<compile_context>
chip_gen: v7x
topology: tpu7x:2x2x1
jax: 0.10.0
libtpu: 0.0.40
codegen_flags: <defaults>
</compile_context>

<pallas_src>
import functools

import numpy as np

import jax
import jax.numpy as jnp
from jax.experimental import pallas as pl
from jax.experimental.pallas import tpu as pltpu


MXU_DTYPE = jnp.bfloat16          # MXU operand / inter-layer activation dtype
VMEM_LIMIT = 32 * 1024 * 1024     # explicit scoped-VMEM budget (safe v5e..v7x)
EPS = 1e-5                        # InstanceNorm2d eps
LANE = 128
_RES_OFF = 128                    # lane-aligned offset of the hidden activation
                                  # inside the residual-block VMEM scratch


def _ru(x, m):
    return (x + m - 1) // m * m


def _valid_mask(Ho, Wo, Wq, Lq_pad):
    """(1, Lq_pad) f32 mask: 1.0 on valid output lanes of the q-layout."""
    m = np.zeros((1, Lq_pad), np.float32)
    for y in range(Ho):
        m[0, y * Wq: y * Wq + Wo] = 1.0
    return jnp.asarray(m)


def _instance_norm(acc, mask, count):
    """InstanceNorm over the valid (masked) lanes of a (C, L) f32 accumulator."""
    inv_n = 1.0 / float(count)
    mean = jnp.sum(acc * mask, axis=1, keepdims=True) * inv_n
    d = (acc - mean) * mask
    var = jnp.sum(d * d, axis=1, keepdims=True) * inv_n
    return (acc - mean) * jax.lax.rsqrt(var + EPS)


# ----------------------------- Pallas kernels --------------------------------

def _conv_in_act_kernel(x_ref, w_ref, mask_ref, o_ref, *, k, s, Wq, L, count,
                        mode, groups):
    """One image: Conv(kxk, stride s via s^2 input phases) + InstanceNorm +
    activation, channels-on-sublanes / spatial-on-lanes layout.

      x_ref   : (s*s, Cin, Lp) bf16  flattened zero-padded input phases
      w_ref   : (k*k, Ct, Cin) bf16  per-tap weight matrices
      mask_ref: (1, L)         f32   1.0 on valid output lanes
      o_ref   : (Ct, L)              output, L is a multiple of 128
    """
    ct = o_ref.shape[0]
    acc = jnp.zeros((ct, L), jnp.float32)
    # Taps unrolled in-kernel: static shifts, vreg accumulation, chained MXU.
    for t in range(k * k):
        dy, dx = t // k, t % k
        ph = (dy % s) * s + (dx % s)
        shift = (dy // s) * Wq + (dx // s)
        slab = x_ref[ph, :, pl.ds(shift, L)]                    # (Cin, L) bf16
        acc = acc + jnp.dot(w_ref[t], slab, preferred_element_type=jnp.float32)

    if mode == "tanh":
        o_ref[...] = jnp.tanh(acc).astype(o_ref.dtype)
        return

    # InstanceNorm (masked stats, pooled over `groups` sub-pixel phases for the
    # up-sampling layers) + ReLU, via static sublane slices (no concatenate).
    m = mask_ref[...]
    c = ct // groups
    inv_n = 1.0 / float(count * groups)
    ssum = jnp.zeros((c, 1), jnp.float32)
    for g in range(groups):
        ssum = ssum + jnp.sum(acc[g * c:(g + 1) * c, :] * m, axis=1,
                              keepdims=True)
    mean = ssum * inv_n
    vsum = jnp.zeros((c, 1), jnp.float32)
    for g in range(groups):
        d = (acc[g * c:(g + 1) * c, :] - mean) * m
        vsum = vsum + jnp.sum(d * d, axis=1, keepdims=True)
    inv_std = jax.lax.rsqrt(vsum * inv_n + EPS)
    for g in range(groups):
        y = (acc[g * c:(g + 1) * c, :] - mean) * inv_std
        o_ref[g * c:(g + 1) * c, :] = jnp.maximum(y, 0.0).astype(o_ref.dtype)


def _res_block_kernel(x_ref, w1_ref, w2_ref, mask_ref, o_ref, h_ref, *, Wq, L,
                      count):
    """Fused residual block (conv3x3+IN+ReLU -> conv3x3+IN -> +identity) for
    one image; the hidden activation never leaves VMEM.

      x_ref : (C, Lp)  bf16  flattened zero-padded input (row pitch == Wq)
      w*_ref: (9, C, C) bf16
      o_ref : (C, L)         block output in the q-layout
      h_ref : (C, Lh)  bf16  VMEM scratch: hidden activation re-materialised in
                             the padded layout of conv2, stored at _RES_OFF.
    """
    C = o_ref.shape[0]
    m = mask_ref[...]

    acc = jnp.zeros((C, L), jnp.float32)
    for t in range(9):
        dy, dx = t // 3, t % 3
        slab = x_ref[:, pl.ds(dy * Wq + dx, L)]
        acc = acc + jnp.dot(w1_ref[t], slab, preferred_element_type=jnp.float32)
    h = jnp.maximum(_instance_norm(acc, m, count), 0.0) * m    # zero the garbage

    # Hidden activation in conv2's padded layout: zero scratch + aligned store.
    h_ref[...] = jnp.zeros_like(h_ref)
    h_ref[:, pl.ds(_RES_OFF, L)] = h.astype(h_ref.dtype)

    acc2 = jnp.zeros((C, L), jnp.float32)
    for t in range(9):
        dy, dx = t // 3, t % 3
        slab = h_ref[:, pl.ds(_RES_OFF + (dy - 1) * Wq + (dx - 1), L)]
        acc2 = acc2 + jnp.dot(w2_ref[t], slab,
                              preferred_element_type=jnp.float32)
    y = _instance_norm(acc2, m, count)
    identity = x_ref[:, pl.ds(Wq + 1, L)].astype(jnp.float32)
    o_ref[...] = (y + identity).astype(o_ref.dtype)


# ----------------------------- layer wrappers --------------------------------

def _conv_in_act(x, wtaps, *, k, s, pad, mode, groups=1, out_dtype=MXU_DTYPE):
    """x: (N, Cin, H, W) bf16 NCHW.  wtaps: (k*k, Ct, Cin) bf16.
    Returns dense (N, Ct, Ho, Wo) in out_dtype."""
    N, Cin, H, W = x.shape
    Ct = int(wtaps.shape[1])
    pt, pb, pleft, pr = pad
    Hp, Wp = H + pt + pb, W + pleft + pr
    Ho, Wo = (Hp - k) // s + 1, (Wp - k) // s + 1
    r = (k - 1) // s                       # per-phase tap overhang
    Hq, Wq = Ho + r, Wo + r
    Lq = Ho * Wq
    Lqp = _ru(Lq, LANE)                    # lane-dense output length
    Lpp = _ru(r * Wq + r + Lqp, LANE)      # flattened phase length (covers taps)

    xpad = jnp.pad(x, ((0, 0), (0, 0), (pt, pb), (pleft, pr)))
    phases = []
    for py in range(s):
        for px in range(s):
            ph = xpad[:, :, py::s, px::s][:, :, :Hq, :Wq]
            ph = jnp.pad(ph, ((0, 0), (0, 0), (0, Hq - ph.shape[2]),
                              (0, Wq - ph.shape[3])))
            phases.append(jnp.pad(ph.reshape(N, Cin, Hq * Wq),
                                  ((0, 0), (0, 0), (0, Lpp - Hq * Wq))))
    xph = jnp.stack(phases, axis=1)                      # (N, s*s, Cin, Lpp)
    mask = _valid_mask(Ho, Wo, Wq, Lqp)

    kernel = functools.partial(_conv_in_act_kernel, k=k, s=s, Wq=Wq, L=Lqp,
                               count=Ho * Wo, mode=mode, groups=groups)
    out = pl.pallas_call(
        kernel,
        out_shape=jax.ShapeDtypeStruct((N, Ct, Lqp), out_dtype),
        grid=(N,),
        in_specs=[
            pl.BlockSpec((None, s * s, Cin, Lpp), lambda n: (n, 0, 0, 0)),
            pl.BlockSpec((k * k, Ct, Cin), lambda n: (0, 0, 0)),
            pl.BlockSpec((1, Lqp), lambda n: (0, 0)),
        ],
        out_specs=pl.BlockSpec((None, Ct, Lqp), lambda n: (n, 0, 0)),
        compiler_params=pltpu.CompilerParams(
            dimension_semantics=("parallel",),
            vmem_limit_bytes=VMEM_LIMIT),
    )(xph, wtaps, mask)
    # Dense NCHW: drop wrap-around / padding lanes.
    return out[:, :, :Lq].reshape(N, Ct, Ho, Wq)[:, :, :, :Wo]


def _res_block(x, w1taps, w2taps):
    """Fused residual block.  x: (N, C, H, W) bf16 NCHW."""
    N, C, H, W = x.shape
    Hp, Wp = H + 2, W + 2
    Ho, Wo = H, W
    Wq = Wo + 2
    Lq = Ho * Wq
    Lqp = _ru(Lq, LANE)
    Lpp = _ru(2 * Wq + 2 + Lqp, LANE)
    Lh = _ru(_RES_OFF + Wq + 1 + Lqp, LANE)

    xpad = jnp.pad(x, ((0, 0), (0, 0), (1, 1), (1, 1)))
    xflat = jnp.pad(xpad.reshape(N, C, Hp * Wp),
                    ((0, 0), (0, 0), (0, Lpp - Hp * Wp)))
    mask = _valid_mask(Ho, Wo, Wq, Lqp)

    kernel = functools.partial(_res_block_kernel, Wq=Wq, L=Lqp, count=Ho * Wo)
    out = pl.pallas_call(
        kernel,
        out_shape=jax.ShapeDtypeStruct((N, C, Lqp), MXU_DTYPE),
        grid=(N,),
        in_specs=[
            pl.BlockSpec((None, C, Lpp), lambda n: (n, 0, 0)),
            pl.BlockSpec((9, C, C), lambda n: (0, 0, 0)),
            pl.BlockSpec((9, C, C), lambda n: (0, 0, 0)),
            pl.BlockSpec((1, Lqp), lambda n: (0, 0)),
        ],
        out_specs=pl.BlockSpec((None, C, Lqp), lambda n: (n, 0, 0)),
        scratch_shapes=[pltpu.VMEM((C, Lh), MXU_DTYPE)],
        compiler_params=pltpu.CompilerParams(
            dimension_semantics=("parallel",),
            vmem_limit_bytes=VMEM_LIMIT),
    )(xflat, w1taps, w2taps, mask)
    return out[:, :, :Lq].reshape(N, C, Ho, Wq)[:, :, :, :Wo]


def _pixel_shuffle2(y):
    """(N, 4*C, H, W) with channel index (ry*2+rx)*C + c -> (N, C, 2H, 2W)."""
    N, c4, H, W = y.shape
    c = c4 // 4
    y = y.reshape(N, 2, 2, c, H, W)
    y = jnp.transpose(y, (0, 3, 4, 1, 5, 2))     # (N, c, H, ry, W, rx)
    return y.reshape(N, c, 2 * H, 2 * W)


# ----------------------------- weight preparation ----------------------------

def _conv_taps(w):
    """(Cout, Cin, k, k) Conv2d weight -> (k*k, Cout, Cin) bf16 tap matrices."""
    co, ci, kh, kw = w.shape
    return jnp.transpose(w, (2, 3, 0, 1)).reshape(kh * kw, co, ci).astype(MXU_DTYPE)


# (output sub-pixel phase, tap offset) -> ConvTranspose kernel row/col index
_KY = {(0, 0): 1, (0, 1): None, (1, 0): 2, (1, 1): 0}


def _convT_subpixel_taps(w):
    """(Cin, Cout, 3, 3) ConvTranspose2d(stride=2, pad=1, out_pad=1) weight ->
    (4, 4*Cout, Cin) bf16 taps of the equivalent stride-1 2x2 sub-pixel conv
    (output channel index = (ry*2+rx)*Cout + co)."""
    ci, co = int(w.shape[0]), int(w.shape[1])
    taps = []
    for diy in (0, 1):
        for dix in (0, 1):
            blocks = []
            for ry in (0, 1):
                for rx in (0, 1):
                    ky, kx = _KY[(ry, diy)], _KY[(rx, dix)]
                    if ky is None or kx is None:
                        blocks.append(jnp.zeros((co, ci), w.dtype))
                    else:
                        blocks.append(w[:, :, ky, kx].T)        # (Cout, Cin)
            taps.append(jnp.concatenate(blocks, axis=0))        # (4*Cout, Cin)
    return jnp.stack(taps, axis=0).astype(MXU_DTYPE)


def init_params(key, in_channels=3, out_channels=3, features=8, n_res=2):
    """Random weights in the PyTorch layouts (Conv2d: (Cout,Cin,kh,kw),
    ConvTranspose2d: (Cin,Cout,kh,kw))."""
    scale = 0.05
    keys = jax.random.split(key, 7 + 2 * n_res)
    p = {}
    p["initial"] = scale * jax.random.normal(keys[0], (features, in_channels, 7, 7), jnp.float32)
    p["down1"] = scale * jax.random.normal(keys[1], (features * 2, features, 3, 3), jnp.float32)
    p["down2"] = scale * jax.random.normal(keys[2], (features * 4, features * 2, 3, 3), jnp.float32)
    res = []
    for i in range(n_res):
        w1 = scale * jax.random.normal(keys[3 + 2 * i], (features * 4, features * 4, 3, 3), jnp.float32)
        w2 = scale * jax.random.normal(keys[4 + 2 * i], (features * 4, features * 4, 3, 3), jnp.float32)
        res.append((w1, w2))
    p["res"] = res
    p["up1"] = scale * jax.random.normal(keys[3 + 2 * n_res], (features * 4, features * 2, 3, 3), jnp.float32)
    p["up2"] = scale * jax.random.normal(keys[4 + 2 * n_res], (features * 2, features, 3, 3), jnp.float32)
    p["final"] = scale * jax.random.normal(keys[5 + 2 * n_res], (out_channels, features, 7, 7), jnp.float32)
    return p


def prepare_params(p):
    """One-time transform to kernel-ready bf16 tap matrices (Ct, Cin per tap)."""
    return {
        "initial": _conv_taps(p["initial"]),
        "down1": _conv_taps(p["down1"]),
        "down2": _conv_taps(p["down2"]),
        "res": [(_conv_taps(w1), _conv_taps(w2)) for (w1, w2) in p["res"]],
        "up1": _convT_subpixel_taps(p["up1"]),
        "up2": _convT_subpixel_taps(p["up2"]),
        "final": _conv_taps(p["final"]),
    }


# ----------------------------- Generator -------------------------------------

def generator_forward(x_nchw, params):
    """x_nchw: (N, Cin, H, W) f32 (PyTorch layout).  Returns (N, Cout, H, W) f32."""
    x = x_nchw.astype(MXU_DTYPE)
    x = _conv_in_act(x, params["initial"], k=7, s=1, pad=(3, 3, 3, 3), mode="relu")
    x = _conv_in_act(x, params["down1"], k=3, s=2, pad=(1, 1, 1, 1), mode="relu")
    x = _conv_in_act(x, params["down2"], k=3, s=2, pad=(1, 1, 1, 1), mode="relu")
    for (w1, w2) in params["res"]:
        x = _res_block(x, w1, w2)
    # ConvTranspose2d(stride=2, k=3, pad=1, out_pad=1) == 2x2 sub-pixel conv + shuffle
    x = _pixel_shuffle2(_conv_in_act(x, params["up1"], k=2, s=1,
                                     pad=(0, 1, 0, 1), mode="relu", groups=4))
    x = _pixel_shuffle2(_conv_in_act(x, params["up2"], k=2, s=1,
                                     pad=(0, 1, 0, 1), mode="relu", groups=4))
    return _conv_in_act(x, params["final"], k=7, s=1, pad=(3, 3, 3, 3),
                        mode="tanh", out_dtype=jnp.float32)


@jax.jit
def generator(x_nchw, params):
    return generator_forward(x_nchw, params)


if __name__ == "__main__":
    key = jax.random.PRNGKey(0)
    kx, kp = jax.random.split(key)
    # small config: in=3, out=3, features=8, n_residual_blocks=2, 16x16 images
    x = jax.random.normal(kx, (2, 3, 16, 16), jnp.float32)   # NCHW like PyTorch
    params = prepare_params(init_params(kp, in_channels=3, out_channels=3,
                                        features=8, n_res=2))
    out = jax.block_until_ready(generator(x, params))
    assert out.shape == (2, 3, 16, 16), out.shape
    assert bool(jnp.all(jnp.isfinite(out)))
    print("KERNEL_OK")
</pallas_src>

<mosaic_0001>
module attributes {stable_mosaic.version = 11 : i64} {
  func.func @_conv_in_act_kernel(%arg0: i32, %arg1: memref<1x1x3x640xbf16, #tpu.memory_space<vmem>>, %arg2: memref<49x8x3xbf16, #tpu.memory_space<vmem>>, %arg3: memref<1x384xf32, #tpu.memory_space<vmem>>, %arg4: memref<1x8x384xbf16, #tpu.memory_space<vmem>>) attributes {dimension_semantics = [#tpu.dimension_semantics<parallel>], iteration_bounds = array<i64: 2>, scalar_prefetch = 0 : i64, scratch_operands = 0 : i64, tpu.core_type = #tpu.core_type<tc>, window_params = [{transform_indices = @transform_0, window_bounds = array<i64: 1, 1, 3, 640>}, {pipeline_mode = #tpu.pipeline_mode<synchronous>, transform_indices = @transform_1, window_bounds = array<i64: 49, 8, 3>}, {pipeline_mode = #tpu.pipeline_mode<synchronous>, transform_indices = @transform_2, window_bounds = array<i64: 1, 384>}, {transform_indices = @transform_3, window_bounds = array<i64: 1, 8, 384>}]} {
    %cst = arith.constant 0.000000e+00 : f32
    %0 = vector.broadcast %cst : f32 to vector<8x384xf32>
    %c0 = arith.constant 0 : index
    %c0_0 = arith.constant 0 : index
    %c0_1 = arith.constant 0 : index
    %c0_2 = arith.constant 0 : index
    %1 = vector.load %arg1[%c0, %c0_0, %c0_1, %c0_2] : memref<1x1x3x640xbf16, #tpu.memory_space<vmem>>, vector<1x1x3x384xbf16>
    %2 = vector.shape_cast %1 : vector<1x1x3x384xbf16> to vector<3x384xbf16>
    %c0_3 = arith.constant 0 : index
    %c0_4 = arith.constant 0 : index
    %c0_5 = arith.constant 0 : index
    %3 = vector.load %arg2[%c0_3, %c0_4, %c0_5] : memref<49x8x3xbf16, #tpu.memory_space<vmem>>, vector<1x8x3xbf16>
    %4 = vector.shape_cast %3 : vector<1x8x3xbf16> to vector<8x3xbf16>
    %cst_6 = arith.constant dense<0.000000e+00> : vector<8x384xf32>
    %5 = tpu.matmul %4, %2, %cst_6 {dimension_numbers = #tpu.dot_dimension_numbers<[1], [0], [0], [1], [0, 0, 1, 1], [], []>} : vector<8x3xbf16>, vector<3x384xbf16>, vector<8x384xf32> -> vector<8x384xf32>
    %6 = arith.addf %0, %5 : vector<8x384xf32>
    %c0_7 = arith.constant 0 : index
    %c0_8 = arith.constant 0 : index
    %c0_9 = arith.constant 0 : index
    %c1 = arith.constant 1 : index
    %7 = vector.load %arg1[%c0_7, %c0_8, %c0_9, %c1] : memref<1x1x3x640xbf16, #tpu.memory_space<vmem>>, vector<1x1x3x384xbf16>
    %8 = vector.shape_cast %7 : vector<1x1x3x384xbf16> to vector<3x384xbf16>
    %c1_10 = arith.constant 1 : index
    %c0_11 = arith.constant 0 : index
    %c0_12 = arith.constant 0 : index
    %9 = vector.load %arg2[%c1_10, %c0_11, %c0_12] : memref<49x8x3xbf16, #tpu.memory_space<vmem>>, vector<1x8x3xbf16>
    %10 = vector.shape_cast %9 : vector<1x8x3xbf16> to vector<8x3xbf16>
    %cst_13 = arith.constant dense<0.000000e+00> : vector<8x384xf32>
    %11 = tpu.matmul %10, %8, %cst_13 {dimension_numbers = #tpu.dot_dimension_numbers<[1], [0], [0], [1], [0, 0, 1, 1], [], []>} : vector<8x3xbf16>, vector<3x384xbf16>, vector<8x384xf32> -> vector<8x384xf32>
    %12 = arith.addf %6, %11 : vector<8x384xf32>
    %c0_14 = arith.constant 0 : index
    %c0_15 = arith.constant 0 : index
    %c0_16 = arith.constant 0 : index
    %c2 = arith.constant 2 : index
    %13 = vector.load %arg1[%c0_14, %c0_15, %c0_16, %c2] : memref<1x1x3x640xbf16, #tpu.memory_space<vmem>>, vector<1x1x3x384xbf16>
    %14 = vector.shape_cast %13 : vector<1x1x3x384xbf16> to vector<3x384xbf16>
    %c2_17 = arith.constant 2 : index
    %c0_18 = arith.constant 0 : index
    %c0_19 = arith.constant 0 : index
    %15 = vector.load %arg2[%c2_17, %c0_18, %c0_19] : memref<49x8x3xbf16, #tpu.memory_space<vmem>>, vector<1x8x3xbf16>
    %16 = vector.shape_cast %15 : vector<1x8x3xbf16> to vector<8x3xbf16>
    %cst_20 = arith.constant dense<0.000000e+00> : vector<8x384xf32>
    %17 = tpu.matmul %16, %14, %cst_20 {dimension_numbers = #tpu.dot_dimension_numbers<[1], [0], [0], [1], [0, 0, 1, 1], [], []>} : vector<8x3xbf16>, vector<3x384xbf16>, vector<8x384xf32> -> vector<8x384xf32>
    %18 = arith.addf %12, %17 : vector<8x384xf32>
    %c0_21 = arith.constant 0 : index
    %c0_22 = arith.constant 0 : index
    %c0_23 = arith.constant 0 : index
    %c3 = arith.constant 3 : index
    %19 = vector.load %arg1[%c0_21, %c0_22, %c0_23, %c3] : memref<1x1x3x640xbf16, #tpu.memory_space<vmem>>, vector<1x1x3x384xbf16>
    %20 = vector.shape_cast %19 : vector<1x1x3x384xbf16> to vector<3x384xbf16>
    %c3_24 = arith.constant 3 : index
    %c0_25 = arith.constant 0 : index
    %c0_26 = arith.constant 0 : index
    %21 = vector.load %arg2[%c3_24, %c0_25, %c0_26] : memref<49x8x3xbf16, #tpu.memory_space<vmem>>, vector<1x8x3xbf16>
    %22 = vector.shape_cast %21 : vector<1x8x3xbf16> to vector<8x3xbf16>
    %cst_27 = arith.constant dense<0.000000e+00> : vector<8x384xf32>
    %23 = tpu.matmul %22, %20, %cst_27 {dimension_numbers = #tpu.dot_dimension_numbers<[1], [0], [0], [1], [0, 0, 1, 1], [], []>} : vector<8x3xbf16>, vector<3x384xbf16>, vector<8x384xf32> -> vector<8x384xf32>
    %24 = arith.addf %18, %23 : vector<8x384xf32>
    %c0_28 = arith.constant 0 : index
    %c0_29 = arith.constant 0 : index
    %c0_30 = arith.constant 0 : index
    %c4 = arith.constant 4 : index
    %25 = vector.load %arg1[%c0_28, %c0_29, %c0_30, %c4] : memref<1x1x3x640xbf16, #tpu.memory_space<vmem>>, vector<1x1x3x384xbf16>
    %26 = vector.shape_cast %25 : vector<1x1x3x384xbf16> to vector<3x384xbf16>
    %c4_31 = arith.constant 4 : index
    %c0_32 = arith.constant 0 : index
    %c0_33 = arith.constant 0 : index
    %27 = vector.load %arg2[%c4_31, %c0_32, %c0_33] : memref<49x8x3xbf16, #tpu.memory_space<vmem>>, vector<1x8x3xbf16>
    %28 = vector.shape_cast %27 : vector<1x8x3xbf16> to vector<8x3xbf16>
    %cst_34 = arith.constant dense<0.000000e+00> : vector<8x384xf32>
    %29 = tpu.matmul %28, %26, %cst_34 {dimension_numbers = #tpu.dot_dimension_numbers<[1], [0], [0], [1], [0, 0, 1, 1], [], []>} : vector<8x3xbf16>, vector<3x384xbf16>, vector<8x384xf32> -> vector<8x384xf32>
    %30 = arith.addf %24, %29 : vector<8x384xf32>
    %c0_35 = arith.constant 0 : index
    %c0_36 = arith.constant 0 : index
    %c0_37 = arith.constant 0 : index
    %c5 = arith.constant 5 : index
    %31 = vector.load %arg1[%c0_35, %c0_36, %c0_37, %c5] : memref<1x1x3x640xbf16, #tpu.memory_space<vmem>>, vector<1x1x3x384xbf16>
    %32 = vector.shape_cast %31 : vector<1x1x3x384xbf16> to vector<3x384xbf16>
    %c5_38 = arith.constant 5 : index
    %c0_39 = arith.constant 0 : index
    %c0_40 = arith.constant 0 : index
    %33 = vector.load %arg2[%c5_38, %c0_39, %c0_40] : memref<49x8x3xbf16, #tpu.memory_space<vmem>>, vector<1x8x3xbf16>
    %34 = vector.shape_cast %33 : vector<1x8x3xbf16> to vector<8x3xbf16>
    %cst_41 = arith.constant dense<0.000000e+00> : vector<8x384xf32>
    %35 = tpu.matmul %34, %32, %cst_41 {dimension_numbers = #tpu.dot_dimension_numbers<[1], [0], [0], [1], [0, 0, 1, 1], [], []>} : vector<8x3xbf16>, vector<3x384xbf16>, vector<8x384xf32> -> vector<8x384xf32>
    %36 = arith.addf %30, %35 : vector<8x384xf32>
    %c0_42 = arith.constant 0 : index
    %c0_43 = arith.constant 0 : index
    %c0_44 = arith.constant 0 : index
    %c6 = arith.constant 6 : index
    %37 = vector.load %arg1[%c0_42, %c0_43, %c0_44, %c6] : memref<1x1x3x640xbf16, #tpu.memory_space<vmem>>, vector<1x1x3x384xbf16>
    %38 = vector.shape_cast %37 : vector<1x1x3x384xbf16> to vector<3x384xbf16>
    %c6_45 = arith.constant 6 : index
    %c0_46 = arith.constant 0 : index
    %c0_47 = arith.constant 0 : index
    %39 = vector.load %arg2[%c6_45, %c0_46, %c0_47] : memref<49x8x3xbf16, #tpu.memory_space<vmem>>, vector<1x8x3xbf16>
    %40 = vector.shape_cast %39 : vector<1x8x3xbf16> to vector<8x3xbf16>
    %cst_48 = arith.constant dense<0.000000e+00> : vector<8x384xf32>
    %41 = tpu.matmul %40, %38, %cst_48 {dimension_numbers = #tpu.dot_dimension_numbers<[1], [0], [0], [1], [0, 0, 1, 1], [], []>} : vector<8x3xbf16>, vector<3x384xbf16>, vector<8x384xf32> -> vector<8x384xf32>
    %42 = arith.addf %36, %41 : vector<8x384xf32>
    %c0_49 = arith.constant 0 : index
    %c0_50 = arith.constant 0 : index
    %c0_51 = arith.constant 0 : index
    %c22 = arith.constant 22 : index
    %43 = vector.load %arg1[%c0_49, %c0_50, %c0_51, %c22] : memref<1x1x3x640xbf16, #tpu.memory_space<vmem>>, vector<1x1x3x384xbf16>
    %44 = vector.shape_cast %43 : vector<1x1x3x384xbf16> to vector<3x384xbf16>
    %c7 = arith.constant 7 : index
    %c0_52 = arith.constant 0 : index
    %c0_53 = arith.constant 0 : index
    %45 = vector.load %arg2[%c7, %c0_52, %c0_53] : memref<49x8x3xbf16, #tpu.memory_space<vmem>>, vector<1x8x3xbf16>
    %46 = vector.shape_cast %45 : vector<1x8x3xbf16> to vector<8x3xbf16>
    %cst_54 = arith.constant dense<0.000000e+00> : vector<8x384xf32>
    %47 = tpu.matmul %46, %44, %cst_54 {dimension_numbers = #tpu.dot_dimension_numbers<[1], [0], [0], [1], [0, 0, 1, 1], [], []>} : vector<8x3xbf16>, vector<3x384xbf16>, vector<8x384xf32> -> vector<8x384xf32>
    %48 = arith.addf %42, %47 : vector<8x384xf32>
    %c0_55 = arith.constant 0 : index
    %c0_56 = arith.constant 0 : index
    %c0_57 = arith.constant 0 : index
    %c23 = arith.constant 23 : index
    %49 = vector.load %arg1[%c0_55, %c0_56, %c0_57, %c23] : memref<1x1x3x640xbf16, #tpu.memory_space<vmem>>, vector<1x1x3x384xbf16>
    %50 = vector.shape_cast %49 : vector<1x1x3x384xbf16> to vector<3x384xbf16>
    %c8 = arith.constant 8 : index
    %c0_58 = arith.constant 0 : index
    %c0_59 = arith.constant 0 : index
    %51 = vector.load %arg2[%c8, %c0_58, %c0_59] : memref<49x8x3xbf16, #tpu.memory_space<vmem>>, vector<1x8x3xbf16>
    %52 = vector.shape_cast %51 : vector<1x8x3xbf16> to vector<8x3xbf16>
    %cst_60 = arith.constant dense<0.000000e+00> : vector<8x384xf32>
    %53 = tpu.matmul %52, %50, %cst_60 {dimension_numbers = #tpu.dot_dimension_numbers<[1], [0], [0], [1], [0, 0, 1, 1], [], []>} : vector<8x3xbf16>, vector<3x384xbf16>, vector<8x384xf32> -> vector<8x384xf32>
    %54 = arith.addf %48, %53 : vector<8x384xf32>
    %c0_61 = arith.constant 0 : index
    %c0_62 = arith.constant 0 : index
    %c0_63 = arith.constant 0 : index
    %c24 = arith.constant 24 : index
    %55 = vector.load %arg1[%c0_61, %c0_62, %c0_63, %c24] : memref<1x1x3x640xbf16, #tpu.memory_space<vmem>>, vector<1x1x3x384xbf16>
    %56 = vector.shape_cast %55 : vector<1x1x3x384xbf16> to vector<3x384xbf16>
    %c9 = arith.constant 9 : index
    %c0_64 = arith.constant 0 : index
    %c0_65 = arith.constant 0 : index
    %57 = vector.load %arg2[%c9, %c0_64, %c0_65] : memref<49x8x3xbf16, #tpu.memory_space<vmem>>, vector<1x8x3xbf16>
    %58 = vector.shape_cast %57 : vector<1x8x3xbf16> to vector<8x3xbf16>
    %cst_66 = arith.constant dense<0.000000e+00> : vector<8x384xf32>
    %59 = tpu.matmul %58, %56, %cst_66 {dimension_numbers = #tpu.dot_dimension_numbers<[1], [0], [0], [1], [0, 0, 1, 1], [], []>} : vector<8x3xbf16>, vector<3x384xbf16>, vector<8x384xf32> -> vector<8x384xf32>
    %60 = arith.addf %54, %59 : vector<8x384xf32>
    %c0_67 = arith.constant 0 : index
    %c0_68 = arith.constant 0 : index
    %c0_69 = arith.constant 0 : index
    %c25 = arith.constant 25 : index
    %61 = vector.load %arg1[%c0_67, %c0_68, %c0_69, %c25] : memref<1x1x3x640xbf16, #tpu.memory_space<vmem>>, vector<1x1x3x384xbf16>
    %62 = vector.shape_cast %61 : vector<1x1x3x384xbf16> to vector<3x384xbf16>
    %c10 = arith.constant 10 : index
    %c0_70 = arith.constant 0 : index
    %c0_71 = arith.constant 0 : index
    %63 = vector.load %arg2[%c10, %c0_70, %c0_71] : memref<49x8x3xbf16, #tpu.memory_space<vmem>>, vector<1x8x3xbf16>
    %64 = vector.shape_cast %63 : vector<1x8x3xbf16> to vector<8x3xbf16>
    %cst_72 = arith.constant dense<0.000000e+00> : vector<8x384xf32>
    %65 = tpu.matmul %64, %62, %cst_72 {dimension_numbers = #tpu.dot_dimension_numbers<[1], [0], [0], [1], [0, 0, 1, 1], [], []>} : vector<8x3xbf16>, vector<3x384xbf16>, vector<8x384xf32> -> vector<8x384xf32>
    %66 = arith.addf %60, %65 : vector<8x384xf32>
    %c0_73 = arith.constant 0 : index
    %c0_74 = arith.constant 0 : index
    %c0_75 = arith.constant 0 : index
    %c26 = arith.constant 26 : index
    %67 = vector.load %arg1[%c0_73, %c0_74, %c0_75, %c26] : memref<1x1x3x640xbf16, #tpu.memory_space<vmem>>, vector<1x1x3x384xbf16>
    %68 = vector.shape_cast %67 : vector<1x1x3x384xbf16> to vector<3x384xbf16>
    %c11 = arith.constant 11 : index
    %c0_76 = arith.constant 0 : index
    %c0_77 = arith.constant 0 : index
    %69 = vector.load %arg2[%c11, %c0_76, %c0_77] : memref<49x8x3xbf16, #tpu.memory_space<vmem>>, vector<1x8x3xbf16>
    %70 = vector.shape_cast %69 : vector<1x8x3xbf16> to vector<8x3xbf16>
    %cst_78 = arith.constant dense<0.000000e+00> : vector<8x384xf32>
    %71 = tpu.matmul %70, %68, %cst_78 {dimension_numbers = #tpu.dot_dimension_numbers<[1], [0], [0], [1], [0, 0, 1, 1], [], []>} : vector<8x3xbf16>, vector<3x384xbf16>, vector<8x384xf32> -> vector<8x384xf32>
    %72 = arith.addf %66, %71 : vector<8x384xf32>
    %c0_79 = arith.constant 0 : index
    %c0_80 = arith.constant 0 : index
    %c0_81 = arith.constant 0 : index
    %c27 = arith.constant 27 : index
    %73 = vector.load %arg1[%c0_79, %c0_80, %c0_81, %c27] : memref<1x1x3x640xbf16, #tpu.memory_space<vmem>>, vector<1x1x3x384xbf16>
    %74 = vector.shape_cast %73 : vector<1x1x3x384xbf16> to vector<3x384xbf16>
    %c12 = arith.constant 12 : index
    %c0_82 = arith.constant 0 : index
    %c0_83 = arith.constant 0 : index
    %75 = vector.load %arg2[%c12, %c0_82, %c0_83] : memref<49x8x3xbf16, #tpu.memory_space<vmem>>, vector<1x8x3xbf16>
    %76 = vector.shape_cast %75 : vector<1x8x3xbf16> to vector<8x3xbf16>
    %cst_84 = arith.constant dense<0.000000e+00> : vector<8x384xf32>
    %77 = tpu.matmul %76, %74, %cst_84 {dimension_numbers = #tpu.dot_dimension_numbers<[1], [0], [0], [1], [0, 0, 1, 1], [], []>} : vector<8x3xbf16>, vector<3x384xbf16>, vector<8x384xf32> -> vector<8x384xf32>
    %78 = arith.addf %72, %77 : vector<8x384xf32>
    %c0_85 = arith.constant 0 : index
    %c0_86 = arith.constant 0 : index
    %c0_87 = arith.constant 0 : index
    %c28 = arith.constant 28 : index
    %79 = vector.load %arg1[%c0_85, %c0_86, %c0_87, %c28] : memref<1x1x3x640xbf16, #tpu.memory_space<vmem>>, vector<1x1x3x384xbf16>
    %80 = vector.shape_cast %79 : vector<1x1x3x384xbf16> to vector<3x384xbf16>
    %c13 = arith.constant 13 : index
    %c0_88 = arith.constant 0 : index
    %c0_89 = arith.constant 0 : index
    %81 = vector.load %arg2[%c13, %c0_88, %c0_89] : memref<49x8x3xbf16, #tpu.memory_space<vmem>>, vector<1x8x3xbf16>
    %82 = vector.shape_cast %81 : vector<1x8x3xbf16> to vector<8x3xbf16>
    %cst_90 = arith.constant dense<0.000000e+00> : vector<8x384xf32>
    %83 = tpu.matmul %82, %80, %cst_90 {dimension_numbers = #tpu.dot_dimension_numbers<[1], [0], [0], [1], [0, 0, 1, 1], [], []>} : vector<8x3xbf16>, vector<3x384xbf16>, vector<8x384xf32> -> vector<8x384xf32>
    %84 = arith.addf %78, %83 : vector<8x384xf32>
    %c0_91 = arith.constant 0 : index
    %c0_92 = arith.constant 0 : index
    %c0_93 = arith.constant 0 : index
    %c44 = arith.constant 44 : index
    %85 = vector.load %arg1[%c0_91, %c0_92, %c0_93, %c44] : memref<1x1x3x640xbf16, #tpu.memory_space<vmem>>, vector<1x1x3x384xbf16>
    %86 = vector.shape_cast %85 : vector<1x1x3x384xbf16> to vector<3x384xbf16>
    %c14 = arith.constant 14 : index
    %c0_94 = arith.constant 0 : index
    %c0_95 = arith.constant 0 : index
    %87 = vector.load %arg2[%c14, %c0_94, %c0_95] : memref<49x8x3xbf16, #tpu.memory_space<vmem>>, vector<1x8x3xbf16>
    %88 = vector.shape_cast %87 : vector<1x8x3xbf16> to vector<8x3xbf16>
    %cst_96 = arith.constant dense<0.000000e+00> : vector<8x384xf32>
    %89 = tpu.matmul %88, %86, %cst_96 {dimension_numbers = #tpu.dot_dimension_numbers<[1], [0], [0], [1], [0, 0, 1, 1], [], []>} : vector<8x3xbf16>, vector<3x384xbf16>, vector<8x384xf32> -> vector<8x384xf32>
    %90 = arith.addf %84, %89 : vector<8x384xf32>
    %c0_97 = arith.constant 0 : index
    %c0_98 = arith.constant 0 : index
    %c0_99 = arith.constant 0 : index
    %c45 = arith.constant 45 : index
    %91 = vector.load %arg1[%c0_97, %c0_98, %c0_99, %c45] : memref<1x1x3x640xbf16, #tpu.memory_space<vmem>>, vector<1x1x3x384xbf16>
    %92 = vector.shape_cast %91 : vector<1x1x3x384xbf16> to vector<3x384xbf16>
    %c15 = arith.constant 15 : index
    %c0_100 = arith.constant 0 : index
    %c0_101 = arith.constant 0 : index
    %93 = vector.load %arg2[%c15, %c0_100, %c0_101] : memref<49x8x3xbf16, #tpu.memory_space<vmem>>, vector<1x8x3xbf16>
    %94 = vector.shape_cast %93 : vector<1x8x3xbf16> to vector<8x3xbf16>
    %cst_102 = arith.constant dense<0.000000e+00> : vector<8x384xf32>
    %95 = tpu.matmul %94, %92, %cst_102 {dimension_numbers = #tpu.dot_dimension_numbers<[1], [0], [0], [1], [0, 0, 1, 1], [], []>} : vector<8x3xbf16>, vector<3x384xbf16>, vector<8x384xf32> -> vector<8x384xf32>
    %96 = arith.addf %90, %95 : vector<8x384xf32>
    %c0_103 = arith.constant 0 : index
    %c0_104 = arith.constant 0 : index
    %c0_105 = arith.constant 0 : index
    %c46 = arith.constant 46 : index
    %97 = vector.load %arg1[%c0_103, %c0_104, %c0_105, %c46] : memref<1x1x3x640xbf16, #tpu.memory_space<vmem>>, vector<1x1x3x384xbf16>
    %98 = vector.shape_cast %97 : vector<1x1x3x384xbf16> to vector<3x384xbf16>
    %c16 = arith.constant 16 : index
    %c0_106 = arith.constant 0 : index
    %c0_107 = arith.constant 0 : index
    %99 = vector.load %arg2[%c16, %c0_106, %c0_107] : memref<49x8x3xbf16, #tpu.memory_space<vmem>>, vector<1x8x3xbf16>
    %100 = vector.shape_cast %99 : vector<1x8x3xbf16> to vector<8x3xbf16>
    %cst_108 = arith.constant dense<0.000000e+00> : vector<8x384xf32>
    %101 = tpu.matmul %100, %98, %cst_108 {dimension_numbers = #tpu.dot_dimension_numbers<[1], [0], [0], [1], [0, 0, 1, 1], [], []>} : vector<8x3xbf16>, vector<3x384xbf16>, vector<8x384xf32> -> vector<8x384xf32>
    %102 = arith.addf %96, %101 : vector<8x384xf32>
    %c0_109 = arith.constant 0 : index
    %c0_110 = arith.constant 0 : index
    %c0_111 = arith.constant 0 : index
    %c47 = arith.constant 47 : index
    %103 = vector.load %arg1[%c0_109, %c0_110, %c0_111, %c47] : memref<1x1x3x640xbf16, #tpu.memory_space<vmem>>, vector<1x1x3x384xbf16>
    %104 = vector.shape_cast %103 : vector<1x1x3x384xbf16> to vector<3x384xbf16>
    %c17 = arith.constant 17 : index
    %c0_112 = arith.constant 0 : index
    %c0_113 = arith.constant 0 : index
    %105 = vector.load %arg2[%c17, %c0_112, %c0_113] : memref<49x8x3xbf16, #tpu.memory_space<vmem>>, vector<1x8x3xbf16>
    %106 = vector.shape_cast %105 : vector<1x8x3xbf16> to vector<8x3xbf16>
    %cst_114 = arith.constant dense<0.000000e+00> : vector<8x384xf32>
    %107 = tpu.matmul %106, %104, %cst_114 {dimension_numbers = #tpu.dot_dimension_numbers<[1], [0], [0], [1], [0, 0, 1, 1], [], []>} : vector<8x3xbf16>, vector<3x384xbf16>, vector<8x384xf32> -> vector<8x384xf32>
    %108 = arith.addf %102, %107 : vector<8x384xf32>
    %c0_115 = arith.constant 0 : index
    %c0_116 = arith.constant 0 : index
    %c0_117 = arith.constant 0 : index
    %c48 = arith.constant 48 : index
    %109 = vector.load %arg1[%c0_115, %c0_116, %c0_117, %c48] : memref<1x1x3x640xbf16, #tpu.memory_space<vmem>>, vector<1x1x3x384xbf16>
    %110 = vector.shape_cast %109 : vector<1x1x3x384xbf16> to vector<3x384xbf16>
    %c18 = arith.constant 18 : index
    %c0_118 = arith.constant 0 : index
    %c0_119 = arith.constant 0 : index
    %111 = vector.load %arg2[%c18, %c0_118, %c0_119] : memref<49x8x3xbf16, #tpu.memory_space<vmem>>, vector<1x8x3xbf16>
    %112 = vector.shape_cast %111 : vector<1x8x3xbf16> to vector<8x3xbf16>
    %cst_120 = arith.constant dense<0.000000e+00> : vector<8x384xf32>
    %113 = tpu.matmul %112, %110, %cst_120 {dimension_numbers = #tpu.dot_dimension_numbers<[1], [0], [0], [1], [0, 0, 1, 1], [], []>} : vector<8x3xbf16>, vector<3x384xbf16>, vector<8x384xf32> -> vector<8x384xf32>
    %114 = arith.addf %108, %113 : vector<8x384xf32>
    %c0_121 = arith.constant 0 : index
    %c0_122 = arith.constant 0 : index
    %c0_123 = arith.constant 0 : index
    %c49 = arith.constant 49 : index
    %115 = vector.load %arg1[%c0_121, %c0_122, %c0_123, %c49] : memref<1x1x3x640xbf16, #tpu.memory_space<vmem>>, vector<1x1x3x384xbf16>
    %116 = vector.shape_cast %115 : vector<1x1x3x384xbf16> to vector<3x384xbf16>
    %c19 = arith.constant 19 : index
    %c0_124 = arith.constant 0 : index
    %c0_125 = arith.constant 0 : index
    %117 = vector.load %arg2[%c19, %c0_124, %c0_125] : memref<49x8x3xbf16, #tpu.memory_space<vmem>>, vector<1x8x3xbf16>
    %118 = vector.shape_cast %117 : vector<1x8x3xbf16> to vector<8x3xbf16>
    %cst_126 = arith.constant dense<0.000000e+00> : vector<8x384xf32>
    %119 = tpu.matmul %118, %116, %cst_126 {dimension_numbers = #tpu.dot_dimension_numbers<[1], [0], [0], [1], [0, 0, 1, 1], [], []>} : vector<8x3xbf16>, vector<3x384xbf16>, vector<8x384xf32> -> vector<8x384xf32>
    %120 = arith.addf %114, %119 : vector<8x384xf32>
    %c0_127 = arith.constant 0 : index
    %c0_128 = arith.constant 0 : index
    %c0_129 = arith.constant 0 : index
    %c50 = arith.constant 50 : index
    %121 = vector.load %arg1[%c0_127, %c0_128, %c0_129, %c50] : memref<1x1x3x640xbf16, #tpu.memory_space<vmem>>, vector<1x1x3x384xbf16>
    %122 = vector.shape_cast %121 : vector<1x1x3x384xbf16> to vector<3x384xbf16>
    %c20 = arith.constant 20 : index
    %c0_130 = arith.constant 0 : index
    %c0_131 = arith.constant 0 : index
    %123 = vector.load %arg2[%c20, %c0_130, %c0_131] : memref<49x8x3xbf16, #tpu.memory_space<vmem>>, vector<1x8x3xbf16>
    %124 = vector.shape_cast %123 : vector<1x8x3xbf16> to vector<8x3xbf16>
    %cst_132 = arith.constant dense<0.000000e+00> : vector<8x384xf32>
    %125 = tpu.matmul %124, %122, %cst_132 {dimension_numbers = #tpu.dot_dimension_numbers<[1], [0], [0], [1], [0, 0, 1, 1], [], []>} : vector<8x3xbf16>, vector<3x384xbf16>, vector<8x384xf32> -> vector<8x384xf32>
    %126 = arith.addf %120, %125 : vector<8x384xf32>
    %c0_133 = arith.constant 0 : index
    %c0_134 = arith.constant 0 : index
    %c0_135 = arith.constant 0 : index
    %c66 = arith.constant 66 : index
    %127 = vector.load %arg1[%c0_133, %c0_134, %c0_135, %c66] : memref<1x1x3x640xbf16, #tpu.memory_space<vmem>>, vector<1x1x3x384xbf16>
    %128 = vector.shape_cast %127 : vector<1x1x3x384xbf16> to vector<3x384xbf16>
    %c21 = arith.constant 21 : index
    %c0_136 = arith.constant 0 : index
    %c0_137 = arith.constant 0 : index
    %129 = vector.load %arg2[%c21, %c0_136, %c0_137] : memref<49x8x3xbf16, #tpu.memory_space<vmem>>, vector<1x8x3xbf16>
    %130 = vector.shape_cast %129 : vector<1x8x3xbf16> to vector<8x3xbf16>
    %cst_138 = arith.constant dense<0.000000e+00> : vector<8x384xf32>
    %131 = tpu.matmul %130, %128, %cst_138 {dimension_numbers = #tpu.dot_dimension_numbers<[1], [0], [0], [1], [0, 0, 1, 1], [], []>} : vector<8x3xbf16>, vector<3x384xbf16>, vector<8x384xf32> -> vector<8x384xf32>
    %132 = arith.addf %126, %131 : vector<8x384xf32>
    %c0_139 = arith.constant 0 : index
    %c0_140 = arith.constant 0 : index
    %c0_141 = arith.constant 0 : index
    %c67 = arith.constant 67 : index
    %133 = vector.load %arg1[%c0_139, %c0_140, %c0_141, %c67] : memref<1x1x3x640xbf16, #tpu.memory_space<vmem>>, vector<1x1x3x384xbf16>
    %134 = vector.shape_cast %133 : vector<1x1x3x384xbf16> to vector<3x384xbf16>
    %c22_142 = arith.constant 22 : index
    %c0_143 = arith.constant 0 : index
    %c0_144 = arith.constant 0 : index
    %135 = vector.load %arg2[%c22_142, %c0_143, %c0_144] : memref<49x8x3xbf16, #tpu.memory_space<vmem>>, vector<1x8x3xbf16>
    %136 = vector.shape_cast %135 : vector<1x8x3xbf16> to vector<8x3xbf16>
    %cst_145 = arith.constant dense<0.000000e+00> : vector<8x384xf32>
    %137 = tpu.matmul %136, %134, %cst_145 {dimension_numbers = #tpu.dot_dimension_numbers<[1], [0], [0], [1], [0, 0, 1, 1], [], []>} : vector<8x3xbf16>, vector<3x384xbf16>, vector<8x384xf32> -> vector<8x384xf32>
    %138 = arith.addf %132, %137 : vector<8x384xf32>
    %c0_146 = arith.constant 0 : index
    %c0_147 = arith.constant 0 : index
    %c0_148 = arith.constant 0 : index
    %c68 = arith.constant 68 : index
    %139 = vector.load %arg1[%c0_146, %c0_147, %c0_148, %c68] : memref<1x1x3x640xbf16, #tpu.memory_space<vmem>>, vector<1x1x3x384xbf16>
    %140 = vector.shape_cast %139 : vector<1x1x3x384xbf16> to vector<3x384xbf16>
    %c23_149 = arith.constant 23 : index
    %c0_150 = arith.constant 0 : index
    %c0_151 = arith.constant 0 : index
    %141 = vector.load %arg2[%c23_149, %c0_150, %c0_151] : memref<49x8x3xbf16, #tpu.memory_space<vmem>>, vector<1x8x3xbf16>
    %142 = vector.shape_cast %141 : vector<1x8x3xbf16> to vector<8x3xbf16>
    %cst_152 = arith.constant dense<0.000000e+00> : vector<8x384xf32>
    %143 = tpu.matmul %142, %140, %cst_152 {dimension_numbers = #tpu.dot_dimension_numbers<[1], [0], [0], [1], [0, 0, 1, 1], [], []>} : vector<8x3xbf16>, vector<3x384xbf16>, vector<8x384xf32> -> vector<8x384xf32>
    %144 = arith.addf %138, %143 : vector<8x384xf32>
    %c0_153 = arith.constant 0 : index
    %c0_154 = arith.constant 0 : index
    %c0_155 = arith.constant 0 : index
    %c69 = arith.constant 69 : index
    %145 = vector.load %arg1[%c0_153, %c0_154, %c0_155, %c69] : memref<1x1x3x640xbf16, #tpu.memory_space<vmem>>, vector<1x1x3x384xbf16>
    %146 = vector.shape_cast %145 : vector<1x1x3x384xbf16> to vector<3x384xbf16>
    %c24_156 = arith.constant 24 : index
    %c0_157 = arith.constant 0 : index
    %c0_158 = arith.constant 0 : index
    %147 = vector.load %arg2[%c24_156, %c0_157, %c0_158] : memref<49x8x3xbf16, #tpu.memory_space<vmem>>, vector<1x8x3xbf16>
    %148 = vector.shape_cast %147 : vector<1x8x3xbf16> to vector<8x3xbf16>
    %cst_159 = arith.constant dense<0.000000e+00> : vector<8x384xf32>
    %149 = tpu.matmul %148, %146, %cst_159 {dimension_numbers = #tpu.dot_dimension_numbers<[1], [0], [0], [1], [0, 0, 1, 1], [], []>} : vector<8x3xbf16>, vector<3x384xbf16>, vector<8x384xf32> -> vector<8x384xf32>
    %150 = arith.addf %144, %149 : vector<8x384xf32>
    %c0_160 = arith.constant 0 : index
    %c0_161 = arith.constant 0 : index
    %c0_162 = arith.constant 0 : index
    %c70 = arith.constant 70 : index
    %151 = vector.load %arg1[%c0_160, %c0_161, %c0_162, %c70] : memref<1x1x3x640xbf16, #tpu.memory_space<vmem>>, vector<1x1x3x384xbf16>
    %152 = vector.shape_cast %151 : vector<1x1x3x384xbf16> to vector<3x384xbf16>
    %c25_163 = arith.constant 25 : index
    %c0_164 = arith.constant 0 : index
    %c0_165 = arith.constant 0 : index
    %153 = vector.load %arg2[%c25_163, %c0_164, %c0_165] : memref<49x8x3xbf16, #tpu.memory_space<vmem>>, vector<1x8x3xbf16>
    %154 = vector.shape_cast %153 : vector<1x8x3xbf16> to vector<8x3xbf16>
    %cst_166 = arith.constant dense<0.000000e+00> : vector<8x384xf32>
    %155 = tpu.matmul %154, %152, %cst_166 {dimension_numbers = #tpu.dot_dimension_numbers<[1], [0], [0], [1], [0, 0, 1, 1], [], []>} : vector<8x3xbf16>, vector<3x384xbf16>, vector<8x384xf32> -> vector<8x384xf32>
    %156 = arith.addf %150, %155 : vector<8x384xf32>
    %c0_167 = arith.constant 0 : index
    %c0_168 = arith.constant 0 : index
    %c0_169 = arith.constant 0 : index
    %c71 = arith.constant 71 : index
    %157 = vector.load %arg1[%c0_167, %c0_168, %c0_169, %c71] : memref<1x1x3x640xbf16, #tpu.memory_space<vmem>>, vector<1x1x3x384xbf16>
    %158 = vector.shape_cast %157 : vector<1x1x3x384xbf16> to vector<3x384xbf16>
    %c26_170 = arith.constant 26 : index
    %c0_171 = arith.constant 0 : index
    %c0_172 = arith.constant 0 : index
    %159 = vector.load %arg2[%c26_170, %c0_171, %c0_172] : memref<49x8x3xbf16, #tpu.memory_space<vmem>>, vector<1x8x3xbf16>
    %160 = vector.shape_cast %159 : vector<1x8x3xbf16> to vector<8x3xbf16>
    %cst_173 = arith.constant dense<0.000000e+00> : vector<8x384xf32>
    %161 = tpu.matmul %160, %158, %cst_173 {dimension_numbers = #tpu.dot_dimension_numbers<[1], [0], [0], [1], [0, 0, 1, 1], [], []>} : vector<8x3xbf16>, vector<3x384xbf16>, vector<8x384xf32> -> vector<8x384xf32>
    %162 = arith.addf %156, %161 : vector<8x384xf32>
    %c0_174 = arith.constant 0 : index
    %c0_175 = arith.constant 0 : index
    %c0_176 = arith.constant 0 : index
    %c72 = arith.constant 72 : index
    %163 = vector.load %arg1[%c0_174, %c0_175, %c0_176, %c72] : memref<1x1x3x640xbf16, #tpu.memory_space<vmem>>, vector<1x1x3x384xbf16>
    %164 = vector.shape_cast %163 : vector<1x1x3x384xbf16> to vector<3x384xbf16>
    %c27_177 = arith.constant 27 : index
    %c0_178 = arith.constant 0 : index
    %c0_179 = arith.constant 0 : index
    %165 = vector.load %arg2[%c27_177, %c0_178, %c0_179] : memref<49x8x3xbf16, #tpu.memory_space<vmem>>, vector<1x8x3xbf16>
    %166 = vector.shape_cast %165 : vector<1x8x3xbf16> to vector<8x3xbf16>
    %cst_180 = arith.constant dense<0.000000e+00> : vector<8x384xf32>
    %167 = tpu.matmul %166, %164, %cst_180 {dimension_numbers = #tpu.dot_dimension_numbers<[1], [0], [0], [1], [0, 0, 1, 1], [], []>} : vector<8x3xbf16>, vector<3x384xbf16>, vector<8x384xf32> -> vector<8x384xf32>
    %168 = arith.addf %162, %167 : vector<8x384xf32>
    %c0_181 = arith.constant 0 : index
    %c0_182 = arith.constant 0 : index
    %c0_183 = arith.constant 0 : index
    %c88 = arith.constant 88 : index
    %169 = vector.load %arg1[%c0_181, %c0_182, %c0_183, %c88] : memref<1x1x3x640xbf16, #tpu.memory_space<vmem>>, vector<1x1x3x384xbf16>
    %170 = vector.shape_cast %169 : vector<1x1x3x384xbf16> to vector<3x384xbf16>
    %c28_184 = arith.constant 28 : index
    %c0_185 = arith.constant 0 : index
    %c0_186 = arith.constant 0 : index
    %171 = vector.load %arg2[%c28_184, %c0_185, %c0_186] : memref<49x8x3xbf16, #tpu.memory_space<vmem>>, vector<1x8x3xbf16>
    %172 = vector.shape_cast %171 : vector<1x8x3xbf16> to vector<8x3xbf16>
    %cst_187 = arith.constant dense<0.000000e+00> : vector<8x384xf32>
    %173 = tpu.matmul %172, %170, %cst_187 {dimension_numbers = #tpu.dot_dimension_numbers<[1], [0], [0], [1], [0, 0, 1, 1], [], []>} : vector<8x3xbf16>, vector<3x384xbf16>, vector<8x384xf32> -> vector<8x384xf32>
    %174 = arith.addf %168, %173 : vector<8x384xf32>
    %c0_188 = arith.constant 0 : index
    %c0_189 = arith.constant 0 : index
    %c0_190 = arith.constant 0 : index
    %c89 = arith.constant 89 : index
    %175 = vector.load %arg1[%c0_188, %c0_189, %c0_190, %c89] : memref<1x1x3x640xbf16, #tpu.memory_space<vmem>>, vector<1x1x3x384xbf16>
    %176 = vector.shape_cast %175 : vector<1x1x3x384xbf16> to vector<3x384xbf16>
    %c29 = arith.constant 29 : index
    %c0_191 = arith.constant 0 : index
    %c0_192 = arith.constant 0 : index
    %177 = vector.load %arg2[%c29, %c0_191, %c0_192] : memref<49x8x3xbf16, #tpu.memory_space<vmem>>, vector<1x8x3xbf16>
    %178 = vector.shape_cast %177 : vector<1x8x3xbf16> to vector<8x3xbf16>
    %cst_193 = arith.constant dense<0.000000e+00> : vector<8x384xf32>
    %179 = tpu.matmul %178, %176, %cst_193 {dimension_numbers = #tpu.dot_dimension_numbers<[1], [0], [0], [1], [0, 0, 1, 1], [], []>} : vector<8x3xbf16>, vector<3x384xbf16>, vector<8x384xf32> -> vector<8x384xf32>
    %180 = arith.addf %174, %179 : vector<8x384xf32>
    %c0_194 = arith.constant 0 : index
    %c0_195 = arith.constant 0 : index
    %c0_196 = arith.constant 0 : index
    %c90 = arith.constant 90 : index
    %181 = vector.load %arg1[%c0_194, %c0_195, %c0_196, %c90] : memref<1x1x3x640xbf16, #tpu.memory_space<vmem>>, vector<1x1x3x384xbf16>
    %182 = vector.shape_cast %181 : vector<1x1x3x384xbf16> to vector<3x384xbf16>
    %c30 = arith.constant 30 : index
    %c0_197 = arith.constant 0 : index
    %c0_198 = arith.constant 0 : index
    %183 = vector.load %arg2[%c30, %c0_197, %c0_198] : memref<49x8x3xbf16, #tpu.memory_space<vmem>>, vector<1x8x3xbf16>
    %184 = vector.shape_cast %183 : vector<1x8x3xbf16> to vector<8x3xbf16>
    %cst_199 = arith.constant dense<0.000000e+00> : vector<8x384xf32>
    %185 = tpu.matmul %184, %182, %cst_199 {dimension_numbers = #tpu.dot_dimension_numbers<[1], [0], [0], [1], [0, 0, 1, 1], [], []>} : vector<8x3xbf16>, vector<3x384xbf16>, vector<8x384xf32> -> vector<8x384xf32>
    %186 = arith.addf %180, %185 : vector<8x384xf32>
    %c0_200 = arith.constant 0 : index
    %c0_201 = arith.constant 0 : index
    %c0_202 = arith.constant 0 : index
    %c91 = arith.constant 91 : index
    %187 = vector.load %arg1[%c0_200, %c0_201, %c0_202, %c91] : memref<1x1x3x640xbf16, #tpu.memory_space<vmem>>, vector<1x1x3x384xbf16>
    %188 = vector.shape_cast %187 : vector<1x1x3x384xbf16> to vector<3x384xbf16>
    %c31 = arith.constant 31 : index
    %c0_203 = arith.constant 0 : index
    %c0_204 = arith.constant 0 : index
    %189 = vector.load %arg2[%c31, %c0_203, %c0_204] : memref<49x8x3xbf16, #tpu.memory_space<vmem>>, vector<1x8x3xbf16>
    %190 = vector.shape_cast %189 : vector<1x8x3xbf16> to vector<8x3xbf16>
    %cst_205 = arith.constant dense<0.000000e+00> : vector<8x384xf32>
    %191 = tpu.matmul %190, %188, %cst_205 {dimension_numbers = #tpu.dot_dimension_numbers<[1], [0], [0], [1], [0, 0, 1, 1], [], []>} : vector<8x3xbf16>, vector<3x384xbf16>, vector<8x384xf32> -> vector<8x384xf32>
    %192 = arith.addf %186, %191 : vector<8x384xf32>
    %c0_206 = arith.constant 0 : index
    %c0_207 = arith.constant 0 : index
    %c0_208 = arith.constant 0 : index
    %c92 = arith.constant 92 : index
    %193 = vector.load %arg1[%c0_206, %c0_207, %c0_208, %c92] : memref<1x1x3x640xbf16, #tpu.memory_space<vmem>>, vector<1x1x3x384xbf16>
    %194 = vector.shape_cast %193 : vector<1x1x3x384xbf16> to vector<3x384xbf16>
    %c32 = arith.constant 32 : index
    %c0_209 = arith.constant 0 : index
    %c0_210 = arith.constant 0 : index
    %195 = vector.load %arg2[%c32, %c0_209, %c0_210] : memref<49x8x3xbf16, #tpu.memory_space<vmem>>, vector<1x8x3xbf16>
    %196 = vector.shape_cast %195 : vector<1x8x3xbf16> to vector<8x3xbf16>
    %cst_211 = arith.constant dense<0.000000e+00> : vector<8x384xf32>
    %197 = tpu.matmul %196, %194, %cst_211 {dimension_numbers = #tpu.dot_dimension_numbers<[1], [0], [0], [1], [0, 0, 1, 1], [], []>} : vector<8x3xbf16>, vector<3x384xbf16>, vector<8x384xf32> -> vector<8x384xf32>
    %198 = arith.addf %192, %197 : vector<8x384xf32>
    %c0_212 = arith.constant 0 : index
    %c0_213 = arith.constant 0 : index
    %c0_214 = arith.constant 0 : index
    %c93 = arith.constant 93 : index
    %199 = vector.load %arg1[%c0_212, %c0_213, %c0_214, %c93] : memref<1x1x3x640xbf16, #tpu.memory_space<vmem>>, vector<1x1x3x384xbf16>
    %200 = vector.shape_cast %199 : vector<1x1x3x384xbf16> to vector<3x384xbf16>
    %c33 = arith.constant 33 : index
    %c0_215 = arith.constant 0 : index
    %c0_216 = arith.constant 0 : index
    %201 = vector.load %arg2[%c33, %c0_215, %c0_216] : memref<49x8x3xbf16, #tpu.memory_space<vmem>>, vector<1x8x3xbf16>
    %202 = vector.shape_cast %201 : vector<1x8x3xbf16> to vector<8x3xbf16>
    %cst_217 = arith.constant dense<0.000000e+00> : vector<8x384xf32>
    %203 = tpu.matmul %202, %200, %cst_217 {dimension_numbers = #tpu.dot_dimension_numbers<[1], [0], [0], [1], [0, 0, 1, 1], [], []>} : vector<8x3xbf16>, vector<3x384xbf16>, vector<8x384xf32> -> vector<8x384xf32>
    %204 = arith.addf %198, %203 : vector<8x384xf32>
    %c0_218 = arith.constant 0 : index
    %c0_219 = arith.constant 0 : index
    %c0_220 = arith.constant 0 : index
    %c94 = arith.constant 94 : index
    %205 = vector.load %arg1[%c0_218, %c0_219, %c0_220, %c94] : memref<1x1x3x640xbf16, #tpu.memory_space<vmem>>, vector<1x1x3x384xbf16>
    %206 = vector.shape_cast %205 : vector<1x1x3x384xbf16> to vector<3x384xbf16>
    %c34 = arith.constant 34 : index
    %c0_221 = arith.constant 0 : index
    %c0_222 = arith.constant 0 : index
    %207 = vector.load %arg2[%c34, %c0_221, %c0_222] : memref<49x8x3xbf16, #tpu.memory_space<vmem>>, vector<1x8x3xbf16>
    %208 = vector.shape_cast %207 : vector<1x8x3xbf16> to vector<8x3xbf16>
    %cst_223 = arith.constant dense<0.000000e+00> : vector<8x384xf32>
    %209 = tpu.matmul %208, %206, %cst_223 {dimension_numbers = #tpu.dot_dimension_numbers<[1], [0], [0], [1], [0, 0, 1, 1], [], []>} : vector<8x3xbf16>, vector<3x384xbf16>, vector<8x384xf32> -> vector<8x384xf32>
    %210 = arith.addf %204, %209 : vector<8x384xf32>
    %c0_224 = arith.constant 0 : index
    %c0_225 = arith.constant 0 : index
    %c0_226 = arith.constant 0 : index
    %c110 = arith.constant 110 : index
    %211 = vector.load %arg1[%c0_224, %c0_225, %c0_226, %c110] : memref<1x1x3x640xbf16, #tpu.memory_space<vmem>>, vector<1x1x3x384xbf16>
    %212 = vector.shape_cast %211 : vector<1x1x3x384xbf16> to vector<3x384xbf16>
    %c35 = arith.constant 35 : index
    %c0_227 = arith.constant 0 : index
    %c0_228 = arith.constant 0 : index
    %213 = vector.load %arg2[%c35, %c0_227, %c0_228] : memref<49x8x3xbf16, #tpu.memory_space<vmem>>, vector<1x8x3xbf16>
    %214 = vector.shape_cast %213 : vector<1x8x3xbf16> to vector<8x3xbf16>
    %cst_229 = arith.constant dense<0.000000e+00> : vector<8x384xf32>
    %215 = tpu.matmul %214, %212, %cst_229 {dimension_numbers = #tpu.dot_dimension_numbers<[1], [0], [0], [1], [0, 0, 1, 1], [], []>} : vector<8x3xbf16>, vector<3x384xbf16>, vector<8x384xf32> -> vector<8x384xf32>
    %216 = arith.addf %210, %215 : vector<8x384xf32>
    %c0_230 = arith.constant 0 : index
    %c0_231 = arith.constant 0 : index
    %c0_232 = arith.constant 0 : index
    %c111 = arith.constant 111 : index
    %217 = vector.load %arg1[%c0_230, %c0_231, %c0_232, %c111] : memref<1x1x3x640xbf16, #tpu.memory_space<vmem>>, vector<1x1x3x384xbf16>
    %218 = vector.shape_cast %217 : vector<1x1x3x384xbf16> to vector<3x384xbf16>
    %c36 = arith.constant 36 : index
    %c0_233 = arith.constant 0 : index
    %c0_234 = arith.constant 0 : index
    %219 = vector.load %arg2[%c36, %c0_233, %c0_234] : memref<49x8x3xbf16, #tpu.memory_space<vmem>>, vector<1x8x3xbf16>
    %220 = vector.shape_cast %219 : vector<1x8x3xbf16> to vector<8x3xbf16>
    %cst_235 = arith.constant dense<0.000000e+00> : vector<8x384xf32>
    %221 = tpu.matmul %220, %218, %cst_235 {dimension_numbers = #tpu.dot_dimension_numbers<[1], [0], [0], [1], [0, 0, 1, 1], [], []>} : vector<8x3xbf16>, vector<3x384xbf16>, vector<8x384xf32> -> vector<8x384xf32>
    %222 = arith.addf %216, %221 : vector<8x384xf32>
    %c0_236 = arith.constant 0 : index
    %c0_237 = arith.constant 0 : index
    %c0_238 = arith.constant 0 : index
    %c112 = arith.constant 112 : index
    %223 = vector.load %arg1[%c0_236, %c0_237, %c0_238, %c112] : memref<1x1x3x640xbf16, #tpu.memory_space<vmem>>, vector<1x1x3x384xbf16>
    %224 = vector.shape_cast %223 : vector<1x1x3x384xbf16> to vector<3x384xbf16>
    %c37 = arith.constant 37 : index
    %c0_239 = arith.constant 0 : index
    %c0_240 = arith.constant 0 : index
    %225 = vector.load %arg2[%c37, %c0_239, %c0_240] : memref<49x8x3xbf16, #tpu.memory_space<vmem>>, vector<1x8x3xbf16>
    %226 = vector.shape_cast %225 : vector<1x8x3xbf16> to vector<8x3xbf16>
    %cst_241 = arith.constant dense<0.000000e+00> : vector<8x384xf32>
    %227 = tpu.matmul %226, %224, %cst_241 {dimension_numbers = #tpu.dot_dimension_numbers<[1], [0], [0], [1], [0, 0, 1, 1], [], []>} : vector<8x3xbf16>, vector<3x384xbf16>, vector<8x384xf32> -> vector<8x384xf32>
    %228 = arith.addf %222, %227 : vector<8x384xf32>
    %c0_242 = arith.constant 0 : index
    %c0_243 = arith.constant 0 : index
    %c0_244 = arith.constant 0 : index
    %c113 = arith.constant 113 : index
    %229 = vector.load %arg1[%c0_242, %c0_243, %c0_244, %c113] : memref<1x1x3x640xbf16, #tpu.memory_space<vmem>>, vector<1x1x3x384xbf16>
    %230 = vector.shape_cast %229 : vector<1x1x3x384xbf16> to vector<3x384xbf16>
    %c38 = arith.constant 38 : index
    %c0_245 = arith.constant 0 : index
    %c0_246 = arith.constant 0 : index
    %231 = vector.load %arg2[%c38, %c0_245, %c0_246] : memref<49x8x3xbf16, #tpu.memory_space<vmem>>, vector<1x8x3xbf16>
    %232 = vector.shape_cast %231 : vector<1x8x3xbf16> to vector<8x3xbf16>
    %cst_247 = arith.constant dense<0.000000e+00> : vector<8x384xf32>
    %233 = tpu.matmul %232, %230, %cst_247 {dimension_numbers = #tpu.dot_dimension_numbers<[1], [0], [0], [1], [0, 0, 1, 1], [], []>} : vector<8x3xbf16>, vector<3x384xbf16>, vector<8x384xf32> -> vector<8x384xf32>
    %234 = arith.addf %228, %233 : vector<8x384xf32>
    %c0_248 = arith.constant 0 : index
    %c0_249 = arith.constant 0 : index
    %c0_250 = arith.constant 0 : index
    %c114 = arith.constant 114 : index
    %235 = vector.load %arg1[%c0_248, %c0_249, %c0_250, %c114] : memref<1x1x3x640xbf16, #tpu.memory_space<vmem>>, vector<1x1x3x384xbf16>
    %236 = vector.shape_cast %235 : vector<1x1x3x384xbf16> to vector<3x384xbf16>
    %c39 = arith.constant 39 : index
    %c0_251 = arith.constant 0 : index
    %c0_252 = arith.constant 0 : index
    %237 = vector.load %arg2[%c39, %c0_251, %c0_252] : memref<49x8x3xbf16, #tpu.memory_space<vmem>>, vector<1x8x3xbf16>
    %238 = vector.shape_cast %237 : vector<1x8x3xbf16> to vector<8x3xbf16>
    %cst_253 = arith.constant dense<0.000000e+00> : vector<8x384xf32>
    %239 = tpu.matmul %238, %236, %cst_253 {dimension_numbers = #tpu.dot_dimension_numbers<[1], [0], [0], [1], [0, 0, 1, 1], [], []>} : vector<8x3xbf16>, vector<3x384xbf16>, vector<8x384xf32> -> vector<8x384xf32>
    %240 = arith.addf %234, %239 : vector<8x384xf32>
    %c0_254 = arith.constant 0 : index
    %c0_255 = arith.constant 0 : index
    %c0_256 = arith.constant 0 : index
    %c115 = arith.constant 115 : index
    %241 = vector.load %arg1[%c0_254, %c0_255, %c0_256, %c115] : memref<1x1x3x640xbf16, #tpu.memory_space<vmem>>, vector<1x1x3x384xbf16>
    %242 = vector.shape_cast %241 : vector<1x1x3x384xbf16> to vector<3x384xbf16>
    %c40 = arith.constant 40 : index
    %c0_257 = arith.constant 0 : index
    %c0_258 = arith.constant 0 : index
    %243 = vector.load %arg2[%c40, %c0_257, %c0_258] : memref<49x8x3xbf16, #tpu.memory_space<vmem>>, vector<1x8x3xbf16>
    %244 = vector.shape_cast %243 : vector<1x8x3xbf16> to vector<8x3xbf16>
    %cst_259 = arith.constant dense<0.000000e+00> : vector<8x384xf32>
    %245 = tpu.matmul %244, %242, %cst_259 {dimension_numbers = #tpu.dot_dimension_numbers<[1], [0], [0], [1], [0, 0, 1, 1], [], []>} : vector<8x3xbf16>, vector<3x384xbf16>, vector<8x384xf32> -> vector<8x384xf32>
    %246 = arith.addf %240, %245 : vector<8x384xf32>
    %c0_260 = arith.constant 0 : index
    %c0_261 = arith.constant 0 : index
    %c0_262 = arith.constant 0 : index
    %c116 = arith.constant 116 : index
    %247 = vector.load %arg1[%c0_260, %c0_261, %c0_262, %c116] : memref<1x1x3x640xbf16, #tpu.memory_space<vmem>>, vector<1x1x3x384xbf16>
    %248 = vector.shape_cast %247 : vector<1x1x3x384xbf16> to vector<3x384xbf16>
    %c41 = arith.constant 41 : index
    %c0_263 = arith.constant 0 : index
    %c0_264 = arith.constant 0 : index
    %249 = vector.load %arg2[%c41, %c0_263, %c0_264] : memref<49x8x3xbf16, #tpu.memory_space<vmem>>, vector<1x8x3xbf16>
    %250 = vector.shape_cast %249 : vector<1x8x3xbf16> to vector<8x3xbf16>
    %cst_265 = arith.constant dense<0.000000e+00> : vector<8x384xf32>
    %251 = tpu.matmul %250, %248, %cst_265 {dimension_numbers = #tpu.dot_dimension_numbers<[1], [0], [0], [1], [0, 0, 1, 1], [], []>} : vector<8x3xbf16>, vector<3x384xbf16>, vector<8x384xf32> -> vector<8x384xf32>
    %252 = arith.addf %246, %251 : vector<8x384xf32>
    %c0_266 = arith.constant 0 : index
    %c0_267 = arith.constant 0 : index
    %c0_268 = arith.constant 0 : index
    %c132 = arith.constant 132 : index
    %253 = vector.load %arg1[%c0_266, %c0_267, %c0_268, %c132] : memref<1x1x3x640xbf16, #tpu.memory_space<vmem>>, vector<1x1x3x384xbf16>
    %254 = vector.shape_cast %253 : vector<1x1x3x384xbf16> to vector<3x384xbf16>
    %c42 = arith.constant 42 : index
    %c0_269 = arith.constant 0 : index
    %c0_270 = arith.constant 0 : index
    %255 = vector.load %arg2[%c42, %c0_269, %c0_270] : memref<49x8x3xbf16, #tpu.memory_space<vmem>>, vector<1x8x3xbf16>
    %256 = vector.shape_cast %255 : vector<1x8x3xbf16> to vector<8x3xbf16>
    %cst_271 = arith.constant dense<0.000000e+00> : vector<8x384xf32>
    %257 = tpu.matmul %256, %254, %cst_271 {dimension_numbers = #tpu.dot_dimension_numbers<[1], [0], [0], [1], [0, 0, 1, 1], [], []>} : vector<8x3xbf16>, vector<3x384xbf16>, vector<8x384xf32> -> vector<8x384xf32>
    %258 = arith.addf %252, %257 : vector<8x384xf32>
    %c0_272 = arith.constant 0 : index
    %c0_273 = arith.constant 0 : index
    %c0_274 = arith.constant 0 : index
    %c133 = arith.constant 133 : index
    %259 = vector.load %arg1[%c0_272, %c0_273, %c0_274, %c133] : memref<1x1x3x640xbf16, #tpu.memory_space<vmem>>, vector<1x1x3x384xbf16>
    %260 = vector.shape_cast %259 : vector<1x1x3x384xbf16> to vector<3x384xbf16>
    %c43 = arith.constant 43 : index
    %c0_275 = arith.constant 0 : index
    %c0_276 = arith.constant 0 : index
    %261 = vector.load %arg2[%c43, %c0_275, %c0_276] : memref<49x8x3xbf16, #tpu.memory_space<vmem>>, vector<1x8x3xbf16>
    %262 = vector.shape_cast %261 : vector<1x8x3xbf16> to vector<8x3xbf16>
    %cst_277 = arith.constant dense<0.000000e+00> : vector<8x384xf32>
    %263 = tpu.matmul %262, %260, %cst_277 {dimension_numbers = #tpu.dot_dimension_numbers<[1], [0], [0], [1], [0, 0, 1, 1], [], []>} : vector<8x3xbf16>, vector<3x384xbf16>, vector<8x384xf32> -> vector<8x384xf32>
    %264 = arith.addf %258, %263 : vector<8x384xf32>
    %c0_278 = arith.constant 0 : index
    %c0_279 = arith.constant 0 : index
    %c0_280 = arith.constant 0 : index
    %c134 = arith.constant 134 : index
    %265 = vector.load %arg1[%c0_278, %c0_279, %c0_280, %c134] : memref<1x1x3x640xbf16, #tpu.memory_space<vmem>>, vector<1x1x3x384xbf16>
    %266 = vector.shape_cast %265 : vector<1x1x3x384xbf16> to vector<3x384xbf16>
    %c44_281 = arith.constant 44 : index
    %c0_282 = arith.constant 0 : index
    %c0_283 = arith.constant 0 : index
    %267 = vector.load %arg2[%c44_281, %c0_282, %c0_283] : memref<49x8x3xbf16, #tpu.memory_space<vmem>>, vector<1x8x3xbf16>
    %268 = vector.shape_cast %267 : vector<1x8x3xbf16> to vector<8x3xbf16>
    %cst_284 = arith.constant dense<0.000000e+00> : vector<8x384xf32>
    %269 = tpu.matmul %268, %266, %cst_284 {dimension_numbers = #tpu.dot_dimension_numbers<[1], [0], [0], [1], [0, 0, 1, 1], [], []>} : vector<8x3xbf16>, vector<3x384xbf16>, vector<8x384xf32> -> vector<8x384xf32>
    %270 = arith.addf %264, %269 : vector<8x384xf32>
    %c0_285 = arith.constant 0 : index
    %c0_286 = arith.constant 0 : index
    %c0_287 = arith.constant 0 : index
    %c135 = arith.constant 135 : index
    %271 = vector.load %arg1[%c0_285, %c0_286, %c0_287, %c135] : memref<1x1x3x640xbf16, #tpu.memory_space<vmem>>, vector<1x1x3x384xbf16>
    %272 = vector.shape_cast %271 : vector<1x1x3x384xbf16> to vector<3x384xbf16>
    %c45_288 = arith.constant 45 : index
    %c0_289 = arith.constant 0 : index
    %c0_290 = arith.constant 0 : index
    %273 = vector.load %arg2[%c45_288, %c0_289, %c0_290] : memref<49x8x3xbf16, #tpu.memory_space<vmem>>, vector<1x8x3xbf16>
    %274 = vector.shape_cast %273 : vector<1x8x3xbf16> to vector<8x3xbf16>
    %cst_291 = arith.constant dense<0.000000e+00> : vector<8x384xf32>
    %275 = tpu.matmul %274, %272, %cst_291 {dimension_numbers = #tpu.dot_dimension_numbers<[1], [0], [0], [1], [0, 0, 1, 1], [], []>} : vector<8x3xbf16>, vector<3x384xbf16>, vector<8x384xf32> -> vector<8x384xf32>
    %276 = arith.addf %270, %275 : vector<8x384xf32>
    %c0_292 = arith.constant 0 : index
    %c0_293 = arith.constant 0 : index
    %c0_294 = arith.constant 0 : index
    %c136 = arith.constant 136 : index
    %277 = vector.load %arg1[%c0_292, %c0_293, %c0_294, %c136] : memref<1x1x3x640xbf16, #tpu.memory_space<vmem>>, vector<1x1x3x384xbf16>
    %278 = vector.shape_cast %277 : vector<1x1x3x384xbf16> to vector<3x384xbf16>
    %c46_295 = arith.constant 46 : index
    %c0_296 = arith.constant 0 : index
    %c0_297 = arith.constant 0 : index
    %279 = vector.load %arg2[%c46_295, %c0_296, %c0_297] : memref<49x8x3xbf16, #tpu.memory_space<vmem>>, vector<1x8x3xbf16>
    %280 = vector.shape_cast %279 : vector<1x8x3xbf16> to vector<8x3xbf16>
    %cst_298 = arith.constant dense<0.000000e+00> : vector<8x384xf32>
    %281 = tpu.matmul %280, %278, %cst_298 {dimension_numbers = #tpu.dot_dimension_numbers<[1], [0], [0], [1], [0, 0, 1, 1], [], []>} : vector<8x3xbf16>, vector<3x384xbf16>, vector<8x384xf32> -> vector<8x384xf32>
    %282 = arith.addf %276, %281 : vector<8x384xf32>
    %c0_299 = arith.constant 0 : index
    %c0_300 = arith.constant 0 : index
    %c0_301 = arith.constant 0 : index
    %c137 = arith.constant 137 : index
    %283 = vector.load %arg1[%c0_299, %c0_300, %c0_301, %c137] : memref<1x1x3x640xbf16, #tpu.memory_space<vmem>>, vector<1x1x3x384xbf16>
    %284 = vector.shape_cast %283 : vector<1x1x3x384xbf16> to vector<3x384xbf16>
    %c47_302 = arith.constant 47 : index
    %c0_303 = arith.constant 0 : index
    %c0_304 = arith.constant 0 : index
    %285 = vector.load %arg2[%c47_302, %c0_303, %c0_304] : memref<49x8x3xbf16, #tpu.memory_space<vmem>>, vector<1x8x3xbf16>
    %286 = vector.shape_cast %285 : vector<1x8x3xbf16> to vector<8x3xbf16>
    %cst_305 = arith.constant dense<0.000000e+00> : vector<8x384xf32>
    %287 = tpu.matmul %286, %284, %cst_305 {dimension_numbers = #tpu.dot_dimension_numbers<[1], [0], [0], [1], [0, 0, 1, 1], [], []>} : vector<8x3xbf16>, vector<3x384xbf16>, vector<8x384xf32> -> vector<8x384xf32>
    %288 = arith.addf %282, %287 : vector<8x384xf32>
    %c0_306 = arith.constant 0 : index
    %c0_307 = arith.constant 0 : index
    %c0_308 = arith.constant 0 : index
    %c138 = arith.constant 138 : index
    %289 = vector.load %arg1[%c0_306, %c0_307, %c0_308, %c138] : memref<1x1x3x640xbf16, #tpu.memory_space<vmem>>, vector<1x1x3x384xbf16>
    %290 = vector.shape_cast %289 : vector<1x1x3x384xbf16> to vector<3x384xbf16>
    %c48_309 = arith.constant 48 : index
    %c0_310 = arith.constant 0 : index
    %c0_311 = arith.constant 0 : index
    %291 = vector.load %arg2[%c48_309, %c0_310, %c0_311] : memref<49x8x3xbf16, #tpu.memory_space<vmem>>, vector<1x8x3xbf16>
    %292 = vector.shape_cast %291 : vector<1x8x3xbf16> to vector<8x3xbf16>
    %cst_312 = arith.constant dense<0.000000e+00> : vector<8x384xf32>
    %293 = tpu.matmul %292, %290, %cst_312 {dimension_numbers = #tpu.dot_dimension_numbers<[1], [0], [0], [1], [0, 0, 1, 1], [], []>} : vector<8x3xbf16>, vector<3x384xbf16>, vector<8x384xf32> -> vector<8x384xf32>
    %294 = arith.addf %288, %293 : vector<8x384xf32>
    %c0_313 = arith.constant 0 : index
    %c0_314 = arith.constant 0 : index
    %295 = vector.load %arg3[%c0_313, %c0_314] : memref<1x384xf32, #tpu.memory_space<vmem>>, vector<1x384xf32>
    %cst_315 = arith.constant 0.000000e+00 : f32
    %296 = vector.broadcast %cst_315 : f32 to vector<8x1xf32>
    %297 = vector.broadcast %295 : vector<1x384xf32> to vector<8x384xf32>
    %298 = arith.mulf %294, %297 : vector<8x384xf32>
    %cst_316 = arith.constant dense<0.000000e+00> : vector<8xf32>
    %299 = vector.multi_reduction <add>, %298, %cst_316 [1] : vector<8x384xf32> to vector<8xf32>
    %300 = vector.shape_cast %299 : vector<8xf32> to vector<8x1xf32>
    %301 = arith.addf %296, %300 : vector<8x1xf32>
    %cst_317 = arith.constant 3.906250e-03 : f32
    %302 = vector.broadcast %cst_317 : f32 to vector<8x1xf32>
    %303 = arith.mulf %301, %302 : vector<8x1xf32>
    %cst_318 = arith.constant 0.000000e+00 : f32
    %304 = vector.broadcast %cst_318 : f32 to vector<8x1xf32>
    %305 = vector.broadcast %303 : vector<8x1xf32> to vector<8x384xf32>
    %306 = arith.subf %294, %305 : vector<8x384xf32>
    %307 = vector.broadcast %295 : vector<1x384xf32> to vector<8x384xf32>
    %308 = arith.mulf %306, %307 : vector<8x384xf32>
    %309 = arith.mulf %308, %308 : vector<8x384xf32>
    %cst_319 = arith.constant dense<0.000000e+00> : vector<8xf32>
    %310 = vector.multi_reduction <add>, %309, %cst_319 [1] : vector<8x384xf32> to vector<8xf32>
    %311 = vector.shape_cast %310 : vector<8xf32> to vector<8x1xf32>
    %312 = arith.addf %304, %311 : vector<8x1xf32>
    %cst_320 = arith.constant 3.906250e-03 : f32
    %313 = vector.broadcast %cst_320 : f32 to vector<8x1xf32>
    %314 = arith.mulf %312, %313 : vector<8x1xf32>
    %cst_321 = arith.constant 9.99999974E-6 : f32
    %315 = vector.broadcast %cst_321 : f32 to vector<8x1xf32>
    %316 = arith.addf %314, %315 : vector<8x1xf32>
    %317 = math.rsqrt %316 : vector<8x1xf32>
    %318 = vector.broadcast %303 : vector<8x1xf32> to vector<8x384xf32>
    %319 = arith.subf %294, %318 : vector<8x384xf32>
    %320 = vector.broadcast %317 : vector<8x1xf32> to vector<8x384xf32>
    %321 = arith.mulf %319, %320 : vector<8x384xf32>
    %cst_322 = arith.constant 0.000000e+00 : f32
    %322 = vector.broadcast %cst_322 : f32 to vector<8x384xf32>
    %323 = arith.maximumf %321, %322 : vector<8x384xf32>
    %324 = arith.truncf %323 : vector<8x384xf32> to vector<8x384xbf16>
    %c0_323 = arith.constant 0 : index
    %c0_324 = arith.constant 0 : index
    %c0_325 = arith.constant 0 : index
    %325 = vector.load %arg4[%c0_323, %c0_324, %c0_325] : memref<1x8x384xbf16, #tpu.memory_space<vmem>>, vector<1x8x384xbf16>
    %326 = vector.shape_cast %325 : vector<1x8x384xbf16> to vector<8x384xbf16>
    %327 = vector.shape_cast %324 : vector<8x384xbf16> to vector<1x8x384xbf16>
    tpu.vector_store %arg4[%c0_323, %c0_324, %c0_325], %327 {strides = array<i32>} : memref<1x8x384xbf16, #tpu.memory_space<vmem>>, vector<1x8x384xbf16>,
    return
  }
  func.func @transform_0(%arg0: i32) -> (i32, i32, i32, i32) {
    %c0_i32 = arith.constant 0 : i32
    %c0_i32_0 = arith.constant 0 : i32
    %c0_i32_1 = arith.constant 0 : i32
    %c0_i32_2 = arith.constant 0 : i32
    return %arg0, %c0_i32, %c0_i32_0, %c0_i32_1 : i32, i32, i32, i32
  }
  func.func @transform_1(%arg0: i32) -> (i32, i32, i32) {
    %c0_i32 = arith.constant 0 : i32
    %c0_i32_0 = arith.constant 0 : i32
    %c0_i32_1 = arith.constant 0 : i32
    %c0_i32_2 = arith.constant 0 : i32
    return %c0_i32, %c0_i32_0, %c0_i32_1 : i32, i32, i32
  }
  func.func @transform_2(%arg0: i32) -> (i32, i32) {
    %c0_i32 = arith.constant 0 : i32
    %c0_i32_0 = arith.constant 0 : i32
    %c0_i32_1 = arith.constant 0 : i32
    return %c0_i32, %c0_i32_0 : i32, i32
  }
  func.func @transform_3(%arg0: i32) -> (i32, i32, i32) {
    %c0_i32 = arith.constant 0 : i32
    %c0_i32_0 = arith.constant 0 : i32
    %c0_i32_1 = arith.constant 0 : i32
    return %arg0, %c0_i32, %c0_i32_0 : i32, i32, i32
  }
}

module attributes {stable_mosaic.version = 11 : i64} {
  func.func @_conv_in_act_kernel(%arg0: i32, %arg1: memref<1x4x8x256xbf16, #tpu.memory_space<vmem>>, %arg2: memref<9x16x8xbf16, #tpu.memory_space<vmem>>, %arg3: memref<1x128xf32, #tpu.memory_space<vmem>>, %arg4: memref<1x16x128xbf16, #tpu.memory_space<vmem>>) attributes {dimension_semantics = [#tpu.dimension_semantics<parallel>], iteration_bounds = array<i64: 2>, scalar_prefetch = 0 : i64, scratch_operands = 0 : i64, tpu.core_type = #tpu.core_type<tc>, window_params = [{transform_indices = @transform_0, window_bounds = array<i64: 1, 4, 8, 256>}, {pipeline_mode = #tpu.pipeline_mode<synchronous>, transform_indices = @transform_1, window_bounds = array<i64: 9, 16, 8>}, {pipeline_mode = #tpu.pipeline_mode<synchronous>, transform_indices = @transform_2, window_bounds = array<i64: 1, 128>}, {transform_indices = @transform_3, window_bounds = array<i64: 1, 16, 128>}]} {
    %cst = arith.constant 0.000000e+00 : f32
    %0 = vector.broadcast %cst : f32 to vector<16x128xf32>
    %c0 = arith.constant 0 : index
    %c0_0 = arith.constant 0 : index
    %c0_1 = arith.constant 0 : index
    %c0_2 = arith.constant 0 : index
    %1 = vector.load %arg1[%c0, %c0_0, %c0_1, %c0_2] : memref<1x4x8x256xbf16, #tpu.memory_space<vmem>>, vector<1x1x8x128xbf16>
    %2 = vector.shape_cast %1 : vector<1x1x8x128xbf16> to vector<8x128xbf16>
    %c0_3 = arith.constant 0 : index
    %c0_4 = arith.constant 0 : index
    %c0_5 = arith.constant 0 : index
    %3 = vector.load %arg2[%c0_3, %c0_4, %c0_5] : memref<9x16x8xbf16, #tpu.memory_space<vmem>>, vector<1x16x8xbf16>
    %4 = vector.shape_cast %3 : vector<1x16x8xbf16> to vector<16x8xbf16>
    %cst_6 = arith.constant dense<0.000000e+00> : vector<16x128xf32>
    %5 = tpu.matmul %4, %2, %cst_6 {dimension_numbers = #tpu.dot_dimension_numbers<[1], [0], [0], [1], [0, 0, 1, 1], [], []>} : vector<16x8xbf16>, vector<8x128xbf16>, vector<16x128xf32> -> vector<16x128xf32>
    %6 = arith.addf %0, %5 : vector<16x128xf32>
    %c0_7 = arith.constant 0 : index
    %c1 = arith.constant 1 : index
    %c0_8 = arith.constant 0 : index
    %c0_9 = arith.constant 0 : index
    %7 = vector.load %arg1[%c0_7, %c1, %c0_8, %c0_9] : memref<1x4x8x256xbf16, #tpu.memory_space<vmem>>, vector<1x1x8x128xbf16>
    %8 = vector.shape_cast %7 : vector<1x1x8x128xbf16> to vector<8x128xbf16>
    %c1_10 = arith.constant 1 : index
    %c0_11 = arith.constant 0 : index
    %c0_12 = arith.constant 0 : index
    %9 = vector.load %arg2[%c1_10, %c0_11, %c0_12] : memref<9x16x8xbf16, #tpu.memory_space<vmem>>, vector<1x16x8xbf16>
    %10 = vector.shape_cast %9 : vector<1x16x8xbf16> to vector<16x8xbf16>
    %cst_13 = arith.constant dense<0.000000e+00> : vector<16x128xf32>
    %11 = tpu.matmul %10, %8, %cst_13 {dimension_numbers = #tpu.dot_dimension_numbers<[1], [0], [0], [1], [0, 0, 1, 1], [], []>} : vector<16x8xbf16>, vector<8x128xbf16>, vector<16x128xf32> -> vector<16x128xf32>
    %12 = arith.addf %6, %11 : vector<16x128xf32>
    %c0_14 = arith.constant 0 : index
    %c0_15 = arith.constant 0 : index
    %c0_16 = arith.constant 0 : index
    %c1_17 = arith.constant 1 : index
    %13 = vector.load %arg1[%c0_14, %c0_15, %c0_16, %c1_17] : memref<1x4x8x256xbf16, #tpu.memory_space<vmem>>, vector<1x1x8x128xbf16>
    %14 = vector.shape_cast %13 : vector<1x1x8x128xbf16> to vector<8x128xbf16>
    %c2 = arith.constant 2 : index
    %c0_18 = arith.constant 0 : index
    %c0_19 = arith.constant 0 : index
    %15 = vector.load %arg2[%c2, %c0_18, %c0_19] : memref<9x16x8xbf16, #tpu.memory_space<vmem>>, vector<1x16x8xbf16>
    %16 = vector.shape_cast %15 : vector<1x16x8xbf16> to vector<16x8xbf16>
    %cst_20 = arith.constant dense<0.000000e+00> : vector<16x128xf32>
    %17 = tpu.matmul %16, %14, %cst_20 {dimension_numbers = #tpu.dot_dimension_numbers<[1], [0], [0], [1], [0, 0, 1, 1], [], []>} : vector<16x8xbf16>, vector<8x128xbf16>, vector<16x128xf32> -> vector<16x128xf32>
    %18 = arith.addf %12, %17 : vector<16x128xf32>
    %c0_21 = arith.constant 0 : index
    %c2_22 = arith.constant 2 : index
    %c0_23 = arith.constant 0 : index
    %c0_24 = arith.constant 0 : index
    %19 = vector.load %arg1[%c0_21, %c2_22, %c0_23, %c0_24] : memref<1x4x8x256xbf16, #tpu.memory_space<vmem>>, vector<1x1x8x128xbf16>
    %20 = vector.shape_cast %19 : vector<1x1x8x128xbf16> to vector<8x128xbf16>
    %c3 = arith.constant 3 : index
    %c0_25 = arith.constant 0 : index
    %c0_26 = arith.constant 0 : index
    %21 = vector.load %arg2[%c3, %c0_25, %c0_26] : memref<9x16x8xbf16, #tpu.memory_space<vmem>>, vector<1x16x8xbf16>
    %22 = vector.shape_cast %21 : vector<1x16x8xbf16> to vector<16x8xbf16>
    %cst_27 = arith.constant dense<0.000000e+00> : vector<16x128xf32>
    %23 = tpu.matmul %22, %20, %cst_27 {dimension_numbers = #tpu.dot_dimension_numbers<[1], [0], [0], [1], [0, 0, 1, 1], [], []>} : vector<16x8xbf16>, vector<8x128xbf16>, vector<16x128xf32> -> vector<16x128xf32>
    %24 = arith.addf %18, %23 : vector<16x128xf32>
    %c0_28 = arith.constant 0 : index
    %c3_29 = arith.constant 3 : index
    %c0_30 = arith.constant 0 : index
    %c0_31 = arith.constant 0 : index
    %25 = vector.load %arg1[%c0_28, %c3_29, %c0_30, %c0_31] : memref<1x4x8x256xbf16, #tpu.memory_space<vmem>>, vector<1x1x8x128xbf16>
    %26 = vector.shape_cast %25 : vector<1x1x8x128xbf16> to vector<8x128xbf16>
    %c4 = arith.constant 4 : index
    %c0_32 = arith.constant 0 : index
    %c0_33 = arith.constant 0 : index
    %27 = vector.load %arg2[%c4, %c0_32, %c0_33] : memref<9x16x8xbf16, #tpu.memory_space<vmem>>, vector<1x16x8xbf16>
    %28 = vector.shape_cast %27 : vector<1x16x8xbf16> to vector<16x8xbf16>
    %cst_34 = arith.constant dense<0.000000e+00> : vector<16x128xf32>
    %29 = tpu.matmul %28, %26, %cst_34 {dimension_numbers = #tpu.dot_dimension_numbers<[1], [0], [0], [1], [0, 0, 1, 1], [], []>} : vector<16x8xbf16>, vector<8x128xbf16>, vector<16x128xf32> -> vector<16x128xf32>
    %30 = arith.addf %24, %29 : vector<16x128xf32>
    %c0_35 = arith.constant 0 : index
    %c2_36 = arith.constant 2 : index
    %c0_37 = arith.constant 0 : index
    %c1_38 = arith.constant 1 : index
    %31 = vector.load %arg1[%c0_35, %c2_36, %c0_37, %c1_38] : memref<1x4x8x256xbf16, #tpu.memory_space<vmem>>, vector<1x1x8x128xbf16>
    %32 = vector.shape_cast %31 : vector<1x1x8x128xbf16> to vector<8x128xbf16>
    %c5 = arith.constant 5 : index
    %c0_39 = arith.constant 0 : index
    %c0_40 = arith.constant 0 : index
    %33 = vector.load %arg2[%c5, %c0_39, %c0_40] : memref<9x16x8xbf16, #tpu.memory_space<vmem>>, vector<1x16x8xbf16>
    %34 = vector.shape_cast %33 : vector<1x16x8xbf16> to vector<16x8xbf16>
    %cst_41 = arith.constant dense<0.000000e+00> : vector<16x128xf32>
    %35 = tpu.matmul %34, %32, %cst_41 {dimension_numbers = #tpu.dot_dimension_numbers<[1], [0], [0], [1], [0, 0, 1, 1], [], []>} : vector<16x8xbf16>, vector<8x128xbf16>, vector<16x128xf32> -> vector<16x128xf32>
    %36 = arith.addf %30, %35 : vector<16x128xf32>
    %c0_42 = arith.constant 0 : index
    %c0_43 = arith.constant 0 : index
    %c0_44 = arith.constant 0 : index
    %c9 = arith.constant 9 : index
    %37 = vector.load %arg1[%c0_42, %c0_43, %c0_44, %c9] : memref<1x4x8x256xbf16, #tpu.memory_space<vmem>>, vector<1x1x8x128xbf16>
    %38 = vector.shape_cast %37 : vector<1x1x8x128xbf16> to vector<8x128xbf16>
    %c6 = arith.constant 6 : index
    %c0_45 = arith.constant 0 : index
    %c0_46 = arith.constant 0 : index
    %39 = vector.load %arg2[%c6, %c0_45, %c0_46] : memref<9x16x8xbf16, #tpu.memory_space<vmem>>, vector<1x16x8xbf16>
    %40 = vector.shape_cast %39 : vector<1x16x8xbf16> to vector<16x8xbf16>
    %cst_47 = arith.constant dense<0.000000e+00> : vector<16x128xf32>
    %41 = tpu.matmul %40, %38, %cst_47 {dimension_numbers = #tpu.dot_dimension_numbers<[1], [0], [0], [1], [0, 0, 1, 1], [], []>} : vector<16x8xbf16>, vector<8x128xbf16>, vector<16x128xf32> -> vector<16x128xf32>
    %42 = arith.addf %36, %41 : vector<16x128xf32>
    %c0_48 = arith.constant 0 : index
    %c1_49 = arith.constant 1 : index
    %c0_50 = arith.constant 0 : index
    %c9_51 = arith.constant 9 : index
    %43 = vector.load %arg1[%c0_48, %c1_49, %c0_50, %c9_51] : memref<1x4x8x256xbf16, #tpu.memory_space<vmem>>, vector<1x1x8x128xbf16>
    %44 = vector.shape_cast %43 : vector<1x1x8x128xbf16> to vector<8x128xbf16>
    %c7 = arith.constant 7 : index
    %c0_52 = arith.constant 0 : index
    %c0_53 = arith.constant 0 : index
    %45 = vector.load %arg2[%c7, %c0_52, %c0_53] : memref<9x16x8xbf16, #tpu.memory_space<vmem>>, vector<1x16x8xbf16>
    %46 = vector.shape_cast %45 : vector<1x16x8xbf16> to vector<16x8xbf16>
    %cst_54 = arith.constant dense<0.000000e+00> : vector<16x128xf32>
    %47 = tpu.matmul %46, %44, %cst_54 {dimension_numbers = #tpu.dot_dimension_numbers<[1], [0], [0], [1], [0, 0, 1, 1], [], []>} : vector<16x8xbf16>, vector<8x128xbf16>, vector<16x128xf32> -> vector<16x128xf32>
    %48 = arith.addf %42, %47 : vector<16x128xf32>
    %c0_55 = arith.constant 0 : index
    %c0_56 = arith.constant 0 : index
    %c0_57 = arith.constant 0 : index
    %c10 = arith.constant 10 : index
    %49 = vector.load %arg1[%c0_55, %c0_56, %c0_57, %c10] : memref<1x4x8x256xbf16, #tpu.memory_space<vmem>>, vector<1x1x8x128xbf16>
    %50 = vector.shape_cast %49 : vector<1x1x8x128xbf16> to vector<8x128xbf16>
    %c8 = arith.constant 8 : index
    %c0_58 = arith.constant 0 : index
    %c0_59 = arith.constant 0 : index
    %51 = vector.load %arg2[%c8, %c0_58, %c0_59] : memref<9x16x8xbf16, #tpu.memory_space<vmem>>, vector<1x16x8xbf16>
    %52 = vector.shape_cast %51 : vector<1x16x8xbf16> to vector<16x8xbf16>
    %cst_60 = arith.constant dense<0.000000e+00> : vector<16x128xf32>
    %53 = tpu.matmul %52, %50, %cst_60 {dimension_numbers = #tpu.dot_dimension_numbers<[1], [0], [0], [1], [0, 0, 1, 1], [], []>} : vector<16x8xbf16>, vector<8x128xbf16>, vector<16x128xf32> -> vector<16x128xf32>
    %54 = arith.addf %48, %53 : vector<16x128xf32>
    %c0_61 = arith.constant 0 : index
    %c0_62 = arith.constant 0 : index
    %55 = vector.load %arg3[%c0_61, %c0_62] : memref<1x128xf32, #tpu.memory_space<vmem>>, vector<1x128xf32>
    %cst_63 = arith.constant 0.000000e+00 : f32
    %56 = vector.broadcast %cst_63 : f32 to vector<16x1xf32>
    %57 = vector.broadcast %55 : vector<1x128xf32> to vector<16x128xf32>
    %58 = arith.mulf %54, %57 : vector<16x128xf32>
    %cst_64 = arith.constant dense<0.000000e+00> : vector<16xf32>
    %59 = vector.multi_reduction <add>, %58, %cst_64 [1] : vector<16x128xf32> to vector<16xf32>
    %60 = vector.shape_cast %59 : vector<16xf32> to vector<16x1xf32>
    %61 = arith.addf %56, %60 : vector<16x1xf32>
    %cst_65 = arith.constant 1.562500e-02 : f32
    %62 = vector.broadcast %cst_65 : f32 to vector<16x1xf32>
    %63 = arith.mulf %61, %62 : vector<16x1xf32>
    %cst_66 = arith.constant 0.000000e+00 : f32
    %64 = vector.broadcast %cst_66 : f32 to vector<16x1xf32>
    %65 = vector.broadcast %63 : vector<16x1xf32> to vector<16x128xf32>
    %66 = arith.subf %54, %65 : vector<16x128xf32>
    %67 = vector.broadcast %55 : vector<1x128xf32> to vector<16x128xf32>
    %68 = arith.mulf %66, %67 : vector<16x128xf32>
    %69 = arith.mulf %68, %68 : vector<16x128xf32>
    %cst_67 = arith.constant dense<0.000000e+00> : vector<16xf32>
    %70 = vector.multi_reduction <add>, %69, %cst_67 [1] : vector<16x128xf32> to vector<16xf32>
    %71 = vector.shape_cast %70 : vector<16xf32> to vector<16x1xf32>
    %72 = arith.addf %64, %71 : vector<16x1xf32>
    %cst_68 = arith.constant 1.562500e-02 : f32
    %73 = vector.broadcast %cst_68 : f32 to vector<16x1xf32>
    %74 = arith.mulf %72, %73 : vector<16x1xf32>
    %cst_69 = arith.constant 9.99999974E-6 : f32
    %75 = vector.broadcast %cst_69 : f32 to vector<16x1xf32>
    %76 = arith.addf %74, %75 : vector<16x1xf32>
    %77 = math.rsqrt %76 : vector<16x1xf32>
    %78 = vector.broadcast %63 : vector<16x1xf32> to vector<16x128xf32>
    %79 = arith.subf %54, %78 : vector<16x128xf32>
    %80 = vector.broadcast %77 : vector<16x1xf32> to vector<16x128xf32>
    %81 = arith.mulf %79, %80 : vector<16x128xf32>
    %cst_70 = arith.constant 0.000000e+00 : f32
    %82 = vector.broadcast %cst_70 : f32 to vector<16x128xf32>
    %83 = arith.maximumf %81, %82 : vector<16x128xf32>
    %84 = arith.truncf %83 : vector<16x128xf32> to vector<16x128xbf16>
    %c0_71 = arith.constant 0 : index
    %c0_72 = arith.constant 0 : index
    %c0_73 = arith.constant 0 : index
    %85 = vector.load %arg4[%c0_71, %c0_72, %c0_73] : memref<1x16x128xbf16, #tpu.memory_space<vmem>>, vector<1x16x128xbf16>
    %86 = vector.shape_cast %85 : vector<1x16x128xbf16> to vector<16x128xbf16>
    %87 = vector.shape_cast %84 : vector<16x128xbf16> to vector<1x16x128xbf16>
    tpu.vector_store %arg4[%c0_71, %c0_72, %c0_73], %87 {strides = array<i32>} : memref<1x16x128xbf16, #tpu.memory_space<vmem>>, vector<1x16x128xbf16>,
    return
  }
  func.func @transform_0(%arg0: i32) -> (i32, i32, i32, i32) {
    %c0_i32 = arith.constant 0 : i32
    %c0_i32_0 = arith.constant 0 : i32
    %c0_i32_1 = arith.constant 0 : i32
    %c0_i32_2 = arith.constant 0 : i32
    return %arg0, %c0_i32, %c0_i32_0, %c0_i32_1 : i32, i32, i32, i32
  }
  func.func @transform_1(%arg0: i32) -> (i32, i32, i32) {
    %c0_i32 = arith.constant 0 : i32
    %c0_i32_0 = arith.constant 0 : i32
    %c0_i32_1 = arith.constant 0 : i32
    %c0_i32_2 = arith.constant 0 : i32
    return %c0_i32, %c0_i32_0, %c0_i32_1 : i32, i32, i32
  }
  func.func @transform_2(%arg0: i32) -> (i32, i32) {
    %c0_i32 = arith.constant 0 : i32
    %c0_i32_0 = arith.constant 0 : i32
    %c0_i32_1 = arith.constant 0 : i32
    return %c0_i32, %c0_i32_0 : i32, i32
  }
  func.func @transform_3(%arg0: i32) -> (i32, i32, i32) {
    %c0_i32 = arith.constant 0 : i32
    %c0_i32_0 = arith.constant 0 : i32
    %c0_i32_1 = arith.constant 0 : i32
    return %arg0, %c0_i32, %c0_i32_0 : i32, i32, i32
  }
}

module attributes {stable_mosaic.version = 11 : i64} {
  func.func @_conv_in_act_kernel(%arg0: i32, %arg1: memref<1x4x16x256xbf16, #tpu.memory_space<vmem>>, %arg2: memref<9x32x16xbf16, #tpu.memory_space<vmem>>, %arg3: memref<1x128xf32, #tpu.memory_space<vmem>>, %arg4: memref<1x32x128xbf16, #tpu.memory_space<vmem>>) attributes {dimension_semantics = [#tpu.dimension_semantics<parallel>], iteration_bounds = array<i64: 2>, scalar_prefetch = 0 : i64, scratch_operands = 0 : i64, tpu.core_type = #tpu.core_type<tc>, window_params = [{transform_indices = @transform_0, window_bounds = array<i64: 1, 4, 16, 256>}, {pipeline_mode = #tpu.pipeline_mode<synchronous>, transform_indices = @transform_1, window_bounds = array<i64: 9, 32, 16>}, {pipeline_mode = #tpu.pipeline_mode<synchronous>, transform_indices = @transform_2, window_bounds = array<i64: 1, 128>}, {transform_indices = @transform_3, window_bounds = array<i64: 1, 32, 128>}]} {
    %cst = arith.constant 0.000000e+00 : f32
    %0 = vector.broadcast %cst : f32 to vector<32x128xf32>
    %c0 = arith.constant 0 : index
    %c0_0 = arith.constant 0 : index
    %c0_1 = arith.constant 0 : index
    %c0_2 = arith.constant 0 : index
    %1 = vector.load %arg1[%c0, %c0_0, %c0_1, %c0_2] : memref<1x4x16x256xbf16, #tpu.memory_space<vmem>>, vector<1x1x16x128xbf16>
    %2 = vector.shape_cast %1 : vector<1x1x16x128xbf16> to vector<16x128xbf16>
    %c0_3 = arith.constant 0 : index
    %c0_4 = arith.constant 0 : index
    %c0_5 = arith.constant 0 : index
    %3 = vector.load %arg2[%c0_3, %c0_4, %c0_5] : memref<9x32x16xbf16, #tpu.memory_space<vmem>>, vector<1x32x16xbf16>
    %4 = vector.shape_cast %3 : vector<1x32x16xbf16> to vector<32x16xbf16>
    %cst_6 = arith.constant dense<0.000000e+00> : vector<32x128xf32>
    %5 = tpu.matmul %4, %2, %cst_6 {dimension_numbers = #tpu.dot_dimension_numbers<[1], [0], [0], [1], [0, 0, 1, 1], [], []>} : vector<32x16xbf16>, vector<16x128xbf16>, vector<32x128xf32> -> vector<32x128xf32>
    %6 = arith.addf %0, %5 : vector<32x128xf32>
    %c0_7 = arith.constant 0 : index
    %c1 = arith.constant 1 : index
    %c0_8 = arith.constant 0 : index
    %c0_9 = arith.constant 0 : index
    %7 = vector.load %arg1[%c0_7, %c1, %c0_8, %c0_9] : memref<1x4x16x256xbf16, #tpu.memory_space<vmem>>, vector<1x1x16x128xbf16>
    %8 = vector.shape_cast %7 : vector<1x1x16x128xbf16> to vector<16x128xbf16>
    %c1_10 = arith.constant 1 : index
    %c0_11 = arith.constant 0 : index
    %c0_12 = arith.constant 0 : index
    %9 = vector.load %arg2[%c1_10, %c0_11, %c0_12] : memref<9x32x16xbf16, #tpu.memory_space<vmem>>, vector<1x32x16xbf16>
    %10 = vector.shape_cast %9 : vector<1x32x16xbf16> to vector<32x16xbf16>
    %cst_13 = arith.constant dense<0.000000e+00> : vector<32x128xf32>
    %11 = tpu.matmul %10, %8, %cst_13 {dimension_numbers = #tpu.dot_dimension_numbers<[1], [0], [0], [1], [0, 0, 1, 1], [], []>} : vector<32x16xbf16>, vector<16x128xbf16>, vector<32x128xf32> -> vector<32x128xf32>
    %12 = arith.addf %6, %11 : vector<32x128xf32>
    %c0_14 = arith.constant 0 : index
    %c0_15 = arith.constant 0 : index
    %c0_16 = arith.constant 0 : index
    %c1_17 = arith.constant 1 : index
    %13 = vector.load %arg1[%c0_14, %c0_15, %c0_16, %c1_17] : memref<1x4x16x256xbf16, #tpu.memory_space<vmem>>, vector<1x1x16x128xbf16>
    %14 = vector.shape_cast %13 : vector<1x1x16x128xbf16> to vector<16x128xbf16>
    %c2 = arith.constant 2 : index
    %c0_18 = arith.constant 0 : index
    %c0_19 = arith.constant 0 : index
    %15 = vector.load %arg2[%c2, %c0_18, %c0_19] : memref<9x32x16xbf16, #tpu.memory_space<vmem>>, vector<1x32x16xbf16>
    %16 = vector.shape_cast %15 : vector<1x32x16xbf16> to vector<32x16xbf16>
    %cst_20 = arith.constant dense<0.000000e+00> : vector<32x128xf32>
    %17 = tpu.matmul %16, %14, %cst_20 {dimension_numbers = #tpu.dot_dimension_numbers<[1], [0], [0], [1], [0, 0, 1, 1], [], []>} : vector<32x16xbf16>, vector<16x128xbf16>, vector<32x128xf32> -> vector<32x128xf32>
    %18 = arith.addf %12, %17 : vector<32x128xf32>
    %c0_21 = arith.constant 0 : index
    %c2_22 = arith.constant 2 : index
    %c0_23 = arith.constant 0 : index
    %c0_24 = arith.constant 0 : index
    %19 = vector.load %arg1[%c0_21, %c2_22, %c0_23, %c0_24] : memref<1x4x16x256xbf16, #tpu.memory_space<vmem>>, vector<1x1x16x128xbf16>
    %20 = vector.shape_cast %19 : vector<1x1x16x128xbf16> to vector<16x128xbf16>
    %c3 = arith.constant 3 : index
    %c0_25 = arith.constant 0 : index
    %c0_26 = arith.constant 0 : index
    %21 = vector.load %arg2[%c3, %c0_25, %c0_26] : memref<9x32x16xbf16, #tpu.memory_space<vmem>>, vector<1x32x16xbf16>
    %22 = vector.shape_cast %21 : vector<1x32x16xbf16> to vector<32x16xbf16>
    %cst_27 = arith.constant dense<0.000000e+00> : vector<32x128xf32>
    %23 = tpu.matmul %22, %20, %cst_27 {dimension_numbers = #tpu.dot_dimension_numbers<[1], [0], [0], [1], [0, 0, 1, 1], [], []>} : vector<32x16xbf16>, vector<16x128xbf16>, vector<32x128xf32> -> vector<32x128xf32>
    %24 = arith.addf %18, %23 : vector<32x128xf32>
    %c0_28 = arith.constant 0 : index
    %c3_29 = arith.constant 3 : index
    %c0_30 = arith.constant 0 : index
    %c0_31 = arith.constant 0 : index
    %25 = vector.load %arg1[%c0_28, %c3_29, %c0_30, %c0_31] : memref<1x4x16x256xbf16, #tpu.memory_space<vmem>>, vector<1x1x16x128xbf16>
    %26 = vector.shape_cast %25 : vector<1x1x16x128xbf16> to vector<16x128xbf16>
    %c4 = arith.constant 4 : index
    %c0_32 = arith.constant 0 : index
    %c0_33 = arith.constant 0 : index
    %27 = vector.load %arg2[%c4, %c0_32, %c0_33] : memref<9x32x16xbf16, #tpu.memory_space<vmem>>, vector<1x32x16xbf16>
    %28 = vector.shape_cast %27 : vector<1x32x16xbf16> to vector<32x16xbf16>
    %cst_34 = arith.constant dense<0.000000e+00> : vector<32x128xf32>
    %29 = tpu.matmul %28, %26, %cst_34 {dimension_numbers = #tpu.dot_dimension_numbers<[1], [0], [0], [1], [0, 0, 1, 1], [], []>} : vector<32x16xbf16>, vector<16x128xbf16>, vector<32x128xf32> -> vector<32x128xf32>
    %30 = arith.addf %24, %29 : vector<32x128xf32>
    %c0_35 = arith.constant 0 : index
    %c2_36 = arith.constant 2 : index
    %c0_37 = arith.constant 0 : index
    %c1_38 = arith.constant 1 : index
    %31 = vector.load %arg1[%c0_35, %c2_36, %c0_37, %c1_38] : memref<1x4x16x256xbf16, #tpu.memory_space<vmem>>, vector<1x1x16x128xbf16>
    %32 = vector.shape_cast %31 : vector<1x1x16x128xbf16> to vector<16x128xbf16>
    %c5 = arith.constant 5 : index
    %c0_39 = arith.constant 0 : index
    %c0_40 = arith.constant 0 : index
    %33 = vector.load %arg2[%c5, %c0_39, %c0_40] : memref<9x32x16xbf16, #tpu.memory_space<vmem>>, vector<1x32x16xbf16>
    %34 = vector.shape_cast %33 : vector<1x32x16xbf16> to vector<32x16xbf16>
    %cst_41 = arith.constant dense<0.000000e+00> : vector<32x128xf32>
    %35 = tpu.matmul %34, %32, %cst_41 {dimension_numbers = #tpu.dot_dimension_numbers<[1], [0], [0], [1], [0, 0, 1, 1], [], []>} : vector<32x16xbf16>, vector<16x128xbf16>, vector<32x128xf32> -> vector<32x128xf32>
    %36 = arith.addf %30, %35 : vector<32x128xf32>
    %c0_42 = arith.constant 0 : index
    %c0_43 = arith.constant 0 : index
    %c0_44 = arith.constant 0 : index
    %c5_45 = arith.constant 5 : index
    %37 = vector.load %arg1[%c0_42, %c0_43, %c0_44, %c5_45] : memref<1x4x16x256xbf16, #tpu.memory_space<vmem>>, vector<1x1x16x128xbf16>
    %38 = vector.shape_cast %37 : vector<1x1x16x128xbf16> to vector<16x128xbf16>
    %c6 = arith.constant 6 : index
    %c0_46 = arith.constant 0 : index
    %c0_47 = arith.constant 0 : index
    %39 = vector.load %arg2[%c6, %c0_46, %c0_47] : memref<9x32x16xbf16, #tpu.memory_space<vmem>>, vector<1x32x16xbf16>
    %40 = vector.shape_cast %39 : vector<1x32x16xbf16> to vector<32x16xbf16>
    %cst_48 = arith.constant dense<0.000000e+00> : vector<32x128xf32>
    %41 = tpu.matmul %40, %38, %cst_48 {dimension_numbers = #tpu.dot_dimension_numbers<[1], [0], [0], [1], [0, 0, 1, 1], [], []>} : vector<32x16xbf16>, vector<16x128xbf16>, vector<32x128xf32> -> vector<32x128xf32>
    %42 = arith.addf %36, %41 : vector<32x128xf32>
    %c0_49 = arith.constant 0 : index
    %c1_50 = arith.constant 1 : index
    %c0_51 = arith.constant 0 : index
    %c5_52 = arith.constant 5 : index
    %43 = vector.load %arg1[%c0_49, %c1_50, %c0_51, %c5_52] : memref<1x4x16x256xbf16, #tpu.memory_space<vmem>>, vector<1x1x16x128xbf16>
    %44 = vector.shape_cast %43 : vector<1x1x16x128xbf16> to vector<16x128xbf16>
    %c7 = arith.constant 7 : index
    %c0_53 = arith.constant 0 : index
    %c0_54 = arith.constant 0 : index
    %45 = vector.load %arg2[%c7, %c0_53, %c0_54] : memref<9x32x16xbf16, #tpu.memory_space<vmem>>, vector<1x32x16xbf16>
    %46 = vector.shape_cast %45 : vector<1x32x16xbf16> to vector<32x16xbf16>
    %cst_55 = arith.constant dense<0.000000e+00> : vector<32x128xf32>
    %47 = tpu.matmul %46, %44, %cst_55 {dimension_numbers = #tpu.dot_dimension_numbers<[1], [0], [0], [1], [0, 0, 1, 1], [], []>} : vector<32x16xbf16>, vector<16x128xbf16>, vector<32x128xf32> -> vector<32x128xf32>
    %48 = arith.addf %42, %47 : vector<32x128xf32>
    %c0_56 = arith.constant 0 : index
    %c0_57 = arith.constant 0 : index
    %c0_58 = arith.constant 0 : index
    %c6_59 = arith.constant 6 : index
    %49 = vector.load %arg1[%c0_56, %c0_57, %c0_58, %c6_59] : memref<1x4x16x256xbf16, #tpu.memory_space<vmem>>, vector<1x1x16x128xbf16>
    %50 = vector.shape_cast %49 : vector<1x1x16x128xbf16> to vector<16x128xbf16>
    %c8 = arith.constant 8 : index
    %c0_60 = arith.constant 0 : index
    %c0_61 = arith.constant 0 : index
    %51 = vector.load %arg2[%c8, %c0_60, %c0_61] : memref<9x32x16xbf16, #tpu.memory_space<vmem>>, vector<1x32x16xbf16>
    %52 = vector.shape_cast %51 : vector<1x32x16xbf16> to vector<32x16xbf16>
    %cst_62 = arith.constant dense<0.000000e+00> : vector<32x128xf32>
    %53 = tpu.matmul %52, %50, %cst_62 {dimension_numbers = #tpu.dot_dimension_numbers<[1], [0], [0], [1], [0, 0, 1, 1], [], []>} : vector<32x16xbf16>, vector<16x128xbf16>, vector<32x128xf32> -> vector<32x128xf32>
    %54 = arith.addf %48, %53 : vector<32x128xf32>
    %c0_63 = arith.constant 0 : index
    %c0_64 = arith.constant 0 : index
    %55 = vector.load %arg3[%c0_63, %c0_64] : memref<1x128xf32, #tpu.memory_space<vmem>>, vector<1x128xf32>
    %cst_65 = arith.constant 0.000000e+00 : f32
    %56 = vector.broadcast %cst_65 : f32 to vector<32x1xf32>
    %57 = vector.broadcast %55 : vector<1x128xf32> to vector<32x128xf32>
    %58 = arith.mulf %54, %57 : vector<32x128xf32>
    %cst_66 = arith.constant dense<0.000000e+00> : vector<32xf32>
    %59 = vector.multi_reduction <add>, %58, %cst_66 [1] : vector<32x128xf32> to vector<32xf32>
    %60 = vector.shape_cast %59 : vector<32xf32> to vector<32x1xf32>
    %61 = arith.addf %56, %60 : vector<32x1xf32>
    %cst_67 = arith.constant 6.250000e-02 : f32
    %62 = vector.broadcast %cst_67 : f32 to vector<32x1xf32>
    %63 = arith.mulf %61, %62 : vector<32x1xf32>
    %cst_68 = arith.constant 0.000000e+00 : f32
    %64 = vector.broadcast %cst_68 : f32 to vector<32x1xf32>
    %65 = vector.broadcast %63 : vector<32x1xf32> to vector<32x128xf32>
    %66 = arith.subf %54, %65 : vector<32x128xf32>
    %67 = vector.broadcast %55 : vector<1x128xf32> to vector<32x128xf32>
    %68 = arith.mulf %66, %67 : vector<32x128xf32>
    %69 = arith.mulf %68, %68 : vector<32x128xf32>
    %cst_69 = arith.constant dense<0.000000e+00> : vector<32xf32>
    %70 = vector.multi_reduction <add>, %69, %cst_69 [1] : vector<32x128xf32> to vector<32xf32>
    %71 = vector.shape_cast %70 : vector<32xf32> to vector<32x1xf32>
    %72 = arith.addf %64, %71 : vector<32x1xf32>
    %cst_70 = arith.constant 6.250000e-02 : f32
    %73 = vector.broadcast %cst_70 : f32 to vector<32x1xf32>
    %74 = arith.mulf %72, %73 : vector<32x1xf32>
    %cst_71 = arith.constant 9.99999974E-6 : f32
    %75 = vector.broadcast %cst_71 : f32 to vector<32x1xf32>
    %76 = arith.addf %74, %75 : vector<32x1xf32>
    %77 = math.rsqrt %76 : vector<32x1xf32>
    %78 = vector.broadcast %63 : vector<32x1xf32> to vector<32x128xf32>
    %79 = arith.subf %54, %78 : vector<32x128xf32>
    %80 = vector.broadcast %77 : vector<32x1xf32> to vector<32x128xf32>
    %81 = arith.mulf %79, %80 : vector<32x128xf32>
    %cst_72 = arith.constant 0.000000e+00 : f32
    %82 = vector.broadcast %cst_72 : f32 to vector<32x128xf32>
    %83 = arith.maximumf %81, %82 : vector<32x128xf32>
    %84 = arith.truncf %83 : vector<32x128xf32> to vector<32x128xbf16>
    %c0_73 = arith.constant 0 : index
    %c0_74 = arith.constant 0 : index
    %c0_75 = arith.constant 0 : index
    %85 = vector.load %arg4[%c0_73, %c0_74, %c0_75] : memref<1x32x128xbf16, #tpu.memory_space<vmem>>, vector<1x32x128xbf16>
    %86 = vector.shape_cast %85 : vector<1x32x128xbf16> to vector<32x128xbf16>
    %87 = vector.shape_cast %84 : vector<32x128xbf16> to vector<1x32x128xbf16>
    tpu.vector_store %arg4[%c0_73, %c0_74, %c0_75], %87 {strides = array<i32>} : memref<1x32x128xbf16, #tpu.memory_space<vmem>>, vector<1x32x128xbf16>,
    return
  }
  func.func @transform_0(%arg0: i32) -> (i32, i32, i32, i32) {
    %c0_i32 = arith.constant 0 : i32
    %c0_i32_0 = arith.constant 0 : i32
    %c0_i32_1 = arith.constant 0 : i32
    %c0_i32_2 = arith.constant 0 : i32
    return %arg0, %c0_i32, %c0_i32_0, %c0_i32_1 : i32, i32, i32, i32
  }
  func.func @transform_1(%arg0: i32) -> (i32, i32, i32) {
    %c0_i32 = arith.constant 0 : i32
    %c0_i32_0 = arith.constant 0 : i32
    %c0_i32_1 = arith.constant 0 : i32
    %c0_i32_2 = arith.constant 0 : i32
    return %c0_i32, %c0_i32_0, %c0_i32_1 : i32, i32, i32
  }
  func.func @transform_2(%arg0: i32) -> (i32, i32) {
    %c0_i32 = arith.constant 0 : i32
    %c0_i32_0 = arith.constant 0 : i32
    %c0_i32_1 = arith.constant 0 : i32
    return %c0_i32, %c0_i32_0 : i32, i32
  }
  func.func @transform_3(%arg0: i32) -> (i32, i32, i32) {
    %c0_i32 = arith.constant 0 : i32
    %c0_i32_0 = arith.constant 0 : i32
    %c0_i32_1 = arith.constant 0 : i32
    return %arg0, %c0_i32, %c0_i32_0 : i32, i32, i32
  }
}

module attributes {stable_mosaic.version = 11 : i64} {
  func.func @_res_block_kernel(%arg0: i32, %arg1: memref<1x32x256xbf16, #tpu.memory_space<vmem>>, %arg2: memref<9x32x32xbf16, #tpu.memory_space<vmem>>, %arg3: memref<9x32x32xbf16, #tpu.memory_space<vmem>>, %arg4: memref<1x128xf32, #tpu.memory_space<vmem>>, %arg5: memref<1x32x128xbf16, #tpu.memory_space<vmem>>, %arg6: memref<32x384xbf16, #tpu.memory_space<vmem>>) attributes {dimension_semantics = [#tpu.dimension_semantics<parallel>], iteration_bounds = array<i64: 2>, scalar_prefetch = 0 : i64, scratch_operands = 1 : i64, tpu.core_type = #tpu.core_type<tc>, window_params = [{transform_indices = @transform_0, window_bounds = array<i64: 1, 32, 256>}, {pipeline_mode = #tpu.pipeline_mode<synchronous>, transform_indices = @transform_1, window_bounds = array<i64: 9, 32, 32>}, {pipeline_mode = #tpu.pipeline_mode<synchronous>, transform_indices = @transform_2, window_bounds = array<i64: 9, 32, 32>}, {pipeline_mode = #tpu.pipeline_mode<synchronous>, transform_indices = @transform_3, window_bounds = array<i64: 1, 128>}, {transform_indices = @transform_4, window_bounds = array<i64: 1, 32, 128>}]} {
    %c0 = arith.constant 0 : index
    %c0_0 = arith.constant 0 : index
    %0 = vector.load %arg4[%c0, %c0_0] : memref<1x128xf32, #tpu.memory_space<vmem>>, vector<1x128xf32>
    %cst = arith.constant 0.000000e+00 : f32
    %1 = vector.broadcast %cst : f32 to vector<32x128xf32>
    %c0_1 = arith.constant 0 : index
    %c0_2 = arith.constant 0 : index
    %c0_3 = arith.constant 0 : index
    %2 = vector.load %arg1[%c0_1, %c0_2, %c0_3] : memref<1x32x256xbf16, #tpu.memory_space<vmem>>, vector<1x32x128xbf16>
    %3 = vector.shape_cast %2 : vector<1x32x128xbf16> to vector<32x128xbf16>
    %c0_4 = arith.constant 0 : index
    %c0_5 = arith.constant 0 : index
    %c0_6 = arith.constant 0 : index
    %4 = vector.load %arg2[%c0_4, %c0_5, %c0_6] : memref<9x32x32xbf16, #tpu.memory_space<vmem>>, vector<1x32x32xbf16>
    %5 = vector.shape_cast %4 : vector<1x32x32xbf16> to vector<32x32xbf16>
    %cst_7 = arith.constant dense<0.000000e+00> : vector<32x128xf32>
    %6 = tpu.matmul %5, %3, %cst_7 {dimension_numbers = #tpu.dot_dimension_numbers<[1], [0], [0], [1], [0, 0, 1, 1], [], []>} : vector<32x32xbf16>, vector<32x128xbf16>, vector<32x128xf32> -> vector<32x128xf32>
    %7 = arith.addf %1, %6 : vector<32x128xf32>
    %c0_8 = arith.constant 0 : index
    %c0_9 = arith.constant 0 : index
    %c1 = arith.constant 1 : index
    %8 = vector.load %arg1[%c0_8, %c0_9, %c1] : memref<1x32x256xbf16, #tpu.memory_space<vmem>>, vector<1x32x128xbf16>
    %9 = vector.shape_cast %8 : vector<1x32x128xbf16> to vector<32x128xbf16>
    %c1_10 = arith.constant 1 : index
    %c0_11 = arith.constant 0 : index
    %c0_12 = arith.constant 0 : index
    %10 = vector.load %arg2[%c1_10, %c0_11, %c0_12] : memref<9x32x32xbf16, #tpu.memory_space<vmem>>, vector<1x32x32xbf16>
    %11 = vector.shape_cast %10 : vector<1x32x32xbf16> to vector<32x32xbf16>
    %cst_13 = arith.constant dense<0.000000e+00> : vector<32x128xf32>
    %12 = tpu.matmul %11, %9, %cst_13 {dimension_numbers = #tpu.dot_dimension_numbers<[1], [0], [0], [1], [0, 0, 1, 1], [], []>} : vector<32x32xbf16>, vector<32x128xbf16>, vector<32x128xf32> -> vector<32x128xf32>
    %13 = arith.addf %7, %12 : vector<32x128xf32>
    %c0_14 = arith.constant 0 : index
    %c0_15 = arith.constant 0 : index
    %c2 = arith.constant 2 : index
    %14 = vector.load %arg1[%c0_14, %c0_15, %c2] : memref<1x32x256xbf16, #tpu.memory_space<vmem>>, vector<1x32x128xbf16>
    %15 = vector.shape_cast %14 : vector<1x32x128xbf16> to vector<32x128xbf16>
    %c2_16 = arith.constant 2 : index
    %c0_17 = arith.constant 0 : index
    %c0_18 = arith.constant 0 : index
    %16 = vector.load %arg2[%c2_16, %c0_17, %c0_18] : memref<9x32x32xbf16, #tpu.memory_space<vmem>>, vector<1x32x32xbf16>
    %17 = vector.shape_cast %16 : vector<1x32x32xbf16> to vector<32x32xbf16>
    %cst_19 = arith.constant dense<0.000000e+00> : vector<32x128xf32>
    %18 = tpu.matmul %17, %15, %cst_19 {dimension_numbers = #tpu.dot_dimension_numbers<[1], [0], [0], [1], [0, 0, 1, 1], [], []>} : vector<32x32xbf16>, vector<32x128xbf16>, vector<32x128xf32> -> vector<32x128xf32>
    %19 = arith.addf %13, %18 : vector<32x128xf32>
    %c0_20 = arith.constant 0 : index
    %c0_21 = arith.constant 0 : index
    %c6 = arith.constant 6 : index
    %20 = vector.load %arg1[%c0_20, %c0_21, %c6] : memref<1x32x256xbf16, #tpu.memory_space<vmem>>, vector<1x32x128xbf16>
    %21 = vector.shape_cast %20 : vector<1x32x128xbf16> to vector<32x128xbf16>
    %c3 = arith.constant 3 : index
    %c0_22 = arith.constant 0 : index
    %c0_23 = arith.constant 0 : index
    %22 = vector.load %arg2[%c3, %c0_22, %c0_23] : memref<9x32x32xbf16, #tpu.memory_space<vmem>>, vector<1x32x32xbf16>
    %23 = vector.shape_cast %22 : vector<1x32x32xbf16> to vector<32x32xbf16>
    %cst_24 = arith.constant dense<0.000000e+00> : vector<32x128xf32>
    %24 = tpu.matmul %23, %21, %cst_24 {dimension_numbers = #tpu.dot_dimension_numbers<[1], [0], [0], [1], [0, 0, 1, 1], [], []>} : vector<32x32xbf16>, vector<32x128xbf16>, vector<32x128xf32> -> vector<32x128xf32>
    %25 = arith.addf %19, %24 : vector<32x128xf32>
    %c0_25 = arith.constant 0 : index
    %c0_26 = arith.constant 0 : index
    %c7 = arith.constant 7 : index
    %26 = vector.load %arg1[%c0_25, %c0_26, %c7] : memref<1x32x256xbf16, #tpu.memory_space<vmem>>, vector<1x32x128xbf16>
    %27 = vector.shape_cast %26 : vector<1x32x128xbf16> to vector<32x128xbf16>
    %c4 = arith.constant 4 : index
    %c0_27 = arith.constant 0 : index
    %c0_28 = arith.constant 0 : index
    %28 = vector.load %arg2[%c4, %c0_27, %c0_28] : memref<9x32x32xbf16, #tpu.memory_space<vmem>>, vector<1x32x32xbf16>
    %29 = vector.shape_cast %28 : vector<1x32x32xbf16> to vector<32x32xbf16>
    %cst_29 = arith.constant dense<0.000000e+00> : vector<32x128xf32>
    %30 = tpu.matmul %29, %27, %cst_29 {dimension_numbers = #tpu.dot_dimension_numbers<[1], [0], [0], [1], [0, 0, 1, 1], [], []>} : vector<32x32xbf16>, vector<32x128xbf16>, vector<32x128xf32> -> vector<32x128xf32>
    %31 = arith.addf %25, %30 : vector<32x128xf32>
    %c0_30 = arith.constant 0 : index
    %c0_31 = arith.constant 0 : index
    %c8 = arith.constant 8 : index
    %32 = vector.load %arg1[%c0_30, %c0_31, %c8] : memref<1x32x256xbf16, #tpu.memory_space<vmem>>, vector<1x32x128xbf16>
    %33 = vector.shape_cast %32 : vector<1x32x128xbf16> to vector<32x128xbf16>
    %c5 = arith.constant 5 : index
    %c0_32 = arith.constant 0 : index
    %c0_33 = arith.constant 0 : index
    %34 = vector.load %arg2[%c5, %c0_32, %c0_33] : memref<9x32x32xbf16, #tpu.memory_space<vmem>>, vector<1x32x32xbf16>
    %35 = vector.shape_cast %34 : vector<1x32x32xbf16> to vector<32x32xbf16>
    %cst_34 = arith.constant dense<0.000000e+00> : vector<32x128xf32>
    %36 = tpu.matmul %35, %33, %cst_34 {dimension_numbers = #tpu.dot_dimension_numbers<[1], [0], [0], [1], [0, 0, 1, 1], [], []>} : vector<32x32xbf16>, vector<32x128xbf16>, vector<32x128xf32> -> vector<32x128xf32>
    %37 = arith.addf %31, %36 : vector<32x128xf32>
    %c0_35 = arith.constant 0 : index
    %c0_36 = arith.constant 0 : index
    %c12 = arith.constant 12 : index
    %38 = vector.load %arg1[%c0_35, %c0_36, %c12] : memref<1x32x256xbf16, #tpu.memory_space<vmem>>, vector<1x32x128xbf16>
    %39 = vector.shape_cast %38 : vector<1x32x128xbf16> to vector<32x128xbf16>
    %c6_37 = arith.constant 6 : index
    %c0_38 = arith.constant 0 : index
    %c0_39 = arith.constant 0 : index
    %40 = vector.load %arg2[%c6_37, %c0_38, %c0_39] : memref<9x32x32xbf16, #tpu.memory_space<vmem>>, vector<1x32x32xbf16>
    %41 = vector.shape_cast %40 : vector<1x32x32xbf16> to vector<32x32xbf16>
    %cst_40 = arith.constant dense<0.000000e+00> : vector<32x128xf32>
    %42 = tpu.matmul %41, %39, %cst_40 {dimension_numbers = #tpu.dot_dimension_numbers<[1], [0], [0], [1], [0, 0, 1, 1], [], []>} : vector<32x32xbf16>, vector<32x128xbf16>, vector<32x128xf32> -> vector<32x128xf32>
    %43 = arith.addf %37, %42 : vector<32x128xf32>
    %c0_41 = arith.constant 0 : index
    %c0_42 = arith.constant 0 : index
    %c13 = arith.constant 13 : index
    %44 = vector.load %arg1[%c0_41, %c0_42, %c13] : memref<1x32x256xbf16, #tpu.memory_space<vmem>>, vector<1x32x128xbf16>
    %45 = vector.shape_cast %44 : vector<1x32x128xbf16> to vector<32x128xbf16>
    %c7_43 = arith.constant 7 : index
    %c0_44 = arith.constant 0 : index
    %c0_45 = arith.constant 0 : index
    %46 = vector.load %arg2[%c7_43, %c0_44, %c0_45] : memref<9x32x32xbf16, #tpu.memory_space<vmem>>, vector<1x32x32xbf16>
    %47 = vector.shape_cast %46 : vector<1x32x32xbf16> to vector<32x32xbf16>
    %cst_46 = arith.constant dense<0.000000e+00> : vector<32x128xf32>
    %48 = tpu.matmul %47, %45, %cst_46 {dimension_numbers = #tpu.dot_dimension_numbers<[1], [0], [0], [1], [0, 0, 1, 1], [], []>} : vector<32x32xbf16>, vector<32x128xbf16>, vector<32x128xf32> -> vector<32x128xf32>
    %49 = arith.addf %43, %48 : vector<32x128xf32>
    %c0_47 = arith.constant 0 : index
    %c0_48 = arith.constant 0 : index
    %c14 = arith.constant 14 : index
    %50 = vector.load %arg1[%c0_47, %c0_48, %c14] : memref<1x32x256xbf16, #tpu.memory_space<vmem>>, vector<1x32x128xbf16>
    %51 = vector.shape_cast %50 : vector<1x32x128xbf16> to vector<32x128xbf16>
    %c8_49 = arith.constant 8 : index
    %c0_50 = arith.constant 0 : index
    %c0_51 = arith.constant 0 : index
    %52 = vector.load %arg2[%c8_49, %c0_50, %c0_51] : memref<9x32x32xbf16, #tpu.memory_space<vmem>>, vector<1x32x32xbf16>
    %53 = vector.shape_cast %52 : vector<1x32x32xbf16> to vector<32x32xbf16>
    %cst_52 = arith.constant dense<0.000000e+00> : vector<32x128xf32>
    %54 = tpu.matmul %53, %51, %cst_52 {dimension_numbers = #tpu.dot_dimension_numbers<[1], [0], [0], [1], [0, 0, 1, 1], [], []>} : vector<32x32xbf16>, vector<32x128xbf16>, vector<32x128xf32> -> vector<32x128xf32>
    %55 = arith.addf %49, %54 : vector<32x128xf32>
    %56 = vector.broadcast %0 : vector<1x128xf32> to vector<32x128xf32>
    %57 = arith.mulf %55, %56 : vector<32x128xf32>
    %cst_53 = arith.constant dense<0.000000e+00> : vector<32xf32>
    %58 = vector.multi_reduction <add>, %57, %cst_53 [1] : vector<32x128xf32> to vector<32xf32>
    %59 = vector.shape_cast %58 : vector<32xf32> to vector<32x1xf32>
    %cst_54 = arith.constant 6.250000e-02 : f32
    %60 = vector.broadcast %cst_54 : f32 to vector<32x1xf32>
    %61 = arith.mulf %59, %60 : vector<32x1xf32>
    %62 = vector.broadcast %61 : vector<32x1xf32> to vector<32x128xf32>
    %63 = arith.subf %55, %62 : vector<32x128xf32>
    %64 = vector.broadcast %0 : vector<1x128xf32> to vector<32x128xf32>
    %65 = arith.mulf %63, %64 : vector<32x128xf32>
    %66 = arith.mulf %65, %65 : vector<32x128xf32>
    %cst_55 = arith.constant dense<0.000000e+00> : vector<32xf32>
    %67 = vector.multi_reduction <add>, %66, %cst_55 [1] : vector<32x128xf32> to vector<32xf32>
    %68 = vector.shape_cast %67 : vector<32xf32> to vector<32x1xf32>
    %cst_56 = arith.constant 6.250000e-02 : f32
    %69 = vector.broadcast %cst_56 : f32 to vector<32x1xf32>
    %70 = arith.mulf %68, %69 : vector<32x1xf32>
    %71 = vector.broadcast %61 : vector<32x1xf32> to vector<32x128xf32>
    %72 = arith.subf %55, %71 : vector<32x128xf32>
    %cst_57 = arith.constant 9.99999974E-6 : f32
    %73 = vector.broadcast %cst_57 : f32 to vector<32x1xf32>
    %74 = arith.addf %70, %73 : vector<32x1xf32>
    %75 = math.rsqrt %74 : vector<32x1xf32>
    %76 = vector.broadcast %75 : vector<32x1xf32> to vector<32x128xf32>
    %77 = arith.mulf %72, %76 : vector<32x128xf32>
    %cst_58 = arith.constant 0.000000e+00 : f32
    %78 = vector.broadcast %cst_58 : f32 to vector<32x128xf32>
    %79 = arith.maximumf %77, %78 : vector<32x128xf32>
    %80 = vector.broadcast %0 : vector<1x128xf32> to vector<32x128xf32>
    %81 = arith.mulf %79, %80 : vector<32x128xf32>
    %cst_59 = arith.constant 0.000000e+00 : bf16
    %82 = vector.broadcast %cst_59 : bf16 to vector<32x384xbf16>
    %c0_60 = arith.constant 0 : index
    %c0_61 = arith.constant 0 : index
    %83 = vector.load %arg6[%c0_60, %c0_61] : memref<32x384xbf16, #tpu.memory_space<vmem>>, vector<32x384xbf16>
    tpu.vector_store %arg6[%c0_60, %c0_61], %82 {strides = array<i32>} : memref<32x384xbf16, #tpu.memory_space<vmem>>, vector<32x384xbf16>,
    %84 = arith.truncf %81 : vector<32x128xf32> to vector<32x128xbf16>
    %c0_62 = arith.constant 0 : index
    %c128 = arith.constant 128 : index
    %85 = vector.load %arg6[%c0_62, %c128] : memref<32x384xbf16, #tpu.memory_space<vmem>>, vector<32x128xbf16>
    tpu.vector_store %arg6[%c0_62, %c128], %84 {strides = array<i32>} : memref<32x384xbf16, #tpu.memory_space<vmem>>, vector<32x128xbf16>,
    %cst_63 = arith.constant 0.000000e+00 : f32
    %86 = vector.broadcast %cst_63 : f32 to vector<32x128xf32>
    %c0_64 = arith.constant 0 : index
    %c121 = arith.constant 121 : index
    %87 = vector.load %arg6[%c0_64, %c121] : memref<32x384xbf16, #tpu.memory_space<vmem>>, vector<32x128xbf16>
    %c0_65 = arith.constant 0 : index
    %c0_66 = arith.constant 0 : index
    %c0_67 = arith.constant 0 : index
    %88 = vector.load %arg3[%c0_65, %c0_66, %c0_67] : memref<9x32x32xbf16, #tpu.memory_space<vmem>>, vector<1x32x32xbf16>
    %89 = vector.shape_cast %88 : vector<1x32x32xbf16> to vector<32x32xbf16>
    %cst_68 = arith.constant dense<0.000000e+00> : vector<32x128xf32>
    %90 = tpu.matmul %89, %87, %cst_68 {dimension_numbers = #tpu.dot_dimension_numbers<[1], [0], [0], [1], [0, 0, 1, 1], [], []>} : vector<32x32xbf16>, vector<32x128xbf16>, vector<32x128xf32> -> vector<32x128xf32>
    %91 = arith.addf %86, %90 : vector<32x128xf32>
    %c0_69 = arith.constant 0 : index
    %c122 = arith.constant 122 : index
    %92 = vector.load %arg6[%c0_69, %c122] : memref<32x384xbf16, #tpu.memory_space<vmem>>, vector<32x128xbf16>
    %c1_70 = arith.constant 1 : index
    %c0_71 = arith.constant 0 : index
    %c0_72 = arith.constant 0 : index
    %93 = vector.load %arg3[%c1_70, %c0_71, %c0_72] : memref<9x32x32xbf16, #tpu.memory_space<vmem>>, vector<1x32x32xbf16>
    %94 = vector.shape_cast %93 : vector<1x32x32xbf16> to vector<32x32xbf16>
    %cst_73 = arith.constant dense<0.000000e+00> : vector<32x128xf32>
    %95 = tpu.matmul %94, %92, %cst_73 {dimension_numbers = #tpu.dot_dimension_numbers<[1], [0], [0], [1], [0, 0, 1, 1], [], []>} : vector<32x32xbf16>, vector<32x128xbf16>, vector<32x128xf32> -> vector<32x128xf32>
    %96 = arith.addf %91, %95 : vector<32x128xf32>
    %c0_74 = arith.constant 0 : index
    %c123 = arith.constant 123 : index
    %97 = vector.load %arg6[%c0_74, %c123] : memref<32x384xbf16, #tpu.memory_space<vmem>>, vector<32x128xbf16>
    %c2_75 = arith.constant 2 : index
    %c0_76 = arith.constant 0 : index
    %c0_77 = arith.constant 0 : index
    %98 = vector.load %arg3[%c2_75, %c0_76, %c0_77] : memref<9x32x32xbf16, #tpu.memory_space<vmem>>, vector<1x32x32xbf16>
    %99 = vector.shape_cast %98 : vector<1x32x32xbf16> to vector<32x32xbf16>
    %cst_78 = arith.constant dense<0.000000e+00> : vector<32x128xf32>
    %100 = tpu.matmul %99, %97, %cst_78 {dimension_numbers = #tpu.dot_dimension_numbers<[1], [0], [0], [1], [0, 0, 1, 1], [], []>} : vector<32x32xbf16>, vector<32x128xbf16>, vector<32x128xf32> -> vector<32x128xf32>
    %101 = arith.addf %96, %100 : vector<32x128xf32>
    %c0_79 = arith.constant 0 : index
    %c127 = arith.constant 127 : index
    %102 = vector.load %arg6[%c0_79, %c127] : memref<32x384xbf16, #tpu.memory_space<vmem>>, vector<32x128xbf16>
    %c3_80 = arith.constant 3 : index
    %c0_81 = arith.constant 0 : index
    %c0_82 = arith.constant 0 : index
    %103 = vector.load %arg3[%c3_80, %c0_81, %c0_82] : memref<9x32x32xbf16, #tpu.memory_space<vmem>>, vector<1x32x32xbf16>
    %104 = vector.shape_cast %103 : vector<1x32x32xbf16> to vector<32x32xbf16>
    %cst_83 = arith.constant dense<0.000000e+00> : vector<32x128xf32>
    %105 = tpu.matmul %104, %102, %cst_83 {dimension_numbers = #tpu.dot_dimension_numbers<[1], [0], [0], [1], [0, 0, 1, 1], [], []>} : vector<32x32xbf16>, vector<32x128xbf16>, vector<32x128xf32> -> vector<32x128xf32>
    %106 = arith.addf %101, %105 : vector<32x128xf32>
    %c0_84 = arith.constant 0 : index
    %c128_85 = arith.constant 128 : index
    %107 = vector.load %arg6[%c0_84, %c128_85] : memref<32x384xbf16, #tpu.memory_space<vmem>>, vector<32x128xbf16>
    %c4_86 = arith.constant 4 : index
    %c0_87 = arith.constant 0 : index
    %c0_88 = arith.constant 0 : index
    %108 = vector.load %arg3[%c4_86, %c0_87, %c0_88] : memref<9x32x32xbf16, #tpu.memory_space<vmem>>, vector<1x32x32xbf16>
    %109 = vector.shape_cast %108 : vector<1x32x32xbf16> to vector<32x32xbf16>
    %cst_89 = arith.constant dense<0.000000e+00> : vector<32x128xf32>
    %110 = tpu.matmul %109, %107, %cst_89 {dimension_numbers = #tpu.dot_dimension_numbers<[1], [0], [0], [1], [0, 0, 1, 1], [], []>} : vector<32x32xbf16>, vector<32x128xbf16>, vector<32x128xf32> -> vector<32x128xf32>
    %111 = arith.addf %106, %110 : vector<32x128xf32>
    %c0_90 = arith.constant 0 : index
    %c129 = arith.constant 129 : index
    %112 = vector.load %arg6[%c0_90, %c129] : memref<32x384xbf16, #tpu.memory_space<vmem>>, vector<32x128xbf16>
    %c5_91 = arith.constant 5 : index
    %c0_92 = arith.constant 0 : index
    %c0_93 = arith.constant 0 : index
    %113 = vector.load %arg3[%c5_91, %c0_92, %c0_93] : memref<9x32x32xbf16, #tpu.memory_space<vmem>>, vector<1x32x32xbf16>
    %114 = vector.shape_cast %113 : vector<1x32x32xbf16> to vector<32x32xbf16>
    %cst_94 = arith.constant dense<0.000000e+00> : vector<32x128xf32>
    %115 = tpu.matmul %114, %112, %cst_94 {dimension_numbers = #tpu.dot_dimension_numbers<[1], [0], [0], [1], [0, 0, 1, 1], [], []>} : vector<32x32xbf16>, vector<32x128xbf16>, vector<32x128xf32> -> vector<32x128xf32>
    %116 = arith.addf %111, %115 : vector<32x128xf32>
    %c0_95 = arith.constant 0 : index
    %c133 = arith.constant 133 : index
    %117 = vector.load %arg6[%c0_95, %c133] : memref<32x384xbf16, #tpu.memory_space<vmem>>, vector<32x128xbf16>
    %c6_96 = arith.constant 6 : index
    %c0_97 = arith.constant 0 : index
    %c0_98 = arith.constant 0 : index
    %118 = vector.load %arg3[%c6_96, %c0_97, %c0_98] : memref<9x32x32xbf16, #tpu.memory_space<vmem>>, vector<1x32x32xbf16>
    %119 = vector.shape_cast %118 : vector<1x32x32xbf16> to vector<32x32xbf16>
    %cst_99 = arith.constant dense<0.000000e+00> : vector<32x128xf32>
    %120 = tpu.matmul %119, %117, %cst_99 {dimension_numbers = #tpu.dot_dimension_numbers<[1], [0], [0], [1], [0, 0, 1, 1], [], []>} : vector<32x32xbf16>, vector<32x128xbf16>, vector<32x128xf32> -> vector<32x128xf32>
    %121 = arith.addf %116, %120 : vector<32x128xf32>
    %c0_100 = arith.constant 0 : index
    %c134 = arith.constant 134 : index
    %122 = vector.load %arg6[%c0_100, %c134] : memref<32x384xbf16, #tpu.memory_space<vmem>>, vector<32x128xbf16>
    %c7_101 = arith.constant 7 : index
    %c0_102 = arith.constant 0 : index
    %c0_103 = arith.constant 0 : index
    %123 = vector.load %arg3[%c7_101, %c0_102, %c0_103] : memref<9x32x32xbf16, #tpu.memory_space<vmem>>, vector<1x32x32xbf16>
    %124 = vector.shape_cast %123 : vector<1x32x32xbf16> to vector<32x32xbf16>
    %cst_104 = arith.constant dense<0.000000e+00> : vector<32x128xf32>
    %125 = tpu.matmul %124, %122, %cst_104 {dimension_numbers = #tpu.dot_dimension_numbers<[1], [0], [0], [1], [0, 0, 1, 1], [], []>} : vector<32x32xbf16>, vector<32x128xbf16>, vector<32x128xf32> -> vector<32x128xf32>
    %126 = arith.addf %121, %125 : vector<32x128xf32>
    %c0_105 = arith.constant 0 : index
    %c135 = arith.constant 135 : index
    %127 = vector.load %arg6[%c0_105, %c135] : memref<32x384xbf16, #tpu.memory_space<vmem>>, vector<32x128xbf16>
    %c8_106 = arith.constant 8 : index
    %c0_107 = arith.constant 0 : index
    %c0_108 = arith.constant 0 : index
    %128 = vector.load %arg3[%c8_106, %c0_107, %c0_108] : memref<9x32x32xbf16, #tpu.memory_space<vmem>>, vector<1x32x32xbf16>
    %129 = vector.shape_cast %128 : vector<1x32x32xbf16> to vector<32x32xbf16>
    %cst_109 = arith.constant dense<0.000000e+00> : vector<32x128xf32>
    %130 = tpu.matmul %129, %127, %cst_109 {dimension_numbers = #tpu.dot_dimension_numbers<[1], [0], [0], [1], [0, 0, 1, 1], [], []>} : vector<32x32xbf16>, vector<32x128xbf16>, vector<32x128xf32> -> vector<32x128xf32>
    %131 = arith.addf %126, %130 : vector<32x128xf32>
    %132 = vector.broadcast %0 : vector<1x128xf32> to vector<32x128xf32>
    %133 = arith.mulf %131, %132 : vector<32x128xf32>
    %cst_110 = arith.constant dense<0.000000e+00> : vector<32xf32>
    %134 = vector.multi_reduction <add>, %133, %cst_110 [1] : vector<32x128xf32> to vector<32xf32>
    %135 = vector.shape_cast %134 : vector<32xf32> to vector<32x1xf32>
    %cst_111 = arith.constant 6.250000e-02 : f32
    %136 = vector.broadcast %cst_111 : f32 to vector<32x1xf32>
    %137 = arith.mulf %135, %136 : vector<32x1xf32>
    %138 = vector.broadcast %137 : vector<32x1xf32> to vector<32x128xf32>
    %139 = arith.subf %131, %138 : vector<32x128xf32>
    %140 = vector.broadcast %0 : vector<1x128xf32> to vector<32x128xf32>
    %141 = arith.mulf %139, %140 : vector<32x128xf32>
    %142 = arith.mulf %141, %141 : vector<32x128xf32>
    %cst_112 = arith.constant dense<0.000000e+00> : vector<32xf32>
    %143 = vector.multi_reduction <add>, %142, %cst_112 [1] : vector<32x128xf32> to vector<32xf32>
    %144 = vector.shape_cast %143 : vector<32xf32> to vector<32x1xf32>
    %cst_113 = arith.constant 6.250000e-02 : f32
    %145 = vector.broadcast %cst_113 : f32 to vector<32x1xf32>
    %146 = arith.mulf %144, %145 : vector<32x1xf32>
    %147 = vector.broadcast %137 : vector<32x1xf32> to vector<32x128xf32>
    %148 = arith.subf %131, %147 : vector<32x128xf32>
    %cst_114 = arith.constant 9.99999974E-6 : f32
    %149 = vector.broadcast %cst_114 : f32 to vector<32x1xf32>
    %150 = arith.addf %146, %149 : vector<32x1xf32>
    %151 = math.rsqrt %150 : vector<32x1xf32>
    %152 = vector.broadcast %151 : vector<32x1xf32> to vector<32x128xf32>
    %153 = arith.mulf %148, %152 : vector<32x128xf32>
    %c0_115 = arith.constant 0 : index
    %c0_116 = arith.constant 0 : index
    %c7_117 = arith.constant 7 : index
    %154 = vector.load %arg1[%c0_115, %c0_116, %c7_117] : memref<1x32x256xbf16, #tpu.memory_space<vmem>>, vector<1x32x128xbf16>
    %155 = vector.shape_cast %154 : vector<1x32x128xbf16> to vector<32x128xbf16>
    %156 = arith.extf %155 : vector<32x128xbf16> to vector<32x128xf32>
    %157 = arith.addf %153, %156 : vector<32x128xf32>
    %158 = arith.truncf %157 : vector<32x128xf32> to vector<32x128xbf16>
    %c0_118 = arith.constant 0 : index
    %c0_119 = arith.constant 0 : index
    %c0_120 = arith.constant 0 : index
    %159 = vector.load %arg5[%c0_118, %c0_119, %c0_120] : memref<1x32x128xbf16, #tpu.memory_space<vmem>>, vector<1x32x128xbf16>
    %160 = vector.shape_cast %159 : vector<1x32x128xbf16> to vector<32x128xbf16>
    %161 = vector.shape_cast %158 : vector<32x128xbf16> to vector<1x32x128xbf16>
    tpu.vector_store %arg5[%c0_118, %c0_119, %c0_120], %161 {strides = array<i32>} : memref<1x32x128xbf16, #tpu.memory_space<vmem>>, vector<1x32x128xbf16>,
    return
  }
  func.func @transform_0(%arg0: i32) -> (i32, i32, i32) {
    %c0_i32 = arith.constant 0 : i32
    %c0_i32_0 = arith.constant 0 : i32
    %c0_i32_1 = arith.constant 0 : i32
    return %arg0, %c0_i32, %c0_i32_0 : i32, i32, i32
  }
  func.func @transform_1(%arg0: i32) -> (i32, i32, i32) {
    %c0_i32 = arith.constant 0 : i32
    %c0_i32_0 = arith.constant 0 : i32
    %c0_i32_1 = arith.constant 0 : i32
    %c0_i32_2 = arith.constant 0 : i32
    return %c0_i32, %c0_i32_0, %c0_i32_1 : i32, i32, i32
  }
  func.func @transform_2(%arg0: i32) -> (i32, i32, i32) {
    %c0_i32 = arith.constant 0 : i32
    %c0_i32_0 = arith.constant 0 : i32
    %c0_i32_1 = arith.constant 0 : i32
    %c0_i32_2 = arith.constant 0 : i32
    return %c0_i32, %c0_i32_0, %c0_i32_1 : i32, i32, i32
  }
  func.func @transform_3(%arg0: i32) -> (i32, i32) {
    %c0_i32 = arith.constant 0 : i32
    %c0_i32_0 = arith.constant 0 : i32
    %c0_i32_1 = arith.constant 0 : i32
    return %c0_i32, %c0_i32_0 : i32, i32
  }
  func.func @transform_4(%arg0: i32) -> (i32, i32, i32) {
    %c0_i32 = arith.constant 0 : i32
    %c0_i32_0 = arith.constant 0 : i32
    %c0_i32_1 = arith.constant 0 : i32
    return %arg0, %c0_i32, %c0_i32_0 : i32, i32, i32
  }
}

module attributes {stable_mosaic.version = 11 : i64} {
  func.func @_conv_in_act_kernel(%arg0: i32, %arg1: memref<1x1x32x256xbf16, #tpu.memory_space<vmem>>, %arg2: memref<4x64x32xbf16, #tpu.memory_space<vmem>>, %arg3: memref<1x128xf32, #tpu.memory_space<vmem>>, %arg4: memref<1x64x128xbf16, #tpu.memory_space<vmem>>) attributes {dimension_semantics = [#tpu.dimension_semantics<parallel>], iteration_bounds = array<i64: 2>, scalar_prefetch = 0 : i64, scratch_operands = 0 : i64, tpu.core_type = #tpu.core_type<tc>, window_params = [{transform_indices = @transform_0, window_bounds = array<i64: 1, 1, 32, 256>}, {pipeline_mode = #tpu.pipeline_mode<synchronous>, transform_indices = @transform_1, window_bounds = array<i64: 4, 64, 32>}, {pipeline_mode = #tpu.pipeline_mode<synchronous>, transform_indices = @transform_2, window_bounds = array<i64: 1, 128>}, {transform_indices = @transform_3, window_bounds = array<i64: 1, 64, 128>}]} {
    %cst = arith.constant 0.000000e+00 : f32
    %0 = vector.broadcast %cst : f32 to vector<64x128xf32>
    %c0 = arith.constant 0 : index
    %c0_0 = arith.constant 0 : index
    %c0_1 = arith.constant 0 : index
    %c0_2 = arith.constant 0 : index
    %1 = vector.load %arg1[%c0, %c0_0, %c0_1, %c0_2] : memref<1x1x32x256xbf16, #tpu.memory_space<vmem>>, vector<1x1x32x128xbf16>
    %2 = vector.shape_cast %1 : vector<1x1x32x128xbf16> to vector<32x128xbf16>
    %c0_3 = arith.constant 0 : index
    %c0_4 = arith.constant 0 : index
    %c0_5 = arith.constant 0 : index
    %3 = vector.load %arg2[%c0_3, %c0_4, %c0_5] : memref<4x64x32xbf16, #tpu.memory_space<vmem>>, vector<1x64x32xbf16>
    %4 = vector.shape_cast %3 : vector<1x64x32xbf16> to vector<64x32xbf16>
    %cst_6 = arith.constant dense<0.000000e+00> : vector<64x128xf32>
    %5 = tpu.matmul %4, %2, %cst_6 {dimension_numbers = #tpu.dot_dimension_numbers<[1], [0], [0], [1], [0, 0, 1, 1], [], []>} : vector<64x32xbf16>, vector<32x128xbf16>, vector<64x128xf32> -> vector<64x128xf32>
    %6 = arith.addf %0, %5 : vector<64x128xf32>
    %c0_7 = arith.constant 0 : index
    %c0_8 = arith.constant 0 : index
    %c0_9 = arith.constant 0 : index
    %c1 = arith.constant 1 : index
    %7 = vector.load %arg1[%c0_7, %c0_8, %c0_9, %c1] : memref<1x1x32x256xbf16, #tpu.memory_space<vmem>>, vector<1x1x32x128xbf16>
    %8 = vector.shape_cast %7 : vector<1x1x32x128xbf16> to vector<32x128xbf16>
    %c1_10 = arith.constant 1 : index
    %c0_11 = arith.constant 0 : index
    %c0_12 = arith.constant 0 : index
    %9 = vector.load %arg2[%c1_10, %c0_11, %c0_12] : memref<4x64x32xbf16, #tpu.memory_space<vmem>>, vector<1x64x32xbf16>
    %10 = vector.shape_cast %9 : vector<1x64x32xbf16> to vector<64x32xbf16>
    %cst_13 = arith.constant dense<0.000000e+00> : vector<64x128xf32>
    %11 = tpu.matmul %10, %8, %cst_13 {dimension_numbers = #tpu.dot_dimension_numbers<[1], [0], [0], [1], [0, 0, 1, 1], [], []>} : vector<64x32xbf16>, vector<32x128xbf16>, vector<64x128xf32> -> vector<64x128xf32>
    %12 = arith.addf %6, %11 : vector<64x128xf32>
    %c0_14 = arith.constant 0 : index
    %c0_15 = arith.constant 0 : index
    %c0_16 = arith.constant 0 : index
    %c5 = arith.constant 5 : index
    %13 = vector.load %arg1[%c0_14, %c0_15, %c0_16, %c5] : memref<1x1x32x256xbf16, #tpu.memory_space<vmem>>, vector<1x1x32x128xbf16>
    %14 = vector.shape_cast %13 : vector<1x1x32x128xbf16> to vector<32x128xbf16>
    %c2 = arith.constant 2 : index
    %c0_17 = arith.constant 0 : index
    %c0_18 = arith.constant 0 : index
    %15 = vector.load %arg2[%c2, %c0_17, %c0_18] : memref<4x64x32xbf16, #tpu.memory_space<vmem>>, vector<1x64x32xbf16>
    %16 = vector.shape_cast %15 : vector<1x64x32xbf16> to vector<64x32xbf16>
    %cst_19 = arith.constant dense<0.000000e+00> : vector<64x128xf32>
    %17 = tpu.matmul %16, %14, %cst_19 {dimension_numbers = #tpu.dot_dimension_numbers<[1], [0], [0], [1], [0, 0, 1, 1], [], []>} : vector<64x32xbf16>, vector<32x128xbf16>, vector<64x128xf32> -> vector<64x128xf32>
    %18 = arith.addf %12, %17 : vector<64x128xf32>
    %c0_20 = arith.constant 0 : index
    %c0_21 = arith.constant 0 : index
    %c0_22 = arith.constant 0 : index
    %c6 = arith.constant 6 : index
    %19 = vector.load %arg1[%c0_20, %c0_21, %c0_22, %c6] : memref<1x1x32x256xbf16, #tpu.memory_space<vmem>>, vector<1x1x32x128xbf16>
    %20 = vector.shape_cast %19 : vector<1x1x32x128xbf16> to vector<32x128xbf16>
    %c3 = arith.constant 3 : index
    %c0_23 = arith.constant 0 : index
    %c0_24 = arith.constant 0 : index
    %21 = vector.load %arg2[%c3, %c0_23, %c0_24] : memref<4x64x32xbf16, #tpu.memory_space<vmem>>, vector<1x64x32xbf16>
    %22 = vector.shape_cast %21 : vector<1x64x32xbf16> to vector<64x32xbf16>
    %cst_25 = arith.constant dense<0.000000e+00> : vector<64x128xf32>
    %23 = tpu.matmul %22, %20, %cst_25 {dimension_numbers = #tpu.dot_dimension_numbers<[1], [0], [0], [1], [0, 0, 1, 1], [], []>} : vector<64x32xbf16>, vector<32x128xbf16>, vector<64x128xf32> -> vector<64x128xf32>
    %24 = arith.addf %18, %23 : vector<64x128xf32>
    %c0_26 = arith.constant 0 : index
    %c0_27 = arith.constant 0 : index
    %25 = vector.load %arg3[%c0_26, %c0_27] : memref<1x128xf32, #tpu.memory_space<vmem>>, vector<1x128xf32>
    %cst_28 = arith.constant 0.000000e+00 : f32
    %26 = vector.broadcast %cst_28 : f32 to vector<16x1xf32>
    %27 = vector.extract_strided_slice %24 {offsets = [0, 0], sizes = [16, 128], strides = [1, 1]} : vector<64x128xf32> to vector<16x128xf32>
    %28 = vector.broadcast %25 : vector<1x128xf32> to vector<16x128xf32>
    %29 = arith.mulf %27, %28 : vector<16x128xf32>
    %cst_29 = arith.constant dense<0.000000e+00> : vector<16xf32>
    %30 = vector.multi_reduction <add>, %29, %cst_29 [1] : vector<16x128xf32> to vector<16xf32>
    %31 = vector.shape_cast %30 : vector<16xf32> to vector<16x1xf32>
    %32 = arith.addf %26, %31 : vector<16x1xf32>
    %33 = vector.extract_strided_slice %24 {offsets = [16, 0], sizes = [16, 128], strides = [1, 1]} : vector<64x128xf32> to vector<16x128xf32>
    %34 = vector.broadcast %25 : vector<1x128xf32> to vector<16x128xf32>
    %35 = arith.mulf %33, %34 : vector<16x128xf32>
    %cst_30 = arith.constant dense<0.000000e+00> : vector<16xf32>
    %36 = vector.multi_reduction <add>, %35, %cst_30 [1] : vector<16x128xf32> to vector<16xf32>
    %37 = vector.shape_cast %36 : vector<16xf32> to vector<16x1xf32>
    %38 = arith.addf %32, %37 : vector<16x1xf32>
    %39 = vector.extract_strided_slice %24 {offsets = [32, 0], sizes = [16, 128], strides = [1, 1]} : vector<64x128xf32> to vector<16x128xf32>
    %40 = vector.broadcast %25 : vector<1x128xf32> to vector<16x128xf32>
    %41 = arith.mulf %39, %40 : vector<16x128xf32>
    %cst_31 = arith.constant dense<0.000000e+00> : vector<16xf32>
    %42 = vector.multi_reduction <add>, %41, %cst_31 [1] : vector<16x128xf32> to vector<16xf32>
    %43 = vector.shape_cast %42 : vector<16xf32> to vector<16x1xf32>
    %44 = arith.addf %38, %43 : vector<16x1xf32>
    %45 = vector.extract_strided_slice %24 {offsets = [48, 0], sizes = [16, 128], strides = [1, 1]} : vector<64x128xf32> to vector<16x128xf32>
    %46 = vector.broadcast %25 : vector<1x128xf32> to vector<16x128xf32>
    %47 = arith.mulf %45, %46 : vector<16x128xf32>
    %cst_32 = arith.constant dense<0.000000e+00> : vector<16xf32>
    %48 = vector.multi_reduction <add>, %47, %cst_32 [1] : vector<16x128xf32> to vector<16xf32>
    %49 = vector.shape_cast %48 : vector<16xf32> to vector<16x1xf32>
    %50 = arith.addf %44, %49 : vector<16x1xf32>
    %cst_33 = arith.constant 1.562500e-02 : f32
    %51 = vector.broadcast %cst_33 : f32 to vector<16x1xf32>
    %52 = arith.mulf %50, %51 : vector<16x1xf32>
    %cst_34 = arith.constant 0.000000e+00 : f32
    %53 = vector.broadcast %cst_34 : f32 to vector<16x1xf32>
    %54 = vector.extract_strided_slice %24 {offsets = [0, 0], sizes = [16, 128], strides = [1, 1]} : vector<64x128xf32> to vector<16x128xf32>
    %55 = vector.broadcast %52 : vector<16x1xf32> to vector<16x128xf32>
    %56 = arith.subf %54, %55 : vector<16x128xf32>
    %57 = vector.broadcast %25 : vector<1x128xf32> to vector<16x128xf32>
    %58 = arith.mulf %56, %57 : vector<16x128xf32>
    %59 = arith.mulf %58, %58 : vector<16x128xf32>
    %cst_35 = arith.constant dense<0.000000e+00> : vector<16xf32>
    %60 = vector.multi_reduction <add>, %59, %cst_35 [1] : vector<16x128xf32> to vector<16xf32>
    %61 = vector.shape_cast %60 : vector<16xf32> to vector<16x1xf32>
    %62 = arith.addf %53, %61 : vector<16x1xf32>
    %63 = vector.extract_strided_slice %24 {offsets = [16, 0], sizes = [16, 128], strides = [1, 1]} : vector<64x128xf32> to vector<16x128xf32>
    %64 = vector.broadcast %52 : vector<16x1xf32> to vector<16x128xf32>
    %65 = arith.subf %63, %64 : vector<16x128xf32>
    %66 = vector.broadcast %25 : vector<1x128xf32> to vector<16x128xf32>
    %67 = arith.mulf %65, %66 : vector<16x128xf32>
    %68 = arith.mulf %67, %67 : vector<16x128xf32>
    %cst_36 = arith.constant dense<0.000000e+00> : vector<16xf32>
    %69 = vector.multi_reduction <add>, %68, %cst_36 [1] : vector<16x128xf32> to vector<16xf32>
    %70 = vector.shape_cast %69 : vector<16xf32> to vector<16x1xf32>
    %71 = arith.addf %62, %70 : vector<16x1xf32>
    %72 = vector.extract_strided_slice %24 {offsets = [32, 0], sizes = [16, 128], strides = [1, 1]} : vector<64x128xf32> to vector<16x128xf32>
    %73 = vector.broadcast %52 : vector<16x1xf32> to vector<16x128xf32>
    %74 = arith.subf %72, %73 : vector<16x128xf32>
    %75 = vector.broadcast %25 : vector<1x128xf32> to vector<16x128xf32>
    %76 = arith.mulf %74, %75 : vector<16x128xf32>
    %77 = arith.mulf %76, %76 : vector<16x128xf32>
    %cst_37 = arith.constant dense<0.000000e+00> : vector<16xf32>
    %78 = vector.multi_reduction <add>, %77, %cst_37 [1] : vector<16x128xf32> to vector<16xf32>
    %79 = vector.shape_cast %78 : vector<16xf32> to vector<16x1xf32>
    %80 = arith.addf %71, %79 : vector<16x1xf32>
    %81 = vector.extract_strided_slice %24 {offsets = [48, 0], sizes = [16, 128], strides = [1, 1]} : vector<64x128xf32> to vector<16x128xf32>
    %82 = vector.broadcast %52 : vector<16x1xf32> to vector<16x128xf32>
    %83 = arith.subf %81, %82 : vector<16x128xf32>
    %84 = vector.broadcast %25 : vector<1x128xf32> to vector<16x128xf32>
    %85 = arith.mulf %83, %84 : vector<16x128xf32>
    %86 = arith.mulf %85, %85 : vector<16x128xf32>
    %cst_38 = arith.constant dense<0.000000e+00> : vector<16xf32>
    %87 = vector.multi_reduction <add>, %86, %cst_38 [1] : vector<16x128xf32> to vector<16xf32>
    %88 = vector.shape_cast %87 : vector<16xf32> to vector<16x1xf32>
    %89 = arith.addf %80, %88 : vector<16x1xf32>
    %cst_39 = arith.constant 1.562500e-02 : f32
    %90 = vector.broadcast %cst_39 : f32 to vector<16x1xf32>
    %91 = arith.mulf %89, %90 : vector<16x1xf32>
    %cst_40 = arith.constant 9.99999974E-6 : f32
    %92 = vector.broadcast %cst_40 : f32 to vector<16x1xf32>
    %93 = arith.addf %91, %92 : vector<16x1xf32>
    %94 = math.rsqrt %93 : vector<16x1xf32>
    %95 = vector.extract_strided_slice %24 {offsets = [0, 0], sizes = [16, 128], strides = [1, 1]} : vector<64x128xf32> to vector<16x128xf32>
    %96 = vector.broadcast %52 : vector<16x1xf32> to vector<16x128xf32>
    %97 = arith.subf %95, %96 : vector<16x128xf32>
    %98 = vector.broadcast %94 : vector<16x1xf32> to vector<16x128xf32>
    %99 = arith.mulf %97, %98 : vector<16x128xf32>
    %cst_41 = arith.constant 0.000000e+00 : f32
    %100 = vector.broadcast %cst_41 : f32 to vector<16x128xf32>
    %101 = arith.maximumf %99, %100 : vector<16x128xf32>
    %102 = arith.truncf %101 : vector<16x128xf32> to vector<16x128xbf16>
    %c0_42 = arith.constant 0 : index
    %c0_43 = arith.constant 0 : index
    %c0_44 = arith.constant 0 : index
    %103 = vector.load %arg4[%c0_42, %c0_43, %c0_44] : memref<1x64x128xbf16, #tpu.memory_space<vmem>>, vector<1x16x128xbf16>
    %104 = vector.shape_cast %103 : vector<1x16x128xbf16> to vector<16x128xbf16>
    %105 = vector.shape_cast %102 : vector<16x128xbf16> to vector<1x16x128xbf16>
    tpu.vector_store %arg4[%c0_42, %c0_43, %c0_44], %105 {strides = array<i32>} : memref<1x64x128xbf16, #tpu.memory_space<vmem>>, vector<1x16x128xbf16>,
    %106 = vector.extract_strided_slice %24 {offsets = [16, 0], sizes = [16, 128], strides = [1, 1]} : vector<64x128xf32> to vector<16x128xf32>
    %107 = vector.broadcast %52 : vector<16x1xf32> to vector<16x128xf32>
    %108 = arith.subf %106, %107 : vector<16x128xf32>
    %109 = vector.broadcast %94 : vector<16x1xf32> to vector<16x128xf32>
    %110 = arith.mulf %108, %109 : vector<16x128xf32>
    %cst_45 = arith.constant 0.000000e+00 : f32
    %111 = vector.broadcast %cst_45 : f32 to vector<16x128xf32>
    %112 = arith.maximumf %110, %111 : vector<16x128xf32>
    %113 = arith.truncf %112 : vector<16x128xf32> to vector<16x128xbf16>
    %c0_46 = arith.constant 0 : index
    %c16 = arith.constant 16 : index
    %c0_47 = arith.constant 0 : index
    %114 = vector.load %arg4[%c0_46, %c16, %c0_47] : memref<1x64x128xbf16, #tpu.memory_space<vmem>>, vector<1x16x128xbf16>
    %115 = vector.shape_cast %114 : vector<1x16x128xbf16> to vector<16x128xbf16>
    %116 = vector.shape_cast %113 : vector<16x128xbf16> to vector<1x16x128xbf16>
    tpu.vector_store %arg4[%c0_46, %c16, %c0_47], %116 {strides = array<i32>} : memref<1x64x128xbf16, #tpu.memory_space<vmem>>, vector<1x16x128xbf16>,
    %117 = vector.extract_strided_slice %24 {offsets = [32, 0], sizes = [16, 128], strides = [1, 1]} : vector<64x128xf32> to vector<16x128xf32>
    %118 = vector.broadcast %52 : vector<16x1xf32> to vector<16x128xf32>
    %119 = arith.subf %117, %118 : vector<16x128xf32>
    %120 = vector.broadcast %94 : vector<16x1xf32> to vector<16x128xf32>
    %121 = arith.mulf %119, %120 : vector<16x128xf32>
    %cst_48 = arith.constant 0.000000e+00 : f32
    %122 = vector.broadcast %cst_48 : f32 to vector<16x128xf32>
    %123 = arith.maximumf %121, %122 : vector<16x128xf32>
    %124 = arith.truncf %123 : vector<16x128xf32> to vector<16x128xbf16>
    %c0_49 = arith.constant 0 : index
    %c32 = arith.constant 32 : index
    %c0_50 = arith.constant 0 : index
    %125 = vector.load %arg4[%c0_49, %c32, %c0_50] : memref<1x64x128xbf16, #tpu.memory_space<vmem>>, vector<1x16x128xbf16>
    %126 = vector.shape_cast %125 : vector<1x16x128xbf16> to vector<16x128xbf16>
    %127 = vector.shape_cast %124 : vector<16x128xbf16> to vector<1x16x128xbf16>
    tpu.vector_store %arg4[%c0_49, %c32, %c0_50], %127 {strides = array<i32>} : memref<1x64x128xbf16, #tpu.memory_space<vmem>>, vector<1x16x128xbf16>,
    %128 = vector.extract_strided_slice %24 {offsets = [48, 0], sizes = [16, 128], strides = [1, 1]} : vector<64x128xf32> to vector<16x128xf32>
    %129 = vector.broadcast %52 : vector<16x1xf32> to vector<16x128xf32>
    %130 = arith.subf %128, %129 : vector<16x128xf32>
    %131 = vector.broadcast %94 : vector<16x1xf32> to vector<16x128xf32>
    %132 = arith.mulf %130, %131 : vector<16x128xf32>
    %cst_51 = arith.constant 0.000000e+00 : f32
    %133 = vector.broadcast %cst_51 : f32 to vector<16x128xf32>
    %134 = arith.maximumf %132, %133 : vector<16x128xf32>
    %135 = arith.truncf %134 : vector<16x128xf32> to vector<16x128xbf16>
    %c0_52 = arith.constant 0 : index
    %c48 = arith.constant 48 : index
    %c0_53 = arith.constant 0 : index
    %136 = vector.load %arg4[%c0_52, %c48, %c0_53] : memref<1x64x128xbf16, #tpu.memory_space<vmem>>, vector<1x16x128xbf16>
    %137 = vector.shape_cast %136 : vector<1x16x128xbf16> to vector<16x128xbf16>
    %138 = vector.shape_cast %135 : vector<16x128xbf16> to vector<1x16x128xbf16>
    tpu.vector_store %arg4[%c0_52, %c48, %c0_53], %138 {strides = array<i32>} : memref<1x64x128xbf16, #tpu.memory_space<vmem>>, vector<1x16x128xbf16>,
    return
  }
  func.func @transform_0(%arg0: i32) -> (i32, i32, i32, i32) {
    %c0_i32 = arith.constant 0 : i32
    %c0_i32_0 = arith.constant 0 : i32
    %c0_i32_1 = arith.constant 0 : i32
    %c0_i32_2 = arith.constant 0 : i32
    return %arg0, %c0_i32, %c0_i32_0, %c0_i32_1 : i32, i32, i32, i32
  }
  func.func @transform_1(%arg0: i32) -> (i32, i32, i32) {
    %c0_i32 = arith.constant 0 : i32
    %c0_i32_0 = arith.constant 0 : i32
    %c0_i32_1 = arith.constant 0 : i32
    %c0_i32_2 = arith.constant 0 : i32
    return %c0_i32, %c0_i32_0, %c0_i32_1 : i32, i32, i32
  }
  func.func @transform_2(%arg0: i32) -> (i32, i32) {
    %c0_i32 = arith.constant 0 : i32
    %c0_i32_0 = arith.constant 0 : i32
    %c0_i32_1 = arith.constant 0 : i32
    return %c0_i32, %c0_i32_0 : i32, i32
  }
  func.func @transform_3(%arg0: i32) -> (i32, i32, i32) {
    %c0_i32 = arith.constant 0 : i32
    %c0_i32_0 = arith.constant 0 : i32
    %c0_i32_1 = arith.constant 0 : i32
    return %arg0, %c0_i32, %c0_i32_0 : i32, i32, i32
  }
}

module attributes {stable_mosaic.version = 11 : i64} {
  func.func @_conv_in_act_kernel(%arg0: i32, %arg1: memref<1x1x16x256xbf16, #tpu.memory_space<vmem>>, %arg2: memref<4x32x16xbf16, #tpu.memory_space<vmem>>, %arg3: memref<1x128xf32, #tpu.memory_space<vmem>>, %arg4: memref<1x32x128xbf16, #tpu.memory_space<vmem>>) attributes {dimension_semantics = [#tpu.dimension_semantics<parallel>], iteration_bounds = array<i64: 2>, scalar_prefetch = 0 : i64, scratch_operands = 0 : i64, tpu.core_type = #tpu.core_type<tc>, window_params = [{transform_indices = @transform_0, window_bounds = array<i64: 1, 1, 16, 256>}, {pipeline_mode = #tpu.pipeline_mode<synchronous>, transform_indices = @transform_1, window_bounds = array<i64: 4, 32, 16>}, {pipeline_mode = #tpu.pipeline_mode<synchronous>, transform_indices = @transform_2, window_bounds = array<i64: 1, 128>}, {transform_indices = @transform_3, window_bounds = array<i64: 1, 32, 128>}]} {
    %cst = arith.constant 0.000000e+00 : f32
    %0 = vector.broadcast %cst : f32 to vector<32x128xf32>
    %c0 = arith.constant 0 : index
    %c0_0 = arith.constant 0 : index
    %c0_1 = arith.constant 0 : index
    %c0_2 = arith.constant 0 : index
    %1 = vector.load %arg1[%c0, %c0_0, %c0_1, %c0_2] : memref<1x1x16x256xbf16, #tpu.memory_space<vmem>>, vector<1x1x16x128xbf16>
    %2 = vector.shape_cast %1 : vector<1x1x16x128xbf16> to vector<16x128xbf16>
    %c0_3 = arith.constant 0 : index
    %c0_4 = arith.constant 0 : index
    %c0_5 = arith.constant 0 : index
    %3 = vector.load %arg2[%c0_3, %c0_4, %c0_5] : memref<4x32x16xbf16, #tpu.memory_space<vmem>>, vector<1x32x16xbf16>
    %4 = vector.shape_cast %3 : vector<1x32x16xbf16> to vector<32x16xbf16>
    %cst_6 = arith.constant dense<0.000000e+00> : vector<32x128xf32>
    %5 = tpu.matmul %4, %2, %cst_6 {dimension_numbers = #tpu.dot_dimension_numbers<[1], [0], [0], [1], [0, 0, 1, 1], [], []>} : vector<32x16xbf16>, vector<16x128xbf16>, vector<32x128xf32> -> vector<32x128xf32>
    %6 = arith.addf %0, %5 : vector<32x128xf32>
    %c0_7 = arith.constant 0 : index
    %c0_8 = arith.constant 0 : index
    %c0_9 = arith.constant 0 : index
    %c1 = arith.constant 1 : index
    %7 = vector.load %arg1[%c0_7, %c0_8, %c0_9, %c1] : memref<1x1x16x256xbf16, #tpu.memory_space<vmem>>, vector<1x1x16x128xbf16>
    %8 = vector.shape_cast %7 : vector<1x1x16x128xbf16> to vector<16x128xbf16>
    %c1_10 = arith.constant 1 : index
    %c0_11 = arith.constant 0 : index
    %c0_12 = arith.constant 0 : index
    %9 = vector.load %arg2[%c1_10, %c0_11, %c0_12] : memref<4x32x16xbf16, #tpu.memory_space<vmem>>, vector<1x32x16xbf16>
    %10 = vector.shape_cast %9 : vector<1x32x16xbf16> to vector<32x16xbf16>
    %cst_13 = arith.constant dense<0.000000e+00> : vector<32x128xf32>
    %11 = tpu.matmul %10, %8, %cst_13 {dimension_numbers = #tpu.dot_dimension_numbers<[1], [0], [0], [1], [0, 0, 1, 1], [], []>} : vector<32x16xbf16>, vector<16x128xbf16>, vector<32x128xf32> -> vector<32x128xf32>
    %12 = arith.addf %6, %11 : vector<32x128xf32>
    %c0_14 = arith.constant 0 : index
    %c0_15 = arith.constant 0 : index
    %c0_16 = arith.constant 0 : index
    %c9 = arith.constant 9 : index
    %13 = vector.load %arg1[%c0_14, %c0_15, %c0_16, %c9] : memref<1x1x16x256xbf16, #tpu.memory_space<vmem>>, vector<1x1x16x128xbf16>
    %14 = vector.shape_cast %13 : vector<1x1x16x128xbf16> to vector<16x128xbf16>
    %c2 = arith.constant 2 : index
    %c0_17 = arith.constant 0 : index
    %c0_18 = arith.constant 0 : index
    %15 = vector.load %arg2[%c2, %c0_17, %c0_18] : memref<4x32x16xbf16, #tpu.memory_space<vmem>>, vector<1x32x16xbf16>
    %16 = vector.shape_cast %15 : vector<1x32x16xbf16> to vector<32x16xbf16>
    %cst_19 = arith.constant dense<0.000000e+00> : vector<32x128xf32>
    %17 = tpu.matmul %16, %14, %cst_19 {dimension_numbers = #tpu.dot_dimension_numbers<[1], [0], [0], [1], [0, 0, 1, 1], [], []>} : vector<32x16xbf16>, vector<16x128xbf16>, vector<32x128xf32> -> vector<32x128xf32>
    %18 = arith.addf %12, %17 : vector<32x128xf32>
    %c0_20 = arith.constant 0 : index
    %c0_21 = arith.constant 0 : index
    %c0_22 = arith.constant 0 : index
    %c10 = arith.constant 10 : index
    %19 = vector.load %arg1[%c0_20, %c0_21, %c0_22, %c10] : memref<1x1x16x256xbf16, #tpu.memory_space<vmem>>, vector<1x1x16x128xbf16>
    %20 = vector.shape_cast %19 : vector<1x1x16x128xbf16> to vector<16x128xbf16>
    %c3 = arith.constant 3 : index
    %c0_23 = arith.constant 0 : index
    %c0_24 = arith.constant 0 : index
    %21 = vector.load %arg2[%c3, %c0_23, %c0_24] : memref<4x32x16xbf16, #tpu.memory_space<vmem>>, vector<1x32x16xbf16>
    %22 = vector.shape_cast %21 : vector<1x32x16xbf16> to vector<32x16xbf16>
    %cst_25 = arith.constant dense<0.000000e+00> : vector<32x128xf32>
    %23 = tpu.matmul %22, %20, %cst_25 {dimension_numbers = #tpu.dot_dimension_numbers<[1], [0], [0], [1], [0, 0, 1, 1], [], []>} : vector<32x16xbf16>, vector<16x128xbf16>, vector<32x128xf32> -> vector<32x128xf32>
    %24 = arith.addf %18, %23 : vector<32x128xf32>
    %c0_26 = arith.constant 0 : index
    %c0_27 = arith.constant 0 : index
    %25 = vector.load %arg3[%c0_26, %c0_27] : memref<1x128xf32, #tpu.memory_space<vmem>>, vector<1x128xf32>
    %cst_28 = arith.constant 0.000000e+00 : f32
    %26 = vector.broadcast %cst_28 : f32 to vector<8x1xf32>
    %27 = vector.extract_strided_slice %24 {offsets = [0, 0], sizes = [8, 128], strides = [1, 1]} : vector<32x128xf32> to vector<8x128xf32>
    %28 = vector.broadcast %25 : vector<1x128xf32> to vector<8x128xf32>
    %29 = arith.mulf %27, %28 : vector<8x128xf32>
    %cst_29 = arith.constant dense<0.000000e+00> : vector<8xf32>
    %30 = vector.multi_reduction <add>, %29, %cst_29 [1] : vector<8x128xf32> to vector<8xf32>
    %31 = vector.shape_cast %30 : vector<8xf32> to vector<8x1xf32>
    %32 = arith.addf %26, %31 : vector<8x1xf32>
    %33 = vector.extract_strided_slice %24 {offsets = [8, 0], sizes = [8, 128], strides = [1, 1]} : vector<32x128xf32> to vector<8x128xf32>
    %34 = vector.broadcast %25 : vector<1x128xf32> to vector<8x128xf32>
    %35 = arith.mulf %33, %34 : vector<8x128xf32>
    %cst_30 = arith.constant dense<0.000000e+00> : vector<8xf32>
    %36 = vector.multi_reduction <add>, %35, %cst_30 [1] : vector<8x128xf32> to vector<8xf32>
    %37 = vector.shape_cast %36 : vector<8xf32> to vector<8x1xf32>
    %38 = arith.addf %32, %37 : vector<8x1xf32>
    %39 = vector.extract_strided_slice %24 {offsets = [16, 0], sizes = [8, 128], strides = [1, 1]} : vector<32x128xf32> to vector<8x128xf32>
    %40 = vector.broadcast %25 : vector<1x128xf32> to vector<8x128xf32>
    %41 = arith.mulf %39, %40 : vector<8x128xf32>
    %cst_31 = arith.constant dense<0.000000e+00> : vector<8xf32>
    %42 = vector.multi_reduction <add>, %41, %cst_31 [1] : vector<8x128xf32> to vector<8xf32>
    %43 = vector.shape_cast %42 : vector<8xf32> to vector<8x1xf32>
    %44 = arith.addf %38, %43 : vector<8x1xf32>
    %45 = vector.extract_strided_slice %24 {offsets = [24, 0], sizes = [8, 128], strides = [1, 1]} : vector<32x128xf32> to vector<8x128xf32>
    %46 = vector.broadcast %25 : vector<1x128xf32> to vector<8x128xf32>
    %47 = arith.mulf %45, %46 : vector<8x128xf32>
    %cst_32 = arith.constant dense<0.000000e+00> : vector<8xf32>
    %48 = vector.multi_reduction <add>, %47, %cst_32 [1] : vector<8x128xf32> to vector<8xf32>
    %49 = vector.shape_cast %48 : vector<8xf32> to vector<8x1xf32>
    %50 = arith.addf %44, %49 : vector<8x1xf32>
    %cst_33 = arith.constant 3.906250e-03 : f32
    %51 = vector.broadcast %cst_33 : f32 to vector<8x1xf32>
    %52 = arith.mulf %50, %51 : vector<8x1xf32>
    %cst_34 = arith.constant 0.000000e+00 : f32
    %53 = vector.broadcast %cst_34 : f32 to vector<8x1xf32>
    %54 = vector.extract_strided_slice %24 {offsets = [0, 0], sizes = [8, 128], strides = [1, 1]} : vector<32x128xf32> to vector<8x128xf32>
    %55 = vector.broadcast %52 : vector<8x1xf32> to vector<8x128xf32>
    %56 = arith.subf %54, %55 : vector<8x128xf32>
    %57 = vector.broadcast %25 : vector<1x128xf32> to vector<8x128xf32>
    %58 = arith.mulf %56, %57 : vector<8x128xf32>
    %59 = arith.mulf %58, %58 : vector<8x128xf32>
    %cst_35 = arith.constant dense<0.000000e+00> : vector<8xf32>
    %60 = vector.multi_reduction <add>, %59, %cst_35 [1] : vector<8x128xf32> to vector<8xf32>
    %61 = vector.shape_cast %60 : vector<8xf32> to vector<8x1xf32>
    %62 = arith.addf %53, %61 : vector<8x1xf32>
    %63 = vector.extract_strided_slice %24 {offsets = [8, 0], sizes = [8, 128], strides = [1, 1]} : vector<32x128xf32> to vector<8x128xf32>
    %64 = vector.broadcast %52 : vector<8x1xf32> to vector<8x128xf32>
    %65 = arith.subf %63, %64 : vector<8x128xf32>
    %66 = vector.broadcast %25 : vector<1x128xf32> to vector<8x128xf32>
    %67 = arith.mulf %65, %66 : vector<8x128xf32>
    %68 = arith.mulf %67, %67 : vector<8x128xf32>
    %cst_36 = arith.constant dense<0.000000e+00> : vector<8xf32>
    %69 = vector.multi_reduction <add>, %68, %cst_36 [1] : vector<8x128xf32> to vector<8xf32>
    %70 = vector.shape_cast %69 : vector<8xf32> to vector<8x1xf32>
    %71 = arith.addf %62, %70 : vector<8x1xf32>
    %72 = vector.extract_strided_slice %24 {offsets = [16, 0], sizes = [8, 128], strides = [1, 1]} : vector<32x128xf32> to vector<8x128xf32>
    %73 = vector.broadcast %52 : vector<8x1xf32> to vector<8x128xf32>
    %74 = arith.subf %72, %73 : vector<8x128xf32>
    %75 = vector.broadcast %25 : vector<1x128xf32> to vector<8x128xf32>
    %76 = arith.mulf %74, %75 : vector<8x128xf32>
    %77 = arith.mulf %76, %76 : vector<8x128xf32>
    %cst_37 = arith.constant dense<0.000000e+00> : vector<8xf32>
    %78 = vector.multi_reduction <add>, %77, %cst_37 [1] : vector<8x128xf32> to vector<8xf32>
    %79 = vector.shape_cast %78 : vector<8xf32> to vector<8x1xf32>
    %80 = arith.addf %71, %79 : vector<8x1xf32>
    %81 = vector.extract_strided_slice %24 {offsets = [24, 0], sizes = [8, 128], strides = [1, 1]} : vector<32x128xf32> to vector<8x128xf32>
    %82 = vector.broadcast %52 : vector<8x1xf32> to vector<8x128xf32>
    %83 = arith.subf %81, %82 : vector<8x128xf32>
    %84 = vector.broadcast %25 : vector<1x128xf32> to vector<8x128xf32>
    %85 = arith.mulf %83, %84 : vector<8x128xf32>
    %86 = arith.mulf %85, %85 : vector<8x128xf32>
    %cst_38 = arith.constant dense<0.000000e+00> : vector<8xf32>
    %87 = vector.multi_reduction <add>, %86, %cst_38 [1] : vector<8x128xf32> to vector<8xf32>
    %88 = vector.shape_cast %87 : vector<8xf32> to vector<8x1xf32>
    %89 = arith.addf %80, %88 : vector<8x1xf32>
    %cst_39 = arith.constant 3.906250e-03 : f32
    %90 = vector.broadcast %cst_39 : f32 to vector<8x1xf32>
    %91 = arith.mulf %89, %90 : vector<8x1xf32>
    %cst_40 = arith.constant 9.99999974E-6 : f32
    %92 = vector.broadcast %cst_40 : f32 to vector<8x1xf32>
    %93 = arith.addf %91, %92 : vector<8x1xf32>
    %94 = math.rsqrt %93 : vector<8x1xf32>
    %95 = vector.extract_strided_slice %24 {offsets = [0, 0], sizes = [8, 128], strides = [1, 1]} : vector<32x128xf32> to vector<8x128xf32>
    %96 = vector.broadcast %52 : vector<8x1xf32> to vector<8x128xf32>
    %97 = arith.subf %95, %96 : vector<8x128xf32>
    %98 = vector.broadcast %94 : vector<8x1xf32> to vector<8x128xf32>
    %99 = arith.mulf %97, %98 : vector<8x128xf32>
    %cst_41 = arith.constant 0.000000e+00 : f32
    %100 = vector.broadcast %cst_41 : f32 to vector<8x128xf32>
    %101 = arith.maximumf %99, %100 : vector<8x128xf32>
    %102 = arith.truncf %101 : vector<8x128xf32> to vector<8x128xbf16>
    %c0_42 = arith.constant 0 : index
    %c0_43 = arith.constant 0 : index
    %c0_44 = arith.constant 0 : index
    %103 = vector.load %arg4[%c0_42, %c0_43, %c0_44] : memref<1x32x128xbf16, #tpu.memory_space<vmem>>, vector<1x8x128xbf16>
    %104 = vector.shape_cast %103 : vector<1x8x128xbf16> to vector<8x128xbf16>
    %105 = vector.shape_cast %102 : vector<8x128xbf16> to vector<1x8x128xbf16>
    tpu.vector_store %arg4[%c0_42, %c0_43, %c0_44], %105 {strides = array<i32>} : memref<1x32x128xbf16, #tpu.memory_space<vmem>>, vector<1x8x128xbf16>,
    %106 = vector.extract_strided_slice %24 {offsets = [8, 0], sizes = [8, 128], strides = [1, 1]} : vector<32x128xf32> to vector<8x128xf32>
    %107 = vector.broadcast %52 : vector<8x1xf32> to vector<8x128xf32>
    %108 = arith.subf %106, %107 : vector<8x128xf32>
    %109 = vector.broadcast %94 : vector<8x1xf32> to vector<8x128xf32>
    %110 = arith.mulf %108, %109 : vector<8x128xf32>
    %cst_45 = arith.constant 0.000000e+00 : f32
    %111 = vector.broadcast %cst_45 : f32 to vector<8x128xf32>
    %112 = arith.maximumf %110, %111 : vector<8x128xf32>
    %113 = arith.truncf %112 : vector<8x128xf32> to vector<8x128xbf16>
    %c0_46 = arith.constant 0 : index
    %c8 = arith.constant 8 : index
    %c0_47 = arith.constant 0 : index
    %114 = vector.load %arg4[%c0_46, %c8, %c0_47] : memref<1x32x128xbf16, #tpu.memory_space<vmem>>, vector<1x8x128xbf16>
    %115 = vector.shape_cast %114 : vector<1x8x128xbf16> to vector<8x128xbf16>
    %116 = vector.shape_cast %113 : vector<8x128xbf16> to vector<1x8x128xbf16>
    tpu.vector_store %arg4[%c0_46, %c8, %c0_47], %116 {strides = array<i32>} : memref<1x32x128xbf16, #tpu.memory_space<vmem>>, vector<1x8x128xbf16>,
    %117 = vector.extract_strided_slice %24 {offsets = [16, 0], sizes = [8, 128], strides = [1, 1]} : vector<32x128xf32> to vector<8x128xf32>
    %118 = vector.broadcast %52 : vector<8x1xf32> to vector<8x128xf32>
    %119 = arith.subf %117, %118 : vector<8x128xf32>
    %120 = vector.broadcast %94 : vector<8x1xf32> to vector<8x128xf32>
    %121 = arith.mulf %119, %120 : vector<8x128xf32>
    %cst_48 = arith.constant 0.000000e+00 : f32
    %122 = vector.broadcast %cst_48 : f32 to vector<8x128xf32>
    %123 = arith.maximumf %121, %122 : vector<8x128xf32>
    %124 = arith.truncf %123 : vector<8x128xf32> to vector<8x128xbf16>
    %c0_49 = arith.constant 0 : index
    %c16 = arith.constant 16 : index
    %c0_50 = arith.constant 0 : index
    %125 = vector.load %arg4[%c0_49, %c16, %c0_50] : memref<1x32x128xbf16, #tpu.memory_space<vmem>>, vector<1x8x128xbf16>
    %126 = vector.shape_cast %125 : vector<1x8x128xbf16> to vector<8x128xbf16>
    %127 = vector.shape_cast %124 : vector<8x128xbf16> to vector<1x8x128xbf16>
    tpu.vector_store %arg4[%c0_49, %c16, %c0_50], %127 {strides = array<i32>} : memref<1x32x128xbf16, #tpu.memory_space<vmem>>, vector<1x8x128xbf16>,
    %128 = vector.extract_strided_slice %24 {offsets = [24, 0], sizes = [8, 128], strides = [1, 1]} : vector<32x128xf32> to vector<8x128xf32>
    %129 = vector.broadcast %52 : vector<8x1xf32> to vector<8x128xf32>
    %130 = arith.subf %128, %129 : vector<8x128xf32>
    %131 = vector.broadcast %94 : vector<8x1xf32> to vector<8x128xf32>
    %132 = arith.mulf %130, %131 : vector<8x128xf32>
    %cst_51 = arith.constant 0.000000e+00 : f32
    %133 = vector.broadcast %cst_51 : f32 to vector<8x128xf32>
    %134 = arith.maximumf %132, %133 : vector<8x128xf32>
    %135 = arith.truncf %134 : vector<8x128xf32> to vector<8x128xbf16>
    %c0_52 = arith.constant 0 : index
    %c24 = arith.constant 24 : index
    %c0_53 = arith.constant 0 : index
    %136 = vector.load %arg4[%c0_52, %c24, %c0_53] : memref<1x32x128xbf16, #tpu.memory_space<vmem>>, vector<1x8x128xbf16>
    %137 = vector.shape_cast %136 : vector<1x8x128xbf16> to vector<8x128xbf16>
    %138 = vector.shape_cast %135 : vector<8x128xbf16> to vector<1x8x128xbf16>
    tpu.vector_store %arg4[%c0_52, %c24, %c0_53], %138 {strides = array<i32>} : memref<1x32x128xbf16, #tpu.memory_space<vmem>>, vector<1x8x128xbf16>,
    return
  }
  func.func @transform_0(%arg0: i32) -> (i32, i32, i32, i32) {
    %c0_i32 = arith.constant 0 : i32
    %c0_i32_0 = arith.constant 0 : i32
    %c0_i32_1 = arith.constant 0 : i32
    %c0_i32_2 = arith.constant 0 : i32
    return %arg0, %c0_i32, %c0_i32_0, %c0_i32_1 : i32, i32, i32, i32
  }
  func.func @transform_1(%arg0: i32) -> (i32, i32, i32) {
    %c0_i32 = arith.constant 0 : i32
    %c0_i32_0 = arith.constant 0 : i32
    %c0_i32_1 = arith.constant 0 : i32
    %c0_i32_2 = arith.constant 0 : i32
    return %c0_i32, %c0_i32_0, %c0_i32_1 : i32, i32, i32
  }
  func.func @transform_2(%arg0: i32) -> (i32, i32) {
    %c0_i32 = arith.constant 0 : i32
    %c0_i32_0 = arith.constant 0 : i32
    %c0_i32_1 = arith.constant 0 : i32
    return %c0_i32, %c0_i32_0 : i32, i32
  }
  func.func @transform_3(%arg0: i32) -> (i32, i32, i32) {
    %c0_i32 = arith.constant 0 : i32
    %c0_i32_0 = arith.constant 0 : i32
    %c0_i32_1 = arith.constant 0 : i32
    return %arg0, %c0_i32, %c0_i32_0 : i32, i32, i32
  }
}

module attributes {stable_mosaic.version = 11 : i64} {
  func.func @_conv_in_act_kernel(%arg0: i32, %arg1: memref<1x1x8x640xbf16, #tpu.memory_space<vmem>>, %arg2: memref<49x3x8xbf16, #tpu.memory_space<vmem>>, %arg3: memref<1x384xf32, #tpu.memory_space<vmem>>, %arg4: memref<1x3x384xf32, #tpu.memory_space<vmem>>) attributes {dimension_semantics = [#tpu.dimension_semantics<parallel>], iteration_bounds = array<i64: 2>, scalar_prefetch = 0 : i64, scratch_operands = 0 : i64, tpu.core_type = #tpu.core_type<tc>, window_params = [{transform_indices = @transform_0, window_bounds = array<i64: 1, 1, 8, 640>}, {pipeline_mode = #tpu.pipeline_mode<synchronous>, transform_indices = @transform_1, window_bounds = array<i64: 49, 3, 8>}, {pipeline_mode = #tpu.pipeline_mode<synchronous>, transform_indices = @transform_2, window_bounds = array<i64: 1, 384>}, {transform_indices = @transform_3, window_bounds = array<i64: 1, 3, 384>}]} {
    %cst = arith.constant 0.000000e+00 : f32
    %0 = vector.broadcast %cst : f32 to vector<3x384xf32>
    %c0 = arith.constant 0 : index
    %c0_0 = arith.constant 0 : index
    %c0_1 = arith.constant 0 : index
    %c0_2 = arith.constant 0 : index
    %1 = vector.load %arg1[%c0, %c0_0, %c0_1, %c0_2] : memref<1x1x8x640xbf16, #tpu.memory_space<vmem>>, vector<1x1x8x384xbf16>
    %2 = vector.shape_cast %1 : vector<1x1x8x384xbf16> to vector<8x384xbf16>
    %c0_3 = arith.constant 0 : index
    %c0_4 = arith.constant 0 : index
    %c0_5 = arith.constant 0 : index
    %3 = vector.load %arg2[%c0_3, %c0_4, %c0_5] : memref<49x3x8xbf16, #tpu.memory_space<vmem>>, vector<1x3x8xbf16>
    %4 = vector.shape_cast %3 : vector<1x3x8xbf16> to vector<3x8xbf16>
    %cst_6 = arith.constant dense<0.000000e+00> : vector<3x384xf32>
    %5 = tpu.matmul %4, %2, %cst_6 {dimension_numbers = #tpu.dot_dimension_numbers<[1], [0], [0], [1], [0, 0, 1, 1], [], []>} : vector<3x8xbf16>, vector<8x384xbf16>, vector<3x384xf32> -> vector<3x384xf32>
    %6 = arith.addf %0, %5 : vector<3x384xf32>
    %c0_7 = arith.constant 0 : index
    %c0_8 = arith.constant 0 : index
    %c0_9 = arith.constant 0 : index
    %c1 = arith.constant 1 : index
    %7 = vector.load %arg1[%c0_7, %c0_8, %c0_9, %c1] : memref<1x1x8x640xbf16, #tpu.memory_space<vmem>>, vector<1x1x8x384xbf16>
    %8 = vector.shape_cast %7 : vector<1x1x8x384xbf16> to vector<8x384xbf16>
    %c1_10 = arith.constant 1 : index
    %c0_11 = arith.constant 0 : index
    %c0_12 = arith.constant 0 : index
    %9 = vector.load %arg2[%c1_10, %c0_11, %c0_12] : memref<49x3x8xbf16, #tpu.memory_space<vmem>>, vector<1x3x8xbf16>
    %10 = vector.shape_cast %9 : vector<1x3x8xbf16> to vector<3x8xbf16>
    %cst_13 = arith.constant dense<0.000000e+00> : vector<3x384xf32>
    %11 = tpu.matmul %10, %8, %cst_13 {dimension_numbers = #tpu.dot_dimension_numbers<[1], [0], [0], [1], [0, 0, 1, 1], [], []>} : vector<3x8xbf16>, vector<8x384xbf16>, vector<3x384xf32> -> vector<3x384xf32>
    %12 = arith.addf %6, %11 : vector<3x384xf32>
    %c0_14 = arith.constant 0 : index
    %c0_15 = arith.constant 0 : index
    %c0_16 = arith.constant 0 : index
    %c2 = arith.constant 2 : index
    %13 = vector.load %arg1[%c0_14, %c0_15, %c0_16, %c2] : memref<1x1x8x640xbf16, #tpu.memory_space<vmem>>, vector<1x1x8x384xbf16>
    %14 = vector.shape_cast %13 : vector<1x1x8x384xbf16> to vector<8x384xbf16>
    %c2_17 = arith.constant 2 : index
    %c0_18 = arith.constant 0 : index
    %c0_19 = arith.constant 0 : index
    %15 = vector.load %arg2[%c2_17, %c0_18, %c0_19] : memref<49x3x8xbf16, #tpu.memory_space<vmem>>, vector<1x3x8xbf16>
    %16 = vector.shape_cast %15 : vector<1x3x8xbf16> to vector<3x8xbf16>
    %cst_20 = arith.constant dense<0.000000e+00> : vector<3x384xf32>
    %17 = tpu.matmul %16, %14, %cst_20 {dimension_numbers = #tpu.dot_dimension_numbers<[1], [0], [0], [1], [0, 0, 1, 1], [], []>} : vector<3x8xbf16>, vector<8x384xbf16>, vector<3x384xf32> -> vector<3x384xf32>
    %18 = arith.addf %12, %17 : vector<3x384xf32>
    %c0_21 = arith.constant 0 : index
    %c0_22 = arith.constant 0 : index
    %c0_23 = arith.constant 0 : index
    %c3 = arith.constant 3 : index
    %19 = vector.load %arg1[%c0_21, %c0_22, %c0_23, %c3] : memref<1x1x8x640xbf16, #tpu.memory_space<vmem>>, vector<1x1x8x384xbf16>
    %20 = vector.shape_cast %19 : vector<1x1x8x384xbf16> to vector<8x384xbf16>
    %c3_24 = arith.constant 3 : index
    %c0_25 = arith.constant 0 : index
    %c0_26 = arith.constant 0 : index
    %21 = vector.load %arg2[%c3_24, %c0_25, %c0_26] : memref<49x3x8xbf16, #tpu.memory_space<vmem>>, vector<1x3x8xbf16>
    %22 = vector.shape_cast %21 : vector<1x3x8xbf16> to vector<3x8xbf16>
    %cst_27 = arith.constant dense<0.000000e+00> : vector<3x384xf32>
    %23 = tpu.matmul %22, %20, %cst_27 {dimension_numbers = #tpu.dot_dimension_numbers<[1], [0], [0], [1], [0, 0, 1, 1], [], []>} : vector<3x8xbf16>, vector<8x384xbf16>, vector<3x384xf32> -> vector<3x384xf32>
    %24 = arith.addf %18, %23 : vector<3x384xf32>
    %c0_28 = arith.constant 0 : index
    %c0_29 = arith.constant 0 : index
    %c0_30 = arith.constant 0 : index
    %c4 = arith.constant 4 : index
    %25 = vector.load %arg1[%c0_28, %c0_29, %c0_30, %c4] : memref<1x1x8x640xbf16, #tpu.memory_space<vmem>>, vector<1x1x8x384xbf16>
    %26 = vector.shape_cast %25 : vector<1x1x8x384xbf16> to vector<8x384xbf16>
    %c4_31 = arith.constant 4 : index
    %c0_32 = arith.constant 0 : index
    %c0_33 = arith.constant 0 : index
    %27 = vector.load %arg2[%c4_31, %c0_32, %c0_33] : memref<49x3x8xbf16, #tpu.memory_space<vmem>>, vector<1x3x8xbf16>
    %28 = vector.shape_cast %27 : vector<1x3x8xbf16> to vector<3x8xbf16>
    %cst_34 = arith.constant dense<0.000000e+00> : vector<3x384xf32>
    %29 = tpu.matmul %28, %26, %cst_34 {dimension_numbers = #tpu.dot_dimension_numbers<[1], [0], [0], [1], [0, 0, 1, 1], [], []>} : vector<3x8xbf16>, vector<8x384xbf16>, vector<3x384xf32> -> vector<3x384xf32>
    %30 = arith.addf %24, %29 : vector<3x384xf32>
    %c0_35 = arith.constant 0 : index
    %c0_36 = arith.constant 0 : index
    %c0_37 = arith.constant 0 : index
    %c5 = arith.constant 5 : index
    %31 = vector.load %arg1[%c0_35, %c0_36, %c0_37, %c5] : memref<1x1x8x640xbf16, #tpu.memory_space<vmem>>, vector<1x1x8x384xbf16>
    %32 = vector.shape_cast %31 : vector<1x1x8x384xbf16> to vector<8x384xbf16>
    %c5_38 = arith.constant 5 : index
    %c0_39 = arith.constant 0 : index
    %c0_40 = arith.constant 0 : index
    %33 = vector.load %arg2[%c5_38, %c0_39, %c0_40] : memref<49x3x8xbf16, #tpu.memory_space<vmem>>, vector<1x3x8xbf16>
    %34 = vector.shape_cast %33 : vector<1x3x8xbf16> to vector<3x8xbf16>
    %cst_41 = arith.constant dense<0.000000e+00> : vector<3x384xf32>
    %35 = tpu.matmul %34, %32, %cst_41 {dimension_numbers = #tpu.dot_dimension_numbers<[1], [0], [0], [1], [0, 0, 1, 1], [], []>} : vector<3x8xbf16>, vector<8x384xbf16>, vector<3x384xf32> -> vector<3x384xf32>
    %36 = arith.addf %30, %35 : vector<3x384xf32>
    %c0_42 = arith.constant 0 : index
    %c0_43 = arith.constant 0 : index
    %c0_44 = arith.constant 0 : index
    %c6 = arith.constant 6 : index
    %37 = vector.load %arg1[%c0_42, %c0_43, %c0_44, %c6] : memref<1x1x8x640xbf16, #tpu.memory_space<vmem>>, vector<1x1x8x384xbf16>
    %38 = vector.shape_cast %37 : vector<1x1x8x384xbf16> to vector<8x384xbf16>
    %c6_45 = arith.constant 6 : index
    %c0_46 = arith.constant 0 : index
    %c0_47 = arith.constant 0 : index
    %39 = vector.load %arg2[%c6_45, %c0_46, %c0_47] : memref<49x3x8xbf16, #tpu.memory_space<vmem>>, vector<1x3x8xbf16>
    %40 = vector.shape_cast %39 : vector<1x3x8xbf16> to vector<3x8xbf16>
    %cst_48 = arith.constant dense<0.000000e+00> : vector<3x384xf32>
    %41 = tpu.matmul %40, %38, %cst_48 {dimension_numbers = #tpu.dot_dimension_numbers<[1], [0], [0], [1], [0, 0, 1, 1], [], []>} : vector<3x8xbf16>, vector<8x384xbf16>, vector<3x384xf32> -> vector<3x384xf32>
    %42 = arith.addf %36, %41 : vector<3x384xf32>
    %c0_49 = arith.constant 0 : index
    %c0_50 = arith.constant 0 : index
    %c0_51 = arith.constant 0 : index
    %c22 = arith.constant 22 : index
    %43 = vector.load %arg1[%c0_49, %c0_50, %c0_51, %c22] : memref<1x1x8x640xbf16, #tpu.memory_space<vmem>>, vector<1x1x8x384xbf16>
    %44 = vector.shape_cast %43 : vector<1x1x8x384xbf16> to vector<8x384xbf16>
    %c7 = arith.constant 7 : index
    %c0_52 = arith.constant 0 : index
    %c0_53 = arith.constant 0 : index
    %45 = vector.load %arg2[%c7, %c0_52, %c0_53] : memref<49x3x8xbf16, #tpu.memory_space<vmem>>, vector<1x3x8xbf16>
    %46 = vector.shape_cast %45 : vector<1x3x8xbf16> to vector<3x8xbf16>
    %cst_54 = arith.constant dense<0.000000e+00> : vector<3x384xf32>
    %47 = tpu.matmul %46, %44, %cst_54 {dimension_numbers = #tpu.dot_dimension_numbers<[1], [0], [0], [1], [0, 0, 1, 1], [], []>} : vector<3x8xbf16>, vector<8x384xbf16>, vector<3x384xf32> -> vector<3x384xf32>
    %48 = arith.addf %42, %47 : vector<3x384xf32>
    %c0_55 = arith.constant 0 : index
    %c0_56 = arith.constant 0 : index
    %c0_57 = arith.constant 0 : index
    %c23 = arith.constant 23 : index
    %49 = vector.load %arg1[%c0_55, %c0_56, %c0_57, %c23] : memref<1x1x8x640xbf16, #tpu.memory_space<vmem>>, vector<1x1x8x384xbf16>
    %50 = vector.shape_cast %49 : vector<1x1x8x384xbf16> to vector<8x384xbf16>
    %c8 = arith.constant 8 : index
    %c0_58 = arith.constant 0 : index
    %c0_59 = arith.constant 0 : index
    %51 = vector.load %arg2[%c8, %c0_58, %c0_59] : memref<49x3x8xbf16, #tpu.memory_space<vmem>>, vector<1x3x8xbf16>
    %52 = vector.shape_cast %51 : vector<1x3x8xbf16> to vector<3x8xbf16>
    %cst_60 = arith.constant dense<0.000000e+00> : vector<3x384xf32>
    %53 = tpu.matmul %52, %50, %cst_60 {dimension_numbers = #tpu.dot_dimension_numbers<[1], [0], [0], [1], [0, 0, 1, 1], [], []>} : vector<3x8xbf16>, vector<8x384xbf16>, vector<3x384xf32> -> vector<3x384xf32>
    %54 = arith.addf %48, %53 : vector<3x384xf32>
    %c0_61 = arith.constant 0 : index
    %c0_62 = arith.constant 0 : index
    %c0_63 = arith.constant 0 : index
    %c24 = arith.constant 24 : index
    %55 = vector.load %arg1[%c0_61, %c0_62, %c0_63, %c24] : memref<1x1x8x640xbf16, #tpu.memory_space<vmem>>, vector<1x1x8x384xbf16>
    %56 = vector.shape_cast %55 : vector<1x1x8x384xbf16> to vector<8x384xbf16>
    %c9 = arith.constant 9 : index
    %c0_64 = arith.constant 0 : index
    %c0_65 = arith.constant 0 : index
    %57 = vector.load %arg2[%c9, %c0_64, %c0_65] : memref<49x3x8xbf16, #tpu.memory_space<vmem>>, vector<1x3x8xbf16>
    %58 = vector.shape_cast %57 : vector<1x3x8xbf16> to vector<3x8xbf16>
    %cst_66 = arith.constant dense<0.000000e+00> : vector<3x384xf32>
    %59 = tpu.matmul %58, %56, %cst_66 {dimension_numbers = #tpu.dot_dimension_numbers<[1], [0], [0], [1], [0, 0, 1, 1], [], []>} : vector<3x8xbf16>, vector<8x384xbf16>, vector<3x384xf32> -> vector<3x384xf32>
    %60 = arith.addf %54, %59 : vector<3x384xf32>
    %c0_67 = arith.constant 0 : index
    %c0_68 = arith.constant 0 : index
    %c0_69 = arith.constant 0 : index
    %c25 = arith.constant 25 : index
    %61 = vector.load %arg1[%c0_67, %c0_68, %c0_69, %c25] : memref<1x1x8x640xbf16, #tpu.memory_space<vmem>>, vector<1x1x8x384xbf16>
    %62 = vector.shape_cast %61 : vector<1x1x8x384xbf16> to vector<8x384xbf16>
    %c10 = arith.constant 10 : index
    %c0_70 = arith.constant 0 : index
    %c0_71 = arith.constant 0 : index
    %63 = vector.load %arg2[%c10, %c0_70, %c0_71] : memref<49x3x8xbf16, #tpu.memory_space<vmem>>, vector<1x3x8xbf16>
    %64 = vector.shape_cast %63 : vector<1x3x8xbf16> to vector<3x8xbf16>
    %cst_72 = arith.constant dense<0.000000e+00> : vector<3x384xf32>
    %65 = tpu.matmul %64, %62, %cst_72 {dimension_numbers = #tpu.dot_dimension_numbers<[1], [0], [0], [1], [0, 0, 1, 1], [], []>} : vector<3x8xbf16>, vector<8x384xbf16>, vector<3x384xf32> -> vector<3x384xf32>
    %66 = arith.addf %60, %65 : vector<3x384xf32>
    %c0_73 = arith.constant 0 : index
    %c0_74 = arith.constant 0 : index
    %c0_75 = arith.constant 0 : index
    %c26 = arith.constant 26 : index
    %67 = vector.load %arg1[%c0_73, %c0_74, %c0_75, %c26] : memref<1x1x8x640xbf16, #tpu.memory_space<vmem>>, vector<1x1x8x384xbf16>
    %68 = vector.shape_cast %67 : vector<1x1x8x384xbf16> to vector<8x384xbf16>
    %c11 = arith.constant 11 : index
    %c0_76 = arith.constant 0 : index
    %c0_77 = arith.constant 0 : index
    %69 = vector.load %arg2[%c11, %c0_76, %c0_77] : memref<49x3x8xbf16, #tpu.memory_space<vmem>>, vector<1x3x8xbf16>
    %70 = vector.shape_cast %69 : vector<1x3x8xbf16> to vector<3x8xbf16>
    %cst_78 = arith.constant dense<0.000000e+00> : vector<3x384xf32>
    %71 = tpu.matmul %70, %68, %cst_78 {dimension_numbers = #tpu.dot_dimension_numbers<[1], [0], [0], [1], [0, 0, 1, 1], [], []>} : vector<3x8xbf16>, vector<8x384xbf16>, vector<3x384xf32> -> vector<3x384xf32>
    %72 = arith.addf %66, %71 : vector<3x384xf32>
    %c0_79 = arith.constant 0 : index
    %c0_80 = arith.constant 0 : index
    %c0_81 = arith.constant 0 : index
    %c27 = arith.constant 27 : index
    %73 = vector.load %arg1[%c0_79, %c0_80, %c0_81, %c27] : memref<1x1x8x640xbf16, #tpu.memory_space<vmem>>, vector<1x1x8x384xbf16>
    %74 = vector.shape_cast %73 : vector<1x1x8x384xbf16> to vector<8x384xbf16>
    %c12 = arith.constant 12 : index
    %c0_82 = arith.constant 0 : index
    %c0_83 = arith.constant 0 : index
    %75 = vector.load %arg2[%c12, %c0_82, %c0_83] : memref<49x3x8xbf16, #tpu.memory_space<vmem>>, vector<1x3x8xbf16>
    %76 = vector.shape_cast %75 : vector<1x3x8xbf16> to vector<3x8xbf16>
    %cst_84 = arith.constant dense<0.000000e+00> : vector<3x384xf32>
    %77 = tpu.matmul %76, %74, %cst_84 {dimension_numbers = #tpu.dot_dimension_numbers<[1], [0], [0], [1], [0, 0, 1, 1], [], []>} : vector<3x8xbf16>, vector<8x384xbf16>, vector<3x384xf32> -> vector<3x384xf32>
    %78 = arith.addf %72, %77 : vector<3x384xf32>
    %c0_85 = arith.constant 0 : index
    %c0_86 = arith.constant 0 : index
    %c0_87 = arith.constant 0 : index
    %c28 = arith.constant 28 : index
    %79 = vector.load %arg1[%c0_85, %c0_86, %c0_87, %c28] : memref<1x1x8x640xbf16, #tpu.memory_space<vmem>>, vector<1x1x8x384xbf16>
    %80 = vector.shape_cast %79 : vector<1x1x8x384xbf16> to vector<8x384xbf16>
    %c13 = arith.constant 13 : index
    %c0_88 = arith.constant 0 : index
    %c0_89 = arith.constant 0 : index
    %81 = vector.load %arg2[%c13, %c0_88, %c0_89] : memref<49x3x8xbf16, #tpu.memory_space<vmem>>, vector<1x3x8xbf16>
    %82 = vector.shape_cast %81 : vector<1x3x8xbf16> to vector<3x8xbf16>
    %cst_90 = arith.constant dense<0.000000e+00> : vector<3x384xf32>
    %83 = tpu.matmul %82, %80, %cst_90 {dimension_numbers = #tpu.dot_dimension_numbers<[1], [0], [0], [1], [0, 0, 1, 1], [], []>} : vector<3x8xbf16>, vector<8x384xbf16>, vector<3x384xf32> -> vector<3x384xf32>
    %84 = arith.addf %78, %83 : vector<3x384xf32>
    %c0_91 = arith.constant 0 : index
    %c0_92 = arith.constant 0 : index
    %c0_93 = arith.constant 0 : index
    %c44 = arith.constant 44 : index
    %85 = vector.load %arg1[%c0_91, %c0_92, %c0_93, %c44] : memref<1x1x8x640xbf16, #tpu.memory_space<vmem>>, vector<1x1x8x384xbf16>
    %86 = vector.shape_cast %85 : vector<1x1x8x384xbf16> to vector<8x384xbf16>
    %c14 = arith.constant 14 : index
    %c0_94 = arith.constant 0 : index
    %c0_95 = arith.constant 0 : index
    %87 = vector.load %arg2[%c14, %c0_94, %c0_95] : memref<49x3x8xbf16, #tpu.memory_space<vmem>>, vector<1x3x8xbf16>
    %88 = vector.shape_cast %87 : vector<1x3x8xbf16> to vector<3x8xbf16>
    %cst_96 = arith.constant dense<0.000000e+00> : vector<3x384xf32>
    %89 = tpu.matmul %88, %86, %cst_96 {dimension_numbers = #tpu.dot_dimension_numbers<[1], [0], [0], [1], [0, 0, 1, 1], [], []>} : vector<3x8xbf16>, vector<8x384xbf16>, vector<3x384xf32> -> vector<3x384xf32>
    %90 = arith.addf %84, %89 : vector<3x384xf32>
    %c0_97 = arith.constant 0 : index
    %c0_98 = arith.constant 0 : index
    %c0_99 = arith.constant 0 : index
    %c45 = arith.constant 45 : index
    %91 = vector.load %arg1[%c0_97, %c0_98, %c0_99, %c45] : memref<1x1x8x640xbf16, #tpu.memory_space<vmem>>, vector<1x1x8x384xbf16>
    %92 = vector.shape_cast %91 : vector<1x1x8x384xbf16> to vector<8x384xbf16>
    %c15 = arith.constant 15 : index
    %c0_100 = arith.constant 0 : index
    %c0_101 = arith.constant 0 : index
    %93 = vector.load %arg2[%c15, %c0_100, %c0_101] : memref<49x3x8xbf16, #tpu.memory_space<vmem>>, vector<1x3x8xbf16>
    %94 = vector.shape_cast %93 : vector<1x3x8xbf16> to vector<3x8xbf16>
    %cst_102 = arith.constant dense<0.000000e+00> : vector<3x384xf32>
    %95 = tpu.matmul %94, %92, %cst_102 {dimension_numbers = #tpu.dot_dimension_numbers<[1], [0], [0], [1], [0, 0, 1, 1], [], []>} : vector<3x8xbf16>, vector<8x384xbf16>, vector<3x384xf32> -> vector<3x384xf32>
    %96 = arith.addf %90, %95 : vector<3x384xf32>
    %c0_103 = arith.constant 0 : index
    %c0_104 = arith.constant 0 : index
    %c0_105 = arith.constant 0 : index
    %c46 = arith.constant 46 : index
    %97 = vector.load %arg1[%c0_103, %c0_104, %c0_105, %c46] : memref<1x1x8x640xbf16, #tpu.memory_space<vmem>>, vector<1x1x8x384xbf16>
    %98 = vector.shape_cast %97 : vector<1x1x8x384xbf16> to vector<8x384xbf16>
    %c16 = arith.constant 16 : index
    %c0_106 = arith.constant 0 : index
    %c0_107 = arith.constant 0 : index
    %99 = vector.load %arg2[%c16, %c0_106, %c0_107] : memref<49x3x8xbf16, #tpu.memory_space<vmem>>, vector<1x3x8xbf16>
    %100 = vector.shape_cast %99 : vector<1x3x8xbf16> to vector<3x8xbf16>
    %cst_108 = arith.constant dense<0.000000e+00> : vector<3x384xf32>
    %101 = tpu.matmul %100, %98, %cst_108 {dimension_numbers = #tpu.dot_dimension_numbers<[1], [0], [0], [1], [0, 0, 1, 1], [], []>} : vector<3x8xbf16>, vector<8x384xbf16>, vector<3x384xf32> -> vector<3x384xf32>
    %102 = arith.addf %96, %101 : vector<3x384xf32>
    %c0_109 = arith.constant 0 : index
    %c0_110 = arith.constant 0 : index
    %c0_111 = arith.constant 0 : index
    %c47 = arith.constant 47 : index
    %103 = vector.load %arg1[%c0_109, %c0_110, %c0_111, %c47] : memref<1x1x8x640xbf16, #tpu.memory_space<vmem>>, vector<1x1x8x384xbf16>
    %104 = vector.shape_cast %103 : vector<1x1x8x384xbf16> to vector<8x384xbf16>
    %c17 = arith.constant 17 : index
    %c0_112 = arith.constant 0 : index
    %c0_113 = arith.constant 0 : index
    %105 = vector.load %arg2[%c17, %c0_112, %c0_113] : memref<49x3x8xbf16, #tpu.memory_space<vmem>>, vector<1x3x8xbf16>
    %106 = vector.shape_cast %105 : vector<1x3x8xbf16> to vector<3x8xbf16>
    %cst_114 = arith.constant dense<0.000000e+00> : vector<3x384xf32>
    %107 = tpu.matmul %106, %104, %cst_114 {dimension_numbers = #tpu.dot_dimension_numbers<[1], [0], [0], [1], [0, 0, 1, 1], [], []>} : vector<3x8xbf16>, vector<8x384xbf16>, vector<3x384xf32> -> vector<3x384xf32>
    %108 = arith.addf %102, %107 : vector<3x384xf32>
    %c0_115 = arith.constant 0 : index
    %c0_116 = arith.constant 0 : index
    %c0_117 = arith.constant 0 : index
    %c48 = arith.constant 48 : index
    %109 = vector.load %arg1[%c0_115, %c0_116, %c0_117, %c48] : memref<1x1x8x640xbf16, #tpu.memory_space<vmem>>, vector<1x1x8x384xbf16>
    %110 = vector.shape_cast %109 : vector<1x1x8x384xbf16> to vector<8x384xbf16>
    %c18 = arith.constant 18 : index
    %c0_118 = arith.constant 0 : index
    %c0_119 = arith.constant 0 : index
    %111 = vector.load %arg2[%c18, %c0_118, %c0_119] : memref<49x3x8xbf16, #tpu.memory_space<vmem>>, vector<1x3x8xbf16>
    %112 = vector.shape_cast %111 : vector<1x3x8xbf16> to vector<3x8xbf16>
    %cst_120 = arith.constant dense<0.000000e+00> : vector<3x384xf32>
    %113 = tpu.matmul %112, %110, %cst_120 {dimension_numbers = #tpu.dot_dimension_numbers<[1], [0], [0], [1], [0, 0, 1, 1], [], []>} : vector<3x8xbf16>, vector<8x384xbf16>, vector<3x384xf32> -> vector<3x384xf32>
    %114 = arith.addf %108, %113 : vector<3x384xf32>
    %c0_121 = arith.constant 0 : index
    %c0_122 = arith.constant 0 : index
    %c0_123 = arith.constant 0 : index
    %c49 = arith.constant 49 : index
    %115 = vector.load %arg1[%c0_121, %c0_122, %c0_123, %c49] : memref<1x1x8x640xbf16, #tpu.memory_space<vmem>>, vector<1x1x8x384xbf16>
    %116 = vector.shape_cast %115 : vector<1x1x8x384xbf16> to vector<8x384xbf16>
    %c19 = arith.constant 19 : index
    %c0_124 = arith.constant 0 : index
    %c0_125 = arith.constant 0 : index
    %117 = vector.load %arg2[%c19, %c0_124, %c0_125] : memref<49x3x8xbf16, #tpu.memory_space<vmem>>, vector<1x3x8xbf16>
    %118 = vector.shape_cast %117 : vector<1x3x8xbf16> to vector<3x8xbf16>
    %cst_126 = arith.constant dense<0.000000e+00> : vector<3x384xf32>
    %119 = tpu.matmul %118, %116, %cst_126 {dimension_numbers = #tpu.dot_dimension_numbers<[1], [0], [0], [1], [0, 0, 1, 1], [], []>} : vector<3x8xbf16>, vector<8x384xbf16>, vector<3x384xf32> -> vector<3x384xf32>
    %120 = arith.addf %114, %119 : vector<3x384xf32>
    %c0_127 = arith.constant 0 : index
    %c0_128 = arith.constant 0 : index
    %c0_129 = arith.constant 0 : index
    %c50 = arith.constant 50 : index
    %121 = vector.load %arg1[%c0_127, %c0_128, %c0_129, %c50] : memref<1x1x8x640xbf16, #tpu.memory_space<vmem>>, vector<1x1x8x384xbf16>
    %122 = vector.shape_cast %121 : vector<1x1x8x384xbf16> to vector<8x384xbf16>
    %c20 = arith.constant 20 : index
    %c0_130 = arith.constant 0 : index
    %c0_131 = arith.constant 0 : index
    %123 = vector.load %arg2[%c20, %c0_130, %c0_131] : memref<49x3x8xbf16, #tpu.memory_space<vmem>>, vector<1x3x8xbf16>
    %124 = vector.shape_cast %123 : vector<1x3x8xbf16> to vector<3x8xbf16>
    %cst_132 = arith.constant dense<0.000000e+00> : vector<3x384xf32>
    %125 = tpu.matmul %124, %122, %cst_132 {dimension_numbers = #tpu.dot_dimension_numbers<[1], [0], [0], [1], [0, 0, 1, 1], [], []>} : vector<3x8xbf16>, vector<8x384xbf16>, vector<3x384xf32> -> vector<3x384xf32>
    %126 = arith.addf %120, %125 : vector<3x384xf32>
    %c0_133 = arith.constant 0 : index
    %c0_134 = arith.constant 0 : index
    %c0_135 = arith.constant 0 : index
    %c66 = arith.constant 66 : index
    %127 = vector.load %arg1[%c0_133, %c0_134, %c0_135, %c66] : memref<1x1x8x640xbf16, #tpu.memory_space<vmem>>, vector<1x1x8x384xbf16>
    %128 = vector.shape_cast %127 : vector<1x1x8x384xbf16> to vector<8x384xbf16>
    %c21 = arith.constant 21 : index
    %c0_136 = arith.constant 0 : index
    %c0_137 = arith.constant 0 : index
    %129 = vector.load %arg2[%c21, %c0_136, %c0_137] : memref<49x3x8xbf16, #tpu.memory_space<vmem>>, vector<1x3x8xbf16>
    %130 = vector.shape_cast %129 : vector<1x3x8xbf16> to vector<3x8xbf16>
    %cst_138 = arith.constant dense<0.000000e+00> : vector<3x384xf32>
    %131 = tpu.matmul %130, %128, %cst_138 {dimension_numbers = #tpu.dot_dimension_numbers<[1], [0], [0], [1], [0, 0, 1, 1], [], []>} : vector<3x8xbf16>, vector<8x384xbf16>, vector<3x384xf32> -> vector<3x384xf32>
    %132 = arith.addf %126, %131 : vector<3x384xf32>
    %c0_139 = arith.constant 0 : index
    %c0_140 = arith.constant 0 : index
    %c0_141 = arith.constant 0 : index
    %c67 = arith.constant 67 : index
    %133 = vector.load %arg1[%c0_139, %c0_140, %c0_141, %c67] : memref<1x1x8x640xbf16, #tpu.memory_space<vmem>>, vector<1x1x8x384xbf16>
    %134 = vector.shape_cast %133 : vector<1x1x8x384xbf16> to vector<8x384xbf16>
    %c22_142 = arith.constant 22 : index
    %c0_143 = arith.constant 0 : index
    %c0_144 = arith.constant 0 : index
    %135 = vector.load %arg2[%c22_142, %c0_143, %c0_144] : memref<49x3x8xbf16, #tpu.memory_space<vmem>>, vector<1x3x8xbf16>
    %136 = vector.shape_cast %135 : vector<1x3x8xbf16> to vector<3x8xbf16>
    %cst_145 = arith.constant dense<0.000000e+00> : vector<3x384xf32>
    %137 = tpu.matmul %136, %134, %cst_145 {dimension_numbers = #tpu.dot_dimension_numbers<[1], [0], [0], [1], [0, 0, 1, 1], [], []>} : vector<3x8xbf16>, vector<8x384xbf16>, vector<3x384xf32> -> vector<3x384xf32>
    %138 = arith.addf %132, %137 : vector<3x384xf32>
    %c0_146 = arith.constant 0 : index
    %c0_147 = arith.constant 0 : index
    %c0_148 = arith.constant 0 : index
    %c68 = arith.constant 68 : index
    %139 = vector.load %arg1[%c0_146, %c0_147, %c0_148, %c68] : memref<1x1x8x640xbf16, #tpu.memory_space<vmem>>, vector<1x1x8x384xbf16>
    %140 = vector.shape_cast %139 : vector<1x1x8x384xbf16> to vector<8x384xbf16>
    %c23_149 = arith.constant 23 : index
    %c0_150 = arith.constant 0 : index
    %c0_151 = arith.constant 0 : index
    %141 = vector.load %arg2[%c23_149, %c0_150, %c0_151] : memref<49x3x8xbf16, #tpu.memory_space<vmem>>, vector<1x3x8xbf16>
    %142 = vector.shape_cast %141 : vector<1x3x8xbf16> to vector<3x8xbf16>
    %cst_152 = arith.constant dense<0.000000e+00> : vector<3x384xf32>
    %143 = tpu.matmul %142, %140, %cst_152 {dimension_numbers = #tpu.dot_dimension_numbers<[1], [0], [0], [1], [0, 0, 1, 1], [], []>} : vector<3x8xbf16>, vector<8x384xbf16>, vector<3x384xf32> -> vector<3x384xf32>
    %144 = arith.addf %138, %143 : vector<3x384xf32>
    %c0_153 = arith.constant 0 : index
    %c0_154 = arith.constant 0 : index
    %c0_155 = arith.constant 0 : index
    %c69 = arith.constant 69 : index
    %145 = vector.load %arg1[%c0_153, %c0_154, %c0_155, %c69] : memref<1x1x8x640xbf16, #tpu.memory_space<vmem>>, vector<1x1x8x384xbf16>
    %146 = vector.shape_cast %145 : vector<1x1x8x384xbf16> to vector<8x384xbf16>
    %c24_156 = arith.constant 24 : index
    %c0_157 = arith.constant 0 : index
    %c0_158 = arith.constant 0 : index
    %147 = vector.load %arg2[%c24_156, %c0_157, %c0_158] : memref<49x3x8xbf16, #tpu.memory_space<vmem>>, vector<1x3x8xbf16>
    %148 = vector.shape_cast %147 : vector<1x3x8xbf16> to vector<3x8xbf16>
    %cst_159 = arith.constant dense<0.000000e+00> : vector<3x384xf32>
    %149 = tpu.matmul %148, %146, %cst_159 {dimension_numbers = #tpu.dot_dimension_numbers<[1], [0], [0], [1], [0, 0, 1, 1], [], []>} : vector<3x8xbf16>, vector<8x384xbf16>, vector<3x384xf32> -> vector<3x384xf32>
    %150 = arith.addf %144, %149 : vector<3x384xf32>
    %c0_160 = arith.constant 0 : index
    %c0_161 = arith.constant 0 : index
    %c0_162 = arith.constant 0 : index
    %c70 = arith.constant 70 : index
    %151 = vector.load %arg1[%c0_160, %c0_161, %c0_162, %c70] : memref<1x1x8x640xbf16, #tpu.memory_space<vmem>>, vector<1x1x8x384xbf16>
    %152 = vector.shape_cast %151 : vector<1x1x8x384xbf16> to vector<8x384xbf16>
    %c25_163 = arith.constant 25 : index
    %c0_164 = arith.constant 0 : index
    %c0_165 = arith.constant 0 : index
    %153 = vector.load %arg2[%c25_163, %c0_164, %c0_165] : memref<49x3x8xbf16, #tpu.memory_space<vmem>>, vector<1x3x8xbf16>
    %154 = vector.shape_cast %153 : vector<1x3x8xbf16> to vector<3x8xbf16>
    %cst_166 = arith.constant dense<0.000000e+00> : vector<3x384xf32>
    %155 = tpu.matmul %154, %152, %cst_166 {dimension_numbers = #tpu.dot_dimension_numbers<[1], [0], [0], [1], [0, 0, 1, 1], [], []>} : vector<3x8xbf16>, vector<8x384xbf16>, vector<3x384xf32> -> vector<3x384xf32>
    %156 = arith.addf %150, %155 : vector<3x384xf32>
    %c0_167 = arith.constant 0 : index
    %c0_168 = arith.constant 0 : index
    %c0_169 = arith.constant 0 : index
    %c71 = arith.constant 71 : index
    %157 = vector.load %arg1[%c0_167, %c0_168, %c0_169, %c71] : memref<1x1x8x640xbf16, #tpu.memory_space<vmem>>, vector<1x1x8x384xbf16>
    %158 = vector.shape_cast %157 : vector<1x1x8x384xbf16> to vector<8x384xbf16>
    %c26_170 = arith.constant 26 : index
    %c0_171 = arith.constant 0 : index
    %c0_172 = arith.constant 0 : index
    %159 = vector.load %arg2[%c26_170, %c0_171, %c0_172] : memref<49x3x8xbf16, #tpu.memory_space<vmem>>, vector<1x3x8xbf16>
    %160 = vector.shape_cast %159 : vector<1x3x8xbf16> to vector<3x8xbf16>
    %cst_173 = arith.constant dense<0.000000e+00> : vector<3x384xf32>
    %161 = tpu.matmul %160, %158, %cst_173 {dimension_numbers = #tpu.dot_dimension_numbers<[1], [0], [0], [1], [0, 0, 1, 1], [], []>} : vector<3x8xbf16>, vector<8x384xbf16>, vector<3x384xf32> -> vector<3x384xf32>
    %162 = arith.addf %156, %161 : vector<3x384xf32>
    %c0_174 = arith.constant 0 : index
    %c0_175 = arith.constant 0 : index
    %c0_176 = arith.constant 0 : index
    %c72 = arith.constant 72 : index
    %163 = vector.load %arg1[%c0_174, %c0_175, %c0_176, %c72] : memref<1x1x8x640xbf16, #tpu.memory_space<vmem>>, vector<1x1x8x384xbf16>
    %164 = vector.shape_cast %163 : vector<1x1x8x384xbf16> to vector<8x384xbf16>
    %c27_177 = arith.constant 27 : index
    %c0_178 = arith.constant 0 : index
    %c0_179 = arith.constant 0 : index
    %165 = vector.load %arg2[%c27_177, %c0_178, %c0_179] : memref<49x3x8xbf16, #tpu.memory_space<vmem>>, vector<1x3x8xbf16>
    %166 = vector.shape_cast %165 : vector<1x3x8xbf16> to vector<3x8xbf16>
    %cst_180 = arith.constant dense<0.000000e+00> : vector<3x384xf32>
    %167 = tpu.matmul %166, %164, %cst_180 {dimension_numbers = #tpu.dot_dimension_numbers<[1], [0], [0], [1], [0, 0, 1, 1], [], []>} : vector<3x8xbf16>, vector<8x384xbf16>, vector<3x384xf32> -> vector<3x384xf32>
    %168 = arith.addf %162, %167 : vector<3x384xf32>
    %c0_181 = arith.constant 0 : index
    %c0_182 = arith.constant 0 : index
    %c0_183 = arith.constant 0 : index
    %c88 = arith.constant 88 : index
    %169 = vector.load %arg1[%c0_181, %c0_182, %c0_183, %c88] : memref<1x1x8x640xbf16, #tpu.memory_space<vmem>>, vector<1x1x8x384xbf16>
    %170 = vector.shape_cast %169 : vector<1x1x8x384xbf16> to vector<8x384xbf16>
    %c28_184 = arith.constant 28 : index
    %c0_185 = arith.constant 0 : index
    %c0_186 = arith.constant 0 : index
    %171 = vector.load %arg2[%c28_184, %c0_185, %c0_186] : memref<49x3x8xbf16, #tpu.memory_space<vmem>>, vector<1x3x8xbf16>
    %172 = vector.shape_cast %171 : vector<1x3x8xbf16> to vector<3x8xbf16>
    %cst_187 = arith.constant dense<0.000000e+00> : vector<3x384xf32>
    %173 = tpu.matmul %172, %170, %cst_187 {dimension_numbers = #tpu.dot_dimension_numbers<[1], [0], [0], [1], [0, 0, 1, 1], [], []>} : vector<3x8xbf16>, vector<8x384xbf16>, vector<3x384xf32> -> vector<3x384xf32>
    %174 = arith.addf %168, %173 : vector<3x384xf32>
    %c0_188 = arith.constant 0 : index
    %c0_189 = arith.constant 0 : index
    %c0_190 = arith.constant 0 : index
    %c89 = arith.constant 89 : index
    %175 = vector.load %arg1[%c0_188, %c0_189, %c0_190, %c89] : memref<1x1x8x640xbf16, #tpu.memory_space<vmem>>, vector<1x1x8x384xbf16>
    %176 = vector.shape_cast %175 : vector<1x1x8x384xbf16> to vector<8x384xbf16>
    %c29 = arith.constant 29 : index
    %c0_191 = arith.constant 0 : index
    %c0_192 = arith.constant 0 : index
    %177 = vector.load %arg2[%c29, %c0_191, %c0_192] : memref<49x3x8xbf16, #tpu.memory_space<vmem>>, vector<1x3x8xbf16>
    %178 = vector.shape_cast %177 : vector<1x3x8xbf16> to vector<3x8xbf16>
    %cst_193 = arith.constant dense<0.000000e+00> : vector<3x384xf32>
    %179 = tpu.matmul %178, %176, %cst_193 {dimension_numbers = #tpu.dot_dimension_numbers<[1], [0], [0], [1], [0, 0, 1, 1], [], []>} : vector<3x8xbf16>, vector<8x384xbf16>, vector<3x384xf32> -> vector<3x384xf32>
    %180 = arith.addf %174, %179 : vector<3x384xf32>
    %c0_194 = arith.constant 0 : index
    %c0_195 = arith.constant 0 : index
    %c0_196 = arith.constant 0 : index
    %c90 = arith.constant 90 : index
    %181 = vector.load %arg1[%c0_194, %c0_195, %c0_196, %c90] : memref<1x1x8x640xbf16, #tpu.memory_space<vmem>>, vector<1x1x8x384xbf16>
    %182 = vector.shape_cast %181 : vector<1x1x8x384xbf16> to vector<8x384xbf16>
    %c30 = arith.constant 30 : index
    %c0_197 = arith.constant 0 : index
    %c0_198 = arith.constant 0 : index
    %183 = vector.load %arg2[%c30, %c0_197, %c0_198] : memref<49x3x8xbf16, #tpu.memory_space<vmem>>, vector<1x3x8xbf16>
    %184 = vector.shape_cast %183 : vector<1x3x8xbf16> to vector<3x8xbf16>
    %cst_199 = arith.constant dense<0.000000e+00> : vector<3x384xf32>
    %185 = tpu.matmul %184, %182, %cst_199 {dimension_numbers = #tpu.dot_dimension_numbers<[1], [0], [0], [1], [0, 0, 1, 1], [], []>} : vector<3x8xbf16>, vector<8x384xbf16>, vector<3x384xf32> -> vector<3x384xf32>
    %186 = arith.addf %180, %185 : vector<3x384xf32>
    %c0_200 = arith.constant 0 : index
    %c0_201 = arith.constant 0 : index
    %c0_202 = arith.constant 0 : index
    %c91 = arith.constant 91 : index
    %187 = vector.load %arg1[%c0_200, %c0_201, %c0_202, %c91] : memref<1x1x8x640xbf16, #tpu.memory_space<vmem>>, vector<1x1x8x384xbf16>
    %188 = vector.shape_cast %187 : vector<1x1x8x384xbf16> to vector<8x384xbf16>
    %c31 = arith.constant 31 : index
    %c0_203 = arith.constant 0 : index
    %c0_204 = arith.constant 0 : index
    %189 = vector.load %arg2[%c31, %c0_203, %c0_204] : memref<49x3x8xbf16, #tpu.memory_space<vmem>>, vector<1x3x8xbf16>
    %190 = vector.shape_cast %189 : vector<1x3x8xbf16> to vector<3x8xbf16>
    %cst_205 = arith.constant dense<0.000000e+00> : vector<3x384xf32>
    %191 = tpu.matmul %190, %188, %cst_205 {dimension_numbers = #tpu.dot_dimension_numbers<[1], [0], [0], [1], [0, 0, 1, 1], [], []>} : vector<3x8xbf16>, vector<8x384xbf16>, vector<3x384xf32> -> vector<3x384xf32>
    %192 = arith.addf %186, %191 : vector<3x384xf32>
    %c0_206 = arith.constant 0 : index
    %c0_207 = arith.constant 0 : index
    %c0_208 = arith.constant 0 : index
    %c92 = arith.constant 92 : index
    %193 = vector.load %arg1[%c0_206, %c0_207, %c0_208, %c92] : memref<1x1x8x640xbf16, #tpu.memory_space<vmem>>, vector<1x1x8x384xbf16>
    %194 = vector.shape_cast %193 : vector<1x1x8x384xbf16> to vector<8x384xbf16>
    %c32 = arith.constant 32 : index
    %c0_209 = arith.constant 0 : index
    %c0_210 = arith.constant 0 : index
    %195 = vector.load %arg2[%c32, %c0_209, %c0_210] : memref<49x3x8xbf16, #tpu.memory_space<vmem>>, vector<1x3x8xbf16>
    %196 = vector.shape_cast %195 : vector<1x3x8xbf16> to vector<3x8xbf16>
    %cst_211 = arith.constant dense<0.000000e+00> : vector<3x384xf32>
    %197 = tpu.matmul %196, %194, %cst_211 {dimension_numbers = #tpu.dot_dimension_numbers<[1], [0], [0], [1], [0, 0, 1, 1], [], []>} : vector<3x8xbf16>, vector<8x384xbf16>, vector<3x384xf32> -> vector<3x384xf32>
    %198 = arith.addf %192, %197 : vector<3x384xf32>
    %c0_212 = arith.constant 0 : index
    %c0_213 = arith.constant 0 : index
    %c0_214 = arith.constant 0 : index
    %c93 = arith.constant 93 : index
    %199 = vector.load %arg1[%c0_212, %c0_213, %c0_214, %c93] : memref<1x1x8x640xbf16, #tpu.memory_space<vmem>>, vector<1x1x8x384xbf16>
    %200 = vector.shape_cast %199 : vector<1x1x8x384xbf16> to vector<8x384xbf16>
    %c33 = arith.constant 33 : index
    %c0_215 = arith.constant 0 : index
    %c0_216 = arith.constant 0 : index
    %201 = vector.load %arg2[%c33, %c0_215, %c0_216] : memref<49x3x8xbf16, #tpu.memory_space<vmem>>, vector<1x3x8xbf16>
    %202 = vector.shape_cast %201 : vector<1x3x8xbf16> to vector<3x8xbf16>
    %cst_217 = arith.constant dense<0.000000e+00> : vector<3x384xf32>
    %203 = tpu.matmul %202, %200, %cst_217 {dimension_numbers = #tpu.dot_dimension_numbers<[1], [0], [0], [1], [0, 0, 1, 1], [], []>} : vector<3x8xbf16>, vector<8x384xbf16>, vector<3x384xf32> -> vector<3x384xf32>
    %204 = arith.addf %198, %203 : vector<3x384xf32>
    %c0_218 = arith.constant 0 : index
    %c0_219 = arith.constant 0 : index
    %c0_220 = arith.constant 0 : index
    %c94 = arith.constant 94 : index
    %205 = vector.load %arg1[%c0_218, %c0_219, %c0_220, %c94] : memref<1x1x8x640xbf16, #tpu.memory_space<vmem>>, vector<1x1x8x384xbf16>
    %206 = vector.shape_cast %205 : vector<1x1x8x384xbf16> to vector<8x384xbf16>
    %c34 = arith.constant 34 : index
    %c0_221 = arith.constant 0 : index
    %c0_222 = arith.constant 0 : index
    %207 = vector.load %arg2[%c34, %c0_221, %c0_222] : memref<49x3x8xbf16, #tpu.memory_space<vmem>>, vector<1x3x8xbf16>
    %208 = vector.shape_cast %207 : vector<1x3x8xbf16> to vector<3x8xbf16>
    %cst_223 = arith.constant dense<0.000000e+00> : vector<3x384xf32>
    %209 = tpu.matmul %208, %206, %cst_223 {dimension_numbers = #tpu.dot_dimension_numbers<[1], [0], [0], [1], [0, 0, 1, 1], [], []>} : vector<3x8xbf16>, vector<8x384xbf16>, vector<3x384xf32> -> vector<3x384xf32>
    %210 = arith.addf %204, %209 : vector<3x384xf32>
    %c0_224 = arith.constant 0 : index
    %c0_225 = arith.constant 0 : index
    %c0_226 = arith.constant 0 : index
    %c110 = arith.constant 110 : index
    %211 = vector.load %arg1[%c0_224, %c0_225, %c0_226, %c110] : memref<1x1x8x640xbf16, #tpu.memory_space<vmem>>, vector<1x1x8x384xbf16>
    %212 = vector.shape_cast %211 : vector<1x1x8x384xbf16> to vector<8x384xbf16>
    %c35 = arith.constant 35 : index
    %c0_227 = arith.constant 0 : index
    %c0_228 = arith.constant 0 : index
    %213 = vector.load %arg2[%c35, %c0_227, %c0_228] : memref<49x3x8xbf16, #tpu.memory_space<vmem>>, vector<1x3x8xbf16>
    %214 = vector.shape_cast %213 : vector<1x3x8xbf16> to vector<3x8xbf16>
    %cst_229 = arith.constant dense<0.000000e+00> : vector<3x384xf32>
    %215 = tpu.matmul %214, %212, %cst_229 {dimension_numbers = #tpu.dot_dimension_numbers<[1], [0], [0], [1], [0, 0, 1, 1], [], []>} : vector<3x8xbf16>, vector<8x384xbf16>, vector<3x384xf32> -> vector<3x384xf32>
    %216 = arith.addf %210, %215 : vector<3x384xf32>
    %c0_230 = arith.constant 0 : index
    %c0_231 = arith.constant 0 : index
    %c0_232 = arith.constant 0 : index
    %c111 = arith.constant 111 : index
    %217 = vector.load %arg1[%c0_230, %c0_231, %c0_232, %c111] : memref<1x1x8x640xbf16, #tpu.memory_space<vmem>>, vector<1x1x8x384xbf16>
    %218 = vector.shape_cast %217 : vector<1x1x8x384xbf16> to vector<8x384xbf16>
    %c36 = arith.constant 36 : index
    %c0_233 = arith.constant 0 : index
    %c0_234 = arith.constant 0 : index
    %219 = vector.load %arg2[%c36, %c0_233, %c0_234] : memref<49x3x8xbf16, #tpu.memory_space<vmem>>, vector<1x3x8xbf16>
    %220 = vector.shape_cast %219 : vector<1x3x8xbf16> to vector<3x8xbf16>
    %cst_235 = arith.constant dense<0.000000e+00> : vector<3x384xf32>
    %221 = tpu.matmul %220, %218, %cst_235 {dimension_numbers = #tpu.dot_dimension_numbers<[1], [0], [0], [1], [0, 0, 1, 1], [], []>} : vector<3x8xbf16>, vector<8x384xbf16>, vector<3x384xf32> -> vector<3x384xf32>
    %222 = arith.addf %216, %221 : vector<3x384xf32>
    %c0_236 = arith.constant 0 : index
    %c0_237 = arith.constant 0 : index
    %c0_238 = arith.constant 0 : index
    %c112 = arith.constant 112 : index
    %223 = vector.load %arg1[%c0_236, %c0_237, %c0_238, %c112] : memref<1x1x8x640xbf16, #tpu.memory_space<vmem>>, vector<1x1x8x384xbf16>
    %224 = vector.shape_cast %223 : vector<1x1x8x384xbf16> to vector<8x384xbf16>
    %c37 = arith.constant 37 : index
    %c0_239 = arith.constant 0 : index
    %c0_240 = arith.constant 0 : index
    %225 = vector.load %arg2[%c37, %c0_239, %c0_240] : memref<49x3x8xbf16, #tpu.memory_space<vmem>>, vector<1x3x8xbf16>
    %226 = vector.shape_cast %225 : vector<1x3x8xbf16> to vector<3x8xbf16>
    %cst_241 = arith.constant dense<0.000000e+00> : vector<3x384xf32>
    %227 = tpu.matmul %226, %224, %cst_241 {dimension_numbers = #tpu.dot_dimension_numbers<[1], [0], [0], [1], [0, 0, 1, 1], [], []>} : vector<3x8xbf16>, vector<8x384xbf16>, vector<3x384xf32> -> vector<3x384xf32>
    %228 = arith.addf %222, %227 : vector<3x384xf32>
    %c0_242 = arith.constant 0 : index
    %c0_243 = arith.constant 0 : index
    %c0_244 = arith.constant 0 : index
    %c113 = arith.constant 113 : index
    %229 = vector.load %arg1[%c0_242, %c0_243, %c0_244, %c113] : memref<1x1x8x640xbf16, #tpu.memory_space<vmem>>, vector<1x1x8x384xbf16>
    %230 = vector.shape_cast %229 : vector<1x1x8x384xbf16> to vector<8x384xbf16>
    %c38 = arith.constant 38 : index
    %c0_245 = arith.constant 0 : index
    %c0_246 = arith.constant 0 : index
    %231 = vector.load %arg2[%c38, %c0_245, %c0_246] : memref<49x3x8xbf16, #tpu.memory_space<vmem>>, vector<1x3x8xbf16>
    %232 = vector.shape_cast %231 : vector<1x3x8xbf16> to vector<3x8xbf16>
    %cst_247 = arith.constant dense<0.000000e+00> : vector<3x384xf32>
    %233 = tpu.matmul %232, %230, %cst_247 {dimension_numbers = #tpu.dot_dimension_numbers<[1], [0], [0], [1], [0, 0, 1, 1], [], []>} : vector<3x8xbf16>, vector<8x384xbf16>, vector<3x384xf32> -> vector<3x384xf32>
    %234 = arith.addf %228, %233 : vector<3x384xf32>
    %c0_248 = arith.constant 0 : index
    %c0_249 = arith.constant 0 : index
    %c0_250 = arith.constant 0 : index
    %c114 = arith.constant 114 : index
    %235 = vector.load %arg1[%c0_248, %c0_249, %c0_250, %c114] : memref<1x1x8x640xbf16, #tpu.memory_space<vmem>>, vector<1x1x8x384xbf16>
    %236 = vector.shape_cast %235 : vector<1x1x8x384xbf16> to vector<8x384xbf16>
    %c39 = arith.constant 39 : index
    %c0_251 = arith.constant 0 : index
    %c0_252 = arith.constant 0 : index
    %237 = vector.load %arg2[%c39, %c0_251, %c0_252] : memref<49x3x8xbf16, #tpu.memory_space<vmem>>, vector<1x3x8xbf16>
    %238 = vector.shape_cast %237 : vector<1x3x8xbf16> to vector<3x8xbf16>
    %cst_253 = arith.constant dense<0.000000e+00> : vector<3x384xf32>
    %239 = tpu.matmul %238, %236, %cst_253 {dimension_numbers = #tpu.dot_dimension_numbers<[1], [0], [0], [1], [0, 0, 1, 1], [], []>} : vector<3x8xbf16>, vector<8x384xbf16>, vector<3x384xf32> -> vector<3x384xf32>
    %240 = arith.addf %234, %239 : vector<3x384xf32>
    %c0_254 = arith.constant 0 : index
    %c0_255 = arith.constant 0 : index
    %c0_256 = arith.constant 0 : index
    %c115 = arith.constant 115 : index
    %241 = vector.load %arg1[%c0_254, %c0_255, %c0_256, %c115] : memref<1x1x8x640xbf16, #tpu.memory_space<vmem>>, vector<1x1x8x384xbf16>
    %242 = vector.shape_cast %241 : vector<1x1x8x384xbf16> to vector<8x384xbf16>
    %c40 = arith.constant 40 : index
    %c0_257 = arith.constant 0 : index
    %c0_258 = arith.constant 0 : index
    %243 = vector.load %arg2[%c40, %c0_257, %c0_258] : memref<49x3x8xbf16, #tpu.memory_space<vmem>>, vector<1x3x8xbf16>
    %244 = vector.shape_cast %243 : vector<1x3x8xbf16> to vector<3x8xbf16>
    %cst_259 = arith.constant dense<0.000000e+00> : vector<3x384xf32>
    %245 = tpu.matmul %244, %242, %cst_259 {dimension_numbers = #tpu.dot_dimension_numbers<[1], [0], [0], [1], [0, 0, 1, 1], [], []>} : vector<3x8xbf16>, vector<8x384xbf16>, vector<3x384xf32> -> vector<3x384xf32>
    %246 = arith.addf %240, %245 : vector<3x384xf32>
    %c0_260 = arith.constant 0 : index
    %c0_261 = arith.constant 0 : index
    %c0_262 = arith.constant 0 : index
    %c116 = arith.constant 116 : index
    %247 = vector.load %arg1[%c0_260, %c0_261, %c0_262, %c116] : memref<1x1x8x640xbf16, #tpu.memory_space<vmem>>, vector<1x1x8x384xbf16>
    %248 = vector.shape_cast %247 : vector<1x1x8x384xbf16> to vector<8x384xbf16>
    %c41 = arith.constant 41 : index
    %c0_263 = arith.constant 0 : index
    %c0_264 = arith.constant 0 : index
    %249 = vector.load %arg2[%c41, %c0_263, %c0_264] : memref<49x3x8xbf16, #tpu.memory_space<vmem>>, vector<1x3x8xbf16>
    %250 = vector.shape_cast %249 : vector<1x3x8xbf16> to vector<3x8xbf16>
    %cst_265 = arith.constant dense<0.000000e+00> : vector<3x384xf32>
    %251 = tpu.matmul %250, %248, %cst_265 {dimension_numbers = #tpu.dot_dimension_numbers<[1], [0], [0], [1], [0, 0, 1, 1], [], []>} : vector<3x8xbf16>, vector<8x384xbf16>, vector<3x384xf32> -> vector<3x384xf32>
    %252 = arith.addf %246, %251 : vector<3x384xf32>
    %c0_266 = arith.constant 0 : index
    %c0_267 = arith.constant 0 : index
    %c0_268 = arith.constant 0 : index
    %c132 = arith.constant 132 : index
    %253 = vector.load %arg1[%c0_266, %c0_267, %c0_268, %c132] : memref<1x1x8x640xbf16, #tpu.memory_space<vmem>>, vector<1x1x8x384xbf16>
    %254 = vector.shape_cast %253 : vector<1x1x8x384xbf16> to vector<8x384xbf16>
    %c42 = arith.constant 42 : index
    %c0_269 = arith.constant 0 : index
    %c0_270 = arith.constant 0 : index
    %255 = vector.load %arg2[%c42, %c0_269, %c0_270] : memref<49x3x8xbf16, #tpu.memory_space<vmem>>, vector<1x3x8xbf16>
    %256 = vector.shape_cast %255 : vector<1x3x8xbf16> to vector<3x8xbf16>
    %cst_271 = arith.constant dense<0.000000e+00> : vector<3x384xf32>
    %257 = tpu.matmul %256, %254, %cst_271 {dimension_numbers = #tpu.dot_dimension_numbers<[1], [0], [0], [1], [0, 0, 1, 1], [], []>} : vector<3x8xbf16>, vector<8x384xbf16>, vector<3x384xf32> -> vector<3x384xf32>
    %258 = arith.addf %252, %257 : vector<3x384xf32>
    %c0_272 = arith.constant 0 : index
    %c0_273 = arith.constant 0 : index
    %c0_274 = arith.constant 0 : index
    %c133 = arith.constant 133 : index
    %259 = vector.load %arg1[%c0_272, %c0_273, %c0_274, %c133] : memref<1x1x8x640xbf16, #tpu.memory_space<vmem>>, vector<1x1x8x384xbf16>
    %260 = vector.shape_cast %259 : vector<1x1x8x384xbf16> to vector<8x384xbf16>
    %c43 = arith.constant 43 : index
    %c0_275 = arith.constant 0 : index
    %c0_276 = arith.constant 0 : index
    %261 = vector.load %arg2[%c43, %c0_275, %c0_276] : memref<49x3x8xbf16, #tpu.memory_space<vmem>>, vector<1x3x8xbf16>
    %262 = vector.shape_cast %261 : vector<1x3x8xbf16> to vector<3x8xbf16>
    %cst_277 = arith.constant dense<0.000000e+00> : vector<3x384xf32>
    %263 = tpu.matmul %262, %260, %cst_277 {dimension_numbers = #tpu.dot_dimension_numbers<[1], [0], [0], [1], [0, 0, 1, 1], [], []>} : vector<3x8xbf16>, vector<8x384xbf16>, vector<3x384xf32> -> vector<3x384xf32>
    %264 = arith.addf %258, %263 : vector<3x384xf32>
    %c0_278 = arith.constant 0 : index
    %c0_279 = arith.constant 0 : index
    %c0_280 = arith.constant 0 : index
    %c134 = arith.constant 134 : index
    %265 = vector.load %arg1[%c0_278, %c0_279, %c0_280, %c134] : memref<1x1x8x640xbf16, #tpu.memory_space<vmem>>, vector<1x1x8x384xbf16>
    %266 = vector.shape_cast %265 : vector<1x1x8x384xbf16> to vector<8x384xbf16>
    %c44_281 = arith.constant 44 : index
    %c0_282 = arith.constant 0 : index
    %c0_283 = arith.constant 0 : index
    %267 = vector.load %arg2[%c44_281, %c0_282, %c0_283] : memref<49x3x8xbf16, #tpu.memory_space<vmem>>, vector<1x3x8xbf16>
    %268 = vector.shape_cast %267 : vector<1x3x8xbf16> to vector<3x8xbf16>
    %cst_284 = arith.constant dense<0.000000e+00> : vector<3x384xf32>
    %269 = tpu.matmul %268, %266, %cst_284 {dimension_numbers = #tpu.dot_dimension_numbers<[1], [0], [0], [1], [0, 0, 1, 1], [], []>} : vector<3x8xbf16>, vector<8x384xbf16>, vector<3x384xf32> -> vector<3x384xf32>
    %270 = arith.addf %264, %269 : vector<3x384xf32>
    %c0_285 = arith.constant 0 : index
    %c0_286 = arith.constant 0 : index
    %c0_287 = arith.constant 0 : index
    %c135 = arith.constant 135 : index
    %271 = vector.load %arg1[%c0_285, %c0_286, %c0_287, %c135] : memref<1x1x8x640xbf16, #tpu.memory_space<vmem>>, vector<1x1x8x384xbf16>
    %272 = vector.shape_cast %271 : vector<1x1x8x384xbf16> to vector<8x384xbf16>
    %c45_288 = arith.constant 45 : index
    %c0_289 = arith.constant 0 : index
    %c0_290 = arith.constant 0 : index
    %273 = vector.load %arg2[%c45_288, %c0_289, %c0_290] : memref<49x3x8xbf16, #tpu.memory_space<vmem>>, vector<1x3x8xbf16>
    %274 = vector.shape_cast %273 : vector<1x3x8xbf16> to vector<3x8xbf16>
    %cst_291 = arith.constant dense<0.000000e+00> : vector<3x384xf32>
    %275 = tpu.matmul %274, %272, %cst_291 {dimension_numbers = #tpu.dot_dimension_numbers<[1], [0], [0], [1], [0, 0, 1, 1], [], []>} : vector<3x8xbf16>, vector<8x384xbf16>, vector<3x384xf32> -> vector<3x384xf32>
    %276 = arith.addf %270, %275 : vector<3x384xf32>
    %c0_292 = arith.constant 0 : index
    %c0_293 = arith.constant 0 : index
    %c0_294 = arith.constant 0 : index
    %c136 = arith.constant 136 : index
    %277 = vector.load %arg1[%c0_292, %c0_293, %c0_294, %c136] : memref<1x1x8x640xbf16, #tpu.memory_space<vmem>>, vector<1x1x8x384xbf16>
    %278 = vector.shape_cast %277 : vector<1x1x8x384xbf16> to vector<8x384xbf16>
    %c46_295 = arith.constant 46 : index
    %c0_296 = arith.constant 0 : index
    %c0_297 = arith.constant 0 : index
    %279 = vector.load %arg2[%c46_295, %c0_296, %c0_297] : memref<49x3x8xbf16, #tpu.memory_space<vmem>>, vector<1x3x8xbf16>
    %280 = vector.shape_cast %279 : vector<1x3x8xbf16> to vector<3x8xbf16>
    %cst_298 = arith.constant dense<0.000000e+00> : vector<3x384xf32>
    %281 = tpu.matmul %280, %278, %cst_298 {dimension_numbers = #tpu.dot_dimension_numbers<[1], [0], [0], [1], [0, 0, 1, 1], [], []>} : vector<3x8xbf16>, vector<8x384xbf16>, vector<3x384xf32> -> vector<3x384xf32>
    %282 = arith.addf %276, %281 : vector<3x384xf32>
    %c0_299 = arith.constant 0 : index
    %c0_300 = arith.constant 0 : index
    %c0_301 = arith.constant 0 : index
    %c137 = arith.constant 137 : index
    %283 = vector.load %arg1[%c0_299, %c0_300, %c0_301, %c137] : memref<1x1x8x640xbf16, #tpu.memory_space<vmem>>, vector<1x1x8x384xbf16>
    %284 = vector.shape_cast %283 : vector<1x1x8x384xbf16> to vector<8x384xbf16>
    %c47_302 = arith.constant 47 : index
    %c0_303 = arith.constant 0 : index
    %c0_304 = arith.constant 0 : index
    %285 = vector.load %arg2[%c47_302, %c0_303, %c0_304] : memref<49x3x8xbf16, #tpu.memory_space<vmem>>, vector<1x3x8xbf16>
    %286 = vector.shape_cast %285 : vector<1x3x8xbf16> to vector<3x8xbf16>
    %cst_305 = arith.constant dense<0.000000e+00> : vector<3x384xf32>
    %287 = tpu.matmul %286, %284, %cst_305 {dimension_numbers = #tpu.dot_dimension_numbers<[1], [0], [0], [1], [0, 0, 1, 1], [], []>} : vector<3x8xbf16>, vector<8x384xbf16>, vector<3x384xf32> -> vector<3x384xf32>
    %288 = arith.addf %282, %287 : vector<3x384xf32>
    %c0_306 = arith.constant 0 : index
    %c0_307 = arith.constant 0 : index
    %c0_308 = arith.constant 0 : index
    %c138 = arith.constant 138 : index
    %289 = vector.load %arg1[%c0_306, %c0_307, %c0_308, %c138] : memref<1x1x8x640xbf16, #tpu.memory_space<vmem>>, vector<1x1x8x384xbf16>
    %290 = vector.shape_cast %289 : vector<1x1x8x384xbf16> to vector<8x384xbf16>
    %c48_309 = arith.constant 48 : index
    %c0_310 = arith.constant 0 : index
    %c0_311 = arith.constant 0 : index
    %291 = vector.load %arg2[%c48_309, %c0_310, %c0_311] : memref<49x3x8xbf16, #tpu.memory_space<vmem>>, vector<1x3x8xbf16>
    %292 = vector.shape_cast %291 : vector<1x3x8xbf16> to vector<3x8xbf16>
    %cst_312 = arith.constant dense<0.000000e+00> : vector<3x384xf32>
    %293 = tpu.matmul %292, %290, %cst_312 {dimension_numbers = #tpu.dot_dimension_numbers<[1], [0], [0], [1], [0, 0, 1, 1], [], []>} : vector<3x8xbf16>, vector<8x384xbf16>, vector<3x384xf32> -> vector<3x384xf32>
    %294 = arith.addf %288, %293 : vector<3x384xf32>
    %295 = math.tanh %294 : vector<3x384xf32>
    %c0_313 = arith.constant 0 : index
    %c0_314 = arith.constant 0 : index
    %c0_315 = arith.constant 0 : index
    %296 = vector.load %arg4[%c0_313, %c0_314, %c0_315] : memref<1x3x384xf32, #tpu.memory_space<vmem>>, vector<1x3x384xf32>
    %297 = vector.shape_cast %296 : vector<1x3x384xf32> to vector<3x384xf32>
    %298 = vector.shape_cast %295 : vector<3x384xf32> to vector<1x3x384xf32>
    tpu.vector_store %arg4[%c0_313, %c0_314, %c0_315], %298 {strides = array<i32>} : memref<1x3x384xf32, #tpu.memory_space<vmem>>, vector<1x3x384xf32>,
    return
  }
  func.func @transform_0(%arg0: i32) -> (i32, i32, i32, i32) {
    %c0_i32 = arith.constant 0 : i32
    %c0_i32_0 = arith.constant 0 : i32
    %c0_i32_1 = arith.constant 0 : i32
    %c0_i32_2 = arith.constant 0 : i32
    return %arg0, %c0_i32, %c0_i32_0, %c0_i32_1 : i32, i32, i32, i32
  }
  func.func @transform_1(%arg0: i32) -> (i32, i32, i32) {
    %c0_i32 = arith.constant 0 : i32
    %c0_i32_0 = arith.constant 0 : i32
    %c0_i32_1 = arith.constant 0 : i32
    %c0_i32_2 = arith.constant 0 : i32
    return %c0_i32, %c0_i32_0, %c0_i32_1 : i32, i32, i32
  }
  func.func @transform_2(%arg0: i32) -> (i32, i32) {
    %c0_i32 = arith.constant 0 : i32
    %c0_i32_0 = arith.constant 0 : i32
    %c0_i32_1 = arith.constant 0 : i32
    return %c0_i32, %c0_i32_0 : i32, i32
  }
  func.func @transform_3(%arg0: i32) -> (i32, i32, i32) {
    %c0_i32 = arith.constant 0 : i32
    %c0_i32_0 = arith.constant 0 : i32
    %c0_i32_1 = arith.constant 0 : i32
    return %arg0, %c0_i32, %c0_i32_0 : i32, i32, i32
  }
}

</mosaic_0001>

<bundles_post_ra>
// kernel: generator.9
= control target key start
LH: loop header
LB: loop body
LE: loop exit
PB: predicated region body
PF: predicated region fallthrough
CT: control target
= control target key end

     0   :  { %s1074_s12 = smov 0   ;;  %s1181_s0 = inlined_call_operand.vmem [shape: bf16[2,4,8,256], index: 0, kind: input, shape index: {}]   ;;  %s1182_s1 = inlined_call_operand.vmem [shape: bf16[9,16,8], index: 1, kind: input, shape index: {}]   ;;  %s1183_s2 = inlined_call_operand.vmem [shape: f32[1,128], index: 2, kind: input, shape index: {}]   ;;  %s1184_s3 = inlined_call_operand.vmem [shape: bf16[2,16,128], index: 3, kind: output, shape index: {}]  }
   0x1 LB: > { %s839_s13 = sadd.s32 4294967295, %s1047_s12   ;;  %p843_p0 = scmp.ge.s32.totalorder %s1047_s12, 1  ;;  %s1047_s12 = sphi %s1074_s12, %s13_s12  }
   0x2   : > { %p137_p1 = scmp.lt.s32.totalorder %s1047_s12, 3 }
   0x4   : > { %p138_p2 = pnand %p843_p0, %p137_p1 }
   0x5   : > { %p161_p3 = scmp.lt.s32.totalorder (!%p138_p2), %s839_s13, 1  ;;  %v1049_v0 = vmov (!%p138_p2), 0.0   ;;  %vm1050_vm0 = vmmov (!%p138_p2), 0   ;;  %vm189_vm1 = vcmask (!%p138_p2), 1043456   ;;  %v1028_v8 = vld [vmem:[%s1182_s1 + $0x8] sm:$0xff] (!%p138_p2)   ;;  %v1029_v10 = vld [vmem:[%s1182_s1 + $0x20] sm:$0xff] (!%p138_p2)  }
   0x6   : > { %141 = sbr.rel (%p138_p2) target bundleno = 713 (0x2c9), region = 32  ;;  %925 = vmatprep.subr.bf16.mxu1 (!%p138_p2), %v1049_v0  ;;  %927 = vmatprep.mubr.msk.bf16.mxu1 (!%p138_p2), %vm1050_vm0, %v1049_v0  ;;  %s1051_s22 = smov (!%p138_p2), 127   ;;  %vm185_vm2 = vcmask (!%p138_p2), 64512   ;;  %v1030_v18 = vld [vmem:[%s1182_s1] sm:$0xff] (!%p138_p2)   ;;  %vm304_vm3 = vcmask (!%p138_p2), 1039360   ;;  %vm553_vm4 = vcmask (!%p138_p2), 973824  }
   0x7   : > { %949 = vmatprep.subr.bf16.mxu0 (!%p138_p2), %v1049_v0  ;;  %951 = vmatprep.mubr.msk.bf16.mxu0 (!%p138_p2), %vm1050_vm0, %v1049_v0  ;;  %s1052_s23 = smov (!%p138_p2), 119   ;;  %s1053_s26 = smov (!%p138_p2), 118   ;;  %v1031_v26 = vld [vmem:[%s1182_s1 + $0x28] sm:$0xff] (!%p138_p2)   ;;  %v1032_v33 = vld [vmem:[%s1182_s1 + $0x10] sm:$0xff] (!%p138_p2)   ;;  %v1034_v40 = vld [vmem:[%s1182_s1 + $0x18] sm:$0xff] (!%p138_p2)   ;;  %vm684_vm5 = vcmask (!%p138_p2), 965632  }
   0x8   : > { %v1033_v38 = vld [vmem:[%s1182_s1 + $0x30] sm:$0xff] (!%p138_p2)   ;;  %v1035_v44 = vld [vmem:[%s1182_s1 + $0x38] sm:$0xff] (!%p138_p2)   ;;  %v1036_v46 = vld [vmem:[%s1182_s1 + $0x40] sm:$0xff] (!%p138_p2)  }
   0x9   : > { %v893_v52 = vld [vmem:[%s1183_s2] ss:$0 sm:$0xff] (!%p138_p2) }
   0xd   : > { %s1186_s13 = smov (!%p161_p3, %s839_s13), 1 }
   0xe   : > { %s898_s14 = sshll.u32 %s1186_s13, 5  ;;  %s899_s16 = sshll.u32 %s1186_s13, 3 }
   0xf   : > { %s1094_s17 = scalar_lea.vmem %s1181_s0, %s898_s14  ;;  %s170_s19 = scalar_lea.vmem %s1184_s3, %s899_s16 }
  0x10   : > { %v871_v1 = vld [vmem:[%s1094_s17 + $0x10] sm:$0xff]  ;;  %v286_v2 = vld [vmem:[%s1094_s17] sm:$0xff]  ;;  %v848_v5 = vld [vmem:[%s1094_s17 + $0x8] sm:$0xf] }
  0x11   : > { %v875_v3 = vcombine.low %v871_v1, %v871_v1  ;;  %v858_v4 = vcombine.low %v286_v2, %v286_v2  ;;  %v866_v6 = vld [vmem:[%s1094_s17 + $0x18] sm:$0xf]  ;;  %v191_v7 = vsel %vm189_vm1, %v848_v5, 0  ;;  %v876_v11 = vcombine.high %v871_v1, %v871_v1  ;;  %v172_v13 = vld [vmem:[%s1094_s17] sm:$0xf]  ;;  %v882_v15 = vld [vmem:[%s1094_s17 + $0x8] sm:$0xff] }
  0x12   : > { %v428_v9 = vsel %vm189_vm1, %v866_v6, 0  ;;  %v859_v12 = vcombine.high %v286_v2, %v286_v2  ;;  %926 = vmatpush3.bf16.msra.mxu1 %v191_v7  ;;  %v243_v14 = vsel %vm189_vm1, %v172_v13, 0  ;;  %v886_v16 = vcombine.low %v882_v15, %v882_v15  ;;  %v861_v31 = vld [vmem:[%s1094_s17 + $0x10] sm:$0xf] }
  0x13   : > { %487 = vrot.lane.b32.xlu0 %v875_v3, %s1051_s22  ;;  %549 = vrot.lane.b32.xlu1 %v858_v4, %s1052_s23  ;;  %v887_v17 = vcombine.high %v882_v15, %v882_v15  ;;  %v369_v34 = vsel %vm189_vm1, %v861_v31, 0 }
  0x14   : > { %950 = vmatpush3.bf16.msra.mxu0 %v428_v9  ;;  %931 = vmatprep.subr.bf16.mxu1 %v1049_v0 }
  0x15   : > { %955 = vmatprep.subr.bf16.mxu0 %v1049_v0  ;;  %928 = vmatmul.mubr.msk.bf16.vlgmr.msra.gmra.mrb[0].mxu1 %vm185_vm2, %v1028_v8 }
  0x16   : > { %932 = vmatpush3.bf16.msra.mxu1 %v243_v14  ;;  %933 = vmatprep.mubr.msk.bf16.mxu1 %vm1050_vm0, %v1049_v0 }
  0x17   : > { %489 = vrot.lane.b32.xlu0 %v876_v11, %s1051_s22  ;;  %551 = vrot.lane.b32.xlu1 %v859_v12, %s1052_s23 }
  0x18   : > { %952 = vmatmul.mubr.msk.bf16.vlgmr.msra.gmra.mrb[0].mxu0 %vm185_vm2, %v1029_v10  ;;  %937 = vmatprep.subr.bf16.mxu1 %v1049_v0 }
  0x19   : > { %957 = vmatprep.mubr.msk.bf16.mxu0 %vm1050_vm0, %v1049_v0 }
  0x1b   : > { %300 = vrot.lane.b32.xlu0 %v858_v4, %s1051_s22  ;;  %302 = vrot.lane.b32.xlu1 %v859_v12, %s1051_s22 }
  0x1f   : > { %618 = vrot.lane.b32.xlu0 %v886_v16, %s1052_s23  ;;  %620 = vrot.lane.b32.xlu1 %v887_v17, %s1052_s23 }
  0x21   : > { %934 = vmatmul.mubr.msk.bf16.vlgmr.msra.gmra.mrb[0].mxu1 %vm185_vm2, %v1030_v18 }
  0x22   : > { %939 = vmatprep.mubr.msk.bf16.mxu1 %vm1050_vm0, %v1049_v0 }
  0x23   : > { %680 = vrot.lane.b32.xlu0 %v858_v4, %s1053_s26  ;;  %682 = vrot.lane.b32.xlu1 %v859_v12, %s1053_s26 }
  0x85   : > { %v488_v19 = vpop.permute.xlu0 %487  ;;  %v550_v20 = vpop.permute.xlu1 %549 }
  0x89   : > { %v490_v21 = vpop.permute.xlu0 %489  ;;  %v552_v22 = vpop.permute.xlu1 %551 }
  0x8a   : > { %v491_v23 = vsel %vm304_vm3, %v488_v19, %v490_v21  ;;  %v554_v24 = vsel %vm553_vm4, %v550_v20, %v552_v22 }
  0x8b   : > { %v496_v25 = vsel %vm189_vm1, %v491_v23, 0  ;;  %v559_v27 = vsel %vm189_vm1, %v554_v24, 0 }
  0x8c   : > { %956 = vmatpush3.bf16.msra.mxu0 %v496_v25 }
  0x8d   : > { %v301_v28 = vpop.permute.xlu0 %300  ;;  %v303_v29 = vpop.permute.xlu1 %302  ;;  %961 = vmatprep.subr.bf16.mxu0 %v1049_v0 }
  0x8e   : > { %v305_v30 = vsel %vm304_vm3, %v301_v28, %v303_v29 }
  0x8f   : > { %v310_v32 = vsel %vm189_vm1, %v305_v30, 0  ;;  %958 = vmatmul.mubr.msk.bf16.vlgmr.msra.gmra.mrb[0].mxu0 %vm185_vm2, %v1031_v26 }
  0x90   : > { %938 = vmatpush3.bf16.msra.mxu1 %v310_v32  ;;  %962 = vmatpush3.bf16.msra.mxu0 %v559_v27 }
  0x91   : > { %963 = vmatprep.mubr.msk.bf16.mxu0 %vm1050_vm0, %v1049_v0  ;;  %943 = vmatprep.subr.bf16.mxu1 %v1049_v0  ;;  %v619_v35 = vpop.permute.xlu0 %618  ;;  %v621_v36 = vpop.permute.xlu1 %620 }
  0x92   : > { %967 = vmatprep.subr.bf16.mxu0 %v1049_v0  ;;  %v622_v37 = vsel %vm553_vm4, %v619_v35, %v621_v36 }
  0x93   : > { %940 = vmatmul.mubr.msk.bf16.vlgmr.msra.gmra.mrb[0].mxu1 %vm185_vm2, %v1032_v33  ;;  %v627_v39 = vsel %vm189_vm1, %v622_v37, 0 }
  0x94   : > { %944 = vmatpush3.bf16.msra.mxu1 %v369_v34  ;;  %945 = vmatprep.mubr.msk.bf16.mxu1 %vm1050_vm0, %v1049_v0 }
  0x95   : > { %v681_v41 = vpop.permute.xlu0 %680  ;;  %v683_v42 = vpop.permute.xlu1 %682 }
  0x96   : > { %v685_v43 = vsel %vm684_vm5, %v681_v41, %v683_v42 }
  0x97   : > { %v690_v45 = vsel %vm189_vm1, %v685_v43, 0 }
  0x9b   : > { %964 = vmatmul.mubr.msk.bf16.vlgmr.msra.gmra.mrb[0].mxu0 %vm185_vm2, %v1033_v38 }
  0x9c   : > { %968 = vmatpush3.bf16.msra.mxu0 %v627_v39  ;;  %969 = vmatprep.mubr.msk.bf16.mxu0 %vm1050_vm0, %v1049_v0 }
  0x9d   : > { %973 = vmatprep.subr.bf16.mxu0 %v1049_v0 }
  0x9f   : > { %946 = vmatmul.mubr.msk.bf16.vlgmr.msra.gmra.mrb[0].mxu1 %vm185_vm2, %v1034_v40 }
  0xa7   : > { %970 = vmatmul.mubr.msk.bf16.vlgmr.msra.gmra.mrb[0].mxu0 %vm185_vm2, %v1035_v44 }
  0xa8   : > { %974 = vmatpush3.bf16.msra.mxu0 %v690_v45  ;;  %975 = vmatprep.mubr.msk.bf16.mxu0 %vm1050_vm0, %v1049_v0 }
  0xb3   : > { %976 = vmatmul.mubr.msk.bf16.vlgmr.msra.gmra.mrb[0].mxu0 %vm185_vm2, %v1036_v46 }
 0x172   : > { %v405_v47 = vpop.f32.mrb[0].mxu1 }
 0x173   : > { %v947_v48 = vpop.f32.mrb[1].mxu1 }
 0x174   : > { %v408_v49 = vpop.f32.mrb[2].mxu1 }
 0x175   : > { %v948_v50 = vpop.f32.mrb[3].mxu1 }
 0x186   : > { %v726_v51 = vpop.f32.mrb[0].mxu0 }
 0x187   : > { %v979_v53 = vadd.f32 %v726_v51, %v405_v47  ;;  %v977_v54 = vpop.f32.mrb[1].mxu0 }
 0x188   : > { %v729_v55 = vpop.f32.mrb[2].mxu0 }
 0x189   : > { %v980_v56 = vadd.f32 %v729_v55, %v408_v49  ;;  %v978_v57 = vpop.f32.mrb[3].mxu0  ;;  %v742_v58 = vmul.f32 %v979_v53, %v893_v52 }
 0x18b   : > { %744 = vadd.xlane.f32.xlu0 %v742_v58  ;;  %v743_v59 = vmul.f32 %v980_v56, %v893_v52 }
 0x18d   : > { %746 = vadd.xlane.f32.xlu1 %v743_v59 }
 0x218   : > { %v745_v60 = vpop.xlane.xlu0 %744 }
 0x219   : > { %v750_v61 = vmul.f32 0.015625, %v745_v60 }
 0x21a   : > { %v747_v62 = vpop.xlane.xlu1 %746 }
 0x21b   : > { %v752_v63 = vsub.f32 %v979_v53, %v750_v61  ;;  %v751_v0 = vmul.f32 0.015625, %v747_v62 }
 0x21d   : > { %v753_v1 = vsub.f32 %v980_v56, %v751_v0  ;;  %v754_v2 = vmul.f32 %v893_v52, %v752_v63 }
 0x21f   : > { %v756_v3 = vmul.f32 %v754_v2, %v754_v2  ;;  %v755_v4 = vmul.f32 %v893_v52, %v753_v1 }
 0x221   : > { %758 = vadd.xlane.f32.xlu0 %v756_v3  ;;  %v757_v5 = vmul.f32 %v755_v4, %v755_v4 }
 0x225   : > { %760 = vadd.xlane.f32.xlu0 %v757_v5 }
 0x2ae   : > { %v759_v6 = vpop.xlane.xlu0 %758 }
 0x2af   : > { %v764_v7 = vmul.f32 0.015625, %v759_v6 }
 0x2b1   : > { %v766_v8 = vadd.f32 1e-05, %v764_v7 }
 0x2b2   : > { %v761_v9 = vpop.xlane.xlu0 %760 }
 0x2b3   : > { %1037 = vrsqrt.f32 %v766_v8  ;;  %v765_v10 = vmul.f32 0.015625, %v761_v9 }
 0x2b5   : > { %v767_v11 = vadd.f32 1e-05, %v765_v10 }
 0x2b7   : > { %1039 = vrsqrt.f32 %v767_v11 }
 0x2bd   : > { %v1038_v12 = vpop.eup %1037 }
 0x2be   : > { %v770_v13 = vmul.f32 %v1038_v12, %v752_v63 }
 0x2c0   : > { %v772_v16 = vmax.f32 %v770_v13, 0.0 }
 0x2c1   : > { %v1040_v14 = vpop.eup %1039 }
 0x2c2   : > { %v771_v15 = vmul.f32 %v1040_v14, %v753_v1 }
 0x2c4   : > { %v773_v17 = vmax.f32 %v771_v15, 0.0 }
 0x2c6   : > { %v905_v18 = vpack.c.bf16 %v773_v17, %v772_v16 }
 0x2c8   : > { %906 = vst [vmem:[%s170_s19] sm:$0xff] %v905_v18  }
 0x2c9 PF: > { %s13_s12 = sadd.s32 1, %s1047_s12  }
 0x2ca   : > { %p10_p4 = scmp.ge.s32.totalorder %s13_s12, 4  }
 0x2cc   :  { %12 = sbr.rel (!%p10_p4) target bundleno = 1 (0x1), region = 73 }

// kernel: generator.10
= control target key start
LH: loop header
LB: loop body
LE: loop exit
PB: predicated region body
PF: predicated region fallthrough
CT: control target
= control target key end

     0   :  { %s1389_s12 = smov 0   ;;  %s1499_s0 = inlined_call_operand.vmem [shape: bf16[2,4,16,256], index: 0, kind: input, shape index: {}]   ;;  %s1500_s1 = inlined_call_operand.vmem [shape: bf16[9,32,16], index: 1, kind: input, shape index: {}]   ;;  %s1501_s2 = inlined_call_operand.vmem [shape: f32[1,128], index: 2, kind: input, shape index: {}]   ;;  %s1502_s3 = inlined_call_operand.vmem [shape: bf16[2,32,128], index: 3, kind: output, shape index: {}]  }
   0x1 LB: > { %s1074_s13 = sadd.s32 4294967295, %s1364_s12   ;;  %p1078_p0 = scmp.ge.s32.totalorder %s1364_s12, 1  ;;  %s1364_s12 = sphi %s1389_s12, %s13_s12  }
   0x2   : > { %p137_p1 = scmp.lt.s32.totalorder %s1364_s12, 3 }
   0x4   : > { %p138_p2 = pnand %p1078_p0, %p137_p1 }
   0x5   : > { %p161_p3 = scmp.lt.s32.totalorder (!%p138_p2), %s1074_s13, 1  ;;  %v1329_v0 = vld [vmem:[%s1500_s1 + $0x10] sm:$0xff] (!%p138_p2)   ;;  %vm202_vm0 = vcmask (!%p138_p2), 130048   ;;  %v1332_v1 = vld [vmem:[%s1500_s1 + $0x40] sm:$0xff] (!%p138_p2)   ;;  %s1366_s22 = smov (!%p138_p2), 127   ;;  %v1330_v7 = vld [vmem:[%s1500_s1 + $0x18] sm:$0xff] (!%p138_p2)  }
   0x6   : > { %141 = sbr.rel (%p138_p2) target bundleno = 716 (0x2cc), region = 32  ;;  %1224 = vmatprep.mubr.msk.bf16.mxu1 (!%p138_p2), %vm202_vm0, %v1329_v0  ;;  %1248 = vmatprep.mubr.msk.bf16.mxu0 (!%p138_p2), %vm202_vm0, %v1332_v1  ;;  %s1367_s23 = smov (!%p138_p2), 123   ;;  %v1334_v10 = vld [vmem:[%s1500_s1 + $0x48] sm:$0xff] (!%p138_p2)   ;;  %v1335_v11 = vld [vmem:[%s1500_s1] sm:$0xff] (!%p138_p2)   ;;  %v1337_v12 = vld [vmem:[%s1500_s1 + $0x50] sm:$0xff] (!%p138_p2)   ;;  %vm358_vm1 = vcmask (!%p138_p2), 1039360  }
   0x7   : > { %v1336_v15 = vld [vmem:[%s1500_s1 + $0x8] sm:$0xff] (!%p138_p2)   ;;  %s1368_s7 = smov (!%p138_p2), 122   ;;  %v1339_v16 = vld [vmem:[%s1500_s1 + $0x20] sm:$0xff] (!%p138_p2)   ;;  %vm695_vm2 = vcmask (!%p138_p2), 1006592   ;;  %v1338_v22 = vld [vmem:[%s1500_s1 + $0x58] sm:$0xff] (!%p138_p2)   ;;  %vm866_vm3 = vcmask (!%p138_p2), 998400  }
   0x8   : > { %v1341_v24 = vld [vmem:[%s1500_s1 + $0x60] sm:$0xff] (!%p138_p2)   ;;  %v1340_v29 = vld [vmem:[%s1500_s1 + $0x28] sm:$0xff] (!%p138_p2)   ;;  %v1344_v31 = vld [vmem:[%s1500_s1 + $0x30] sm:$0xff] (!%p138_p2)  }
   0x9   : > { %v1343_v34 = vld [vmem:[%s1500_s1 + $0x68] sm:$0xff] (!%p138_p2)   ;;  %v1346_v37 = vld [vmem:[%s1500_s1 + $0x70] sm:$0xff] (!%p138_p2)   ;;  %v1345_v39 = vld [vmem:[%s1500_s1 + $0x38] sm:$0xff] (!%p138_p2)  }
   0xa   : > { %v1347_v40 = vld [vmem:[%s1500_s1 + $0x78] sm:$0xff] (!%p138_p2)   ;;  %v1348_v41 = vld [vmem:[%s1500_s1 + $0x80] sm:$0xff] (!%p138_p2)   ;;  %v1349_v42 = vld [vmem:[%s1500_s1 + $0x88] sm:$0xff] (!%p138_p2)  }
   0xb   : > { %v1171_v50 = vld [vmem:[%s1501_s2] ss:$0 sm:$0xff] (!%p138_p2) }
   0xd   : > { %s1504_s13 = smov (!%p161_p3, %s1074_s13), 1 }
   0xe   : > { %s1178_s18 = sshll.u32 %s1504_s13, 6 }
   0xf   : > { %s1410_s21 = scalar_lea.vmem %s1499_s0, %s1178_s18 }
  0x10   : > { %v1319_v2 = vld [vmem:[%s1410_s21 + $0x20] ss:$8 sps:$4 sm:$0xff]   ;;  %v1321_v3 = vld [vmem:[%s1410_s21 + $0x24] ss:$8 sps:$4 sm:$0xff]   ;;  %v1328_v6 = vld [vmem:[%s1410_s21 + $0x10] ss:$8 sps:$4 sm:$0xff]  }
  0x11   : > { %611 = vrot.lane.b32.xlu0 %v1319_v2, %s1366_s22  ;;  %v1322_v4 = vld [vmem:[%s1410_s21] ss:$8 sps:$4 sm:$0xff]   ;;  %v1324_v5 = vld [vmem:[%s1410_s21 + $0x4] ss:$8 sps:$4 sm:$0xff]   ;;  %v1331_v8 = vld [vmem:[%s1410_s21 + $0x30] ss:$8 sps:$4 sm:$0xff]   ;;  %1222 = vmatprep.subr.bf16.mxu1 %v1328_v6 }
  0x12   : > { %691 = vrot.lane.b32.xlu1 %v1322_v4, %s1367_s23  ;;  %v1333_v9 = vld [vmem:[%s1410_s21] ss:$8 sps:$4 sm:$0xff]   ;;  %1223 = vmatpush3.bf16.msra.mxu1 %v1328_v6  ;;  %v1325_v13 = vld [vmem:[%s1410_s21 + $0x10] ss:$8 sps:$4 sm:$0xff]   ;;  %v1327_v14 = vld [vmem:[%s1410_s21 + $0x14] ss:$8 sps:$4 sm:$0xff]  }
  0x13   : > { %1246 = vmatprep.subr.bf16.mxu0 %v1331_v8  ;;  %1228 = vmatprep.subr.bf16.mxu1 %v1333_v9  ;;  %v1342_v27 = vld [vmem:[%s1410_s21 + $0x20] ss:$8 sps:$4 sm:$0xff]  }
  0x14   : > { %1247 = vmatpush3.bf16.msra.mxu0 %v1331_v8 }
  0x15   : > { %613 = vrot.lane.b32.xlu0 %v1321_v3, %s1366_s22  ;;  %1225 = vmatmul.mubr.msk.bf16.vlgmr.msra.gmra.mrb[0].mxu1 %vm202_vm0, %v1330_v7 }
  0x16   : > { %693 = vrot.lane.b32.xlu1 %v1324_v5, %s1367_s23  ;;  %1229 = vmatpush3.bf16.msra.mxu1 %v1333_v9 }
  0x17   : > { %1249 = vmatmul.mubr.msk.bf16.vlgmr.msra.gmra.mrb[0].mxu0 %vm202_vm0, %v1334_v10  ;;  %1230 = vmatprep.mubr.msk.bf16.mxu1 %vm202_vm0, %v1335_v11 }
  0x18   : > { %1254 = vmatprep.mubr.msk.bf16.mxu0 %vm202_vm0, %v1337_v12 }
  0x19   : > { %354 = vrot.lane.b32.xlu0 %v1322_v4, %s1366_s22 }
  0x1a   : > { %356 = vrot.lane.b32.xlu1 %v1324_v5, %s1366_s22 }
  0x1d   : > { %782 = vrot.lane.b32.xlu0 %v1325_v13, %s1367_s23 }
  0x1e   : > { %784 = vrot.lane.b32.xlu1 %v1327_v14, %s1367_s23 }
  0x21   : > { %862 = vrot.lane.b32.xlu0 %v1322_v4, %s1368_s7  ;;  %1231 = vmatmul.mubr.msk.bf16.vlgmr.msra.gmra.mrb[0].mxu1 %vm202_vm0, %v1336_v15 }
  0x22   : > { %864 = vrot.lane.b32.xlu1 %v1324_v5, %s1368_s7  ;;  %1236 = vmatprep.mubr.msk.bf16.mxu1 %vm202_vm0, %v1339_v16  ;;  %s1179_s7 = sshll.u32 %s1504_s13, 4 }
  0x23   : > { %s170_s10 = scalar_lea.vmem %s1502_s3, %s1179_s7 }
  0x83   : > { %v612_v17 = vpop.permute.xlu0 %611 }
  0x84   : > { %v692_v18 = vpop.permute.xlu1 %691 }
  0x87   : > { %v614_v19 = vpop.permute.xlu0 %613 }
  0x88   : > { %v615_v20 = vsel %vm358_vm1, %v612_v17, %v614_v19  ;;  %v694_v21 = vpop.permute.xlu1 %693 }
  0x89   : > { %1252 = vmatprep.subr.bf16.mxu0 %v615_v20  ;;  %v696_v23 = vsel %vm695_vm2, %v692_v18, %v694_v21 }
  0x8a   : > { %1253 = vmatpush3.bf16.msra.mxu0 %v615_v20 }
  0x8b   : > { %v355_v25 = vpop.permute.xlu0 %354  ;;  %1258 = vmatprep.subr.bf16.mxu0 %v696_v23 }
  0x8c   : > { %v357_v26 = vpop.permute.xlu1 %356 }
  0x8d   : > { %1255 = vmatmul.mubr.msk.bf16.vlgmr.msra.gmra.mrb[0].mxu0 %vm202_vm0, %v1338_v22  ;;  %v359_v28 = vsel %vm358_vm1, %v355_v25, %v357_v26 }
  0x8e   : > { %1259 = vmatpush3.bf16.msra.mxu0 %v696_v23  ;;  %1260 = vmatprep.mubr.msk.bf16.mxu0 %vm202_vm0, %v1341_v24 }
  0x8f   : > { %1234 = vmatprep.subr.bf16.mxu1 %v359_v28  ;;  %v783_v30 = vpop.permute.xlu0 %782 }
  0x90   : > { %1235 = vmatpush3.bf16.msra.mxu1 %v359_v28  ;;  %v785_v32 = vpop.permute.xlu1 %784 }
  0x91   : > { %1240 = vmatprep.subr.bf16.mxu1 %v1342_v27  ;;  %v786_v33 = vsel %vm695_vm2, %v783_v30, %v785_v32 }
  0x92   : > { %1264 = vmatprep.subr.bf16.mxu0 %v786_v33 }
  0x93   : > { %1237 = vmatmul.mubr.msk.bf16.vlgmr.msra.gmra.mrb[0].mxu1 %vm202_vm0, %v1340_v29  ;;  %v863_v35 = vpop.permute.xlu0 %862 }
  0x94   : > { %1241 = vmatpush3.bf16.msra.mxu1 %v1342_v27  ;;  %1242 = vmatprep.mubr.msk.bf16.mxu1 %vm202_vm0, %v1344_v31  ;;  %v865_v36 = vpop.permute.xlu1 %864 }
  0x95   : > { %v867_v38 = vsel %vm866_vm3, %v863_v35, %v865_v36 }
  0x99   : > { %1261 = vmatmul.mubr.msk.bf16.vlgmr.msra.gmra.mrb[0].mxu0 %vm202_vm0, %v1343_v34 }
  0x9a   : > { %1265 = vmatpush3.bf16.msra.mxu0 %v786_v33  ;;  %1266 = vmatprep.mubr.msk.bf16.mxu0 %vm202_vm0, %v1346_v37 }
  0x9b   : > { %1270 = vmatprep.subr.bf16.mxu0 %v867_v38 }
  0x9f   : > { %1243 = vmatmul.mubr.msk.bf16.vlgmr.msra.gmra.mrb[0].mxu1 %vm202_vm0, %v1345_v39 }
  0xa5   : > { %1267 = vmatmul.mubr.msk.bf16.vlgmr.msra.gmra.mrb[0].mxu0 %vm202_vm0, %v1347_v40 }
  0xa6   : > { %1271 = vmatpush3.bf16.msra.mxu0 %v867_v38  ;;  %1272 = vmatprep.mubr.msk.bf16.mxu0 %vm202_vm0, %v1348_v41 }
  0xb1   : > { %1273 = vmatmul.mubr.msk.bf16.vlgmr.msra.gmra.mrb[0].mxu0 %vm202_vm0, %v1349_v42 }
 0x172   : > { %v1244_v43 = vpop.f32.mrb[0].mxu1 }
 0x173   : > { %v484_v44 = vpop.f32.mrb[1].mxu1 }
 0x174   : > { %v1245_v45 = vpop.f32.mrb[2].mxu1 }
 0x175   : > { %v487_v46 = vpop.f32.mrb[3].mxu1 }
 0x184   : > { %v1274_v47 = vpop.f32.mrb[0].mxu0 }
 0x185   : > { %v1276_v48 = vadd.f32 %v1274_v47, %v1244_v43  ;;  %v909_v49 = vpop.f32.mrb[1].mxu0 }
 0x186   : > { %v1277_v51 = vadd.f32 %v909_v49, %v484_v44  ;;  %v1275_v52 = vpop.f32.mrb[2].mxu0 }
 0x187   : > { %v1278_v53 = vadd.f32 %v1275_v52, %v1245_v45  ;;  %v912_v54 = vpop.f32.mrb[3].mxu0  ;;  %v937_v58 = vmul.f32 %v1276_v48, %v1171_v50 }
 0x188   : > { %v1279_v55 = vadd.f32 %v912_v54, %v487_v46  ;;  %v935_v56 = vmul.f32 %v1277_v51, %v1171_v50 }
 0x189   : > { %v938_v59 = vmul.f32 %v1278_v53, %v1171_v50 }
 0x18a   : > { %939 = vadd.xlane.f32.xlu0 %v935_v56  ;;  %v936_v57 = vmul.f32 %v1279_v55, %v1171_v50 }
 0x18c   : > { %941 = vadd.xlane.f32.xlu1 %v936_v57 }
 0x18e   : > { %943 = vadd.xlane.f32.xlu0 %v937_v58 }
 0x192   : > { %945 = vadd.xlane.f32.xlu0 %v938_v59 }
 0x217   : > { %v940_v60 = vpop.xlane.xlu0 %939 }
 0x218   : > { %v951_v61 = vmul.f32 0.0625, %v940_v60 }
 0x219   : > { %v942_v62 = vpop.xlane.xlu1 %941 }
 0x21a   : > { %v955_v63 = vsub.f32 %v1277_v51, %v951_v61  ;;  %v952_v0 = vmul.f32 0.0625, %v942_v62 }
 0x21b   : > { %v944_v1 = vpop.xlane.xlu0 %943 }
 0x21c   : > { %v956_v2 = vsub.f32 %v1279_v55, %v952_v0  ;;  %v953_v3 = vmul.f32 0.0625, %v944_v1  ;;  %v959_v4 = vmul.f32 %v1171_v50, %v955_v63 }
 0x21e   : > { %v957_v5 = vsub.f32 %v1276_v48, %v953_v3  ;;  %v963_v6 = vmul.f32 %v959_v4, %v959_v4  ;;  %v960_v7 = vmul.f32 %v1171_v50, %v956_v2 }
 0x21f   : > { %v946_v8 = vpop.xlane.xlu0 %945 }
 0x220   : > { %v954_v9 = vmul.f32 0.0625, %v946_v8  ;;  %967 = vadd.xlane.f32.xlu1 %v963_v6  ;;  %v964_v10 = vmul.f32 %v960_v7, %v960_v7  ;;  %v961_v11 = vmul.f32 %v1171_v50, %v957_v5 }
 0x222   : > { %v958_v12 = vsub.f32 %v1278_v53, %v954_v9  ;;  %969 = vadd.xlane.f32.xlu0 %v964_v10  ;;  %v965_v13 = vmul.f32 %v961_v11, %v961_v11 }
 0x224   : > { %971 = vadd.xlane.f32.xlu1 %v965_v13  ;;  %v962_v14 = vmul.f32 %v1171_v50, %v958_v12 }
 0x226   : > { %v966_v15 = vmul.f32 %v962_v14, %v962_v14 }
 0x228   : > { %973 = vadd.xlane.f32.xlu0 %v966_v15 }
 0x2ad   : > { %v968_v16 = vpop.xlane.xlu1 %967 }
 0x2ae   : > { %v979_v17 = vmul.f32 0.0625, %v968_v16 }
 0x2af   : > { %v970_v18 = vpop.xlane.xlu0 %969 }
 0x2b0   : > { %v983_v19 = vadd.f32 1e-05, %v979_v17  ;;  %v980_v20 = vmul.f32 0.0625, %v970_v18 }
 0x2b1   : > { %v972_v21 = vpop.xlane.xlu1 %971 }
 0x2b2   : > { %1350 = vrsqrt.f32 %v983_v19  ;;  %v984_v22 = vadd.f32 1e-05, %v980_v20  ;;  %v981_v23 = vmul.f32 0.0625, %v972_v21 }
 0x2b4   : > { %1352 = vrsqrt.f32 %v984_v22  ;;  %v985_v24 = vadd.f32 1e-05, %v981_v23 }
 0x2b5   : > { %v974_v25 = vpop.xlane.xlu0 %973 }
 0x2b6   : > { %1354 = vrsqrt.f32 %v985_v24  ;;  %v982_v26 = vmul.f32 0.0625, %v974_v25 }
 0x2b8   : > { %v986_v27 = vadd.f32 1e-05, %v982_v26 }
 0x2ba   : > { %1356 = vrsqrt.f32 %v986_v27 }
 0x2bc   : > { %v1351_v28 = vpop.eup %1350 }
 0x2bd   : > { %v991_v29 = vmul.f32 %v1351_v28, %v955_v63 }
 0x2be   : > { %v1353_v30 = vpop.eup %1352 }
 0x2bf   : > { %v992_v31 = vmul.f32 %v1353_v30, %v956_v2  ;;  %v995_v33 = vmax.f32 %v991_v29, 0.0 }
 0x2c0   : > { %v1355_v32 = vpop.eup %1354 }
 0x2c1   : > { %v996_v34 = vmax.f32 %v992_v31, 0.0  ;;  %v993_v36 = vmul.f32 %v1355_v32, %v957_v5 }
 0x2c3   : > { %v1187_v35 = vpack.c.bf16 %v996_v34, %v995_v33  ;;  %v997_v39 = vmax.f32 %v993_v36, 0.0 }
 0x2c4   : > { %v1357_v37 = vpop.eup %1356 }
 0x2c5   : > { %1188 = vst [vmem:[%s170_s10] sm:$0xff] %v1187_v35   ;;  %v994_v38 = vmul.f32 %v1357_v37, %v958_v12 }
 0x2c7   : > { %v998_v40 = vmax.f32 %v994_v38, 0.0 }
 0x2c9   : > { %v1192_v41 = vpack.c.bf16 %v998_v40, %v997_v39 }
 0x2cb   : > { %1194 = vst [vmem:[%s170_s10 + $0x8] sm:$0xff] %v1192_v41  }
 0x2cc PF: > { %s13_s12 = sadd.s32 1, %s1364_s12  }
 0x2cd   : > { %p10_p4 = scmp.ge.s32.totalorder %s13_s12, 4  }
 0x2cf   :  { %12 = sbr.rel (!%p10_p4) target bundleno = 1 (0x1), region = 73 }

// kernel: generator.8
= control target key start
LH: loop header
LB: loop body
LE: loop exit
PB: predicated region body
PF: predicated region fallthrough
CT: control target
= control target key end

     0   :  { %s7674_s12 = smov 0   ;;  %s8698_s0 = inlined_call_operand.vmem [shape: bf16[2,1,3,640], index: 0, kind: input, shape index: {}]   ;;  %s8699_s1 = inlined_call_operand.vmem [shape: bf16[49,8,3], index: 1, kind: input, shape index: {}]   ;;  %s8700_s2 = inlined_call_operand.vmem [shape: f32[1,384], index: 2, kind: input, shape index: {}]   ;;  %s8701_s3 = inlined_call_operand.vmem [shape: bf16[2,8,384], index: 3, kind: output, shape index: {}]  }
   0x1 LB: > { %s6594_s13 = sadd.s32 4294967295, %s7602_s12   ;;  %p6598_p0 = scmp.ge.s32.totalorder %s7602_s12, 1  ;;  %s7602_s12 = sphi %s7674_s12, %s13_s12  }
   0x2   : > { %p137_p1 = scmp.lt.s32.totalorder %s7602_s12, 3 }
   0x4   : > { %p138_p2 = pnand %p6598_p0, %p137_p1 }
   0x5   : > { %p161_p3 = scmp.lt.s32.totalorder (!%p138_p2), %s6594_s13, 1  ;;  %v182_v0 = vlaneseq (!%p138_p2)  ;;  %v7604_v1 = vmov (!%p138_p2), 1983009808   ;;  %v7605_v5 = vmov (!%p138_p2), 0.0   ;;  %vm7606_vm0 = vmmov (!%p138_p2), 0   ;;  %s7608_s18 = smov (!%p138_p2), 127  }
   0x6   : > { %141 = sbr.rel (%p138_p2) target bundleno = 1261 (0x4ed), region = 32  ;;  %v180_v2 = vunpack.c.l.s4 (!%p138_p2), %v7604_v1  ;;  %6851 = vmatprep.subr.bf16.mxu1 (!%p138_p2), %v7605_v5  ;;  %6853 = vmatprep.mubr.msk.bf16.mxu1 (!%p138_p2), %vm7606_vm0, %v7605_v5  ;;  %v7607_v10 = vmov (!%p138_p2), 0   ;;  %s7609_s19 = smov (!%p138_p2), 126   ;;  %vm211_vm1 = vcmask (!%p138_p2), 1040384   ;;  %vm203_vm2 = vcmask (!%p138_p2), 1039360  }
   0x7   : > { %v7684_v3 = vshrl.u32 (!%p138_p2), %v182_v0, 7  ;;  %256 = vmatprep.mubr.bf16.mxu0 (!%p138_p2), %v7607_v10  ;;  %s7610_s20 = smov (!%p138_p2), 125   ;;  %s7611_s21 = smov (!%p138_p2), 124   ;;  %vm212_vm3 = vcmask (!%p138_p2), 1041408   ;;  %v7623_v19 = vmov (!%p138_p2), 65535   ;;  %vm444_vm4 = vcmask (!%p138_p2), 1031168  }
   0x8   : > { %v181_v4 = vunpack.c.0.s8 (!%p138_p2), %v180_v2  ;;  %s7612_s22 = smov (!%p138_p2), 123   ;;  %s7613_s23 = smov (!%p138_p2), 122   ;;  %v213_v20 = vsel (!%p138_p2), %vm211_vm1, 4294967295, %v7623_v19  ;;  %v6601_v34 = vld [vmem:[%s8699_s1 + $0x4] sm:$0xf] (!%p138_p2)  ;;  %vm207_vm5 = vcmask (!%p138_p2), 23552  }
   0x9   : > { %s7614_s24 = smov (!%p138_p2), 106   ;;  %s7615_s25 = smov (!%p138_p2), 105   ;;  %v7788_v24 = vsel (!%p138_p2), %vm212_vm3, %v213_v20, 0  ;;  %vm573_vm6 = vcmask (!%p138_p2), 1022976   ;;  %v173_v48 = vld [vmem:[%s8699_s1] sm:$0xf] (!%p138_p2) }
   0xa   : > { %v7689_v6 = vsub.s32 (!%p138_p2), %v181_v4, %v7684_v3  ;;  %s7616_s26 = smov (!%p138_p2), 104   ;;  %s7617_s27 = smov (!%p138_p2), 103   ;;  %vm702_vm7 = vcmask (!%p138_p2), 1014784   ;;  %v6606_v59 = vld [vmem:[%s8699_s1 + $0x8] sm:$0xf] (!%p138_p2)  ;;  %vm831_vm8 = vcmask (!%p138_p2), 1006592  }
   0xb   : > { %s7618_s28 = smov (!%p138_p2), 102   ;;  %s7619_s29 = smov (!%p138_p2), 101   ;;  %vm960_vm9 = vcmask (!%p138_p2), 998400   ;;  %vm1089_vm10 = vcmask (!%p138_p2), 867328   ;;  %vm1218_vm11 = vcmask (!%p138_p2), 859136   ;;  %vm1347_vm12 = vcmask (!%p138_p2), 850944  }
   0xc   : > { %s7620_s30 = smov (!%p138_p2), 100   ;;  %s7621_s4 = smov (!%p138_p2), 84   ;;  %vm1476_vm13 = vcmask (!%p138_p2), 842752   ;;  %vm1605_vm14 = vcmask (!%p138_p2), 834560   ;;  %vm1734_vm15 = vcmask (!%p138_p2), 826368   ;;  %vm1863_vm1 = vcmask (!%p138_p2), 818176  }
   0xd   : > { %s8703_s13 = smov (!%p161_p3, %s6594_s13), 1  ;;  %s7622_s5 = smov 83   ;;  %vm2121_vm3 = vcmask 678912  }
   0xe   : > { %s7529_s14 = smul.u32 10, %s8703_s13  ;;  %s7624_s6 = smov 82  }
   0xf   : > { %s7625_s9 = smov 81   ;;  %s7632_s7 = smov 59  }
  0x10   : > { %s7694_s17 = scalar_lea.vmem %s8698_s0, %s7529_s14  ;;  %s7626_s14 = smov 80  }
  0x11   : > { %v174_v7 = vld [vmem:[%s7694_s17] sm:$0xff]  ;;  %s7633_s8 = smov 58   ;;  %s7634_s11 = smov 57  }
  0x12   : > { %v7698_v8 = vrot.slane %v174_v7, %v7689_v6  ;;  %v178_v9 = vcombine.high %v174_v7, %v174_v7  ;;  %v172_v14 = vld [vmem:[%s7694_s17] sm:$0x3f]  ;;  %s7635_s16 = smov 56   ;;  %s7643_s15 = smov 18  }
  0x13   : > { %v313_v16 = vrot.slane %v172_v14, %v7689_v6  ;;  %v306_v18 = vcombine.high %v172_v14, %v172_v14  ;;  %v6609_v14 = vld [vmem:[%s8699_s1 + $0xc] sm:$0xf] }
  0x14   : > { %195 = vrot.lane.b32.xlu1 %v7698_v8, %s7608_s18  ;;  %v7706_v11 = vcombine.high %v7698_v8, %v7698_v8  ;;  %v7709_v12 = vrot.slane %v178_v9, %v7689_v6 }
  0x15   : > { %v321_v22 = vcombine.high %v313_v16, %v313_v16  ;;  %v320_v26 = vrot.slane %v306_v18, %v7689_v6  ;;  %v326_v37 = vand.u32 %v313_v16, %v7788_v24 }
  0x16   : > { %197 = vrot.lane.b32.xlu0 %v7706_v11, %s7608_s18  ;;  %v7714_v13 = vcombine.high %v7709_v12, %v7709_v12 }
  0x17   : > { %v329_v31 = vand.u32 %v321_v22, %v7788_v24  ;;  %v332_v36 = vand.u32 %v320_v26, %v7788_v24  ;;  %v6612_v26 = vld [vmem:[%s8699_s1 + $0x10] sm:$0xf] }
  0x18   : > { %201 = vrot.lane.b32.xlu1 %v7714_v13, %s7608_s18 }
  0x1a   : > { %199 = vrot.lane.b32.xlu0 %v7709_v12, %s7608_s18  ;;  %s7627_s18 = smov 79  }
  0x1c   : > { %440 = vrot.lane.b32.xlu1 %v7709_v12, %s7609_s19 }
  0x1e   : > { %438 = vrot.lane.b32.xlu0 %v7706_v11, %s7609_s19 }
  0x20   : > { %442 = vrot.lane.b32.xlu1 %v7714_v13, %s7609_s19 }
  0x22   : > { %436 = vrot.lane.b32.xlu0 %v7698_v8, %s7609_s19  ;;  %s7628_s19 = smov 78  }
  0x24   : > { %569 = vrot.lane.b32.xlu1 %v7709_v12, %s7610_s20 }
  0x26   : > { %567 = vrot.lane.b32.xlu0 %v7706_v11, %s7610_s20 }
  0x28   : > { %571 = vrot.lane.b32.xlu1 %v7714_v13, %s7610_s20 }
  0x2a   : > { %565 = vrot.lane.b32.xlu0 %v7698_v8, %s7610_s20  ;;  %s7636_s20 = smov 40  }
  0x2c   : > { %698 = vrot.lane.b32.xlu1 %v7709_v12, %s7611_s21 }
  0x2e   : > { %696 = vrot.lane.b32.xlu0 %v7706_v11, %s7611_s21 }
  0x30   : > { %700 = vrot.lane.b32.xlu1 %v7714_v13, %s7611_s21 }
  0x32   : > { %694 = vrot.lane.b32.xlu0 %v7698_v8, %s7611_s21 }
  0x34   : > { %827 = vrot.lane.b32.xlu1 %v7709_v12, %s7612_s22 }
  0x36   : > { %825 = vrot.lane.b32.xlu0 %v7706_v11, %s7612_s22 }
  0x38   : > { %829 = vrot.lane.b32.xlu1 %v7714_v13, %s7612_s22 }
  0x3a   : > { %823 = vrot.lane.b32.xlu0 %v7698_v8, %s7612_s22 }
  0x3c   : > { %956 = vrot.lane.b32.xlu1 %v7709_v12, %s7613_s23 }
  0x3e   : > { %954 = vrot.lane.b32.xlu0 %v7706_v11, %s7613_s23 }
  0x40   : > { %958 = vrot.lane.b32.xlu1 %v7714_v13, %s7613_s23 }
  0x42   : > { %952 = vrot.lane.b32.xlu0 %v7698_v8, %s7613_s23 }
  0x44   : > { %1085 = vrot.lane.b32.xlu1 %v7709_v12, %s7614_s24 }
  0x46   : > { %1083 = vrot.lane.b32.xlu0 %v7706_v11, %s7614_s24 }
  0x48   : > { %1087 = vrot.lane.b32.xlu1 %v7714_v13, %s7614_s24 }
  0x4a   : > { %1081 = vrot.lane.b32.xlu0 %v7698_v8, %s7614_s24 }
  0x4c   : > { %1214 = vrot.lane.b32.xlu1 %v7709_v12, %s7615_s25 }
  0x4e   : > { %1212 = vrot.lane.b32.xlu0 %v7706_v11, %s7615_s25 }
  0x50   : > { %1216 = vrot.lane.b32.xlu1 %v7714_v13, %s7615_s25 }
  0x52   : > { %1210 = vrot.lane.b32.xlu0 %v7698_v8, %s7615_s25  ;;  %s7629_s25 = smov 62  }
  0x54   : > { %1343 = vrot.lane.b32.xlu1 %v7709_v12, %s7616_s26 }
  0x56   : > { %1341 = vrot.lane.b32.xlu0 %v7706_v11, %s7616_s26 }
  0x58   : > { %1345 = vrot.lane.b32.xlu1 %v7714_v13, %s7616_s26 }
  0x5a   : > { %1339 = vrot.lane.b32.xlu0 %v7698_v8, %s7616_s26  ;;  %s7637_s26 = smov 39  }
  0x5c   : > { %1472 = vrot.lane.b32.xlu1 %v7709_v12, %s7617_s27 }
  0x5e   : > { %1470 = vrot.lane.b32.xlu0 %v7706_v11, %s7617_s27 }
  0x60   : > { %1474 = vrot.lane.b32.xlu1 %v7714_v13, %s7617_s27 }
  0x62   : > { %1468 = vrot.lane.b32.xlu0 %v7698_v8, %s7617_s27  ;;  %s7638_s27 = smov 38  }
  0x64   : > { %1601 = vrot.lane.b32.xlu1 %v7709_v12, %s7618_s28 }
  0x66   : > { %1599 = vrot.lane.b32.xlu0 %v7706_v11, %s7618_s28 }
  0x68   : > { %1603 = vrot.lane.b32.xlu1 %v7714_v13, %s7618_s28 }
  0x6a   : > { %1597 = vrot.lane.b32.xlu0 %v7698_v8, %s7618_s28  ;;  %s7630_s28 = smov 61  }
  0x6c   : > { %1730 = vrot.lane.b32.xlu1 %v7709_v12, %s7619_s29 }
  0x6e   : > { %1728 = vrot.lane.b32.xlu0 %v7706_v11, %s7619_s29 }
  0x70   : > { %1732 = vrot.lane.b32.xlu1 %v7714_v13, %s7619_s29 }
  0x72   : > { %1726 = vrot.lane.b32.xlu0 %v7698_v8, %s7619_s29 }
  0x74   : > { %1859 = vrot.lane.b32.xlu1 %v7709_v12, %s7620_s30 }
  0x76   : > { %1857 = vrot.lane.b32.xlu0 %v7706_v11, %s7620_s30 }
  0x78   : > { %1861 = vrot.lane.b32.xlu1 %v7714_v13, %s7620_s30 }
  0x7a   : > { %1855 = vrot.lane.b32.xlu0 %v7698_v8, %s7620_s30  ;;  %s7639_s30 = smov 37  }
  0x7c   : > { %1988 = vrot.lane.b32.xlu1 %v7709_v12, %s7621_s4 }
  0x7e   : > { %1986 = vrot.lane.b32.xlu0 %v7706_v11, %s7621_s4 }
  0x80   : > { %1990 = vrot.lane.b32.xlu1 %v7714_v13, %s7621_s4 }
  0x82   : > { %1984 = vrot.lane.b32.xlu0 %v7698_v8, %s7621_s4  ;;  %s7631_s4 = smov 60  }
  0x84   : > { %2117 = vrot.lane.b32.xlu1 %v7709_v12, %s7622_s5 }
  0x86   : > { %v196_v15 = vpop.permute.xlu1 %195  ;;  %2115 = vrot.lane.b32.xlu0 %v7706_v11, %s7622_s5 }
  0x88   : > { %v198_v17 = vpop.permute.xlu0 %197  ;;  %2119 = vrot.lane.b32.xlu1 %v7714_v13, %s7622_s5 }
  0x89   : > { %v204_v25 = vsel %vm203_vm2, %v196_v15, %v198_v17 }
  0x8a   : > { %v202_v21 = vpop.permute.xlu1 %201  ;;  %2113 = vrot.lane.b32.xlu0 %v7698_v8, %s7622_s5  ;;  %v216_v33 = vand.u32 %v7788_v24, %v204_v25  ;;  %s7648_s5 = smov 13  }
  0x8c   : > { %v200_v23 = vpop.permute.xlu0 %199  ;;  %2246 = vrot.lane.b32.xlu1 %v7709_v12, %s7624_s6 }
  0x8d   : > { %v206_v27 = vsel %vm203_vm2, %v200_v23, %v202_v21  ;;  %v205_v28 = vsel %vm203_vm2, %v198_v17, %v200_v23  ;;  %vm1992_vm2 = vcmask 687104  }
  0x8e   : > { %v219_v29 = vand.u32 %v7788_v24, %v205_v28  ;;  %v222_v30 = vand.u32 %v7788_v24, %v206_v27  ;;  %v441_v32 = vpop.permute.xlu1 %440  ;;  %2244 = vrot.lane.b32.xlu0 %v7706_v11, %s7624_s6 }
  0x90   : > { %224 = vmatprep.subr.bf16.mxu0 %v219_v29  ;;  %6852 = vmatpush3.bf16.msra.mxu1 %v222_v30  ;;  %v439_v35 = vpop.permute.xlu0 %438  ;;  %v3124_v30 = vld [vmem:[%s7694_s17] sm:$0xff] }
  0x91   : > { %225 = vmatpush1.bf16.msra.mxu0 %v216_v33  ;;  %6857 = vmatprep.subr.bf16.mxu1 %v7605_v5  ;;  %v446_v38 = vsel %vm444_vm4, %v439_v35, %v441_v32 }
  0x92   : > { %334 = vmatprep.subr.bf16.mxu0 %v329_v31  ;;  %v455_v39 = vand.u32 %v446_v38, %v7788_v24  ;;  %2242 = vrot.lane.b32.xlu0 %v7698_v8, %s7624_s6  ;;  %v443_v40 = vpop.permute.xlu1 %442 }
  0x93   : > { %6854 = vmatmul.mubr.msk.bf16.vlgmr.msra.gmra.mrb[0].mxu1 %vm207_vm5, %v6601_v34  ;;  %2248 = vrot.lane.b32.xlu1 %v7714_v13, %s7624_s6  ;;  %v447_v43 = vsel %vm444_vm4, %v441_v32, %v443_v40  ;;  %v7896_v32 = vrot.slane %v3124_v30, %v7689_v6  ;;  %s7640_s6 = smov 36  }
  0x94   : > { %6602 = vmatmul.mubr.msk.bf16.vlgmr.msra.gmra.mrb[0].mxu0 %vm207_vm5, %v6601_v34  ;;  %6858 = vmatpush3.bf16.msra.mxu1 %v332_v36  ;;  %v437_v41 = vpop.permute.xlu0 %436  ;;  %v458_v47 = vand.u32 %v447_v43, %v7788_v24 }
  0x95   : > { %335 = vmatpush1.bf16.msra.mxu0 %v326_v37  ;;  %6859 = vmatprep.mubr.msk.bf16.mxu1 %vm7606_vm0, %v7605_v5  ;;  %v445_v44 = vsel %vm444_vm4, %v437_v41, %v439_v35  ;;  %v7905_v38 = vcombine.high %v7896_v32, %v7896_v32  ;;  %vm2250_vm4 = vcmask 670720  }
  0x96   : > { %460 = vmatprep.subr.bf16.mxu0 %v455_v39  ;;  %366 = vmatprep.mubr.bf16.mxu0 %v7607_v10  ;;  %v570_v42 = vpop.permute.xlu1 %569  ;;  %v452_v49 = vand.u32 %v445_v44, %v7788_v24 }
  0x97   : > { %6863 = vmatprep.subr.bf16.mxu1 %v7605_v5  ;;  %2373 = vrot.lane.b32.xlu0 %v7706_v11, %s7625_s9 }
  0x98   : > { %2375 = vrot.lane.b32.xlu1 %v7709_v12, %s7625_s9  ;;  %v568_v45 = vpop.permute.xlu0 %567 }
  0x99   : > { %v575_v46 = vsel %vm573_vm6, %v568_v45, %v570_v42 }
  0x9a   : > { %v584_v50 = vand.u32 %v575_v46, %v7788_v24  ;;  %v572_v51 = vpop.permute.xlu1 %571 }
  0x9b   : > { %2371 = vrot.lane.b32.xlu0 %v7698_v8, %s7625_s9  ;;  %v576_v54 = vsel %vm573_vm6, %v570_v42, %v572_v51 }
  0x9c   : > { %2377 = vrot.lane.b32.xlu1 %v7714_v13, %s7625_s9  ;;  %v566_v52 = vpop.permute.xlu0 %565  ;;  %v587_v58 = vand.u32 %v576_v54, %v7788_v24  ;;  %s7641_s9 = smov 35  }
  0x9d   : > { %v574_v55 = vsel %vm573_vm6, %v566_v52, %v568_v45  ;;  %vm2379_vm6 = vcmask 662528  }
  0x9e   : > { %v699_v53 = vpop.permute.xlu1 %698  ;;  %v581_v60 = vand.u32 %v574_v55, %v7788_v24 }
  0x9f   : > { %6860 = vmatmul.mubr.msk.bf16.vlgmr.msra.gmra.mrb[0].mxu1 %vm207_vm5, %v173_v48  ;;  %2502 = vrot.lane.b32.xlu0 %v7706_v11, %s7626_s14 }
  0xa0   : > { %6604 = vmatmul.mubr.msk.bf16.vlgmr.msra.gmra.mrb[0].mxu0 %vm207_vm5, %v173_v48  ;;  %6864 = vmatpush3.bf16.msra.mxu1 %v458_v47  ;;  %v697_v56 = vpop.permute.xlu0 %696 }
  0xa1   : > { %461 = vmatpush1.bf16.msra.mxu0 %v452_v49  ;;  %6865 = vmatprep.mubr.msk.bf16.mxu1 %vm7606_vm0, %v7605_v5  ;;  %v704_v57 = vsel %vm702_vm7, %v697_v56, %v699_v53 }
  0xa2   : > { %589 = vmatprep.subr.bf16.mxu0 %v584_v50  ;;  %492 = vmatprep.mubr.bf16.mxu0 %v7607_v10  ;;  %v713_v61 = vand.u32 %v704_v57, %v7788_v24  ;;  %v701_v62 = vpop.permute.xlu1 %700  ;;  %v6618_v50 = vld [vmem:[%s8699_s1 + $0x18] sm:$0xf] }
  0xa3   : > { %6869 = vmatprep.subr.bf16.mxu1 %v7605_v5  ;;  %2504 = vrot.lane.b32.xlu1 %v7709_v12, %s7626_s14  ;;  %v705_v1 = vsel %vm702_vm7, %v699_v53, %v701_v62 }
  0xa4   : > { %2500 = vrot.lane.b32.xlu0 %v7698_v8, %s7626_s14  ;;  %v695_v63 = vpop.permute.xlu0 %694  ;;  %v716_v9 = vand.u32 %v705_v1, %v7788_v24 }
  0xa5   : > { %v703_v2 = vsel %vm702_vm7, %v695_v63, %v697_v56 }
  0xa6   : > { %v828_v0 = vpop.permute.xlu1 %827  ;;  %v710_v15 = vand.u32 %v703_v2, %v7788_v24 }
  0xa7   : > { %2506 = vrot.lane.b32.xlu1 %v7714_v13, %s7626_s14  ;;  %s7642_s14 = smov 34  }
  0xa8   : > { %2631 = vrot.lane.b32.xlu0 %v7706_v11, %s7627_s18  ;;  %v826_v4 = vpop.permute.xlu0 %825 }
  0xa9   : > { %v833_v7 = vsel %vm831_vm8, %v826_v4, %v828_v0 }
  0xaa   : > { %v842_v16 = vand.u32 %v833_v7, %v7788_v24  ;;  %v830_v17 = vpop.permute.xlu1 %829 }
  0xab   : > { %6866 = vmatmul.mubr.msk.bf16.vlgmr.msra.gmra.mrb[0].mxu1 %vm207_vm5, %v6606_v59  ;;  %2633 = vrot.lane.b32.xlu1 %v7709_v12, %s7627_s18  ;;  %v834_v20 = vsel %vm831_vm8, %v828_v0, %v830_v17 }
  0xac   : > { %6607 = vmatmul.mubr.msk.bf16.vlgmr.msra.gmra.mrb[0].mxu0 %vm207_vm5, %v6606_v59  ;;  %6870 = vmatpush3.bf16.msra.mxu1 %v587_v58  ;;  %v824_v18 = vpop.permute.xlu0 %823  ;;  %v845_v25 = vand.u32 %v834_v20, %v7788_v24 }
  0xad   : > { %590 = vmatpush1.bf16.msra.mxu0 %v581_v60  ;;  %6871 = vmatprep.mubr.msk.bf16.mxu1 %vm7606_vm0, %v7605_v5  ;;  %v832_v21 = vsel %vm831_vm8, %v824_v18, %v826_v4 }
  0xae   : > { %718 = vmatprep.subr.bf16.mxu0 %v713_v61  ;;  %621 = vmatprep.mubr.bf16.mxu0 %v7607_v10  ;;  %v957_v19 = vpop.permute.xlu1 %956  ;;  %v839_v27 = vand.u32 %v832_v21, %v7788_v24  ;;  %v6621_v61 = vld [vmem:[%s8699_s1 + $0x1c] sm:$0xf] }
  0xaf   : > { %6875 = vmatprep.subr.bf16.mxu1 %v7605_v5  ;;  %2629 = vrot.lane.b32.xlu0 %v7698_v8, %s7627_s18 }
  0xb0   : > { %2635 = vrot.lane.b32.xlu1 %v7714_v13, %s7627_s18  ;;  %v955_v22 = vpop.permute.xlu0 %954 }
  0xb1   : > { %v962_v23 = vsel %vm960_vm9, %v955_v22, %v957_v19 }
  0xb2   : > { %v971_v28 = vand.u32 %v962_v23, %v7788_v24  ;;  %v959_v29 = vpop.permute.xlu1 %958 }
  0xb3   : > { %2760 = vrot.lane.b32.xlu0 %v7706_v11, %s7628_s19  ;;  %v963_v34 = vsel %vm960_vm9, %v957_v19, %v959_v29 }
  0xb4   : > { %2762 = vrot.lane.b32.xlu1 %v7709_v12, %s7628_s19  ;;  %v953_v31 = vpop.permute.xlu0 %952  ;;  %v974_v39 = vand.u32 %v963_v34, %v7788_v24 }
  0xb5   : > { %v961_v35 = vsel %vm960_vm9, %v953_v31, %v955_v22 }
  0xb6   : > { %v1086_v33 = vpop.permute.xlu1 %1085  ;;  %v968_v40 = vand.u32 %v961_v35, %v7788_v24 }
  0xb7   : > { %6872 = vmatmul.mubr.msk.bf16.vlgmr.msra.gmra.mrb[0].mxu1 %vm207_vm5, %v6609_v14  ;;  %2758 = vrot.lane.b32.xlu0 %v7698_v8, %s7628_s19 }
  0xb8   : > { %6610 = vmatmul.mubr.msk.bf16.vlgmr.msra.gmra.mrb[0].mxu0 %vm207_vm5, %v6609_v14  ;;  %6876 = vmatpush3.bf16.msra.mxu1 %v716_v9  ;;  %v1084_v36 = vpop.permute.xlu0 %1083 }
  0xb9   : > { %719 = vmatpush1.bf16.msra.mxu0 %v710_v15  ;;  %6877 = vmatprep.mubr.msk.bf16.mxu1 %vm7606_vm0, %v7605_v5  ;;  %v1091_v37 = vsel %vm1089_vm10, %v1084_v36, %v1086_v33 }
  0xba   : > { %847 = vmatprep.subr.bf16.mxu0 %v842_v16  ;;  %750 = vmatprep.mubr.bf16.mxu0 %v7607_v10  ;;  %v1100_v41 = vand.u32 %v1091_v37, %v7788_v24  ;;  %v1088_v42 = vpop.permute.xlu1 %1087  ;;  %v6624_v16 = vld [vmem:[%s8699_s1 + $0x20] sm:$0xf] }
  0xbb   : > { %6881 = vmatprep.subr.bf16.mxu1 %v7605_v5  ;;  %2764 = vrot.lane.b32.xlu1 %v7714_v13, %s7628_s19  ;;  %v1092_v45 = vsel %vm1089_vm10, %v1086_v33, %v1088_v42  ;;  %s7644_s19 = smov 17  }
  0xbc   : > { %2889 = vrot.lane.b32.xlu0 %v7706_v11, %s7629_s25  ;;  %v1103_v49 = vand.u32 %v1092_v45, %v7788_v24 }
  0xbe   : > { %v1215_v44 = vpop.permute.xlu1 %1214 }
  0xbf   : > { %2891 = vrot.lane.b32.xlu1 %v7709_v12, %s7629_s25 }
  0xc0   : > { %2887 = vrot.lane.b32.xlu0 %v7698_v8, %s7629_s25 }
  0xc2   : > { %v1217_v53 = vpop.permute.xlu1 %1216 }
  0xc3   : > { %6878 = vmatmul.mubr.msk.bf16.vlgmr.msra.gmra.mrb[0].mxu1 %vm207_vm5, %v6612_v26  ;;  %2893 = vrot.lane.b32.xlu1 %v7714_v13, %s7629_s25  ;;  %v1221_v56 = vsel %vm1218_vm11, %v1215_v44, %v1217_v53  ;;  %s7645_s25 = smov 16  }
  0xc4   : > { %6613 = vmatmul.mubr.msk.bf16.vlgmr.msra.gmra.mrb[0].mxu0 %vm207_vm5, %v6612_v26  ;;  %6882 = vmatpush3.bf16.msra.mxu1 %v845_v25  ;;  %v1232_v60 = vand.u32 %v1221_v56, %v7788_v24 }
  0xc5   : > { %848 = vmatpush1.bf16.msra.mxu0 %v839_v27  ;;  %6883 = vmatprep.mubr.msk.bf16.mxu1 %vm7606_vm0, %v7605_v5 }
  0xc6   : > { %976 = vmatprep.subr.bf16.mxu0 %v971_v28  ;;  %879 = vmatprep.mubr.bf16.mxu0 %v7607_v10  ;;  %v1344_v55 = vpop.permute.xlu1 %1343  ;;  %v6627_v28 = vld [vmem:[%s8699_s1 + $0x24] sm:$0xf] }
  0xc7   : > { %6887 = vmatprep.subr.bf16.mxu1 %v7605_v5  ;;  %3018 = vrot.lane.b32.xlu0 %v7706_v11, %s7630_s28  ;;  %v3128_v11 = vcombine.high %v3124_v30, %v3124_v30 }
  0xc8   : > { %3020 = vrot.lane.b32.xlu1 %v7709_v12, %s7630_s28  ;;  %v6615_v12 = vld [vmem:[%s8699_s1 + $0x14] sm:$0xf] }
  0xca   : > { %v1346_v0 = vpop.permute.xlu1 %1345 }
  0xcb   : > { %3016 = vrot.lane.b32.xlu0 %v7698_v8, %s7630_s28  ;;  %v7917_v8 = vrot.slane %v3128_v11, %v7689_v6  ;;  %v1350_v4 = vsel %vm1347_vm12, %v1344_v55, %v1346_v0 }
  0xcc   : > { %3022 = vrot.lane.b32.xlu1 %v7714_v13, %s7630_s28  ;;  %v1082_v13 = vpop.permute.xlu0 %1081  ;;  %v1361_v15 = vand.u32 %v1350_v4, %v7788_v24  ;;  %s7646_s28 = smov 15  }
  0xcd   : > { %v7927_v43 = vcombine.high %v7917_v8, %v7917_v8  ;;  %v1090_v46 = vsel %vm1089_vm10, %v1082_v13, %v1084_v36  ;;  %vm2508_vm10 = vcmask 654336  }
  0xce   : > { %v1097_v51 = vand.u32 %v1090_v46, %v7788_v24  ;;  %v1473_v2 = vpop.permute.xlu1 %1472 }
  0xcf   : > { %6884 = vmatmul.mubr.msk.bf16.vlgmr.msra.gmra.mrb[0].mxu1 %vm207_vm5, %v6615_v12  ;;  %3147 = vrot.lane.b32.xlu0 %v7905_v38, %s7631_s4 }
  0xd0   : > { %6616 = vmatmul.mubr.msk.bf16.vlgmr.msra.gmra.mrb[0].mxu0 %vm207_vm5, %v6615_v12  ;;  %6888 = vmatpush3.bf16.msra.mxu1 %v974_v39  ;;  %v1213_v47 = vpop.permute.xlu0 %1212  ;;  %v6630_v12 = vld [vmem:[%s8699_s1 + $0x28] sm:$0xf] }
  0xd1   : > { %977 = vmatpush1.bf16.msra.mxu0 %v968_v40  ;;  %6889 = vmatprep.mubr.msk.bf16.mxu1 %vm7606_vm0, %v7605_v5  ;;  %v1220_v48 = vsel %vm1218_vm11, %v1213_v47, %v1215_v44 }
  0xd2   : > { %1105 = vmatprep.subr.bf16.mxu0 %v1100_v41  ;;  %1008 = vmatprep.mubr.bf16.mxu0 %v7607_v10  ;;  %v1229_v52 = vand.u32 %v1220_v48, %v7788_v24  ;;  %v1475_v19 = vpop.permute.xlu1 %1474 }
  0xd3   : > { %6893 = vmatprep.subr.bf16.mxu1 %v7605_v5  ;;  %3149 = vrot.lane.b32.xlu1 %v7917_v8, %s7631_s4  ;;  %v1479_v22 = vsel %vm1476_vm13, %v1473_v2, %v1475_v19 }
  0xd4   : > { %3145 = vrot.lane.b32.xlu0 %v7896_v32, %s7631_s4  ;;  %v1211_v54 = vpop.permute.xlu0 %1210  ;;  %v1490_v27 = vand.u32 %v1479_v22, %v7788_v24 }
  0xd5   : > { %v1219_v57 = vsel %vm1218_vm11, %v1211_v54, %v1213_v47  ;;  %vm2637_vm11 = vcmask 646144  }
  0xd6   : > { %v1226_v62 = vand.u32 %v1219_v57, %v7788_v24  ;;  %v1602_v21 = vpop.permute.xlu1 %1601 }
  0xd7   : > { %3151 = vrot.lane.b32.xlu1 %v7927_v43, %s7631_s4  ;;  %s7647_s4 = smov 14  }
  0xd8   : > { %3276 = vrot.lane.b32.xlu0 %v7905_v38, %s7632_s7  ;;  %v1342_v58 = vpop.permute.xlu0 %1341 }
  0xd9   : > { %v1349_v59 = vsel %vm1347_vm12, %v1342_v58, %v1344_v55 }
  0xda   : > { %v1358_v63 = vand.u32 %v1349_v59, %v7788_v24  ;;  %v1604_v31 = vpop.permute.xlu1 %1603 }
  0xdb   : > { %6890 = vmatmul.mubr.msk.bf16.vlgmr.msra.gmra.mrb[0].mxu1 %vm207_vm5, %v6618_v50  ;;  %3278 = vrot.lane.b32.xlu1 %v7917_v8, %s7632_s7  ;;  %v1608_v35 = vsel %vm1605_vm14, %v1602_v21, %v1604_v31 }
  0xdc   : > { %6619 = vmatmul.mubr.msk.bf16.vlgmr.msra.gmra.mrb[0].mxu0 %vm207_vm5, %v6618_v50  ;;  %6894 = vmatpush3.bf16.msra.mxu1 %v1103_v49  ;;  %v1340_v1 = vpop.permute.xlu0 %1339  ;;  %v1619_v39 = vand.u32 %v1608_v35, %v7788_v24  ;;  %v6633_v50 = vld [vmem:[%s8699_s1 + $0x2c] sm:$0xf] }
  0xdd   : > { %1106 = vmatpush1.bf16.msra.mxu0 %v1097_v51  ;;  %6895 = vmatprep.mubr.msk.bf16.mxu1 %vm7606_vm0, %v7605_v5  ;;  %v1348_v7 = vsel %vm1347_vm12, %v1340_v1, %v1342_v58  ;;  %vm2766_vm12 = vcmask 637952  }
  0xde   : > { %1234 = vmatprep.subr.bf16.mxu0 %v1229_v52  ;;  %1137 = vmatprep.mubr.bf16.mxu0 %v7607_v10  ;;  %v1355_v17 = vand.u32 %v1348_v7, %v7788_v24  ;;  %v1731_v34 = vpop.permute.xlu1 %1730 }
  0xdf   : > { %6899 = vmatprep.subr.bf16.mxu1 %v7605_v5  ;;  %3274 = vrot.lane.b32.xlu0 %v7896_v32, %s7632_s7 }
  0xe0   : > { %3280 = vrot.lane.b32.xlu1 %v7927_v43, %s7632_s7  ;;  %v1471_v9 = vpop.permute.xlu0 %1470 }
  0xe1   : > { %v1478_v14 = vsel %vm1476_vm13, %v1471_v9, %v1473_v2 }
  0xe2   : > { %v1487_v18 = vand.u32 %v1478_v14, %v7788_v24  ;;  %v1733_v42 = vpop.permute.xlu1 %1732 }
  0xe3   : > { %3405 = vrot.lane.b32.xlu0 %v7905_v38, %s7633_s8  ;;  %v1737_v45 = vsel %vm1734_vm15, %v1731_v34, %v1733_v42 }
  0xe4   : > { %3407 = vrot.lane.b32.xlu1 %v7917_v8, %s7633_s8  ;;  %v1469_v20 = vpop.permute.xlu0 %1468  ;;  %v1748_v49 = vand.u32 %v1737_v45, %v7788_v24 }
  0xe5   : > { %v1477_v23 = vsel %vm1476_vm13, %v1469_v20, %v1471_v9  ;;  %vm2895_vm13 = vcmask 506880  }
  0xe6   : > { %v1484_v29 = vand.u32 %v1477_v23, %v7788_v24  ;;  %v1860_v44 = vpop.permute.xlu1 %1859 }
  0xe7   : > { %6896 = vmatmul.mubr.msk.bf16.vlgmr.msra.gmra.mrb[0].mxu1 %vm207_vm5, %v6621_v61  ;;  %3403 = vrot.lane.b32.xlu0 %v7896_v32, %s7633_s8 }
  0xe8   : > { %6622 = vmatmul.mubr.msk.bf16.vlgmr.msra.gmra.mrb[0].mxu0 %vm207_vm5, %v6621_v61  ;;  %6900 = vmatpush3.bf16.msra.mxu1 %v1232_v60  ;;  %v1600_v25 = vpop.permute.xlu0 %1599  ;;  %v6636_v61 = vld [vmem:[%s8699_s1 + $0x30] sm:$0xf] }
  0xe9   : > { %1235 = vmatpush1.bf16.msra.mxu0 %v1226_v62  ;;  %6901 = vmatprep.mubr.msk.bf16.mxu1 %vm7606_vm0, %v7605_v5  ;;  %v1607_v26 = vsel %vm1605_vm14, %v1600_v25, %v1602_v21 }
  0xea   : > { %1363 = vmatprep.subr.bf16.mxu0 %v1358_v63  ;;  %1266 = vmatprep.mubr.bf16.mxu0 %v7607_v10  ;;  %v1616_v30 = vand.u32 %v1607_v26, %v7788_v24  ;;  %v1862_v53 = vpop.permute.xlu1 %1861 }
  0xeb   : > { %6905 = vmatprep.subr.bf16.mxu1 %v7605_v5  ;;  %3409 = vrot.lane.b32.xlu1 %v7927_v43, %s7633_s8  ;;  %v1866_v56 = vsel %vm1863_vm1, %v1860_v44, %v1862_v53  ;;  %s7649_s8 = smov 12  }
  0xec   : > { %3534 = vrot.lane.b32.xlu0 %v7905_v38, %s7634_s11  ;;  %v1598_v33 = vpop.permute.xlu0 %1597  ;;  %v1877_v60 = vand.u32 %v1866_v56, %v7788_v24 }
  0xed   : > { %v1606_v36 = vsel %vm1605_vm14, %v1598_v33, %v1600_v25  ;;  %vm3024_vm14 = vcmask 498688  }
  0xee   : > { %v1613_v40 = vand.u32 %v1606_v36, %v7788_v24  ;;  %v1989_v55 = vpop.permute.xlu1 %1988 }
  0xef   : > { %3536 = vrot.lane.b32.xlu1 %v7917_v8, %s7634_s11 }
  0xf0   : > { %3532 = vrot.lane.b32.xlu0 %v7896_v32, %s7634_s11  ;;  %v1729_v37 = vpop.permute.xlu0 %1728 }
  0xf1   : > { %v1736_v11 = vsel %vm1734_vm15, %v1729_v37, %v1731_v34 }
  0xf2   : > { %v1745_v41 = vand.u32 %v1736_v11, %v7788_v24  ;;  %v1991_v0 = vpop.permute.xlu1 %1990 }
  0xf3   : > { %6902 = vmatmul.mubr.msk.bf16.vlgmr.msra.gmra.mrb[0].mxu1 %vm207_vm5, %v6624_v16  ;;  %3538 = vrot.lane.b32.xlu1 %v7927_v43, %s7634_s11  ;;  %v1995_v4 = vsel %vm1992_vm2, %v1989_v55, %v1991_v0 }
  0xf4   : > { %6625 = vmatmul.mubr.msk.bf16.vlgmr.msra.gmra.mrb[0].mxu0 %vm207_vm5, %v6624_v16  ;;  %6906 = vmatpush3.bf16.msra.mxu1 %v1361_v15  ;;  %v1727_v13 = vpop.permute.xlu0 %1726  ;;  %v2006_v15 = vand.u32 %v1995_v4, %v7788_v24  ;;  %v6639_v16 = vld [vmem:[%s8699_s1 + $0x34] sm:$0xf] }
  0xf5   : > { %1364 = vmatpush1.bf16.msra.mxu0 %v1355_v17  ;;  %6907 = vmatprep.mubr.msk.bf16.mxu1 %vm7606_vm0, %v7605_v5  ;;  %v1735_v46 = vsel %vm1734_vm15, %v1727_v13, %v1729_v37  ;;  %vm3153_vm15 = vcmask 490496  }
  0xf6   : > { %1492 = vmatprep.subr.bf16.mxu0 %v1487_v18  ;;  %1395 = vmatprep.mubr.bf16.mxu0 %v7607_v10  ;;  %v1742_v51 = vand.u32 %v1735_v46, %v7788_v24  ;;  %v2118_v2 = vpop.permute.xlu1 %2117 }
  0xf7   : > { %6911 = vmatprep.subr.bf16.mxu1 %v7605_v5  ;;  %3663 = vrot.lane.b32.xlu0 %v7905_v38, %s7635_s16 }
  0xf8   : > { %3665 = vrot.lane.b32.xlu1 %v7917_v8, %s7635_s16  ;;  %v1858_v47 = vpop.permute.xlu0 %1857 }
  0xf9   : > { %v1865_v48 = vsel %vm1863_vm1, %v1858_v47, %v1860_v44 }
  0xfa   : > { %v1874_v52 = vand.u32 %v1865_v48, %v7788_v24  ;;  %v2120_v19 = vpop.permute.xlu1 %2119 }
  0xfb   : > { %3661 = vrot.lane.b32.xlu0 %v7896_v32, %s7635_s16  ;;  %v2124_v22 = vsel %vm2121_vm3, %v2118_v2, %v2120_v19 }
  0xfc   : > { %3667 = vrot.lane.b32.xlu1 %v7927_v43, %s7635_s16  ;;  %v1856_v54 = vpop.permute.xlu0 %1855 }
  0xfd   : > { %v1864_v57 = vsel %vm1863_vm1, %v1856_v54, %v1858_v47  ;;  %vm3282_vm1 = vcmask 482304  }
  0xfe   : > { %v1871_v62 = vand.u32 %v1864_v57, %v7788_v24  ;;  %v2247_v21 = vpop.permute.xlu1 %2246 }
  0xff   : > { %6908 = vmatmul.mubr.msk.bf16.vlgmr.msra.gmra.mrb[0].mxu1 %vm207_vm5, %v6627_v28  ;;  %3792 = vrot.lane.b32.xlu0 %v7905_v38, %s7636_s20 }
 0x100   : > { %6628 = vmatmul.mubr.msk.bf16.vlgmr.msra.gmra.mrb[0].mxu0 %vm207_vm5, %v6627_v28  ;;  %6912 = vmatpush3.bf16.msra.mxu1 %v1490_v27  ;;  %v1987_v58 = vpop.permute.xlu0 %1986  ;;  %v2135_v27 = vand.u32 %v2124_v22, %v7788_v24  ;;  %v6642_v28 = vld [vmem:[%s8699_s1 + $0x38] sm:$0xf] }
 0x101   : > { %1493 = vmatpush1.bf16.msra.mxu0 %v1484_v29  ;;  %6913 = vmatprep.mubr.msk.bf16.mxu1 %vm7606_vm0, %v7605_v5  ;;  %v1994_v59 = vsel %vm1992_vm2, %v1987_v58, %v1989_v55 }
 0x102   : > { %1621 = vmatprep.subr.bf16.mxu0 %v1616_v30  ;;  %1524 = vmatprep.mubr.bf16.mxu0 %v7607_v10  ;;  %v2003_v63 = vand.u32 %v1994_v59, %v7788_v24 }
 0x103   : > { %6917 = vmatprep.subr.bf16.mxu1 %v7605_v5  ;;  %3794 = vrot.lane.b32.xlu1 %v7917_v8, %s7636_s20 }
 0x104   : > { %3790 = vrot.lane.b32.xlu0 %v7896_v32, %s7636_s20  ;;  %v1985_v1 = vpop.permute.xlu0 %1984 }
 0x105   : > { %v1993_v7 = vsel %vm1992_vm2, %v1985_v1, %v1987_v58  ;;  %v2249_v31 = vpop.permute.xlu1 %2248  ;;  %vm3411_vm2 = vcmask 474112  }
 0x106   : > { %v2000_v17 = vand.u32 %v1993_v7, %v7788_v24  ;;  %v2253_v35 = vsel %vm2250_vm4, %v2247_v21, %v2249_v31 }
 0x107   : > { %3796 = vrot.lane.b32.xlu1 %v7927_v43, %s7636_s20  ;;  %s7652_s20 = smov 119  }
 0x108   : > { %3921 = vrot.lane.b32.xlu0 %v7905_v38, %s7637_s26  ;;  %v2116_v9 = vpop.permute.xlu0 %2115 }
 0x109   : > { %v2123_v14 = vsel %vm2121_vm3, %v2116_v9, %v2118_v2 }
 0x10a   : > { %v2132_v18 = vand.u32 %v2123_v14, %v7788_v24  ;;  %v2376_v34 = vpop.permute.xlu1 %2375 }
 0x10b   : > { %6914 = vmatmul.mubr.msk.bf16.vlgmr.msra.gmra.mrb[0].mxu1 %vm207_vm5, %v6630_v12  ;;  %3923 = vrot.lane.b32.xlu1 %v7917_v8, %s7637_s26 }
 0x10c   : > { %6631 = vmatmul.mubr.msk.bf16.vlgmr.msra.gmra.mrb[0].mxu0 %vm207_vm5, %v6630_v12  ;;  %6918 = vmatpush3.bf16.msra.mxu1 %v1619_v39  ;;  %v2114_v20 = vpop.permute.xlu0 %2113  ;;  %v2264_v39 = vand.u32 %v2253_v35, %v7788_v24  ;;  %v6645_v12 = vld [vmem:[%s8699_s1 + $0x3c] sm:$0xf] }
 0x10d   : > { %1622 = vmatpush1.bf16.msra.mxu0 %v1613_v40  ;;  %6919 = vmatprep.mubr.msk.bf16.mxu1 %vm7606_vm0, %v7605_v5  ;;  %v2122_v23 = vsel %vm2121_vm3, %v2114_v20, %v2116_v9  ;;  %vm3540_vm3 = vcmask 465920  }
 0x10e   : > { %1750 = vmatprep.subr.bf16.mxu0 %v1745_v41  ;;  %1653 = vmatprep.mubr.bf16.mxu0 %v7607_v10  ;;  %v2129_v29 = vand.u32 %v2122_v23, %v7788_v24  ;;  %v2378_v42 = vpop.permute.xlu1 %2377 }
 0x10f   : > { %6923 = vmatprep.subr.bf16.mxu1 %v7605_v5  ;;  %3919 = vrot.lane.b32.xlu0 %v7896_v32, %s7637_s26  ;;  %v2382_v45 = vsel %vm2379_vm6, %v2376_v34, %v2378_v42 }
 0x110   : > { %3925 = vrot.lane.b32.xlu1 %v7927_v43, %s7637_s26  ;;  %v2245_v25 = vpop.permute.xlu0 %2244  ;;  %s7653_s26 = smov 118  }
 0x111   : > { %v2252_v26 = vsel %vm2250_vm4, %v2245_v25, %v2247_v21 }
 0x112   : > { %v2261_v30 = vand.u32 %v2252_v26, %v7788_v24 }
 0x113   : > { %4050 = vrot.lane.b32.xlu0 %v7905_v38, %s7638_s27 }
 0x114   : > { %4052 = vrot.lane.b32.xlu1 %v7917_v8, %s7638_s27  ;;  %v2243_v33 = vpop.permute.xlu0 %2242 }
 0x115   : > { %v2251_v36 = vsel %vm2250_vm4, %v2243_v33, %v2245_v25  ;;  %v2505_v44 = vpop.permute.xlu1 %2504  ;;  %vm3669_vm4 = vcmask 457728  }
 0x116   : > { %v2258_v40 = vand.u32 %v2251_v36, %v7788_v24 }
 0x117   : > { %6920 = vmatmul.mubr.msk.bf16.vlgmr.msra.gmra.mrb[0].mxu1 %vm207_vm5, %v6633_v50  ;;  %4048 = vrot.lane.b32.xlu0 %v7896_v32, %s7638_s27 }
 0x118   : > { %6634 = vmatmul.mubr.msk.bf16.vlgmr.msra.gmra.mrb[0].mxu0 %vm207_vm5, %v6633_v50  ;;  %6924 = vmatpush3.bf16.msra.mxu1 %v1748_v49  ;;  %v2374_v37 = vpop.permute.xlu0 %2373  ;;  %v2393_v49 = vand.u32 %v2382_v45, %v7788_v24  ;;  %v6648_v50 = vld [vmem:[%s8699_s1 + $0x40] sm:$0xf] }
 0x119   : > { %1751 = vmatpush1.bf16.msra.mxu0 %v1742_v51  ;;  %6925 = vmatprep.mubr.msk.bf16.mxu1 %vm7606_vm0, %v7605_v5  ;;  %v2381_v11 = vsel %vm2379_vm6, %v2374_v37, %v2376_v34  ;;  %v2507_v53 = vpop.permute.xlu1 %2506 }
 0x11a   : > { %1879 = vmatprep.subr.bf16.mxu0 %v1874_v52  ;;  %1782 = vmatprep.mubr.bf16.mxu0 %v7607_v10  ;;  %v2390_v41 = vand.u32 %v2381_v11, %v7788_v24  ;;  %v2511_v56 = vsel %vm2508_vm10, %v2505_v44, %v2507_v53  ;;  %v5575_v11 = vld [vmem:[%s7694_s17 + $0x2] sm:$0xff] }
 0x11b   : > { %6929 = vmatprep.subr.bf16.mxu1 %v7605_v5  ;;  %4054 = vrot.lane.b32.xlu1 %v7927_v43, %s7638_s27 }
 0x11c   : > { %4179 = vrot.lane.b32.xlu0 %v7905_v38, %s7639_s30  ;;  %v2372_v13 = vpop.permute.xlu0 %2371 }
 0x11d   : > { %v2380_v46 = vsel %vm2379_vm6, %v2372_v13, %v2374_v37  ;;  %v2634_v55 = vpop.permute.xlu1 %2633  ;;  %v6660_v13 = vld [vmem:[%s8699_s1 + $0x50] sm:$0xf]  ;;  %vm3798_vm6 = vcmask 326656  }
 0x11e   : > { %v2387_v51 = vand.u32 %v2380_v46, %v7788_v24 }
 0x11f   : > { %4181 = vrot.lane.b32.xlu1 %v7917_v8, %s7639_s30 }
 0x120   : > { %4177 = vrot.lane.b32.xlu0 %v7896_v32, %s7639_s30  ;;  %v2503_v47 = vpop.permute.xlu0 %2502 }
 0x121   : > { %v2510_v48 = vsel %vm2508_vm10, %v2503_v47, %v2505_v44  ;;  %v5579_v44 = vcombine.high %v5575_v11, %v5575_v11 }
 0x122   : > { %v2519_v52 = vand.u32 %v2510_v48, %v7788_v24  ;;  %v2636_v0 = vpop.permute.xlu1 %2635 }
 0x123   : > { %6926 = vmatmul.mubr.msk.bf16.vlgmr.msra.gmra.mrb[0].mxu1 %vm207_vm5, %v6636_v61  ;;  %4183 = vrot.lane.b32.xlu1 %v7927_v43, %s7639_s30  ;;  %v2640_v4 = vsel %vm2637_vm11, %v2634_v55, %v2636_v0 }
 0x124   : > { %6637 = vmatmul.mubr.msk.bf16.vlgmr.msra.gmra.mrb[0].mxu0 %vm207_vm5, %v6636_v61  ;;  %6930 = vmatpush3.bf16.msra.mxu1 %v1877_v60  ;;  %v2501_v54 = vpop.permute.xlu0 %2500  ;;  %v2522_v60 = vand.u32 %v2511_v56, %v7788_v24  ;;  %v6651_v61 = vld [vmem:[%s8699_s1 + $0x44] sm:$0xf] }
 0x125   : > { %1880 = vmatpush1.bf16.msra.mxu0 %v1871_v62  ;;  %6931 = vmatprep.mubr.msk.bf16.mxu1 %vm7606_vm0, %v7605_v5  ;;  %v2509_v57 = vsel %vm2508_vm10, %v2501_v54, %v2503_v47  ;;  %vm3927_vm10 = vcmask 318464  }
 0x126   : > { %2008 = vmatprep.subr.bf16.mxu0 %v2003_v63  ;;  %1911 = vmatprep.mubr.bf16.mxu0 %v7607_v10  ;;  %v2516_v62 = vand.u32 %v2509_v57, %v7788_v24  ;;  %v2763_v2 = vpop.permute.xlu1 %2762  ;;  %v6663_v57 = vld [vmem:[%s8699_s1 + $0x54] sm:$0xf] }
 0x127   : > { %6935 = vmatprep.subr.bf16.mxu1 %v7605_v5  ;;  %4308 = vrot.lane.b32.xlu0 %v7905_v38, %s7640_s6 }
 0x128   : > { %4310 = vrot.lane.b32.xlu1 %v7917_v8, %s7640_s6  ;;  %v2632_v58 = vpop.permute.xlu0 %2631 }
 0x129   : > { %v2639_v59 = vsel %vm2637_vm11, %v2632_v58, %v2634_v55 }
 0x12a   : > { %v2648_v63 = vand.u32 %v2639_v59, %v7788_v24 }
 0x12b   : > { %4306 = vrot.lane.b32.xlu0 %v7896_v32, %s7640_s6 }
 0x12c   : > { %4312 = vrot.lane.b32.xlu1 %v7927_v43, %s7640_s6  ;;  %v2630_v1 = vpop.permute.xlu0 %2629 }
 0x12d   : > { %v2638_v7 = vsel %vm2637_vm11, %v2630_v1, %v2632_v58  ;;  %v2765_v21 = vpop.permute.xlu1 %2764  ;;  %vm4056_vm11 = vcmask 310272  }
 0x12e   : > { %v2769_v26 = vsel %vm2766_vm12, %v2763_v2, %v2765_v21 }
 0x12f   : > { %6932 = vmatmul.mubr.msk.bf16.vlgmr.msra.gmra.mrb[0].mxu1 %vm207_vm5, %v6639_v16  ;;  %4437 = vrot.lane.b32.xlu0 %v7905_v38, %s7641_s9 }
 0x130   : > { %6640 = vmatmul.mubr.msk.bf16.vlgmr.msra.gmra.mrb[0].mxu0 %vm207_vm5, %v6639_v16  ;;  %6936 = vmatpush3.bf16.msra.mxu1 %v2006_v15  ;;  %v2761_v9 = vpop.permute.xlu0 %2760  ;;  %v2651_v15 = vand.u32 %v2640_v4, %v7788_v24  ;;  %v6654_v16 = vld [vmem:[%s8699_s1 + $0x48] sm:$0xf] }
 0x131   : > { %2009 = vmatpush1.bf16.msra.mxu0 %v2000_v17  ;;  %6937 = vmatprep.mubr.msk.bf16.mxu1 %vm7606_vm0, %v7605_v5  ;;  %v2768_v14 = vsel %vm2766_vm12, %v2761_v9, %v2763_v2  ;;  %v5317_v17 = vld [vmem:[%s7694_s17] sm:$0xff]  ;;  %v2892_v23 = vpop.permute.xlu1 %2891 }
 0x132   : > { %2137 = vmatprep.subr.bf16.mxu0 %v2132_v18  ;;  %2040 = vmatprep.mubr.bf16.mxu0 %v7607_v10  ;;  %v2645_v18 = vand.u32 %v2638_v7, %v7788_v24  ;;  %v2777_v19 = vand.u32 %v2768_v14, %v7788_v24  ;;  %v5328_v20 = vrot.slane %v5317_v17, %v7689_v6  ;;  %v6666_v7 = vld [vmem:[%s8699_s1 + $0x58] sm:$0xf] }
 0x133   : > { %6941 = vmatprep.subr.bf16.mxu1 %v7605_v5  ;;  %4439 = vrot.lane.b32.xlu1 %v7917_v8, %s7641_s9  ;;  %v5321_v22 = vcombine.high %v5317_v17, %v5317_v17 }
 0x134   : > { %4435 = vrot.lane.b32.xlu0 %v7896_v32, %s7641_s9 }
 0x135   : > { %v5335_v25 = vrot.slane %v5321_v22, %v7689_v6  ;;  %v2894_v34 = vpop.permute.xlu1 %2893 }
 0x136   : > { %v2898_v37 = vsel %vm2895_vm13, %v2892_v23, %v2894_v34 }
 0x137   : > { %4441 = vrot.lane.b32.xlu1 %v7927_v43, %s7641_s9  ;;  %v5337_v33 = vcombine.high %v5335_v25, %v5335_v25  ;;  %v2909_v42 = vand.u32 %v2898_v37, %v7788_v24 }
 0x138   : > { %4566 = vrot.lane.b32.xlu0 %v7905_v38, %s7642_s14 }
 0x13a   : > { %v3021_v36 = vpop.permute.xlu1 %3020 }
 0x13b   : > { %6938 = vmatmul.mubr.msk.bf16.vlgmr.msra.gmra.mrb[0].mxu1 %vm207_vm5, %v6642_v28  ;;  %4568 = vrot.lane.b32.xlu1 %v7917_v8, %s7642_s14 }
 0x13c   : > { %6643 = vmatmul.mubr.msk.bf16.vlgmr.msra.gmra.mrb[0].mxu0 %vm207_vm5, %v6642_v28  ;;  %6942 = vmatpush3.bf16.msra.mxu1 %v2135_v27 }
 0x13d   : > { %2138 = vmatpush1.bf16.msra.mxu0 %v2129_v29  ;;  %6943 = vmatprep.mubr.msk.bf16.mxu1 %vm7606_vm0, %v7605_v5 }
 0x13e   : > { %2266 = vmatprep.subr.bf16.mxu0 %v2261_v30  ;;  %2169 = vmatprep.mubr.bf16.mxu0 %v7607_v10  ;;  %v2780_v30 = vand.u32 %v2769_v26, %v7788_v24  ;;  %v3023_v48 = vpop.permute.xlu1 %3022 }
 0x13f   : > { %6947 = vmatprep.subr.bf16.mxu1 %v7605_v5  ;;  %4564 = vrot.lane.b32.xlu0 %v7896_v32, %s7642_s14 }
 0x140   : > { %4570 = vrot.lane.b32.xlu1 %v7927_v43, %s7642_s14 }
 0x143   : > { %4695 = vrot.lane.b32.xlu0 %v7905_v38, %s7643_s15 }
 0x144   : > { %4697 = vrot.lane.b32.xlu1 %v7917_v8, %s7643_s15 }
 0x147   : > { %6944 = vmatmul.mubr.msk.bf16.vlgmr.msra.gmra.mrb[0].mxu1 %vm207_vm5, %v6645_v12  ;;  %4693 = vrot.lane.b32.xlu0 %v7896_v32, %s7643_s15 }
 0x148   : > { %6646 = vmatmul.mubr.msk.bf16.vlgmr.msra.gmra.mrb[0].mxu0 %vm207_vm5, %v6645_v12  ;;  %6948 = vmatpush3.bf16.msra.mxu1 %v2264_v39 }
 0x149   : > { %2267 = vmatpush1.bf16.msra.mxu0 %v2258_v40  ;;  %6949 = vmatprep.mubr.msk.bf16.mxu1 %vm7606_vm0, %v7605_v5 }
 0x14a   : > { %2395 = vmatprep.subr.bf16.mxu0 %v2390_v41  ;;  %2298 = vmatprep.mubr.bf16.mxu0 %v7607_v10  ;;  %v8213_v41 = vrot.slane %v5575_v11, %v7689_v6 }
 0x14b   : > { %6953 = vmatprep.subr.bf16.mxu1 %v7605_v5  ;;  %4699 = vrot.lane.b32.xlu1 %v7927_v43, %s7643_s15 }
 0x14c   : > { %4824 = vrot.lane.b32.xlu0 %v7905_v38, %s7644_s19  ;;  %v8224_v47 = vcombine.high %v8213_v41, %v8213_v41 }
 0x14f   : > { %4826 = vrot.lane.b32.xlu1 %v7917_v8, %s7644_s19 }
 0x150   : > { %4822 = vrot.lane.b32.xlu0 %v7896_v32, %s7644_s19 }
 0x153   : > { %6950 = vmatmul.mubr.msk.bf16.vlgmr.msra.gmra.mrb[0].mxu1 %vm207_vm5, %v6648_v50  ;;  %4828 = vrot.lane.b32.xlu1 %v7927_v43, %s7644_s19 }
 0x154   : > { %6649 = vmatmul.mubr.msk.bf16.vlgmr.msra.gmra.mrb[0].mxu0 %vm207_vm5, %v6648_v50  ;;  %6954 = vmatpush3.bf16.msra.mxu1 %v2393_v49  ;;  %v8228_v49 = vrot.slane %v5579_v44, %v7689_v6  ;;  %v3027_v6 = vsel %vm3024_vm14, %v3021_v36, %v3023_v48 }
 0x155   : > { %2396 = vmatpush1.bf16.msra.mxu0 %v2387_v51  ;;  %6955 = vmatprep.mubr.msk.bf16.mxu1 %vm7606_vm0, %v7605_v5  ;;  %v3150_v51 = vpop.permute.xlu1 %3149  ;;  %v3038_v56 = vand.u32 %v3027_v6, %v7788_v24 }
 0x156   : > { %2524 = vmatprep.subr.bf16.mxu0 %v2519_v52  ;;  %2427 = vmatprep.mubr.bf16.mxu0 %v7607_v10  ;;  %v8241_v52 = vcombine.high %v8228_v49, %v8228_v49 }
 0x157   : > { %6959 = vmatprep.subr.bf16.mxu1 %v7605_v5  ;;  %4953 = vrot.lane.b32.xlu0 %v7905_v38, %s7645_s25 }
 0x158   : > { %4955 = vrot.lane.b32.xlu1 %v7917_v8, %s7645_s25 }
 0x15b   : > { %4951 = vrot.lane.b32.xlu0 %v7896_v32, %s7645_s25 }
 0x15c   : > { %4957 = vrot.lane.b32.xlu1 %v7927_v43, %s7645_s25  ;;  %s7530_s25 = smul.u32 12, %s8703_s13 }
 0x15f   : > { %6956 = vmatmul.mubr.msk.bf16.vlgmr.msra.gmra.mrb[0].mxu1 %vm207_vm5, %v6651_v61  ;;  %5082 = vrot.lane.b32.xlu0 %v7905_v38, %s7646_s28 }
 0x160   : > { %6652 = vmatmul.mubr.msk.bf16.vlgmr.msra.gmra.mrb[0].mxu0 %vm207_vm5, %v6651_v61  ;;  %6960 = vmatpush3.bf16.msra.mxu1 %v2522_v60  ;;  %v3152_v60 = vpop.permute.xlu1 %3151 }
 0x161   : > { %2525 = vmatpush1.bf16.msra.mxu0 %v2516_v62  ;;  %6961 = vmatprep.mubr.msk.bf16.mxu1 %vm7606_vm0, %v7605_v5 }
 0x162   : > { %2653 = vmatprep.subr.bf16.mxu0 %v2648_v63  ;;  %2556 = vmatprep.mubr.bf16.mxu0 %v7607_v10  ;;  %v3156_v63 = vsel %vm3153_vm15, %v3150_v51, %v3152_v60 }
 0x163   : > { %6965 = vmatprep.subr.bf16.mxu1 %v7605_v5  ;;  %5084 = vrot.lane.b32.xlu1 %v7917_v8, %s7646_s28  ;;  %v3167_v4 = vand.u32 %v3156_v63, %v7788_v24  ;;  %v6681_v63 = vld [vmem:[%s8699_s1 + $0x6c] sm:$0xf] }
 0x164   : > { %5080 = vrot.lane.b32.xlu0 %v7896_v32, %s7646_s28  ;;  %v3279_v62 = vpop.permute.xlu1 %3278 }
 0x167   : > { %5086 = vrot.lane.b32.xlu1 %v7927_v43, %s7646_s28  ;;  %s170_s28 = scalar_lea.vmem %s8701_s3, %s7530_s25 }
 0x168   : > { %5211 = vrot.lane.b32.xlu0 %v7905_v38, %s7647_s4  ;;  %v2759_v38 = vpop.permute.xlu0 %2758 }
 0x169   : > { %v2767_v27 = vsel %vm2766_vm12, %v2759_v38, %v2761_v9  ;;  %v6669_v38 = vld [vmem:[%s8699_s1 + $0x5c] sm:$0xf]  ;;  %vm4185_vm12 = vcmask 302080  }
 0x16b   : > { %6962 = vmatmul.mubr.msk.bf16.vlgmr.msra.gmra.mrb[0].mxu1 %vm207_vm5, %v6654_v16  ;;  %5213 = vrot.lane.b32.xlu1 %v7917_v8, %s7647_s4  ;;  %v5336_v8 = vcombine.high %v5328_v20, %v5328_v20 }
 0x16c   : > { %6655 = vmatmul.mubr.msk.bf16.vlgmr.msra.gmra.mrb[0].mxu0 %vm207_vm5, %v6654_v16  ;;  %6966 = vmatpush3.bf16.msra.mxu1 %v2651_v15  ;;  %v2890_v28 = vpop.permute.xlu0 %2889  ;;  %v3281_v15 = vpop.permute.xlu1 %3280 }
 0x16d   : > { %2654 = vmatpush1.bf16.msra.mxu0 %v2645_v18  ;;  %6967 = vmatprep.mubr.msk.bf16.mxu1 %vm7606_vm0, %v7605_v5  ;;  %v2897_v29 = vsel %vm2895_vm13, %v2890_v28, %v2892_v23  ;;  %v3285_v18 = vsel %vm3282_vm1, %v3279_v62, %v3281_v15 }
 0x16e   : > { %2782 = vmatprep.subr.bf16.mxu0 %v2777_v19  ;;  %2685 = vmatprep.mubr.bf16.mxu0 %v7607_v10  ;;  %v2906_v31 = vand.u32 %v2897_v29, %v7788_v24  ;;  %v3296_v22 = vand.u32 %v3285_v18, %v7788_v24  ;;  %v6684_v18 = vld [vmem:[%s8699_s1 + $0x70] sm:$0xf] }
 0x16f   : > { %6971 = vmatprep.subr.bf16.mxu1 %v7605_v5  ;;  %5209 = vrot.lane.b32.xlu0 %v7896_v32, %s7647_s4  ;;  %v6657_v32 = vld [vmem:[%s8699_s1 + $0x4c] sm:$0xf] }
 0x170   : > { %5215 = vrot.lane.b32.xlu1 %v7927_v43, %s7647_s4  ;;  %v2774_v43 = vand.u32 %v2767_v27, %v7788_v24  ;;  %v2888_v35 = vpop.permute.xlu0 %2887  ;;  %v3408_v17 = vpop.permute.xlu1 %3407 }
 0x171   : > { %v2896_v39 = vsel %vm2895_vm13, %v2888_v35, %v2890_v28  ;;  %vm4314_vm13 = vcmask 293888  }
 0x172   : > { %v2903_v45 = vand.u32 %v2896_v39, %v7788_v24 }
 0x173   : > { %5340 = vrot.lane.b32.xlu0 %v5336_v8, %s7648_s5 }
 0x174   : > { %5342 = vrot.lane.b32.xlu1 %v5335_v25, %s7648_s5  ;;  %v3019_v12 = vpop.permute.xlu0 %3018 }
 0x175   : > { %v3026_v40 = vsel %vm3024_vm14, %v3019_v12, %v3021_v36 }
 0x176   : > { %v3035_v46 = vand.u32 %v3026_v40, %v7788_v24 }
 0x177   : > { %6968 = vmatmul.mubr.msk.bf16.vlgmr.msra.gmra.mrb[0].mxu1 %vm207_vm5, %v6657_v32  ;;  %5338 = vrot.lane.b32.xlu0 %v5328_v20, %s7648_s5 }
 0x178   : > { %6658 = vmatmul.mubr.msk.bf16.vlgmr.msra.gmra.mrb[0].mxu0 %vm207_vm5, %v6657_v32  ;;  %6972 = vmatpush3.bf16.msra.mxu1 %v2780_v30  ;;  %v3017_v50 = vpop.permute.xlu0 %3016 }
 0x179   : > { %2783 = vmatpush1.bf16.msra.mxu0 %v2774_v43  ;;  %6973 = vmatprep.mubr.msk.bf16.mxu1 %vm7606_vm0, %v7605_v5  ;;  %v3025_v53 = vsel %vm3024_vm14, %v3017_v50, %v3019_v12  ;;  %vm4443_vm14 = vcmask 285696  }
 0x17a   : > { %2911 = vmatprep.subr.bf16.mxu0 %v2906_v31  ;;  %2814 = vmatprep.mubr.bf16.mxu0 %v7607_v10  ;;  %v3032_v58 = vand.u32 %v3025_v53, %v7788_v24  ;;  %v6672_v31 = vld [vmem:[%s8699_s1 + $0x60] sm:$0xf] }
 0x17b   : > { %6977 = vmatprep.subr.bf16.mxu1 %v7605_v5  ;;  %5344 = vrot.lane.b32.xlu1 %v5337_v33, %s7648_s5 }
 0x17c   : > { %5469 = vrot.lane.b32.xlu0 %v5336_v8, %s7649_s8  ;;  %v3148_v54 = vpop.permute.xlu0 %3147 }
 0x17d   : > { %v3155_v55 = vsel %vm3153_vm15, %v3148_v54, %v3150_v51 }
 0x17e   : > { %v3164_v59 = vand.u32 %v3155_v55, %v7788_v24 }
 0x17f   : > { %5471 = vrot.lane.b32.xlu1 %v5335_v25, %s7649_s8  ;;  %v3410_v25 = vpop.permute.xlu1 %3409 }
 0x180   : > { %5467 = vrot.lane.b32.xlu0 %v5328_v20, %s7649_s8  ;;  %v3146_v61 = vpop.permute.xlu0 %3145  ;;  %v3414_v28 = vsel %vm3411_vm2, %v3408_v17, %v3410_v25 }
 0x181   : > { %v3154_v0 = vsel %vm3153_vm15, %v3146_v61, %v3148_v54  ;;  %v3425_v43 = vand.u32 %v3414_v28, %v7788_v24  ;;  %v6687_v28 = vld [vmem:[%s8699_s1 + $0x74] sm:$0xf]  ;;  %vm4572_vm15 = vcmask 277504  }
 0x182   : > { %v3161_v9 = vand.u32 %v3154_v0, %v7788_v24 }
 0x183   : > { %6974 = vmatmul.mubr.msk.bf16.vlgmr.msra.gmra.mrb[0].mxu1 %vm207_vm5, %v6660_v13  ;;  %5473 = vrot.lane.b32.xlu1 %v5337_v33, %s7649_s8  ;;  %v3537_v27 = vpop.permute.xlu1 %3536 }
 0x184   : > { %6661 = vmatmul.mubr.msk.bf16.vlgmr.msra.gmra.mrb[0].mxu0 %vm207_vm5, %v6660_v13  ;;  %6978 = vmatpush3.bf16.msra.mxu1 %v2909_v42  ;;  %v3277_v1 = vpop.permute.xlu0 %3276  ;;  %v6675_v13 = vld [vmem:[%s8699_s1 + $0x64] sm:$0xf] }
 0x185   : > { %2912 = vmatpush1.bf16.msra.mxu0 %v2903_v45  ;;  %6979 = vmatprep.mubr.msk.bf16.mxu1 %vm7606_vm0, %v7605_v5  ;;  %v3284_v2 = vsel %vm3282_vm1, %v3277_v1, %v3279_v62 }
 0x186   : > { %3040 = vmatprep.subr.bf16.mxu0 %v3035_v46  ;;  %2943 = vmatprep.mubr.bf16.mxu0 %v7607_v10  ;;  %v3293_v14 = vand.u32 %v3284_v2, %v7788_v24 }
 0x187   : > { %6983 = vmatprep.subr.bf16.mxu1 %v7605_v5  ;;  %5598 = vrot.lane.b32.xlu0 %v8224_v47, %s7611_s21  ;;  %v3539_v35 = vpop.permute.xlu1 %3538 }
 0x188   : > { %5600 = vrot.lane.b32.xlu1 %v8228_v49, %s7611_s21  ;;  %v3275_v16 = vpop.permute.xlu0 %3274  ;;  %v3543_v11 = vsel %vm3540_vm3, %v3537_v27, %v3539_v35 }
 0x189   : > { %v3283_v19 = vsel %vm3282_vm1, %v3275_v16, %v3277_v1  ;;  %v3554_v42 = vand.u32 %v3543_v11, %v7788_v24  ;;  %v6690_v11 = vld [vmem:[%s8699_s1 + $0x78] sm:$0xf]  ;;  %vm4701_vm1 = vcmask 146432  }
 0x18a   : > { %v3290_v8 = vand.u32 %v3283_v19, %v7788_v24 }
 0x18b   : > { %5596 = vrot.lane.b32.xlu0 %v8213_v41, %s7611_s21  ;;  %v3666_v37 = vpop.permute.xlu1 %3665 }
 0x18c   : > { %5602 = vrot.lane.b32.xlu1 %v8241_v52, %s7611_s21  ;;  %v3406_v20 = vpop.permute.xlu0 %3405 }
 0x18d   : > { %v3413_v21 = vsel %vm3411_vm2, %v3406_v20, %v3408_v17 }
 0x18e   : > { %v3422_v23 = vand.u32 %v3413_v21, %v7788_v24 }
 0x18f   : > { %6980 = vmatmul.mubr.msk.bf16.vlgmr.msra.gmra.mrb[0].mxu1 %vm207_vm5, %v6663_v57  ;;  %5726 = vrot.lane.b32.xlu0 %v8224_v47, %s7612_s22  ;;  %v3668_v46 = vpop.permute.xlu1 %3667 }
 0x190   : > { %6664 = vmatmul.mubr.msk.bf16.vlgmr.msra.gmra.mrb[0].mxu0 %vm207_vm5, %v6663_v57  ;;  %6984 = vmatpush3.bf16.msra.mxu1 %v3038_v56  ;;  %v3404_v26 = vpop.permute.xlu0 %3403  ;;  %v3672_v51 = vsel %vm3669_vm4, %v3666_v37, %v3668_v46  ;;  %v6678_v56 = vld [vmem:[%s8699_s1 + $0x68] sm:$0xf] }
 0x191   : > { %3041 = vmatpush1.bf16.msra.mxu0 %v3032_v58  ;;  %6985 = vmatprep.mubr.msk.bf16.mxu1 %vm7606_vm0, %v7605_v5  ;;  %v3412_v29 = vsel %vm3411_vm2, %v3404_v26, %v3406_v20  ;;  %v3683_v55 = vand.u32 %v3672_v51, %v7788_v24  ;;  %v6693_v51 = vld [vmem:[%s8699_s1 + $0x7c] sm:$0xf]  ;;  %vm4830_vm2 = vcmask 138240  }
 0x192   : > { %3169 = vmatprep.subr.bf16.mxu0 %v3164_v59  ;;  %3072 = vmatprep.mubr.bf16.mxu0 %v7607_v10  ;;  %v3419_v33 = vand.u32 %v3412_v29, %v7788_v24 }
 0x193   : > { %6989 = vmatprep.subr.bf16.mxu1 %v7605_v5  ;;  %5728 = vrot.lane.b32.xlu1 %v8228_v49, %s7612_s22  ;;  %v3795_v50 = vpop.permute.xlu1 %3794 }
 0x194   : > { %5724 = vrot.lane.b32.xlu0 %v8213_v41, %s7612_s22  ;;  %v3535_v30 = vpop.permute.xlu0 %3534 }
 0x195   : > { %v3542_v32 = vsel %vm3540_vm3, %v3535_v30, %v3537_v27 }
 0x196   : > { %v3551_v34 = vand.u32 %v3542_v32, %v7788_v24 }
 0x197   : > { %5730 = vrot.lane.b32.xlu1 %v8241_v52, %s7612_s22  ;;  %s7650_s22 = smov 121  }
 0x198   : > { %5854 = vrot.lane.b32.xlu0 %v8224_v47, %s7613_s23  ;;  %v3533_v36 = vpop.permute.xlu0 %3532 }
 0x199   : > { %v3541_v39 = vsel %vm3540_vm3, %v3533_v36, %v3535_v30  ;;  %vm4959_vm3 = vcmask 130048  }
 0x19a   : > { %v3548_v44 = vand.u32 %v3541_v39, %v7788_v24 }
 0x19b   : > { %6986 = vmatmul.mubr.msk.bf16.vlgmr.msra.gmra.mrb[0].mxu1 %vm207_vm5, %v6666_v7  ;;  %5856 = vrot.lane.b32.xlu1 %v8228_v49, %s7613_s23 }
 0x19c   : > { %6667 = vmatmul.mubr.msk.bf16.vlgmr.msra.gmra.mrb[0].mxu0 %vm207_vm5, %v6666_v7  ;;  %6990 = vmatpush3.bf16.msra.mxu1 %v3167_v4  ;;  %v3664_v12 = vpop.permute.xlu0 %3663 }
 0x19d   : > { %3170 = vmatpush1.bf16.msra.mxu0 %v3161_v9  ;;  %6991 = vmatprep.mubr.msk.bf16.mxu1 %vm7606_vm0, %v7605_v5  ;;  %v3671_v40 = vsel %vm3669_vm4, %v3664_v12, %v3666_v37 }
 0x19e   : > { %3298 = vmatprep.subr.bf16.mxu0 %v3293_v14  ;;  %3201 = vmatprep.mubr.bf16.mxu0 %v7607_v10  ;;  %v3680_v45 = vand.u32 %v3671_v40, %v7788_v24 }
 0x19f   : > { %6995 = vmatprep.subr.bf16.mxu1 %v7605_v5  ;;  %5852 = vrot.lane.b32.xlu0 %v8213_v41, %s7613_s23 }
 0x1a0   : > { %5858 = vrot.lane.b32.xlu1 %v8241_v52, %s7613_s23  ;;  %s7651_s23 = smov 120   ;;  %v3662_v48 = vpop.permute.xlu0 %3661 }
 0x1a1   : > { %v3670_v6 = vsel %vm3669_vm4, %v3662_v48, %v3664_v12  ;;  %vm5088_vm4 = vcmask 121856  }
 0x1a2   : > { %v3677_v57 = vand.u32 %v3670_v6, %v7788_v24 }
 0x1a3   : > { %5982 = vrot.lane.b32.xlu0 %v8224_v47, %s7650_s22 }
 0x1a4   : > { %5984 = vrot.lane.b32.xlu1 %v8228_v49, %s7650_s22  ;;  %v3793_v53 = vpop.permute.xlu0 %3792 }
 0x1a5   : > { %v3800_v54 = vsel %vm3798_vm6, %v3793_v53, %v3795_v50 }
 0x1a6   : > { %v3809_v58 = vand.u32 %v3800_v54, %v7788_v24 }
 0x1a7   : > { %6992 = vmatmul.mubr.msk.bf16.vlgmr.msra.gmra.mrb[0].mxu1 %vm207_vm5, %v6669_v38  ;;  %5980 = vrot.lane.b32.xlu0 %v8213_v41, %s7650_s22 }
 0x1a8   : > { %6670 = vmatmul.mubr.msk.bf16.vlgmr.msra.gmra.mrb[0].mxu0 %vm207_vm5, %v6669_v38  ;;  %6996 = vmatpush3.bf16.msra.mxu1 %v3296_v22 }
 0x1a9   : > { %3299 = vmatpush1.bf16.msra.mxu0 %v3290_v8  ;;  %6997 = vmatprep.mubr.msk.bf16.mxu1 %vm7606_vm0, %v7605_v5 }
 0x1aa   : > { %3427 = vmatprep.subr.bf16.mxu0 %v3422_v23  ;;  %3330 = vmatprep.mubr.bf16.mxu0 %v7607_v10 }
 0x1ab   : > { %7001 = vmatprep.subr.bf16.mxu1 %v7605_v5  ;;  %5986 = vrot.lane.b32.xlu1 %v8241_v52, %s7650_s22 }
 0x1ac   : > { %6111 = vrot.lane.b32.xlu0 %v8224_v47, %s7651_s23 }
 0x1af   : > { %6113 = vrot.lane.b32.xlu1 %v8228_v49, %s7651_s23 }
 0x1b0   : > { %6109 = vrot.lane.b32.xlu0 %v8213_v41, %s7651_s23 }
 0x1b3   : > { %6998 = vmatmul.mubr.msk.bf16.vlgmr.msra.gmra.mrb[0].mxu1 %vm207_vm5, %v6672_v31  ;;  %6115 = vrot.lane.b32.xlu1 %v8241_v52, %s7651_s23 }
 0x1b4   : > { %6673 = vmatmul.mubr.msk.bf16.vlgmr.msra.gmra.mrb[0].mxu0 %vm207_vm5, %v6672_v31  ;;  %7002 = vmatpush3.bf16.msra.mxu1 %v3425_v43 }
 0x1b5   : > { %3428 = vmatpush1.bf16.msra.mxu0 %v3419_v33  ;;  %7003 = vmatprep.mubr.msk.bf16.mxu1 %vm7606_vm0, %v7605_v5 }
 0x1b6   : > { %3556 = vmatprep.subr.bf16.mxu0 %v3551_v34  ;;  %3459 = vmatprep.mubr.bf16.mxu0 %v7607_v10 }
 0x1b7   : > { %7007 = vmatprep.subr.bf16.mxu1 %v7605_v5  ;;  %6240 = vrot.lane.b32.xlu0 %v8224_v47, %s7652_s20 }
 0x1b8   : > { %6242 = vrot.lane.b32.xlu1 %v8228_v49, %s7652_s20 }
 0x1bb   : > { %6238 = vrot.lane.b32.xlu0 %v8213_v41, %s7652_s20 }
 0x1bc   : > { %6244 = vrot.lane.b32.xlu1 %v8241_v52, %s7652_s20 }
 0x1bf   : > { %7004 = vmatmul.mubr.msk.bf16.vlgmr.msra.gmra.mrb[0].mxu1 %vm207_vm5, %v6675_v13  ;;  %6369 = vrot.lane.b32.xlu0 %v8224_v47, %s7653_s26  ;;  %v3797_v47 = vpop.permute.xlu1 %3796 }
 0x1c0   : > { %6676 = vmatmul.mubr.msk.bf16.vlgmr.msra.gmra.mrb[0].mxu0 %vm207_vm5, %v6675_v13  ;;  %7008 = vmatpush3.bf16.msra.mxu1 %v3554_v42 }
 0x1c1   : > { %3557 = vmatpush1.bf16.msra.mxu0 %v3548_v44  ;;  %7009 = vmatprep.mubr.msk.bf16.mxu1 %vm7606_vm0, %v7605_v5 }
 0x1c2   : > { %3685 = vmatprep.subr.bf16.mxu0 %v3680_v45  ;;  %3588 = vmatprep.mubr.bf16.mxu0 %v7607_v10 }
 0x1c3   : > { %7013 = vmatprep.subr.bf16.mxu1 %v7605_v5  ;;  %6371 = vrot.lane.b32.xlu1 %v8228_v49, %s7653_s26  ;;  %v3791_v49 = vpop.permute.xlu0 %3790 }
 0x1c4   : > { %6367 = vrot.lane.b32.xlu0 %v8213_v41, %s7653_s26  ;;  %v3924_v41 = vpop.permute.xlu1 %3923  ;;  %v3799_v59 = vsel %vm3798_vm6, %v3791_v49, %v3793_v53 }
 0x1c5   : > { %v3806_v0 = vand.u32 %v3799_v59, %v7788_v24 }
 0x1c7   : > { %6373 = vrot.lane.b32.xlu1 %v8241_v52, %s7653_s26  ;;  %v3801_v52 = vsel %vm3798_vm6, %v3795_v50, %v3797_v47  ;;  %v3922_v60 = vpop.permute.xlu0 %3921  ;;  %vm5217_vm6 = vcmask 113664  }
 0x1c8   : > { %v3929_v61 = vsel %vm3927_vm10, %v3922_v60, %v3924_v41  ;;  %v3812_v62 = vand.u32 %v3801_v52, %v7788_v24  ;;  %v3926_v2 = vpop.permute.xlu1 %3925  ;;  %v6696_v52 = vld [vmem:[%s8699_s1 + $0x80] sm:$0xf] }
 0x1c9   : > { %v3938_v1 = vand.u32 %v3929_v61, %v7788_v24  ;;  %v3930_v9 = vsel %vm3927_vm10, %v3924_v41, %v3926_v2 }
 0x1ca   : > { %v3941_v17 = vand.u32 %v3930_v9, %v7788_v24  ;;  %v6699_v9 = vld [vmem:[%s8699_s1 + $0x84] sm:$0xf] }
 0x1cb   : > { %7010 = vmatmul.mubr.msk.bf16.vlgmr.msra.gmra.mrb[0].mxu1 %vm207_vm5, %v6678_v56  ;;  %v3920_v4 = vpop.permute.xlu0 %3919 }
 0x1cc   : > { %6679 = vmatmul.mubr.msk.bf16.vlgmr.msra.gmra.mrb[0].mxu0 %vm207_vm5, %v6678_v56  ;;  %7014 = vmatpush3.bf16.msra.mxu1 %v3683_v55  ;;  %v4053_v7 = vpop.permute.xlu1 %4052  ;;  %v3928_v14 = vsel %vm3927_vm10, %v3920_v4, %v3922_v60  ;;  %vm5346_vm10 = vcmask 105472  }
 0x1cd   : > { %3686 = vmatpush1.bf16.msra.mxu0 %v3677_v57  ;;  %7015 = vmatprep.mubr.msk.bf16.mxu1 %vm7606_vm0, %v7605_v5  ;;  %v3935_v19 = vand.u32 %v3928_v14, %v7788_v24 }
 0x1ce   : > { %3814 = vmatprep.subr.bf16.mxu0 %v3809_v58  ;;  %3717 = vmatprep.mubr.bf16.mxu0 %v7607_v10 }
 0x1cf   : > { %7019 = vmatprep.subr.bf16.mxu1 %v7605_v5  ;;  %v4051_v15 = vpop.permute.xlu0 %4050 }
 0x1d0   : > { %v4058_v16 = vsel %vm4056_vm11, %v4051_v15, %v4053_v7  ;;  %v4055_v21 = vpop.permute.xlu1 %4054 }
 0x1d1   : > { %v4067_v20 = vand.u32 %v4058_v16, %v7788_v24  ;;  %v4059_v8 = vsel %vm4056_vm11, %v4053_v7, %v4055_v21 }
 0x1d2   : > { %v4070_v27 = vand.u32 %v4059_v8, %v7788_v24  ;;  %v6702_v8 = vld [vmem:[%s8699_s1 + $0x88] sm:$0xf] }
 0x1d3   : > { %v4049_v22 = vpop.permute.xlu0 %4048 }
 0x1d4   : > { %v4182_v38 = vpop.permute.xlu1 %4181  ;;  %v4057_v23 = vsel %vm4056_vm11, %v4049_v22, %v4051_v15  ;;  %vm5475_vm11 = vcmask 97280  }
 0x1d5   : > { %v4064_v29 = vand.u32 %v4057_v23, %v7788_v24 }
 0x1d7   : > { %7016 = vmatmul.mubr.msk.bf16.vlgmr.msra.gmra.mrb[0].mxu1 %vm207_vm5, %v6681_v63  ;;  %v4180_v25 = vpop.permute.xlu0 %4179 }
 0x1d8   : > { %6682 = vmatmul.mubr.msk.bf16.vlgmr.msra.gmra.mrb[0].mxu0 %vm207_vm5, %v6681_v63  ;;  %7020 = vmatpush3.bf16.msra.mxu1 %v3812_v62  ;;  %v4187_v26 = vsel %vm4185_vm12, %v4180_v25, %v4182_v38  ;;  %v4184_v32 = vpop.permute.xlu1 %4183 }
 0x1d9   : > { %3815 = vmatpush1.bf16.msra.mxu0 %v3806_v0  ;;  %7021 = vmatprep.mubr.msk.bf16.mxu1 %vm7606_vm0, %v7605_v5  ;;  %v4196_v30 = vand.u32 %v4187_v26, %v7788_v24  ;;  %v4188_v33 = vsel %vm4185_vm12, %v4182_v38, %v4184_v32 }
 0x1da   : > { %3943 = vmatprep.subr.bf16.mxu0 %v3938_v1  ;;  %3846 = vmatprep.mubr.bf16.mxu0 %v7607_v10  ;;  %v4199_v37 = vand.u32 %v4188_v33, %v7788_v24  ;;  %v6705_v33 = vld [vmem:[%s8699_s1 + $0x8c] sm:$0xf] }
 0x1db   : > { %7025 = vmatprep.subr.bf16.mxu1 %v7605_v5  ;;  %v4178_v43 = vpop.permute.xlu0 %4177 }
 0x1dc   : > { %v4311_v31 = vpop.permute.xlu1 %4310  ;;  %v4186_v34 = vsel %vm4185_vm12, %v4178_v43, %v4180_v25  ;;  %vm6375_vm12 = vcmask 965632  }
 0x1dd   : > { %v4193_v39 = vand.u32 %v4186_v34, %v7788_v24 }
 0x1df   : > { %v4309_v35 = vpop.permute.xlu0 %4308 }
 0x1e0   : > { %v4316_v36 = vsel %vm4314_vm13, %v4309_v35, %v4311_v31  ;;  %v4313_v40 = vpop.permute.xlu1 %4312 }
 0x1e1   : > { %v4325_v12 = vand.u32 %v4316_v36, %v7788_v24  ;;  %v4317_v44 = vsel %vm4314_vm13, %v4311_v31, %v4313_v40 }
 0x1e2   : > { %v4328_v50 = vand.u32 %v4317_v44, %v7788_v24  ;;  %v6708_v44 = vld [vmem:[%s8699_s1 + $0x90] sm:$0xf] }
 0x1e3   : > { %7022 = vmatmul.mubr.msk.bf16.vlgmr.msra.gmra.mrb[0].mxu1 %vm207_vm5, %v6684_v18  ;;  %v4307_v42 = vpop.permute.xlu0 %4306 }
 0x1e4   : > { %6685 = vmatmul.mubr.msk.bf16.vlgmr.msra.gmra.mrb[0].mxu0 %vm207_vm5, %v6684_v18  ;;  %7026 = vmatpush3.bf16.msra.mxu1 %v3941_v17  ;;  %v4440_v13 = vpop.permute.xlu1 %4439  ;;  %v4315_v45 = vsel %vm4314_vm13, %v4307_v42, %v4309_v35 }
 0x1e5   : > { %3944 = vmatpush1.bf16.msra.mxu0 %v3935_v19  ;;  %7027 = vmatprep.mubr.msk.bf16.mxu1 %vm7606_vm0, %v7605_v5  ;;  %v4322_v6 = vand.u32 %v4315_v45, %v7788_v24 }
 0x1e6   : > { %4072 = vmatprep.subr.bf16.mxu0 %v4067_v20  ;;  %3975 = vmatprep.mubr.bf16.mxu0 %v7607_v10 }
 0x1e7   : > { %7031 = vmatprep.subr.bf16.mxu1 %v7605_v5  ;;  %v4438_v46 = vpop.permute.xlu0 %4437 }
 0x1e8   : > { %v4445_v48 = vsel %vm4443_vm14, %v4438_v46, %v4440_v13  ;;  %v4442_v54 = vpop.permute.xlu1 %4441 }
 0x1e9   : > { %v4454_v53 = vand.u32 %v4445_v48, %v7788_v24  ;;  %v4446_v57 = vsel %vm4443_vm14, %v4440_v13, %v4442_v54 }
 0x1ea   : > { %v4457_v41 = vand.u32 %v4446_v57, %v7788_v24  ;;  %v6711_v57 = vld [vmem:[%s8699_s1 + $0x94] sm:$0xf] }
 0x1eb   : > { %v4436_v55 = vpop.permute.xlu0 %4435 }
 0x1ec   : > { %v4569_v56 = vpop.permute.xlu1 %4568  ;;  %v4444_v58 = vsel %vm4443_vm14, %v4436_v55, %v4438_v46 }
 0x1ed   : > { %v4451_v59 = vand.u32 %v4444_v58, %v7788_v24 }
 0x1ef   : > { %7028 = vmatmul.mubr.msk.bf16.vlgmr.msra.gmra.mrb[0].mxu1 %vm207_vm5, %v6687_v28  ;;  %v4567_v47 = vpop.permute.xlu0 %4566 }
 0x1f0   : > { %6688 = vmatmul.mubr.msk.bf16.vlgmr.msra.gmra.mrb[0].mxu0 %vm207_vm5, %v6687_v28  ;;  %7032 = vmatpush3.bf16.msra.mxu1 %v4070_v27  ;;  %v4574_v49 = vsel %vm4572_vm15, %v4567_v47, %v4569_v56  ;;  %v4571_v61 = vpop.permute.xlu1 %4570 }
 0x1f1   : > { %4073 = vmatpush1.bf16.msra.mxu0 %v4064_v29  ;;  %7033 = vmatprep.mubr.msk.bf16.mxu1 %vm7606_vm0, %v7605_v5  ;;  %v4583_v60 = vand.u32 %v4574_v49, %v7788_v24  ;;  %v4575_v0 = vsel %vm4572_vm15, %v4569_v56, %v4571_v61 }
 0x1f2   : > { %4201 = vmatprep.subr.bf16.mxu0 %v4196_v30  ;;  %4104 = vmatprep.mubr.bf16.mxu0 %v7607_v10  ;;  %v4586_v7 = vand.u32 %v4575_v0, %v7788_v24  ;;  %v6714_v0 = vld [vmem:[%s8699_s1 + $0x98] sm:$0xf] }
 0x1f3   : > { %7037 = vmatprep.subr.bf16.mxu1 %v7605_v5  ;;  %v4565_v62 = vpop.permute.xlu0 %4564 }
 0x1f4   : > { %v4698_v63 = vpop.permute.xlu1 %4697  ;;  %v4573_v1 = vsel %vm4572_vm15, %v4565_v62, %v4567_v47 }
 0x1f5   : > { %v4580_v14 = vand.u32 %v4573_v1, %v7788_v24 }
 0x1f7   : > { %v4696_v2 = vpop.permute.xlu0 %4695 }
 0x1f8   : > { %v4703_v4 = vsel %vm4701_vm1, %v4696_v2, %v4698_v63  ;;  %v4700_v16 = vpop.permute.xlu1 %4699 }
 0x1f9   : > { %v4712_v15 = vand.u32 %v4703_v4, %v7788_v24  ;;  %v4704_v19 = vsel %vm4701_vm1, %v4698_v63, %v4700_v16 }
 0x1fa   : > { %v4715_v38 = vand.u32 %v4704_v19, %v7788_v24  ;;  %v6717_v19 = vld [vmem:[%s8699_s1 + $0x9c] sm:$0xf] }
 0x1fb   : > { %7034 = vmatmul.mubr.msk.bf16.vlgmr.msra.gmra.mrb[0].mxu1 %vm207_vm5, %v6690_v11  ;;  %v4694_v17 = vpop.permute.xlu0 %4693 }
 0x1fc   : > { %6691 = vmatmul.mubr.msk.bf16.vlgmr.msra.gmra.mrb[0].mxu0 %vm207_vm5, %v6690_v11  ;;  %7038 = vmatpush3.bf16.msra.mxu1 %v4199_v37  ;;  %v4827_v18 = vpop.permute.xlu1 %4826  ;;  %v4702_v20 = vsel %vm4701_vm1, %v4694_v17, %v4696_v2 }
 0x1fd   : > { %4202 = vmatpush1.bf16.msra.mxu0 %v4193_v39  ;;  %7039 = vmatprep.mubr.msk.bf16.mxu1 %vm7606_vm0, %v7605_v5  ;;  %v4709_v23 = vand.u32 %v4702_v20, %v7788_v24 }
 0x1fe   : > { %4330 = vmatprep.subr.bf16.mxu0 %v4325_v12  ;;  %4233 = vmatprep.mubr.bf16.mxu0 %v7607_v10 }
 0x1ff   : > { %7043 = vmatprep.subr.bf16.mxu1 %v7605_v5  ;;  %v4825_v21 = vpop.permute.xlu0 %4824 }
 0x200   : > { %v4832_v22 = vsel %vm4830_vm2, %v4825_v21, %v4827_v18  ;;  %v4829_v26 = vpop.permute.xlu1 %4828 }
 0x201   : > { %v4841_v25 = vand.u32 %v4832_v22, %v7788_v24  ;;  %v4833_v29 = vsel %vm4830_vm2, %v4827_v18, %v4829_v26 }
 0x202   : > { %v4844_v31 = vand.u32 %v4833_v29, %v7788_v24  ;;  %v6720_v29 = vld [vmem:[%s8699_s1 + $0xa0] sm:$0xf] }
 0x203   : > { %v4823_v27 = vpop.permute.xlu0 %4822 }
 0x204   : > { %v4956_v28 = vpop.permute.xlu1 %4955  ;;  %v4831_v30 = vsel %vm4830_vm2, %v4823_v27, %v4825_v21 }
 0x205   : > { %v4838_v34 = vand.u32 %v4831_v30, %v7788_v24 }
 0x207   : > { %7040 = vmatmul.mubr.msk.bf16.vlgmr.msra.gmra.mrb[0].mxu1 %vm207_vm5, %v6693_v51  ;;  %v4954_v32 = vpop.permute.xlu0 %4953 }
 0x208   : > { %6694 = vmatmul.mubr.msk.bf16.vlgmr.msra.gmra.mrb[0].mxu0 %vm207_vm5, %v6693_v51  ;;  %7044 = vmatpush3.bf16.msra.mxu1 %v4328_v50  ;;  %v4961_v43 = vsel %vm4959_vm3, %v4954_v32, %v4956_v28  ;;  %v4958_v36 = vpop.permute.xlu1 %4957 }
 0x209   : > { %4331 = vmatpush1.bf16.msra.mxu0 %v4322_v6  ;;  %7045 = vmatprep.mubr.msk.bf16.mxu1 %vm7606_vm0, %v7605_v5  ;;  %v4970_v35 = vand.u32 %v4961_v43, %v7788_v24  ;;  %v4962_v39 = vsel %vm4959_vm3, %v4956_v28, %v4958_v36 }
 0x20a   : > { %4459 = vmatprep.subr.bf16.mxu0 %v4454_v53  ;;  %4362 = vmatprep.mubr.bf16.mxu0 %v7607_v10  ;;  %v4973_v13 = vand.u32 %v4962_v39, %v7788_v24  ;;  %v6723_v39 = vld [vmem:[%s8699_s1 + $0xa4] sm:$0xf] }
 0x20b   : > { %7049 = vmatprep.subr.bf16.mxu1 %v7605_v5  ;;  %v4952_v37 = vpop.permute.xlu0 %4951 }
 0x20c   : > { %v5085_v11 = vpop.permute.xlu1 %5084  ;;  %v4960_v12 = vsel %vm4959_vm3, %v4952_v37, %v4954_v32 }
 0x20d   : > { %v4967_v45 = vand.u32 %v4960_v12, %v7788_v24 }
 0x20f   : > { %v5083_v40 = vpop.permute.xlu0 %5082 }
 0x210   : > { %v5090_v42 = vsel %vm5088_vm4, %v5083_v40, %v5085_v11  ;;  %v5087_v48 = vpop.permute.xlu1 %5086 }
 0x211   : > { %v5099_v46 = vand.u32 %v5090_v42, %v7788_v24  ;;  %v5091_v6 = vsel %vm5088_vm4, %v5085_v11, %v5087_v48 }
 0x212   : > { %v5102_v56 = vand.u32 %v5091_v6, %v7788_v24  ;;  %v6726_v6 = vld [vmem:[%s8699_s1 + $0xa8] sm:$0xf] }
 0x213   : > { %7046 = vmatmul.mubr.msk.bf16.vlgmr.msra.gmra.mrb[0].mxu1 %vm207_vm5, %v6696_v52  ;;  %v5081_v50 = vpop.permute.xlu0 %5080 }
 0x214   : > { %6697 = vmatmul.mubr.msk.bf16.vlgmr.msra.gmra.mrb[0].mxu0 %vm207_vm5, %v6696_v52  ;;  %7050 = vmatpush3.bf16.msra.mxu1 %v4457_v41  ;;  %v5214_v51 = vpop.permute.xlu1 %5213  ;;  %v5089_v53 = vsel %vm5088_vm4, %v5081_v50, %v5083_v40 }
 0x215   : > { %4460 = vmatpush1.bf16.msra.mxu0 %v4451_v59  ;;  %7051 = vmatprep.mubr.msk.bf16.mxu1 %vm7606_vm0, %v7605_v5  ;;  %v5096_v58 = vand.u32 %v5089_v53, %v7788_v24 }
 0x216   : > { %4588 = vmatprep.subr.bf16.mxu0 %v4583_v60  ;;  %4491 = vmatprep.mubr.bf16.mxu0 %v7607_v10 }
 0x217   : > { %7055 = vmatprep.subr.bf16.mxu1 %v7605_v5  ;;  %v5212_v54 = vpop.permute.xlu0 %5211 }
 0x218   : > { %v5219_v55 = vsel %vm5217_vm6, %v5212_v54, %v5214_v51  ;;  %v5216_v49 = vpop.permute.xlu1 %5215 }
 0x219   : > { %v5228_v47 = vand.u32 %v5219_v55, %v7788_v24  ;;  %v5220_v59 = vsel %vm5217_vm6, %v5214_v51, %v5216_v49 }
 0x21a   : > { %v5231_v63 = vand.u32 %v5220_v59, %v7788_v24  ;;  %v6729_v59 = vld [vmem:[%s8699_s1 + $0xac] sm:$0xf] }
 0x21b   : > { %v5210_v41 = vpop.permute.xlu0 %5209 }
 0x21c   : > { %v5343_v52 = vpop.permute.xlu1 %5342  ;;  %v5218_v60 = vsel %vm5217_vm6, %v5210_v41, %v5212_v54 }
 0x21d   : > { %v5225_v1 = vand.u32 %v5218_v60, %v7788_v24 }
 0x21f   : > { %7052 = vmatmul.mubr.msk.bf16.vlgmr.msra.gmra.mrb[0].mxu1 %vm207_vm5, %v6699_v9  ;;  %v5341_v61 = vpop.permute.xlu0 %5340 }
 0x220   : > { %6700 = vmatmul.mubr.msk.bf16.vlgmr.msra.gmra.mrb[0].mxu0 %vm207_vm5, %v6699_v9  ;;  %7056 = vmatpush3.bf16.msra.mxu1 %v4586_v7  ;;  %v5348_v62 = vsel %vm5346_vm10, %v5341_v61, %v5343_v52  ;;  %v5345_v4 = vpop.permute.xlu1 %5344 }
 0x221   : > { %4589 = vmatpush1.bf16.msra.mxu0 %v4580_v14  ;;  %7057 = vmatprep.mubr.msk.bf16.mxu1 %vm7606_vm0, %v7605_v5  ;;  %v5357_v2 = vand.u32 %v5348_v62, %v7788_v24  ;;  %v5349_v14 = vsel %vm5346_vm10, %v5343_v52, %v5345_v4 }
 0x222   : > { %4717 = vmatprep.subr.bf16.mxu0 %v4712_v15  ;;  %4620 = vmatprep.mubr.bf16.mxu0 %v7607_v10  ;;  %v5360_v18 = vand.u32 %v5349_v14, %v7788_v24  ;;  %v6732_v14 = vld [vmem:[%s8699_s1 + $0xb0] sm:$0xf] }
 0x223   : > { %7061 = vmatprep.subr.bf16.mxu1 %v7605_v5  ;;  %v5339_v7 = vpop.permute.xlu0 %5338 }
 0x224   : > { %v5472_v9 = vpop.permute.xlu1 %5471  ;;  %v5347_v15 = vsel %vm5346_vm10, %v5339_v7, %v5341_v61 }
 0x225   : > { %v5354_v20 = vand.u32 %v5347_v15, %v7788_v24 }
 0x227   : > { %v5470_v16 = vpop.permute.xlu0 %5469 }
 0x228   : > { %v5477_v17 = vsel %vm5475_vm11, %v5470_v16, %v5472_v9  ;;  %v5474_v22 = vpop.permute.xlu1 %5473 }
 0x229   : > { %v5486_v21 = vand.u32 %v5477_v17, %v7788_v24 }
 0x22b   : > { %7058 = vmatmul.mubr.msk.bf16.vlgmr.msra.gmra.mrb[0].mxu1 %vm207_vm5, %v6702_v8 }
 0x22c   : > { %6703 = vmatmul.mubr.msk.bf16.vlgmr.msra.gmra.mrb[0].mxu0 %vm207_vm5, %v6702_v8  ;;  %7062 = vmatpush3.bf16.msra.mxu1 %v4715_v38  ;;  %v5468_v38 = vpop.permute.xlu0 %5467  ;;  %v5601_v8 = vpop.permute.xlu1 %5600 }
 0x22d   : > { %4718 = vmatpush1.bf16.msra.mxu0 %v4709_v23  ;;  %7063 = vmatprep.mubr.msk.bf16.mxu1 %vm7606_vm0, %v7605_v5  ;;  %v5478_v23 = vsel %vm5475_vm11, %v5472_v9, %v5474_v22 }
 0x22e   : > { %4846 = vmatprep.subr.bf16.mxu0 %v4841_v25  ;;  %4749 = vmatprep.mubr.bf16.mxu0 %v7607_v10  ;;  %v5476_v25 = vsel %vm5475_vm11, %v5468_v38, %v5470_v16  ;;  %v5489_v28 = vand.u32 %v5478_v23, %v7788_v24  ;;  %v6735_v23 = vld [vmem:[%s8699_s1 + $0xb4] sm:$0xf] }
 0x22f   : > { %7067 = vmatprep.subr.bf16.mxu1 %v7605_v5  ;;  %v5483_v30 = vand.u32 %v5476_v25, %v7788_v24 }
 0x230   : > { %v5599_v26 = vpop.permute.xlu0 %5598  ;;  %v5603_v43 = vpop.permute.xlu1 %5602 }
 0x231   : > { %v5605_v27 = vsel %vm702_vm7, %v5599_v26, %v5601_v8 }
 0x232   : > { %v5614_v32 = vand.u32 %v5605_v27, %v7788_v24 }
 0x237   : > { %7064 = vmatmul.mubr.msk.bf16.vlgmr.msra.gmra.mrb[0].mxu1 %vm207_vm5, %v6705_v33 }
 0x238   : > { %6706 = vmatmul.mubr.msk.bf16.vlgmr.msra.gmra.mrb[0].mxu0 %vm207_vm5, %v6705_v33  ;;  %7068 = vmatpush3.bf16.msra.mxu1 %v4844_v31  ;;  %v5597_v31 = vpop.permute.xlu0 %5596  ;;  %v5729_v33 = vpop.permute.xlu1 %5728 }
 0x239   : > { %4847 = vmatpush1.bf16.msra.mxu0 %v4838_v34  ;;  %7069 = vmatprep.mubr.msk.bf16.mxu1 %vm7606_vm0, %v7605_v5  ;;  %v5606_v34 = vsel %vm702_vm7, %v5601_v8, %v5603_v43 }
 0x23a   : > { %4975 = vmatprep.subr.bf16.mxu0 %v4970_v35  ;;  %4878 = vmatprep.mubr.bf16.mxu0 %v7607_v10  ;;  %v5604_v35 = vsel %vm702_vm7, %v5597_v31, %v5599_v26  ;;  %v5617_v11 = vand.u32 %v5606_v34, %v7788_v24  ;;  %vm5988_vm7 = vcmask 990208   ;;  %v6738_v34 = vld [vmem:[%s8699_s1 + $0xb8] sm:$0xf] }
 0x23b   : > { %7073 = vmatprep.subr.bf16.mxu1 %v7605_v5  ;;  %v5611_v12 = vand.u32 %v5604_v35, %v7788_v24 }
 0x23c   : > { %v5727_v36 = vpop.permute.xlu0 %5726  ;;  %v5731_v42 = vpop.permute.xlu1 %5730 }
 0x23d   : > { %v5733_v37 = vsel %vm831_vm8, %v5727_v36, %v5729_v33 }
 0x23e   : > { %v5742_v40 = vand.u32 %v5733_v37, %v7788_v24 }
 0x243   : > { %7070 = vmatmul.mubr.msk.bf16.vlgmr.msra.gmra.mrb[0].mxu1 %vm207_vm5, %v6708_v44 }
 0x244   : > { %6709 = vmatmul.mubr.msk.bf16.vlgmr.msra.gmra.mrb[0].mxu0 %vm207_vm5, %v6708_v44  ;;  %7074 = vmatpush3.bf16.msra.mxu1 %v4973_v13  ;;  %v5725_v13 = vpop.permute.xlu0 %5724  ;;  %v5857_v44 = vpop.permute.xlu1 %5856 }
 0x245   : > { %4976 = vmatpush1.bf16.msra.mxu0 %v4967_v45  ;;  %7075 = vmatprep.mubr.msk.bf16.mxu1 %vm7606_vm0, %v7605_v5  ;;  %v5734_v45 = vsel %vm831_vm8, %v5729_v33, %v5731_v42  ;;  %v6741_v42 = vld [vmem:[%s8699_s1 + $0xbc] sm:$0xf] }
 0x246   : > { %5104 = vmatprep.subr.bf16.mxu0 %v5099_v46  ;;  %5007 = vmatprep.mubr.bf16.mxu0 %v7607_v10  ;;  %v5732_v46 = vsel %vm831_vm8, %v5725_v13, %v5727_v36  ;;  %v5745_v51 = vand.u32 %v5734_v45, %v7788_v24  ;;  %vm6117_vm8 = vcmask 982016   ;;  %v6475_v45 = vld [vmem:[%s8700_s2] sm:$0x7] }
 0x247   : > { %7079 = vmatprep.subr.bf16.mxu1 %v7605_v5  ;;  %v5739_v53 = vand.u32 %v5732_v46, %v7788_v24  ;;  %v6483_v46 = vsub.s32 1, %v7684_v3 }
 0x248   : > { %v5855_v48 = vpop.permute.xlu0 %5854  ;;  %v5859_v55 = vpop.permute.xlu1 %5858 }
 0x249   : > { %v5861_v50 = vsel %vm960_vm9, %v5855_v48, %v5857_v44 }
 0x24a   : > { %v5870_v54 = vand.u32 %v5861_v50, %v7788_v24 }
 0x24f   : > { %7076 = vmatmul.mubr.msk.bf16.vlgmr.msra.gmra.mrb[0].mxu1 %vm207_vm5, %v6711_v57 }
 0x250   : > { %6712 = vmatmul.mubr.msk.bf16.vlgmr.msra.gmra.mrb[0].mxu0 %vm207_vm5, %v6711_v57  ;;  %7080 = vmatpush3.bf16.msra.mxu1 %v5102_v56  ;;  %v5853_v56 = vpop.permute.xlu0 %5852  ;;  %v5985_v57 = vpop.permute.xlu1 %5984 }
 0x251   : > { %5105 = vmatpush1.bf16.msra.mxu0 %v5096_v58  ;;  %7081 = vmatprep.mubr.msk.bf16.mxu1 %vm7606_vm0, %v7605_v5  ;;  %v5862_v58 = vsel %vm960_vm9, %v5857_v44, %v5859_v55  ;;  %v6744_v44 = vld [vmem:[%s8699_s1 + $0xc0] sm:$0xf] }
 0x252   : > { %5233 = vmatprep.subr.bf16.mxu0 %v5228_v47  ;;  %5136 = vmatprep.mubr.bf16.mxu0 %v7607_v10  ;;  %v5860_v47 = vsel %vm960_vm9, %v5853_v56, %v5855_v48  ;;  %v5873_v52 = vand.u32 %v5862_v58, %v7788_v24  ;;  %vm6246_vm9 = vcmask 973824  }
 0x253   : > { %7085 = vmatprep.subr.bf16.mxu1 %v7605_v5  ;;  %v5867_v60 = vand.u32 %v5860_v47, %v7788_v24 }
 0x254   : > { %v5983_v49 = vpop.permute.xlu0 %5982  ;;  %v5987_v62 = vpop.permute.xlu1 %5986 }
 0x255   : > { %v5990_v41 = vsel %vm5988_vm7, %v5983_v49, %v5985_v57 }
 0x256   : > { %v5999_v61 = vand.u32 %v5990_v41, %v7788_v24 }
 0x25b   : > { %7082 = vmatmul.mubr.msk.bf16.vlgmr.msra.gmra.mrb[0].mxu1 %vm207_vm5, %v6714_v0 }
 0x25c   : > { %6715 = vmatmul.mubr.msk.bf16.vlgmr.msra.gmra.mrb[0].mxu0 %vm207_vm5, %v6714_v0  ;;  %7086 = vmatpush3.bf16.msra.mxu1 %v5231_v63  ;;  %v5981_v63 = vpop.permute.xlu0 %5980  ;;  %v6114_v0 = vpop.permute.xlu1 %6113 }
 0x25d   : > { %5234 = vmatpush1.bf16.msra.mxu0 %v5225_v1  ;;  %7087 = vmatprep.mubr.msk.bf16.mxu1 %vm7606_vm0, %v7605_v5  ;;  %v5991_v1 = vsel %vm5988_vm7, %v5985_v57, %v5987_v62 }
 0x25e   : > { %5362 = vmatprep.subr.bf16.mxu0 %v5357_v2  ;;  %5265 = vmatprep.mubr.bf16.mxu0 %v7607_v10  ;;  %v5989_v2 = vsel %vm5988_vm7, %v5981_v63, %v5983_v49  ;;  %v6002_v9 = vand.u32 %v5991_v1, %v7788_v24 }
 0x25f   : > { %7091 = vmatprep.subr.bf16.mxu1 %v7605_v5  ;;  %v5996_v15 = vand.u32 %v5989_v2, %v7788_v24 }
 0x260   : > { %v6112_v4 = vpop.permute.xlu0 %6111  ;;  %v6116_v17 = vpop.permute.xlu1 %6115 }
 0x261   : > { %v6119_v7 = vsel %vm6117_vm8, %v6112_v4, %v6114_v0 }
 0x262   : > { %v6128_v16 = vand.u32 %v6119_v7, %v7788_v24 }
 0x267   : > { %7088 = vmatmul.mubr.msk.bf16.vlgmr.msra.gmra.mrb[0].mxu1 %vm207_vm5, %v6717_v19 }
 0x268   : > { %6718 = vmatmul.mubr.msk.bf16.vlgmr.msra.gmra.mrb[0].mxu0 %vm207_vm5, %v6717_v19  ;;  %7092 = vmatpush3.bf16.msra.mxu1 %v5360_v18  ;;  %v6110_v18 = vpop.permute.xlu0 %6109  ;;  %v6243_v19 = vpop.permute.xlu1 %6242 }
 0x269   : > { %5363 = vmatpush1.bf16.msra.mxu0 %v5354_v20  ;;  %7093 = vmatprep.mubr.msk.bf16.mxu1 %vm7606_vm0, %v7605_v5  ;;  %v6120_v20 = vsel %vm6117_vm8, %v6114_v0, %v6116_v17 }
 0x26a   : > { %5491 = vmatprep.subr.bf16.mxu0 %v5486_v21  ;;  %5394 = vmatprep.mubr.bf16.mxu0 %v7607_v10  ;;  %v6118_v21 = vsel %vm6117_vm8, %v6110_v18, %v6112_v4  ;;  %v6131_v8 = vand.u32 %v6120_v20, %v7788_v24 }
 0x26b   : > { %7097 = vmatprep.subr.bf16.mxu1 %v7605_v5  ;;  %v6125_v25 = vand.u32 %v6118_v21, %v7788_v24 }
 0x26c   : > { %v6241_v22 = vpop.permute.xlu0 %6240  ;;  %v6245_v27 = vpop.permute.xlu1 %6244 }
 0x26d   : > { %v6248_v38 = vsel %vm6246_vm9, %v6241_v22, %v6243_v19 }
 0x26e   : > { %v6257_v26 = vand.u32 %v6248_v38, %v7788_v24 }
 0x273   : > { %7094 = vmatmul.mubr.msk.bf16.vlgmr.msra.gmra.mrb[0].mxu1 %vm207_vm5, %v6720_v29 }
 0x274   : > { %6721 = vmatmul.mubr.msk.bf16.vlgmr.msra.gmra.mrb[0].mxu0 %vm207_vm5, %v6720_v29  ;;  %7098 = vmatpush3.bf16.msra.mxu1 %v5489_v28  ;;  %v6239_v28 = vpop.permute.xlu0 %6238  ;;  %v6372_v29 = vpop.permute.xlu1 %6371 }
 0x275   : > { %5492 = vmatpush1.bf16.msra.mxu0 %v5483_v30  ;;  %7099 = vmatprep.mubr.msk.bf16.mxu1 %vm7606_vm0, %v7605_v5  ;;  %v6249_v30 = vsel %vm6246_vm9, %v6243_v19, %v6245_v27 }
 0x276   : > { %5619 = vmatprep.subr.bf16.mxu0 %v5614_v32  ;;  %5523 = vmatprep.mubr.bf16.mxu0 %v7607_v10  ;;  %v6247_v32 = vsel %vm6246_vm9, %v6239_v28, %v6241_v22  ;;  %v6260_v33 = vand.u32 %v6249_v30, %v7788_v24 }
 0x277   : > { %7103 = vmatprep.subr.bf16.mxu1 %v7605_v5  ;;  %v6254_v35 = vand.u32 %v6247_v32, %v7788_v24 }
 0x278   : > { %v6370_v43 = vpop.permute.xlu0 %6369  ;;  %v6374_v37 = vpop.permute.xlu1 %6373 }
 0x279   : > { %v6377_v31 = vsel %vm6375_vm12, %v6370_v43, %v6372_v29 }
 0x27a   : > { %v6386_v36 = vand.u32 %v6377_v31, %v7788_v24 }
 0x27f   : > { %7100 = vmatmul.mubr.msk.bf16.vlgmr.msra.gmra.mrb[0].mxu1 %vm207_vm5, %v6723_v39 }
 0x280   : > { %6724 = vmatmul.mubr.msk.bf16.vlgmr.msra.gmra.mrb[0].mxu0 %vm207_vm5, %v6723_v39  ;;  %7104 = vmatpush3.bf16.msra.mxu1 %v5617_v11  ;;  %v6368_v11 = vpop.permute.xlu0 %6367  ;;  %v6378_v39 = vsel %vm6375_vm12, %v6372_v29, %v6374_v37 }
 0x281   : > { %5620 = vmatpush1.bf16.msra.mxu0 %v5611_v12  ;;  %7105 = vmatprep.mubr.msk.bf16.mxu1 %vm7606_vm0, %v7605_v5  ;;  %v6376_v12 = vsel %vm6375_vm12, %v6368_v11, %v6370_v43 }
 0x282   : > { %5747 = vmatprep.subr.bf16.mxu0 %v5742_v40  ;;  %5651 = vmatprep.mubr.bf16.mxu0 %v7607_v10  ;;  %v6389_v40 = vand.u32 %v6378_v39, %v7788_v24  ;;  %v6383_v13 = vand.u32 %v6376_v12, %v7788_v24  ;;  %v6479_v24 = vsub.s32 0, %v7684_v3 }
 0x283   : > { %7109 = vmatprep.subr.bf16.mxu1 %v7605_v5 }
 0x284   : > { %v6480_v48 = vrot.slane %v6475_v45, %v6479_v24 }
 0x28b   : > { %7106 = vmatmul.mubr.msk.bf16.vlgmr.msra.gmra.mrb[0].mxu1 %vm207_vm5, %v6726_v6 }
 0x28c   : > { %6727 = vmatmul.mubr.msk.bf16.vlgmr.msra.gmra.mrb[0].mxu0 %vm207_vm5, %v6726_v6  ;;  %7110 = vmatpush3.bf16.msra.mxu1 %v5745_v51 }
 0x28d   : > { %5748 = vmatpush1.bf16.msra.mxu0 %v5739_v53  ;;  %7111 = vmatprep.mubr.msk.bf16.mxu1 %vm7606_vm0, %v7605_v5 }
 0x28e   : > { %5875 = vmatprep.subr.bf16.mxu0 %v5870_v54  ;;  %5779 = vmatprep.mubr.bf16.mxu0 %v7607_v10 }
 0x28f   : > { %7115 = vmatprep.subr.bf16.mxu1 %v7605_v5 }
 0x297   : > { %7112 = vmatmul.mubr.msk.bf16.vlgmr.msra.gmra.mrb[0].mxu1 %vm207_vm5, %v6729_v59 }
 0x298   : > { %6730 = vmatmul.mubr.msk.bf16.vlgmr.msra.gmra.mrb[0].mxu0 %vm207_vm5, %v6729_v59  ;;  %7116 = vmatpush3.bf16.msra.mxu1 %v5873_v52 }
 0x299   : > { %5876 = vmatpush1.bf16.msra.mxu0 %v5867_v60  ;;  %7117 = vmatprep.mubr.msk.bf16.mxu1 %vm7606_vm0, %v7605_v5 }
 0x29a   : > { %6004 = vmatprep.subr.bf16.mxu0 %v5999_v61  ;;  %5907 = vmatprep.mubr.bf16.mxu0 %v7607_v10 }
 0x29b   : > { %7121 = vmatprep.subr.bf16.mxu1 %v7605_v5 }
 0x2a3   : > { %7118 = vmatmul.mubr.msk.bf16.vlgmr.msra.gmra.mrb[0].mxu1 %vm207_vm5, %v6732_v14 }
 0x2a4   : > { %6733 = vmatmul.mubr.msk.bf16.vlgmr.msra.gmra.mrb[0].mxu0 %vm207_vm5, %v6732_v14  ;;  %7122 = vmatpush3.bf16.msra.mxu1 %v6002_v9 }
 0x2a5   : > { %6005 = vmatpush1.bf16.msra.mxu0 %v5996_v15  ;;  %7123 = vmatprep.mubr.msk.bf16.mxu1 %vm7606_vm0, %v7605_v5 }
 0x2a6   : > { %6133 = vmatprep.subr.bf16.mxu0 %v6128_v16  ;;  %6036 = vmatprep.mubr.bf16.mxu0 %v7607_v10 }
 0x2a7   : > { %7127 = vmatprep.subr.bf16.mxu1 %v7605_v5 }
 0x2af   : > { %7124 = vmatmul.mubr.msk.bf16.vlgmr.msra.gmra.mrb[0].mxu1 %vm207_vm5, %v6735_v23 }
 0x2b0   : > { %6736 = vmatmul.mubr.msk.bf16.vlgmr.msra.gmra.mrb[0].mxu0 %vm207_vm5, %v6735_v23  ;;  %7128 = vmatpush3.bf16.msra.mxu1 %v6131_v8 }
 0x2b1   : > { %6134 = vmatpush1.bf16.msra.mxu0 %v6125_v25  ;;  %7129 = vmatprep.mubr.msk.bf16.mxu1 %vm7606_vm0, %v7605_v5 }
 0x2b2   : > { %6262 = vmatprep.subr.bf16.mxu0 %v6257_v26  ;;  %6165 = vmatprep.mubr.bf16.mxu0 %v7607_v10 }
 0x2b3   : > { %7133 = vmatprep.subr.bf16.mxu1 %v7605_v5 }
 0x2bb   : > { %7130 = vmatmul.mubr.msk.bf16.vlgmr.msra.gmra.mrb[0].mxu1 %vm207_vm5, %v6738_v34 }
 0x2bc   : > { %6739 = vmatmul.mubr.msk.bf16.vlgmr.msra.gmra.mrb[0].mxu0 %vm207_vm5, %v6738_v34  ;;  %7134 = vmatpush3.bf16.msra.mxu1 %v6260_v33 }
 0x2bd   : > { %6263 = vmatpush1.bf16.msra.mxu0 %v6254_v35  ;;  %7135 = vmatprep.mubr.msk.bf16.mxu1 %vm7606_vm0, %v7605_v5 }
 0x2be   : > { %6391 = vmatprep.subr.bf16.mxu0 %v6386_v36  ;;  %6294 = vmatprep.mubr.bf16.mxu0 %v7607_v10 }
 0x2bf   : > { %7139 = vmatprep.subr.bf16.mxu1 %v7605_v5 }
 0x2c7   : > { %7136 = vmatmul.mubr.msk.bf16.vlgmr.msra.gmra.mrb[0].mxu1 %vm207_vm5, %v6741_v42 }
 0x2c8   : > { %6742 = vmatmul.mubr.msk.bf16.vlgmr.msra.gmra.mrb[0].mxu0 %vm207_vm5, %v6741_v42  ;;  %7140 = vmatpush3.bf16.msra.mxu1 %v6389_v40 }
 0x2c9   : > { %6392 = vmatpush1.bf16.msra.mxu0 %v6383_v13  ;;  %7141 = vmatprep.mubr.msk.bf16.mxu1 %vm7606_vm0, %v7605_v5  ;;  %v6487_v5 = vsub.s32 2, %v7684_v3 }
 0x2ca   : > { %6423 = vmatprep.mubr.bf16.mxu0 %v7607_v10  ;;  %v6484_v10 = vrot.slane %v6475_v45, %v6483_v46 }
 0x2cb   : > { %v6488_v51 = vrot.slane %v6475_v45, %v6487_v5 }
 0x2d3   : > { %7142 = vmatmul.mubr.msk.bf16.vlgmr.msra.gmra.mrb[0].mxu1 %vm207_vm5, %v6744_v44 }
 0x2d4   : > { %6745 = vmatmul.mubr.msk.bf16.vlgmr.msra.gmra.mrb[0].mxu0 %vm207_vm5, %v6744_v44 }
 0x3a6   : > { %v6466_v50 = vpop.f32.mrb[0].mxu1 }
 0x3a7   : > { %v6425_v6 = vpop.f32.mrb[0].mxu0  ;;  %v7143_v53 = vpop.f32.mrb[1].mxu1  ;;  %v6494_v41 = vmul.f32 %v6488_v51, %v6466_v50 }
 0x3a8   : > { %v6492_v54 = vmul.f32 %v6480_v48, %v6425_v6  ;;  %v6427_v55 = vpop.f32.mrb[1].mxu0  ;;  %v6469_v56 = vpop.f32.mrb[2].mxu1 }
 0x3a9   : > { %v6493_v57 = vmul.f32 %v6484_v10, %v6427_v55  ;;  %v6429_v58 = vpop.f32.mrb[2].mxu0  ;;  %v7144_v47 = vpop.f32.mrb[3].mxu1 }
 0x3aa   : > { %v6430_v49 = vpop.f32.mrb[3].mxu0 }
 0x3ab   : > { %v6495_v52 = vadd.f32 %v6493_v57, %v6492_v54 }
 0x3ad   : > { %v6496_v59 = vadd.f32 %v6495_v52, %v6494_v41 }
 0x3af   : > { %6497 = vadd.xlane.f32.xlu0 %v6496_v59 }
 0x43c   : > { %v6498_v60 = vpop.xlane.xlu0 %6497 }
 0x43d   : > { %v6500_v61 = vmul.f32 0.00390625, %v6498_v60 }
 0x43f   : > { %v6501_v3 = vsub.f32 %v6425_v6, %v6500_v61  ;;  %v6502_v62 = vsub.f32 %v6427_v55, %v6500_v61  ;;  %v6503_v63 = vsub.f32 %v6466_v50, %v6500_v61 }
 0x441   : > { %v6504_v0 = vmul.f32 %v6501_v3, %v6480_v48  ;;  %v6505_v1 = vmul.f32 %v6502_v62, %v6484_v10  ;;  %v6506_v2 = vmul.f32 %v6503_v63, %v6488_v51 }
 0x443   : > { %v6507_v4 = vmul.f32 %v6504_v0, %v6504_v0  ;;  %v6508_v7 = vmul.f32 %v6505_v1, %v6505_v1  ;;  %v6509_v9 = vmul.f32 %v6506_v2, %v6506_v2 }
 0x445   : > { %v6510_v14 = vadd.f32 %v6508_v7, %v6507_v4 }
 0x447   : > { %v6511_v15 = vadd.f32 %v6510_v14, %v6509_v9 }
 0x449   : > { %6512 = vadd.xlane.f32.xlu1 %v6511_v15 }
 0x4d6   : > { %v6513_v16 = vpop.xlane.xlu1 %6512 }
 0x4d7   : > { %v6515_v17 = vmul.f32 0.00390625, %v6513_v16 }
 0x4d9   : > { %v6516_v18 = vadd.f32 1e-05, %v6515_v17 }
 0x4db   : > { %7594 = vrsqrt.f32 %v6516_v18 }
 0x4e5   : > { %v7595_v19 = vpop.eup %7594 }
 0x4e6   : > { %v6518_v20 = vmul.f32 %v7595_v19, %v6501_v3  ;;  %v6519_v21 = vmul.f32 %v7595_v19, %v6502_v62  ;;  %v6520_v22 = vmul.f32 %v7595_v19, %v6503_v63 }
 0x4e8   : > { %v6521_v38 = vmax.f32 %v6518_v20, 0.0  ;;  %v6522_v8 = vmax.f32 %v6519_v21, 0.0  ;;  %v6523_v23 = vmax.f32 %v6520_v22, 0.0 }
 0x4ea   : > { %v6751_v25 = vpack.c.bf16 %v6522_v8, %v6521_v38  ;;  %v6752_v26 = vpack.c.bf16 %v6523_v23, %v6523_v23 }
 0x4ec   : > { %6537 = vst [vmem:[%s170_s28] sm:$0xff] %v6751_v25  ;;  %6538 = vst [vmem:[%s170_s28 + $0x8] sm:$0xf] %v6752_v26 }
 0x4ed PF: > { %s13_s12 = sadd.s32 1, %s7602_s12  }
 0x4ee   : > { %p10_p4 = scmp.ge.s32.totalorder %s13_s12, 4  }
 0x4f0   :  { %12 = sbr.rel (!%p10_p4) target bundleno = 1 (0x1), region = 110 }

// kernel: generator.13
= control target key start
LH: loop header
LB: loop body
LE: loop exit
PB: predicated region body
PF: predicated region fallthrough
CT: control target
= control target key end

     0   :  { %s1174_s12 = smov 0   ;;  %s1295_s0 = inlined_call_operand.vmem [shape: bf16[2,1,32,256], index: 0, kind: input, shape index: {}]   ;;  %s1296_s1 = inlined_call_operand.vmem [shape: bf16[4,64,32], index: 1, kind: input, shape index: {}]   ;;  %s1297_s2 = inlined_call_operand.vmem [shape: f32[1,128], index: 2, kind: input, shape index: {}]   ;;  %s1298_s3 = inlined_call_operand.vmem [shape: bf16[2,64,128], index: 3, kind: output, shape index: {}]  }
   0x1 LB: > { %s893_s13 = sadd.s32 4294967295, %s1149_s12   ;;  %p897_p0 = scmp.ge.s32.totalorder %s1149_s12, 1  ;;  %s1149_s12 = sphi %s1174_s12, %s13_s12  }
   0x2   : > { %p137_p1 = scmp.lt.s32.totalorder %s1149_s12, 3 }
   0x4   : > { %p138_p2 = pnand %p897_p0, %p137_p1 }
   0x5   : > { %p161_p3 = scmp.lt.s32.totalorder (!%p138_p2), %s893_s13, 1  ;;  %v1121_v0 = vld [vmem:[%s1296_s1 + $0x20] sm:$0xff] (!%p138_p2)   ;;  %vm246_vm0 = vcmask (!%p138_p2), 261120   ;;  %s1151_s20 = smov (!%p138_p2), 123   ;;  %vm241_vm1 = vcmask (!%p138_p2), 1039360   ;;  %vm470_vm2 = vcmask (!%p138_p2), 1006592  }
   0x6   : > { %141 = sbr.rel (%p138_p2) target bundleno = 728 (0x2d8), region = 32  ;;  %1036 = vmatprep.mubr.msk.bf16.mxu1 (!%p138_p2), %vm246_vm0, %v1121_v0  ;;  %s1152_s21 = smov (!%p138_p2), 127   ;;  %v1123_v3 = vld [vmem:[%s1296_s1 + $0x40] sm:$0xff] (!%p138_p2)   ;;  %v1122_v16 = vld [vmem:[%s1296_s1 + $0x28] sm:$0xff] (!%p138_p2)   ;;  %v1126_v19 = vld [vmem:[%s1296_s1 + $0x30] sm:$0xff] (!%p138_p2)   ;;  %vm597_vm3 = vcmask (!%p138_p2), 998400  }
   0x7   : > { %1060 = vmatprep.mubr.msk.bf16.mxu0 (!%p138_p2), %vm246_vm0, %v1123_v3  ;;  %s1153_s24 = smov (!%p138_p2), 122   ;;  %v1125_v22 = vld [vmem:[%s1296_s1 + $0x48] sm:$0xff] (!%p138_p2)   ;;  %v1128_v23 = vld [vmem:[%s1296_s1 + $0x50] sm:$0xff] (!%p138_p2)   ;;  %v1127_v27 = vld [vmem:[%s1296_s1 + $0x38] sm:$0xff] (!%p138_p2)  }
   0x8   : > { %v1131_v28 = vld [vmem:[%s1296_s1] sm:$0xff] (!%p138_p2)   ;;  %v1130_v32 = vld [vmem:[%s1296_s1 + $0x58] sm:$0xff] (!%p138_p2)   ;;  %v1132_v34 = vld [vmem:[%s1296_s1 + $0x8] sm:$0xff] (!%p138_p2)  }
   0x9   : > { %v1133_v33 = vld [vmem:[%s1296_s1 + $0x60] sm:$0xff] (!%p138_p2)   ;;  %v1135_v35 = vld [vmem:[%s1296_s1 + $0x10] sm:$0xff] (!%p138_p2)   ;;  %v1134_v36 = vld [vmem:[%s1296_s1 + $0x68] sm:$0xff] (!%p138_p2)  }
   0xa   : > { %v1137_v37 = vld [vmem:[%s1296_s1 + $0x70] sm:$0xff] (!%p138_p2)   ;;  %v1136_v38 = vld [vmem:[%s1296_s1 + $0x18] sm:$0xff] (!%p138_p2)   ;;  %v1269_v45 = vld [vmem:[%s1297_s2] ss:$0 sm:$0xff] (!%p138_p2) }
   0xb   : > { %v1138_v39 = vld [vmem:[%s1296_s1 + $0x78] sm:$0xff] (!%p138_p2)  }
   0xd   : > { %s1300_s13 = smov (!%p161_p3, %s893_s13), 1 }
   0xe   : > { %s975_s14 = sshll.u32 %s1300_s13, 5 }
   0xf   : > { %s1190_s17 = scalar_lea.vmem %s1295_s0, %s975_s14  ;;  %s170_s6 = scalar_lea.vmem %s1298_s3, %s975_s14 }
  0x10   : > { %v1115_v1 = vld [vmem:[%s1190_s17] ss:$8 sps:$4 sm:$0xff]   ;;  %v1117_v2 = vld [vmem:[%s1190_s17 + $0x4] ss:$8 sps:$4 sm:$0xff]   ;;  %v1118_v4 = vld [vmem:[%s1190_s17 + $0x14] ss:$8 sps:$4 sm:$0xff]  }
  0x11   : > { %462 = vrot.lane.b32.xlu1 %v1115_v1, %s1151_s20  ;;  %233 = vrot.lane.b32.xlu0 %v1115_v1, %s1152_s21  ;;  %v1120_v5 = vld [vmem:[%s1190_s17 + $0x10] ss:$8 sps:$4 sm:$0xff]   ;;  %v1124_v14 = vld [vmem:[%s1190_s17] ss:$8 sps:$4 sm:$0xff]  }
  0x12   : > { %v1129_v20 = vld [vmem:[%s1190_s17 + $0x10] ss:$8 sps:$4 sm:$0xff]  }
  0x15   : > { %464 = vrot.lane.b32.xlu1 %v1117_v2, %s1151_s20  ;;  %235 = vrot.lane.b32.xlu0 %v1117_v2, %s1152_s21 }
  0x19   : > { %239 = vrot.lane.b32.xlu1 %v1118_v4, %s1152_s21  ;;  %237 = vrot.lane.b32.xlu0 %v1120_v5, %s1152_s21 }
  0x1d   : > { %468 = vrot.lane.b32.xlu1 %v1118_v4, %s1151_s20  ;;  %466 = vrot.lane.b32.xlu0 %v1120_v5, %s1151_s20 }
  0x21   : > { %591 = vrot.lane.b32.xlu1 %v1117_v2, %s1153_s24  ;;  %589 = vrot.lane.b32.xlu0 %v1115_v1, %s1153_s24 }
  0x25   : > { %595 = vrot.lane.b32.xlu1 %v1118_v4, %s1153_s24  ;;  %593 = vrot.lane.b32.xlu0 %v1120_v5, %s1153_s24 }
  0x83   : > { %v463_v6 = vpop.permute.xlu1 %462  ;;  %v234_v7 = vpop.permute.xlu0 %233 }
  0x87   : > { %v465_v8 = vpop.permute.xlu1 %464  ;;  %v236_v9 = vpop.permute.xlu0 %235 }
  0x88   : > { %v242_v10 = vsel %vm241_vm1, %v234_v7, %v236_v9  ;;  %v471_v11 = vsel %vm470_vm2, %v463_v6, %v465_v8 }
  0x89   : > { %1032 = vmatprep.subr.bf16.mxu1 %v242_v10  ;;  %1056 = vmatprep.subr.bf16.mxu0 %v471_v11 }
  0x8a   : > { %1033 = vmatpush3.bf16.msra.mxu1 %v242_v10  ;;  %1057 = vmatpush3.bf16.msra.mxu0 %v471_v11 }
  0x8b   : > { %v240_v12 = vpop.permute.xlu1 %239  ;;  %v238_v13 = vpop.permute.xlu0 %237 }
  0x8c   : > { %v243_v15 = vsel %vm241_vm1, %v238_v13, %v240_v12 }
  0x8d   : > { %1034 = vmatprep.subr.bf16.mxu1 %v243_v15 }
  0x8e   : > { %1035 = vmatpush3.bf16.msra.mxu1 %v243_v15 }
  0x8f   : > { %v469_v17 = vpop.permute.xlu1 %468  ;;  %v467_v18 = vpop.permute.xlu0 %466  ;;  %1044 = vmatprep.subr.bf16.mxu1 %v1124_v14 }
  0x90   : > { %v472_v21 = vsel %vm470_vm2, %v467_v18, %v469_v17 }
  0x91   : > { %1037 = vmatmul.mubr.msk.bf16.vlgmr.msra.gmra.mrb[0].mxu1 %vm246_vm0, %v1122_v16  ;;  %1058 = vmatprep.subr.bf16.mxu0 %v472_v21 }
  0x92   : > { %1059 = vmatpush3.bf16.msra.mxu0 %v472_v21  ;;  %1045 = vmatpush3.bf16.msra.mxu1 %v1124_v14 }
  0x93   : > { %v592_v24 = vpop.permute.xlu1 %591  ;;  %v590_v25 = vpop.permute.xlu0 %589  ;;  %1040 = vmatprep.mubr.msk.bf16.mxu1 %vm246_vm0, %v1126_v19  ;;  %1046 = vmatprep.subr.bf16.mxu1 %v1129_v20 }
  0x94   : > { %v598_v26 = vsel %vm597_vm3, %v590_v25, %v592_v24 }
  0x95   : > { %1061 = vmatmul.mubr.msk.bf16.vlgmr.msra.gmra.mrb[0].mxu0 %vm246_vm0, %v1125_v22  ;;  %1068 = vmatprep.subr.bf16.mxu0 %v598_v26 }
  0x96   : > { %1069 = vmatpush3.bf16.msra.mxu0 %v598_v26  ;;  %1064 = vmatprep.mubr.msk.bf16.mxu0 %vm246_vm0, %v1128_v23 }
  0x97   : > { %v596_v29 = vpop.permute.xlu1 %595  ;;  %v594_v30 = vpop.permute.xlu0 %593  ;;  %1047 = vmatpush3.bf16.msra.mxu1 %v1129_v20 }
  0x98   : > { %v599_v31 = vsel %vm597_vm3, %v594_v30, %v596_v29 }
  0x99   : > { %1041 = vmatmul.mubr.msk.bf16.gmra.mrb[4].mxu1 %vm246_vm0, %v1127_v27  ;;  %1070 = vmatprep.subr.bf16.mxu0 %v599_v31 }
  0x9a   : > { %1071 = vmatpush3.bf16.msra.mxu0 %v599_v31  ;;  %1048 = vmatprep.mubr.msk.bf16.mxu1 %vm246_vm0, %v1131_v28 }
  0x9d   : > { %1065 = vmatmul.mubr.msk.bf16.gmra.mrb[4].mxu0 %vm246_vm0, %v1130_v32 }
  0x9e   : > { %1072 = vmatprep.mubr.msk.bf16.mxu0 %vm246_vm0, %v1133_v33 }
  0xa1   : > { %1049 = vmatmul.mubr.msk.bf16.vlgmr.msra.gmra.mrb[0].mxu1 %vm246_vm0, %v1132_v34 }
  0xa2   : > { %1052 = vmatprep.mubr.msk.bf16.mxu1 %vm246_vm0, %v1135_v35 }
  0xa5   : > { %1073 = vmatmul.mubr.msk.bf16.vlgmr.msra.gmra.mrb[0].mxu0 %vm246_vm0, %v1134_v36 }
  0xa6   : > { %1076 = vmatprep.mubr.msk.bf16.mxu0 %vm246_vm0, %v1137_v37 }
  0xa9   : > { %1053 = vmatmul.mubr.msk.bf16.gmra.mrb[4].mxu1 %vm246_vm0, %v1136_v38 }
  0xad   : > { %1077 = vmatmul.mubr.msk.bf16.gmra.mrb[4].mxu0 %vm246_vm0, %v1138_v39 }
 0x174   : > { %v1050_v40 = vpop.f32.mrb[0].mxu1 }
 0x175   : > { %v402_v41 = vpop.f32.mrb[1].mxu1 }
 0x176   : > { %v1051_v42 = vpop.f32.mrb[2].mxu1 }
 0x177   : > { %v405_v43 = vpop.f32.mrb[3].mxu1 }
 0x178   : > { %v1074_v44 = vpop.f32.mrb[0].mxu0 }
 0x179   : > { %v1080_v46 = vadd.f32 %v1074_v44, %v1050_v40  ;;  %v648_v47 = vpop.f32.mrb[1].mxu0 }
 0x17a   : > { %v1081_v48 = vadd.f32 %v648_v47, %v402_v41  ;;  %v1075_v49 = vpop.f32.mrb[2].mxu0 }
 0x17b   : > { %v1082_v50 = vadd.f32 %v1075_v49, %v1051_v42  ;;  %v651_v51 = vpop.f32.mrb[3].mxu0  ;;  %v702_v52 = vmul.f32 %v1080_v46, %v1269_v45 }
 0x17c   : > { %v1083_v53 = vadd.f32 %v651_v51, %v405_v43  ;;  %v1054_v54 = vpop.f32.mrb[4].mxu1  ;;  %v694_v59 = vmul.f32 %v1081_v48, %v1269_v45 }
 0x17d   : > { %704 = vadd.xlane.f32.xlu0 %v702_v52  ;;  %v418_v55 = vpop.f32.mrb[5].mxu1  ;;  %v703_v3 = vmul.f32 %v1082_v50, %v1269_v45 }
 0x17e   : > { %v1055_v56 = vpop.f32.mrb[6].mxu1  ;;  %v695_v57 = vmul.f32 %v1083_v53, %v1269_v45 }
 0x17f   : > { %v421_v58 = vpop.f32.mrb[7].mxu1 }
 0x180   : > { %v1078_v60 = vpop.f32.mrb[4].mxu0  ;;  %698 = vadd.xlane.f32.xlu1 %v695_v57 }
 0x181   : > { %v1084_v61 = vadd.f32 %v1078_v60, %v1054_v54  ;;  %v664_v62 = vpop.f32.mrb[5].mxu0  ;;  %696 = vadd.xlane.f32.xlu0 %v694_v59 }
 0x182   : > { %v1085_v63 = vadd.f32 %v664_v62, %v418_v55  ;;  %v1079_v0 = vpop.f32.mrb[6].mxu0 }
 0x183   : > { %v1086_v1 = vadd.f32 %v1079_v0, %v1055_v56  ;;  %v667_v2 = vpop.f32.mrb[7].mxu0  ;;  %v718_v7 = vmul.f32 %v1084_v61, %v1269_v45 }
 0x184   : > { %v1087_v4 = vadd.f32 %v667_v2, %v421_v58  ;;  %v710_v5 = vmul.f32 %v1085_v63, %v1269_v45 }
 0x185   : > { %706 = vadd.xlane.f32.xlu0 %v703_v3  ;;  %v719_v8 = vmul.f32 %v1086_v1, %v1269_v45 }
 0x186   : > { %712 = vadd.xlane.f32.xlu1 %v710_v5  ;;  %v711_v6 = vmul.f32 %v1087_v4, %v1269_v45 }
 0x189   : > { %714 = vadd.xlane.f32.xlu0 %v711_v6 }
 0x18a   : > { %720 = vadd.xlane.f32.xlu1 %v718_v7 }
 0x18d   : > { %722 = vadd.xlane.f32.xlu0 %v719_v8 }
 0x20a   : > { %v705_v9 = vpop.xlane.xlu0 %704 }
 0x20d   : > { %v699_v11 = vpop.xlane.xlu1 %698 }
 0x20e   : > { %v697_v10 = vpop.xlane.xlu0 %696 }
 0x20f   : > { %v708_v14 = vadd.f32 %v705_v9, %v697_v10 }
 0x212   : > { %v707_v12 = vpop.xlane.xlu0 %706 }
 0x213   : > { %v713_v13 = vpop.xlane.xlu1 %712  ;;  %v709_v17 = vadd.f32 %v707_v12, %v699_v11 }
 0x214   : > { %v716_v15 = vadd.f32 %v713_v13, %v708_v14 }
 0x216   : > { %v715_v16 = vpop.xlane.xlu0 %714 }
 0x217   : > { %v721_v18 = vpop.xlane.xlu1 %720  ;;  %v717_v20 = vadd.f32 %v715_v16, %v709_v17 }
 0x218   : > { %v724_v19 = vadd.f32 %v721_v18, %v716_v15 }
 0x21a   : > { %v726_v21 = vmul.f32 0.015625, %v724_v19  ;;  %v723_v22 = vpop.xlane.xlu0 %722 }
 0x21b   : > { %v725_v23 = vadd.f32 %v723_v22, %v717_v20 }
 0x21c   : > { %v728_v24 = vsub.f32 %v1081_v48, %v726_v21  ;;  %v740_v25 = vsub.f32 %v1080_v46, %v726_v21  ;;  %v752_v32 = vsub.f32 %v1085_v63, %v726_v21  ;;  %v764_v39 = vsub.f32 %v1084_v61, %v726_v21 }
 0x21d   : > { %v727_v26 = vmul.f32 0.015625, %v725_v23 }
 0x21e   : > { %v730_v27 = vmul.f32 %v1269_v45, %v728_v24  ;;  %v742_v31 = vmul.f32 %v1269_v45, %v740_v25  ;;  %v754_v38 = vmul.f32 %v1269_v45, %v752_v32  ;;  %v766_v44 = vmul.f32 %v1269_v45, %v764_v39 }
 0x21f   : > { %v729_v28 = vsub.f32 %v1083_v53, %v727_v26  ;;  %v741_v29 = vsub.f32 %v1082_v50, %v727_v26  ;;  %v753_v36 = vsub.f32 %v1087_v4, %v727_v26  ;;  %v765_v42 = vsub.f32 %v1086_v1, %v727_v26 }
 0x220   : > { %v732_v30 = vmul.f32 %v730_v27, %v730_v27  ;;  %v744_v37 = vmul.f32 %v742_v31, %v742_v31  ;;  %v756_v43 = vmul.f32 %v754_v38, %v754_v38  ;;  %v768_v48 = vmul.f32 %v766_v44, %v766_v44 }
 0x221   : > { %v731_v33 = vmul.f32 %v1269_v45, %v729_v28  ;;  %v743_v35 = vmul.f32 %v1269_v45, %v741_v29  ;;  %v755_v41 = vmul.f32 %v1269_v45, %v753_v36  ;;  %v767_v47 = vmul.f32 %v1269_v45, %v765_v42 }
 0x222   : > { %734 = vadd.xlane.f32.xlu1 %v732_v30 }
 0x223   : > { %v733_v34 = vmul.f32 %v731_v33, %v731_v33  ;;  %v745_v40 = vmul.f32 %v743_v35, %v743_v35  ;;  %v757_v46 = vmul.f32 %v755_v41, %v755_v41  ;;  %v769_v49 = vmul.f32 %v767_v47, %v767_v47 }
 0x225   : > { %736 = vadd.xlane.f32.xlu0 %v733_v34 }
 0x226   : > { %746 = vadd.xlane.f32.xlu1 %v744_v37 }
 0x229   : > { %748 = vadd.xlane.f32.xlu0 %v745_v40 }
 0x22a   : > { %758 = vadd.xlane.f32.xlu1 %v756_v43 }
 0x22d   : > { %760 = vadd.xlane.f32.xlu0 %v757_v46 }
 0x22e   : > { %770 = vadd.xlane.f32.xlu1 %v768_v48 }
 0x231   : > { %772 = vadd.xlane.f32.xlu0 %v769_v49 }
 0x2af   : > { %v735_v50 = vpop.xlane.xlu1 %734 }
 0x2b2   : > { %v737_v51 = vpop.xlane.xlu0 %736 }
 0x2b3   : > { %v747_v52 = vpop.xlane.xlu1 %746 }
 0x2b4   : > { %v750_v55 = vadd.f32 %v747_v52, %v735_v50 }
 0x2b6   : > { %v749_v53 = vpop.xlane.xlu0 %748 }
 0x2b7   : > { %v759_v54 = vpop.xlane.xlu1 %758  ;;  %v751_v58 = vadd.f32 %v749_v53, %v737_v51 }
 0x2b8   : > { %v762_v56 = vadd.f32 %v759_v54, %v750_v55 }
 0x2ba   : > { %v761_v57 = vpop.xlane.xlu0 %760 }
 0x2bb   : > { %v771_v59 = vpop.xlane.xlu1 %770  ;;  %v763_v61 = vadd.f32 %v761_v57, %v751_v58 }
 0x2bc   : > { %v774_v60 = vadd.f32 %v771_v59, %v762_v56 }
 0x2be   : > { %v776_v62 = vmul.f32 0.015625, %v774_v60  ;;  %v773_v63 = vpop.xlane.xlu0 %772 }
 0x2bf   : > { %v775_v45 = vadd.f32 %v773_v63, %v763_v61 }
 0x2c0   : > { %v778_v0 = vadd.f32 1e-05, %v776_v62 }
 0x2c1   : > { %v777_v1 = vmul.f32 0.015625, %v775_v45 }
 0x2c2   : > { %1139 = vrsqrt.f32 %v778_v0 }
 0x2c3   : > { %v779_v2 = vadd.f32 1e-05, %v777_v1 }
 0x2c5   : > { %1141 = vrsqrt.f32 %v779_v2 }
 0x2cc   : > { %v1140_v3 = vpop.eup %1139 }
 0x2cd   : > { %v782_v4 = vmul.f32 %v1140_v3, %v728_v24  ;;  %v796_v5 = vmul.f32 %v1140_v3, %v740_v25  ;;  %v810_v6 = vmul.f32 %v1140_v3, %v752_v32  ;;  %v824_v7 = vmul.f32 %v1140_v3, %v764_v39 }
 0x2cf   : > { %v1142_v8 = vpop.eup %1141  ;;  %v784_v13 = vmax.f32 %v782_v4, 0.0  ;;  %v798_v14 = vmax.f32 %v796_v5, 0.0  ;;  %v812_v15 = vmax.f32 %v810_v6, 0.0  ;;  %v826_v16 = vmax.f32 %v824_v7, 0.0 }
 0x2d0   : > { %v783_v9 = vmul.f32 %v1142_v8, %v729_v28  ;;  %v797_v10 = vmul.f32 %v1142_v8, %v741_v29  ;;  %v811_v11 = vmul.f32 %v1142_v8, %v753_v36  ;;  %v825_v12 = vmul.f32 %v1142_v8, %v765_v42 }
 0x2d2   : > { %v785_v17 = vmax.f32 %v783_v9, 0.0  ;;  %v799_v18 = vmax.f32 %v797_v10, 0.0  ;;  %v813_v19 = vmax.f32 %v811_v11, 0.0  ;;  %v827_v20 = vmax.f32 %v825_v12, 0.0 }
 0x2d4   : > { %v988_v21 = vpack.c.bf16 %v785_v17, %v784_v13  ;;  %v993_v22 = vpack.c.bf16 %v799_v18, %v798_v14  ;;  %v998_v23 = vpack.c.bf16 %v813_v19, %v812_v15  ;;  %v1003_v24 = vpack.c.bf16 %v827_v20, %v826_v16 }
 0x2d6   : > { %989 = vst [vmem:[%s170_s6] sm:$0xff] %v988_v21   ;;  %1005 = vst [vmem:[%s170_s6 + $0x8] sm:$0xff] %v993_v22  }
 0x2d7   : > { %1006 = vst [vmem:[%s170_s6 + $0x10] sm:$0xff] %v998_v23   ;;  %1007 = vst [vmem:[%s170_s6 + $0x18] sm:$0xff] %v1003_v24  }
 0x2d8 PF: > { %s13_s12 = sadd.s32 1, %s1149_s12  }
 0x2d9   : > { %p10_p4 = scmp.ge.s32.totalorder %s13_s12, 4  }
 0x2db   :  { %12 = sbr.rel (!%p10_p4) target bundleno = 1 (0x1), region = 65 }

// kernel: generator.11
= control target key start
LH: loop header
LB: loop body
LE: loop exit
PB: predicated region body
PF: predicated region fallthrough
CT: control target
= control target key end

     0   :  { %s2627_s15 = smov 0   ;;  %s2930_s0 = inlined_call_operand.vmem [shape: bf16[2,32,256], index: 0, kind: input, shape index: {}]   ;;  %s2931_s1 = inlined_call_operand.vmem [shape: bf16[9,32,32], index: 1, kind: input, shape index: {}]   ;;  %s2932_s2 = inlined_call_operand.vmem [shape: bf16[9,32,32], index: 2, kind: input, shape index: {}]   ;;  %s2933_s3 = inlined_call_operand.vmem [shape: f32[1,128], index: 3, kind: input, shape index: {}]   ;;  %s2934_s4 = inlined_call_operand.vmem [shape: bf16[2,32,128], index: 4, kind: output, shape index: {}]  }
   0x1 LB: > { %s2024_s16 = sadd.s32 4294967295, %s2586_s15   ;;  %p2028_p0 = scmp.ge.s32.totalorder %s2586_s15, 1  ;;  %s2586_s15 = sphi %s2627_s15, %s14_s15  }
   0x2   : > { %p162_p1 = scmp.lt.s32.totalorder %s2586_s15, 3 }
   0x4   : > { %p163_p2 = pnand %p2028_p0, %p162_p1 }
   0x5   : > { %p188_p3 = scmp.lt.s32.totalorder (!%p163_p2), %s2024_s16, 1  ;;  %vm256_vm0 = vcmask (!%p163_p2), 261120   ;;  %s2588_s21 = smov (!%p163_p2), 127   ;;  %v2526_v5 = vld [vmem:[%s2931_s1 + $0x10] sm:$0xff] (!%p163_p2)   ;;  %vm251_vm1 = vcmask (!%p163_p2), 1039360   ;;  %v2527_v14 = vld [vmem:[%s2931_s1 + $0x18] sm:$0xff] (!%p163_p2)  }
   0x6   : > { %166 = sbr.rel (%p163_p2) target bundleno = 1538 (0x602), region = 36  ;;  %2275 = vmatprep.mubr.msk.bf16.mxu0 (!%p163_p2), %vm256_vm0, %v2526_v5  ;;  %s2589_s24 = smov (!%p163_p2), 126   ;;  %v2530_v15 = vld [vmem:[%s2931_s1] sm:$0xff] (!%p163_p2)   ;;  %vm412_vm2 = vcmask (!%p163_p2), 1031168   ;;  %v2531_v20 = vld [vmem:[%s2931_s1 + $0x8] sm:$0xff] (!%p163_p2)   ;;  %vm499_vm3 = vcmask (!%p163_p2), 998400  }
   0x7   : > { %s2590_s25 = smov (!%p163_p2), 122   ;;  %s2591_s26 = smov (!%p163_p2), 121   ;;  %v2532_v23 = vld [vmem:[%s2931_s1 + $0x20] sm:$0xff] (!%p163_p2)   ;;  %v2533_v28 = vld [vmem:[%s2931_s1 + $0x28] sm:$0xff] (!%p163_p2)   ;;  %v2534_v31 = vld [vmem:[%s2931_s1 + $0x30] sm:$0xff] (!%p163_p2)   ;;  %vm586_vm4 = vcmask (!%p163_p2), 990208  }
   0x8   : > { %s2592_s27 = smov (!%p163_p2), 120   ;;  %s2593_s28 = smov (!%p163_p2), 116   ;;  %v2535_v36 = vld [vmem:[%s2931_s1 + $0x38] sm:$0xff] (!%p163_p2)   ;;  %v2536_v39 = vld [vmem:[%s2931_s1 + $0x40] sm:$0xff] (!%p163_p2)   ;;  %vm673_vm5 = vcmask (!%p163_p2), 982016   ;;  %v2537_v44 = vld [vmem:[%s2931_s1 + $0x48] sm:$0xff] (!%p163_p2)  }
   0x9   : > { %s2594_s29 = smov (!%p163_p2), 115   ;;  %s2595_s30 = smov (!%p163_p2), 114   ;;  %v2538_v47 = vld [vmem:[%s2931_s1 + $0x50] sm:$0xff] (!%p163_p2)   ;;  %vm760_vm6 = vcmask (!%p163_p2), 949248   ;;  %v2539_v52 = vld [vmem:[%s2931_s1 + $0x58] sm:$0xff] (!%p163_p2)   ;;  %v2540_v55 = vld [vmem:[%s2931_s1 + $0x60] sm:$0xff] (!%p163_p2)  }
   0xa   : > { %vm847_vm7 = vcmask (!%p163_p2), 941056   ;;  %v2541_v60 = vld [vmem:[%s2931_s1 + $0x68] sm:$0xff] (!%p163_p2)   ;;  %v2542_v63 = vld [vmem:[%s2931_s1 + $0x70] sm:$0xff] (!%p163_p2)   ;;  %vm934_vm8 = vcmask (!%p163_p2), 932864   ;;  %v2543_v5 = vld [vmem:[%s2931_s1 + $0x78] sm:$0xff] (!%p163_p2)   ;;  %s2599_s5 = smov (!%p163_p2), 5  }
   0xb   : > { %s2600_s6 = smov (!%p163_p2), 1   ;;  %s2601_s7 = smov (!%p163_p2), 123   ;;  %vm1109_vm9 = vcmask (!%p163_p2), 48128   ;;  %vm1187_vm10 = vcmask (!%p163_p2), 56320   ;;  %vm1270_vm11 = vcmask (!%p163_p2), 39936   ;;  %vm1357_vm12 = vcmask (!%p163_p2), 7168  }
   0xc   : > { %vm1612_vm13 = vcmask (!%p163_p2), 1006592  }
   0xd   : > { %s2936_s16 = smov (!%p188_p3, %s2024_s16), 1 }
   0xe   : > { %s2182_s17 = sshll.u32 %s2936_s16, 5 }
   0xf   : > { %s2641_s20 = scalar_lea.vmem %s2930_s0, %s2182_s17 }
  0x10   : > { %v2521_v0 = vld [vmem:[%s2641_s20 + $0x10] ss:$8 sps:$4 sm:$0xff]   ;;  %v2645_v1 = vld [vmem:[%s2641_s20] sm:$0xff]  ;;  %v209_v2 = vld [vmem:[%s2641_s20 + $0x8] sm:$0xff] }
  0x11   : > { %247 = vrot.lane.b32.xlu1 %v2521_v0, %s2588_s21  ;;  %v2039_v3 = vcombine.low %v2645_v1, %v209_v2  ;;  %v2524_v4 = vld [vmem:[%s2641_s20 + $0x14] ss:$8 sps:$4 sm:$0xff]   ;;  %v2040_v6 = vcombine.high %v2645_v1, %v209_v2  ;;  %v2528_v13 = vld [vmem:[%s2641_s20] ss:$8 sps:$4 sm:$0xff]   ;;  %v2529_v16 = vld [vmem:[%s2641_s20 + $0x10] ss:$8 sps:$4 sm:$0xff]  }
  0x13   : > { %243 = vrot.lane.b32.xlu0 %v2039_v3, %s2588_s21 }
  0x15   : > { %249 = vrot.lane.b32.xlu1 %v2524_v4, %s2588_s21 }
  0x17   : > { %245 = vrot.lane.b32.xlu0 %v2040_v6, %s2588_s21 }
  0x19   : > { %406 = vrot.lane.b32.xlu1 %v2040_v6, %s2589_s24 }
  0x1b   : > { %404 = vrot.lane.b32.xlu0 %v2039_v3, %s2589_s24 }
  0x1d   : > { %410 = vrot.lane.b32.xlu1 %v2524_v4, %s2589_s24 }
  0x1f   : > { %408 = vrot.lane.b32.xlu0 %v2521_v0, %s2589_s24 }
  0x21   : > { %493 = vrot.lane.b32.xlu1 %v2040_v6, %s2590_s25 }
  0x23   : > { %491 = vrot.lane.b32.xlu0 %v2039_v3, %s2590_s25 }
  0x25   : > { %497 = vrot.lane.b32.xlu1 %v2524_v4, %s2590_s25 }
  0x27   : > { %495 = vrot.lane.b32.xlu0 %v2521_v0, %s2590_s25 }
  0x29   : > { %580 = vrot.lane.b32.xlu1 %v2040_v6, %s2591_s26 }
  0x2b   : > { %578 = vrot.lane.b32.xlu0 %v2039_v3, %s2591_s26 }
  0x2d   : > { %584 = vrot.lane.b32.xlu1 %v2524_v4, %s2591_s26 }
  0x2f   : > { %582 = vrot.lane.b32.xlu0 %v2521_v0, %s2591_s26 }
  0x31   : > { %667 = vrot.lane.b32.xlu1 %v2040_v6, %s2592_s27 }
  0x33   : > { %665 = vrot.lane.b32.xlu0 %v2039_v3, %s2592_s27 }
  0x35   : > { %671 = vrot.lane.b32.xlu1 %v2524_v4, %s2592_s27 }
  0x37   : > { %669 = vrot.lane.b32.xlu0 %v2521_v0, %s2592_s27  ;;  %s2597_s27 = smov 6  }
  0x39   : > { %754 = vrot.lane.b32.xlu1 %v2040_v6, %s2593_s28 }
  0x3b   : > { %752 = vrot.lane.b32.xlu0 %v2039_v3, %s2593_s28 }
  0x3d   : > { %758 = vrot.lane.b32.xlu1 %v2524_v4, %s2593_s28 }
  0x3f   : > { %756 = vrot.lane.b32.xlu0 %v2521_v0, %s2593_s28 }
  0x41   : > { %841 = vrot.lane.b32.xlu1 %v2040_v6, %s2594_s29 }
  0x43   : > { %839 = vrot.lane.b32.xlu0 %v2039_v3, %s2594_s29 }
  0x45   : > { %845 = vrot.lane.b32.xlu1 %v2524_v4, %s2594_s29 }
  0x47   : > { %843 = vrot.lane.b32.xlu0 %v2521_v0, %s2594_s29 }
  0x49   : > { %928 = vrot.lane.b32.xlu1 %v2040_v6, %s2595_s30 }
  0x4b   : > { %926 = vrot.lane.b32.xlu0 %v2039_v3, %s2595_s30 }
  0x4d   : > { %932 = vrot.lane.b32.xlu1 %v2524_v4, %s2595_s30 }
  0x4f   : > { %930 = vrot.lane.b32.xlu0 %v2521_v0, %s2595_s30  ;;  %s2598_s30 = smov 7  }
  0x83   : > { %v248_v7 = vpop.permute.xlu1 %247 }
  0x85   : > { %v244_v8 = vpop.permute.xlu0 %243 }
  0x87   : > { %v250_v9 = vpop.permute.xlu1 %249 }
  0x88   : > { %v253_v12 = vsel %vm251_vm1, %v248_v7, %v250_v9 }
  0x89   : > { %v246_v10 = vpop.permute.xlu0 %245 }
  0x8a   : > { %v252_v11 = vsel %vm251_vm1, %v244_v8, %v246_v10  ;;  %v2544_v8 = vld [vmem:[%s2931_s1 + $0x80] sm:$0xff]   ;;  %v2545_v10 = vld [vmem:[%s2931_s1 + $0x88] sm:$0xff]  }
  0x8b   : > { %2271 = vmatprep.subr.bf16.mxu0 %v252_v11  ;;  %v407_v17 = vpop.permute.xlu1 %406 }
  0x8c   : > { %2272 = vmatpush3.bf16.msra.mxu0 %v252_v11  ;;  %v2746_v11 = vld [vmem:[%s2933_s3] ss:$0 sm:$0xff] }
  0x8d   : > { %2273 = vmatprep.subr.bf16.mxu0 %v253_v12  ;;  %v405_v18 = vpop.permute.xlu0 %404 }
  0x8e   : > { %v413_v19 = vsel %vm412_vm2, %v405_v18, %v407_v17 }
  0x8f   : > { %v411_v21 = vpop.permute.xlu1 %410 }
  0x90   : > { %2274 = vmatpush3.bf16.msra.mxu0 %v253_v12 }
  0x91   : > { %2279 = vmatprep.subr.bf16.mxu0 %v2528_v13  ;;  %v409_v22 = vpop.permute.xlu0 %408 }
  0x92   : > { %v414_v24 = vsel %vm412_vm2, %v409_v22, %v411_v21 }
  0x93   : > { %2276 = vmatmul.mubr.msk.bf16.vlgmr.msra.gmra.mrb[0].mxu0 %vm256_vm0, %v2527_v14  ;;  %v494_v25 = vpop.permute.xlu1 %493 }
  0x94   : > { %2280 = vmatpush3.bf16.msra.mxu0 %v2528_v13  ;;  %2283 = vmatprep.mubr.msk.bf16.mxu0 %vm256_vm0, %v2530_v15 }
  0x95   : > { %2281 = vmatprep.subr.bf16.mxu0 %v2529_v16  ;;  %v492_v26 = vpop.permute.xlu0 %491 }
  0x96   : > { %v500_v27 = vsel %vm499_vm3, %v492_v26, %v494_v25 }
  0x97   : > { %v498_v29 = vpop.permute.xlu1 %497 }
  0x98   : > { %2282 = vmatpush3.bf16.msra.mxu0 %v2529_v16 }
  0x99   : > { %2287 = vmatprep.subr.bf16.mxu0 %v413_v19  ;;  %v496_v30 = vpop.permute.xlu0 %495 }
  0x9a   : > { %v501_v32 = vsel %vm499_vm3, %v496_v30, %v498_v29 }
  0x9b   : > { %v581_v33 = vpop.permute.xlu1 %580 }
  0x9d   : > { %v579_v34 = vpop.permute.xlu0 %578 }
  0x9e   : > { %v587_v35 = vsel %vm586_vm4, %v579_v34, %v581_v33 }
  0x9f   : > { %2284 = vmatmul.mubr.msk.bf16.vlgmr.msra.gmra.mrb[0].mxu0 %vm256_vm0, %v2531_v20  ;;  %v585_v37 = vpop.permute.xlu1 %584 }
  0xa0   : > { %2288 = vmatpush3.bf16.msra.mxu0 %v413_v19  ;;  %2291 = vmatprep.mubr.msk.bf16.mxu0 %vm256_vm0, %v2532_v23 }
  0xa1   : > { %2289 = vmatprep.subr.bf16.mxu0 %v414_v24  ;;  %v583_v38 = vpop.permute.xlu0 %582 }
  0xa2   : > { %v588_v40 = vsel %vm586_vm4, %v583_v38, %v585_v37 }
  0xa3   : > { %v668_v41 = vpop.permute.xlu1 %667 }
  0xa4   : > { %2290 = vmatpush3.bf16.msra.mxu0 %v414_v24 }
  0xa5   : > { %2295 = vmatprep.subr.bf16.mxu0 %v500_v27  ;;  %v666_v42 = vpop.permute.xlu0 %665 }
  0xa6   : > { %v674_v43 = vsel %vm673_vm5, %v666_v42, %v668_v41 }
  0xa7   : > { %v672_v45 = vpop.permute.xlu1 %671 }
  0xa9   : > { %v670_v46 = vpop.permute.xlu0 %669 }
  0xaa   : > { %v675_v48 = vsel %vm673_vm5, %v670_v46, %v672_v45 }
  0xab   : > { %2292 = vmatmul.mubr.msk.bf16.vlgmr.msra.gmra.mrb[0].mxu0 %vm256_vm0, %v2533_v28  ;;  %v755_v49 = vpop.permute.xlu1 %754 }
  0xac   : > { %2296 = vmatpush3.bf16.msra.mxu0 %v500_v27  ;;  %2299 = vmatprep.mubr.msk.bf16.mxu0 %vm256_vm0, %v2534_v31 }
  0xad   : > { %2297 = vmatprep.subr.bf16.mxu0 %v501_v32  ;;  %v753_v50 = vpop.permute.xlu0 %752 }
  0xae   : > { %v761_v51 = vsel %vm760_vm6, %v753_v50, %v755_v49 }
  0xaf   : > { %v759_v53 = vpop.permute.xlu1 %758 }
  0xb0   : > { %2298 = vmatpush3.bf16.msra.mxu0 %v501_v32 }
  0xb1   : > { %2303 = vmatprep.subr.bf16.mxu0 %v587_v35  ;;  %v757_v54 = vpop.permute.xlu0 %756 }
  0xb2   : > { %v762_v56 = vsel %vm760_vm6, %v757_v54, %v759_v53 }
  0xb3   : > { %v842_v57 = vpop.permute.xlu1 %841 }
  0xb5   : > { %v840_v58 = vpop.permute.xlu0 %839 }
  0xb6   : > { %v848_v59 = vsel %vm847_vm7, %v840_v58, %v842_v57 }
  0xb7   : > { %2300 = vmatmul.mubr.msk.bf16.vlgmr.msra.gmra.mrb[0].mxu0 %vm256_vm0, %v2535_v36  ;;  %v846_v61 = vpop.permute.xlu1 %845 }
  0xb8   : > { %2304 = vmatpush3.bf16.msra.mxu0 %v587_v35  ;;  %2307 = vmatprep.mubr.msk.bf16.mxu0 %vm256_vm0, %v2536_v39 }
  0xb9   : > { %2305 = vmatprep.subr.bf16.mxu0 %v588_v40  ;;  %v844_v62 = vpop.permute.xlu0 %843 }
  0xba   : > { %v849_v0 = vsel %vm847_vm7, %v844_v62, %v846_v61  ;;  %v2546_v61 = vld [vmem:[%s2932_s2 + $0x10] sm:$0xff]  }
  0xbb   : > { %v929_v2 = vpop.permute.xlu1 %928  ;;  %2347 = vmatprep.mubr.msk.bf16.mxu1 %vm256_vm0, %v2546_v61 }
  0xbc   : > { %2306 = vmatpush3.bf16.msra.mxu0 %v588_v40  ;;  %v2596_v40 = vmov 0  }
  0xbd   : > { %2311 = vmatprep.subr.bf16.mxu0 %v674_v43  ;;  %v927_v3 = vpop.permute.xlu0 %926 }
  0xbe   : > { %v935_v4 = vsel %vm934_vm8, %v927_v3, %v929_v2 }
  0xbf   : > { %v933_v6 = vpop.permute.xlu1 %932 }
  0xc1   : > { %v931_v7 = vpop.permute.xlu0 %930 }
  0xc2   : > { %v936_v9 = vsel %vm934_vm8, %v931_v7, %v933_v6 }
  0xc3   : > { %2308 = vmatmul.mubr.msk.bf16.vlgmr.msra.gmra.mrb[0].mxu0 %vm256_vm0, %v2537_v44 }
  0xc4   : > { %2312 = vmatpush3.bf16.msra.mxu0 %v674_v43  ;;  %2315 = vmatprep.mubr.msk.bf16.mxu0 %vm256_vm0, %v2538_v47 }
  0xc5   : > { %2313 = vmatprep.subr.bf16.mxu0 %v675_v48 }
  0xc8   : > { %2314 = vmatpush3.bf16.msra.mxu0 %v675_v48 }
  0xc9   : > { %2319 = vmatprep.subr.bf16.mxu0 %v761_v51 }
  0xcf   : > { %2316 = vmatmul.mubr.msk.bf16.vlgmr.msra.gmra.mrb[0].mxu0 %vm256_vm0, %v2539_v52 }
  0xd0   : > { %2320 = vmatpush3.bf16.msra.mxu0 %v761_v51  ;;  %2323 = vmatprep.mubr.msk.bf16.mxu0 %vm256_vm0, %v2540_v55 }
  0xd1   : > { %2321 = vmatprep.subr.bf16.mxu0 %v762_v56 }
  0xd4   : > { %2322 = vmatpush3.bf16.msra.mxu0 %v762_v56 }
  0xd5   : > { %2327 = vmatprep.subr.bf16.mxu0 %v848_v59 }
  0xdb   : > { %2324 = vmatmul.mubr.msk.bf16.vlgmr.msra.gmra.mrb[0].mxu0 %vm256_vm0, %v2541_v60 }
  0xdc   : > { %2328 = vmatpush3.bf16.msra.mxu0 %v848_v59  ;;  %2331 = vmatprep.mubr.msk.bf16.mxu0 %vm256_vm0, %v2542_v63 }
  0xdd   : > { %2329 = vmatprep.subr.bf16.mxu0 %v849_v0 }
  0xe0   : > { %2330 = vmatpush3.bf16.msra.mxu0 %v849_v0 }
  0xe1   : > { %2335 = vmatprep.subr.bf16.mxu0 %v935_v4 }
  0xe7   : > { %2332 = vmatmul.mubr.msk.bf16.vlgmr.msra.gmra.mrb[0].mxu0 %vm256_vm0, %v2543_v5 }
  0xe8   : > { %2336 = vmatpush3.bf16.msra.mxu0 %v935_v4  ;;  %2339 = vmatprep.mubr.msk.bf16.mxu0 %vm256_vm0, %v2544_v8 }
  0xe9   : > { %2337 = vmatprep.subr.bf16.mxu0 %v936_v9 }
  0xec   : > { %2338 = vmatpush3.bf16.msra.mxu0 %v936_v9 }
  0xf3   : > { %2340 = vmatmul.mubr.msk.bf16.vlgmr.msra.gmra.mrb[0].mxu0 %vm256_vm0, %v2545_v10 }
 0x1c6   : > { %v2341_v12 = vpop.f32.mrb[0].mxu0 }
 0x1c7   : > { %v979_v13 = vpop.f32.mrb[1].mxu0  ;;  %v1006_v18 = vmul.f32 %v2341_v12, %v2746_v11 }
 0x1c8   : > { %v2342_v14 = vpop.f32.mrb[2].mxu0  ;;  %v1004_v15 = vmul.f32 %v2746_v11, %v979_v13 }
 0x1c9   : > { %v982_v16 = vpop.f32.mrb[3].mxu0  ;;  %v1007_v19 = vmul.f32 %v2342_v14, %v2746_v11 }
 0x1ca   : > { %v1005_v17 = vmul.f32 %v2746_v11, %v982_v16  ;;  %1008 = vadd.xlane.f32.xlu0 %v1004_v15 }
 0x1cc   : > { %1010 = vadd.xlane.f32.xlu1 %v1005_v17 }
 0x1ce   : > { %1012 = vadd.xlane.f32.xlu0 %v1006_v18  ;;  %v2547_v18 = vld [vmem:[%s2932_s2 + $0x18] sm:$0xff]  }
 0x1d2   : > { %1014 = vadd.xlane.f32.xlu0 %v1007_v19  ;;  %v2548_v19 = vld [vmem:[%s2932_s2] sm:$0xff]  }
 0x257   : > { %v1009_v20 = vpop.xlane.xlu0 %1008 }
 0x258   : > { %v1016_v21 = vmul.f32 0.0625, %v1009_v20 }
 0x259   : > { %v1011_v22 = vpop.xlane.xlu1 %1010 }
 0x25a   : > { %v1020_v23 = vsub.f32 %v979_v13, %v1016_v21  ;;  %v1017_v24 = vmul.f32 0.0625, %v1011_v22 }
 0x25b   : > { %v1013_v25 = vpop.xlane.xlu0 %1012 }
 0x25c   : > { %v1021_v26 = vsub.f32 %v982_v16, %v1017_v24  ;;  %v1018_v27 = vmul.f32 0.0625, %v1013_v25  ;;  %v1024_v28 = vmul.f32 %v2746_v11, %v1020_v23 }
 0x25e   : > { %v1022_v29 = vsub.f32 %v2341_v12, %v1018_v27  ;;  %v1028_v30 = vmul.f32 %v1024_v28, %v1024_v28  ;;  %v1025_v31 = vmul.f32 %v2746_v11, %v1021_v26  ;;  %v2549_v28 = vld [vmem:[%s2932_s2 + $0x8] sm:$0xff]  }
 0x25f   : > { %v1015_v32 = vpop.xlane.xlu0 %1014 }
 0x260   : > { %v1019_v33 = vmul.f32 0.0625, %v1015_v32  ;;  %1032 = vadd.xlane.f32.xlu1 %v1028_v30  ;;  %v1029_v34 = vmul.f32 %v1025_v31, %v1025_v31  ;;  %v1026_v35 = vmul.f32 %v2746_v11, %v1022_v29 }
 0x262   : > { %v1023_v36 = vsub.f32 %v2342_v14, %v1019_v33  ;;  %1034 = vadd.xlane.f32.xlu0 %v1029_v34  ;;  %v1030_v37 = vmul.f32 %v1026_v35, %v1026_v35  ;;  %v2551_v35 = vld [vmem:[%s2932_s2 + $0x28] sm:$0xff]  }
 0x264   : > { %1036 = vadd.xlane.f32.xlu1 %v1030_v37  ;;  %v1027_v38 = vmul.f32 %v2746_v11, %v1023_v36 }
 0x266   : > { %v1031_v39 = vmul.f32 %v1027_v38, %v1027_v38 }
 0x268   : > { %1038 = vadd.xlane.f32.xlu0 %v1031_v39 }
 0x275   : > { %1101 = vrot.lane.b32.xlu1 %v2596_v40, %s2597_s27 }
 0x279   : > { %1105 = vrot.lane.b32.xlu1 %v2596_v40, %s2597_s27 }
 0x2ed   : > { %v1033_v41 = vpop.xlane.xlu1 %1032 }
 0x2ee   : > { %v1040_v42 = vmul.f32 0.0625, %v1033_v41  ;;  %v2554_v41 = vld [vmem:[%s2932_s2 + $0x40] sm:$0xff]  }
 0x2ef   : > { %v1035_v43 = vpop.xlane.xlu0 %1034 }
 0x2f0   : > { %v1044_v44 = vadd.f32 1e-05, %v1040_v42  ;;  %v1041_v45 = vmul.f32 0.0625, %v1035_v43 }
 0x2f1   : > { %v1037_v46 = vpop.xlane.xlu1 %1036 }
 0x2f2   : > { %2564 = vrsqrt.f32 %v1044_v44  ;;  %v1045_v47 = vadd.f32 1e-05, %v1041_v45  ;;  %v1042_v48 = vmul.f32 0.0625, %v1037_v46  ;;  %v2555_v46 = vld [vmem:[%s2932_s2 + $0x48] sm:$0xff]  }
 0x2f4   : > { %2566 = vrsqrt.f32 %v1045_v47  ;;  %v1046_v49 = vadd.f32 1e-05, %v1042_v48  ;;  %v2556_v47 = vld [vmem:[%s2932_s2 + $0x50] sm:$0xff]  }
 0x2f5   : > { %v1039_v50 = vpop.xlane.xlu0 %1038  ;;  %v1102_v9 = vpop.permute.xlu1 %1101 }
 0x2f6   : > { %2568 = vrsqrt.f32 %v1046_v49  ;;  %v1043_v51 = vmul.f32 0.0625, %v1039_v50 }
 0x2f8   : > { %v1047_v52 = vadd.f32 1e-05, %v1043_v51 }
 0x2f9   : > { %v1106_v12 = vpop.permute.xlu1 %1105 }
 0x2fa   : > { %2570 = vrsqrt.f32 %v1047_v52 }
 0x2fc   : > { %v2565_v53 = vpop.eup %2564 }
 0x2fd   : > { %v1052_v54 = vmul.f32 %v2565_v53, %v1020_v23 }
 0x2fe   : > { %v2567_v55 = vpop.eup %2566 }
 0x2ff   : > { %v1056_v56 = vmax.f32 %v1052_v54, 0.0  ;;  %v1053_v57 = vmul.f32 %v2567_v55, %v1021_v26  ;;  %v2557_v54 = vld [vmem:[%s2932_s2 + $0x58] sm:$0xff]   ;;  %v2558_v55 = vld [vmem:[%s2932_s2 + $0x60] sm:$0xff]  }
 0x300   : > { %v2569_v58 = vpop.eup %2568 }
 0x301   : > { %v1057_v59 = vmax.f32 %v1053_v57, 0.0  ;;  %v1054_v60 = vmul.f32 %v2569_v58, %v1022_v29  ;;  %v1060_v62 = vmul.f32 %v2746_v11, %v1056_v56  ;;  %v2550_v29 = vld [vmem:[%s2932_s2 + $0x20] sm:$0xff]  }
 0x303   : > { %v1061_v63 = vmul.f32 %v2746_v11, %v1057_v59  ;;  %v1058_v3 = vmax.f32 %v1054_v60, 0.0 }
 0x304   : > { %v2571_v0 = vpop.eup %2570 }
 0x305   : > { %v2766_v2 = vpack.c.bf16 %v1061_v63, %v1060_v62  ;;  %v1055_v4 = vmul.f32 %v2571_v0, %v1023_v36  ;;  %v1062_v6 = vmul.f32 %v2746_v11, %v1058_v3  ;;  %v2552_v36 = vld [vmem:[%s2932_s2 + $0x30] sm:$0xff]   ;;  %v2559_v62 = vld [vmem:[%s2932_s2 + $0x68] sm:$0xff]  }
 0x306   : > { %v2560_v63 = vld [vmem:[%s2932_s2 + $0x70] sm:$0xff]  }
 0x307   : > { %v1059_v5 = vmax.f32 %v1055_v4, 0.0  ;;  %1103 = vrot.lane.b32.xlu0 %v2766_v2, %s2597_s27 }
 0x309   : > { %v1063_v7 = vmul.f32 %v2746_v11, %v1059_v5 }
 0x30b   : > { %v2772_v8 = vpack.c.bf16 %v1063_v7, %v1062_v6  ;;  %1179 = vrot.lane.b32.xlu0 %v2596_v40, %s2598_s30  ;;  %v2561_v6 = vld [vmem:[%s2932_s2 + $0x78] sm:$0xff]   ;;  %v2562_v7 = vld [vmem:[%s2932_s2 + $0x80] sm:$0xff]  }
 0x30d   : > { %1107 = vrot.lane.b32.xlu1 %v2772_v8, %s2597_s27 }
 0x30f   : > { %1183 = vrot.lane.b32.xlu0 %v2596_v40, %s2598_s30 }
 0x311   : > { %1181 = vrot.lane.b32.xlu1 %v2766_v2, %s2598_s30 }
 0x313   : > { %1262 = vrot.lane.b32.xlu0 %v2596_v40, %s2599_s5 }
 0x315   : > { %1185 = vrot.lane.b32.xlu1 %v2772_v8, %s2598_s30 }
 0x317   : > { %1266 = vrot.lane.b32.xlu0 %v2596_v40, %s2599_s5 }
 0x319   : > { %1264 = vrot.lane.b32.xlu1 %v2766_v2, %s2599_s5 }
 0x31b   : > { %1349 = vrot.lane.b32.xlu0 %v2596_v40, %s2600_s6 }
 0x31d   : > { %1268 = vrot.lane.b32.xlu1 %v2772_v8, %s2599_s5 }
 0x31f   : > { %1353 = vrot.lane.b32.xlu0 %v2596_v40, %s2600_s6 }
 0x321   : > { %1351 = vrot.lane.b32.xlu1 %v2766_v2, %s2600_s6 }
 0x323   : > { %1518 = vrot.lane.b32.xlu0 %v2766_v2, %s2588_s21 }
 0x325   : > { %1355 = vrot.lane.b32.xlu1 %v2772_v8, %s2600_s6 }
 0x327   : > { %1522 = vrot.lane.b32.xlu0 %v2772_v8, %s2588_s21 }
 0x329   : > { %1520 = vrot.lane.b32.xlu1 %v2596_v40, %s2588_s21 }
 0x32b   : > { %1604 = vrot.lane.b32.xlu0 %v2766_v2, %s2601_s7 }
 0x32d   : > { %1524 = vrot.lane.b32.xlu1 %v2596_v40, %s2588_s21 }
 0x32f   : > { %1608 = vrot.lane.b32.xlu0 %v2772_v8, %s2601_s7 }
 0x331   : > { %1606 = vrot.lane.b32.xlu1 %v2596_v40, %s2601_s7 }
 0x333   : > { %1691 = vrot.lane.b32.xlu0 %v2766_v2, %s2590_s25 }
 0x335   : > { %1610 = vrot.lane.b32.xlu1 %v2596_v40, %s2601_s7 }
 0x337   : > { %1695 = vrot.lane.b32.xlu0 %v2772_v8, %s2590_s25 }
 0x339   : > { %1693 = vrot.lane.b32.xlu1 %v2596_v40, %s2590_s25 }
 0x33b   : > { %1777 = vrot.lane.b32.xlu0 %v2766_v2, %s2591_s26 }
 0x33d   : > { %1697 = vrot.lane.b32.xlu1 %v2596_v40, %s2590_s25 }
 0x33f   : > { %1781 = vrot.lane.b32.xlu0 %v2772_v8, %s2591_s26 }
 0x341   : > { %1779 = vrot.lane.b32.xlu1 %v2596_v40, %s2591_s26 }
 0x345   : > { %1783 = vrot.lane.b32.xlu1 %v2596_v40, %s2591_s26  ;;  %v2553_v40 = vld [vmem:[%s2932_s2 + $0x38] sm:$0xff]  }
 0x379   : > { %v1104_v10 = vpop.permute.xlu0 %1103 }
 0x37a   : > { %v1110_v13 = vsel %vm1109_vm9, %v1102_v9, %v1104_v10 }
 0x37b   : > { %2343 = vmatprep.subr.bf16.mxu1 %v1110_v13 }
 0x37c   : > { %2344 = vmatpush3.bf16.msra.mxu1 %v1110_v13 }
 0x37d   : > { %v1180_v14 = vpop.permute.xlu0 %1179 }
 0x37f   : > { %v1108_v15 = vpop.permute.xlu1 %1107 }
 0x380   : > { %v1111_v16 = vsel %vm1109_vm9, %v1106_v12, %v1108_v15  ;;  %v2563_v12 = vld [vmem:[%s2932_s2 + $0x88] sm:$0xff]  }
 0x381   : > { %v1184_v17 = vpop.permute.xlu0 %1183  ;;  %2345 = vmatprep.subr.bf16.mxu1 %v1111_v16 }
 0x382   : > { %2346 = vmatpush3.bf16.msra.mxu1 %v1111_v16 }
 0x383   : > { %v1182_v20 = vpop.permute.xlu1 %1181 }
 0x384   : > { %v1188_v21 = vsel %vm1187_vm10, %v1180_v14, %v1182_v20 }
 0x385   : > { %2348 = vmatmul.mubr.msk.bf16.vlgmr.msra.gmra.mrb[0].mxu1 %vm256_vm0, %v2547_v18  ;;  %2351 = vmatprep.subr.bf16.mxu1 %v1188_v21  ;;  %v1263_v22 = vpop.permute.xlu0 %1262 }
 0x386   : > { %2352 = vmatpush3.bf16.msra.mxu1 %v1188_v21  ;;  %2355 = vmatprep.mubr.msk.bf16.mxu1 %vm256_vm0, %v2548_v19  ;;  %v1904_v21 = vunpack.c.l.bf16 %v2645_v1 }
 0x387   : > { %v1186_v23 = vpop.permute.xlu1 %1185 }
 0x388   : > { %v1189_v24 = vsel %vm1187_vm10, %v1184_v17, %v1186_v23 }
 0x389   : > { %2353 = vmatprep.subr.bf16.mxu1 %v1189_v24  ;;  %v1267_v27 = vpop.permute.xlu0 %1266 }
 0x38a   : > { %2354 = vmatpush3.bf16.msra.mxu1 %v1189_v24 }
 0x38b   : > { %v1265_v25 = vpop.permute.xlu1 %1264 }
 0x38c   : > { %v1271_v26 = vsel %vm1270_vm11, %v1263_v22, %v1265_v25  ;;  %v1905_v22 = vunpack.c.h.bf16 %v2645_v1 }
 0x38d   : > { %2359 = vmatprep.subr.bf16.mxu1 %v1271_v26  ;;  %v1350_v32 = vpop.permute.xlu0 %1349 }
 0x38e   : > { %v2501_v23 = vpack.i.bf16 %v1905_v22, %v1904_v21 }
 0x38f   : > { %v1269_v30 = vpop.permute.xlu1 %1268 }
 0x390   : > { %v1272_v31 = vsel %vm1270_vm11, %v1267_v27, %v1269_v30 }
 0x391   : > { %2356 = vmatmul.mubr.msk.bf16.vlgmr.msra.gmra.mrb[0].mxu1 %vm256_vm0, %v2549_v28  ;;  %v1354_v38 = vpop.permute.xlu0 %1353 }
 0x392   : > { %2360 = vmatpush3.bf16.msra.mxu1 %v1271_v26  ;;  %2363 = vmatprep.mubr.msk.bf16.mxu1 %vm256_vm0, %v2550_v29 }
 0x393   : > { %2361 = vmatprep.subr.bf16.mxu1 %v1272_v31  ;;  %v1352_v33 = vpop.permute.xlu1 %1351 }
 0x394   : > { %v1358_v34 = vsel %vm1357_vm12, %v1350_v32, %v1352_v33 }
 0x395   : > { %v1519_v43 = vpop.permute.xlu0 %1518 }
 0x396   : > { %2362 = vmatpush3.bf16.msra.mxu1 %v1272_v31 }
 0x397   : > { %2367 = vmatprep.subr.bf16.mxu1 %v1358_v34  ;;  %v1356_v37 = vpop.permute.xlu1 %1355 }
 0x398   : > { %v1359_v39 = vsel %vm1357_vm12, %v1354_v38, %v1356_v37 }
 0x399   : > { %v1523_v48 = vpop.permute.xlu0 %1522 }
 0x39b   : > { %v1521_v42 = vpop.permute.xlu1 %1520 }
 0x39c   : > { %v1526_v44 = vsel %vm251_vm1, %v1519_v43, %v1521_v42  ;;  %v1902_v43 = vld [vmem:[%s2641_s20 + $0x10] sm:$0xff] }
 0x39d   : > { %2364 = vmatmul.mubr.msk.bf16.vlgmr.msra.gmra.mrb[0].mxu1 %vm256_vm0, %v2551_v35  ;;  %v1605_v51 = vpop.permute.xlu0 %1604 }
 0x39e   : > { %2368 = vmatpush3.bf16.msra.mxu1 %v1358_v34  ;;  %2371 = vmatprep.mubr.msk.bf16.mxu1 %vm256_vm0, %v2552_v36 }
 0x39f   : > { %2369 = vmatprep.subr.bf16.mxu1 %v1359_v39  ;;  %v1525_v45 = vpop.permute.xlu1 %1524 }
 0x3a0   : > { %v1527_v49 = vsel %vm251_vm1, %v1523_v48, %v1525_v45  ;;  %v1909_v45 = vunpack.c.h.bf16 %v1902_v43 }
 0x3a1   : > { %v1609_v56 = vpop.permute.xlu0 %1608 }
 0x3a2   : > { %2370 = vmatpush3.bf16.msra.mxu1 %v1359_v39 }
 0x3a3   : > { %2375 = vmatprep.subr.bf16.mxu1 %v2766_v2  ;;  %v1607_v50 = vpop.permute.xlu1 %1606 }
 0x3a4   : > { %v1613_v52 = vsel %vm1612_vm13, %v1605_v51, %v1607_v50  ;;  %v1901_v50 = vld [vmem:[%s2641_s20 + $0x8] sm:$0xff] }
 0x3a5   : > { %v1692_v59 = vpop.permute.xlu0 %1691 }
 0x3a7   : > { %v1611_v53 = vpop.permute.xlu1 %1610 }
 0x3a8   : > { %v1614_v57 = vsel %vm1612_vm13, %v1609_v56, %v1611_v53  ;;  %v1907_v53 = vunpack.c.h.bf16 %v1901_v50 }
 0x3a9   : > { %2372 = vmatmul.mubr.msk.bf16.vlgmr.msra.gmra.mrb[0].mxu1 %vm256_vm0, %v2553_v40  ;;  %v1696_v0 = vpop.permute.xlu0 %1695 }
 0x3aa   : > { %2376 = vmatpush3.bf16.msra.mxu1 %v2766_v2  ;;  %2379 = vmatprep.mubr.msk.bf16.mxu1 %vm256_vm0, %v2554_v41 }
 0x3ab   : > { %2377 = vmatprep.subr.bf16.mxu1 %v2772_v8  ;;  %v1694_v58 = vpop.permute.xlu1 %1693 }
 0x3ac   : > { %v1699_v60 = vsel %vm499_vm3, %v1692_v59, %v1694_v58 }
 0x3ad   : > { %v1778_v4 = vpop.permute.xlu0 %1777 }
 0x3ae   : > { %2378 = vmatpush3.bf16.msra.mxu1 %v2772_v8 }
 0x3af   : > { %2383 = vmatprep.subr.bf16.mxu1 %v1526_v44  ;;  %v1698_v61 = vpop.permute.xlu1 %1697 }
 0x3b0   : > { %v1700_v2 = vsel %vm499_vm3, %v1696_v0, %v1698_v61 }
 0x3b1   : > { %v1782_v9 = vpop.permute.xlu0 %1781 }
 0x3b3   : > { %v1780_v3 = vpop.permute.xlu1 %1779 }
 0x3b4   : > { %v1785_v5 = vsel %vm586_vm4, %v1778_v4, %v1780_v3 }
 0x3b5   : > { %2380 = vmatmul.mubr.msk.bf16.vlgmr.msra.gmra.mrb[0].mxu1 %vm256_vm0, %v2555_v46  ;;  %v1903_v46 = vld [vmem:[%s2641_s20 + $0x18] sm:$0xff]  ;;  %s2183_s20 = sshll.u32 %s2936_s16, 4 }
 0x3b6   : > { %2384 = vmatpush3.bf16.msra.mxu1 %v1526_v44  ;;  %2387 = vmatprep.mubr.msk.bf16.mxu1 %vm256_vm0, %v2556_v47  ;;  %v1908_v44 = vunpack.c.l.bf16 %v1902_v43  ;;  %v1910_v48 = vunpack.c.l.bf16 %v1903_v46  ;;  %s197_s23 = scalar_lea.vmem %s2934_s4, %s2183_s20 }
 0x3b7   : > { %2385 = vmatprep.subr.bf16.mxu1 %v1527_v49  ;;  %v1784_v8 = vpop.permute.xlu1 %1783 }
 0x3b8   : > { %v1786_v10 = vsel %vm586_vm4, %v1782_v9, %v1784_v8  ;;  %v2511_v47 = vpack.i.bf16 %v1909_v45, %v1908_v44 }
 0x3ba   : > { %2386 = vmatpush3.bf16.msra.mxu1 %v1527_v49  ;;  %v1911_v49 = vunpack.c.h.bf16 %v1903_v46 }
 0x3bb   : > { %2391 = vmatprep.subr.bf16.mxu1 %v1613_v52 }
 0x3bc   : > { %v2516_v51 = vpack.i.bf16 %v1911_v49, %v1910_v48 }
 0x3c1   : > { %2388 = vmatmul.mubr.msk.bf16.vlgmr.msra.gmra.mrb[0].mxu1 %vm256_vm0, %v2557_v54 }
 0x3c2   : > { %2392 = vmatpush3.bf16.msra.mxu1 %v1613_v52  ;;  %2395 = vmatprep.mubr.msk.bf16.mxu1 %vm256_vm0, %v2558_v55  ;;  %v1906_v52 = vunpack.c.l.bf16 %v1901_v50 }
 0x3c3   : > { %2393 = vmatprep.subr.bf16.mxu1 %v1614_v57 }
 0x3c6   : > { %2394 = vmatpush3.bf16.msra.mxu1 %v1614_v57 }
 0x3c7   : > { %2399 = vmatprep.subr.bf16.mxu1 %v1699_v60 }
 0x3cd   : > { %2396 = vmatmul.mubr.msk.bf16.vlgmr.msra.gmra.mrb[0].mxu1 %vm256_vm0, %v2559_v62 }
 0x3ce   : > { %2400 = vmatpush3.bf16.msra.mxu1 %v1699_v60  ;;  %2403 = vmatprep.mubr.msk.bf16.mxu1 %vm256_vm0, %v2560_v63 }
 0x3cf   : > { %2401 = vmatprep.subr.bf16.mxu1 %v1700_v2 }
 0x3d2   : > { %2402 = vmatpush3.bf16.msra.mxu1 %v1700_v2 }
 0x3d3   : > { %2407 = vmatprep.subr.bf16.mxu1 %v1785_v5 }
 0x3d9   : > { %2404 = vmatmul.mubr.msk.bf16.vlgmr.msra.gmra.mrb[0].mxu1 %vm256_vm0, %v2561_v6 }
 0x3da   : > { %2408 = vmatpush3.bf16.msra.mxu1 %v1785_v5  ;;  %2411 = vmatprep.mubr.msk.bf16.mxu1 %vm256_vm0, %v2562_v7 }
 0x3db   : > { %2409 = vmatprep.subr.bf16.mxu1 %v1786_v10 }
 0x3de   : > { %2410 = vmatpush3.bf16.msra.mxu1 %v1786_v10 }
 0x3e5   : > { %2412 = vmatmul.mubr.msk.bf16.vlgmr.msra.gmra.mrb[0].mxu1 %vm256_vm0, %v2563_v12 }
 0x4b8   : > { %v2413_v13 = vpop.f32.mrb[0].mxu1 }
 0x4b9   : > { %v1829_v14 = vpop.f32.mrb[1].mxu1  ;;  %v1850_v19 = vmul.f32 %v2413_v13, %v2746_v11 }
 0x4ba   : > { %v2414_v15 = vpop.f32.mrb[2].mxu1  ;;  %v1848_v16 = vmul.f32 %v2746_v11, %v1829_v14 }
 0x4bb   : > { %v1832_v17 = vpop.f32.mrb[3].mxu1  ;;  %v1851_v20 = vmul.f32 %v2414_v15, %v2746_v11 }
 0x4bc   : > { %v1849_v18 = vmul.f32 %v2746_v11, %v1832_v17  ;;  %1852 = vadd.xlane.f32.xlu0 %v1848_v16 }
 0x4be   : > { %1854 = vadd.xlane.f32.xlu1 %v1849_v18 }
 0x4c0   : > { %1856 = vadd.xlane.f32.xlu0 %v1850_v19 }
 0x4c4   : > { %1858 = vadd.xlane.f32.xlu0 %v1851_v20 }
 0x4cf   : > { %2502 = vrot.lane.b32.xlu1 %v2501_v23, %s2591_s26 }
 0x549   : > { %v1853_v24 = vpop.xlane.xlu0 %1852 }
 0x54a   : > { %v1860_v25 = vmul.f32 0.0625, %v1853_v24 }
 0x54b   : > { %v1855_v26 = vpop.xlane.xlu1 %1854 }
 0x54c   : > { %v2901_v29 = vsub.f32 %v1829_v14, %v1860_v25  ;;  %v1861_v30 = vmul.f32 0.0625, %v1855_v26 }
 0x54d   : > { %v1857_v27 = vpop.xlane.xlu0 %1856 }
 0x54e   : > { %v1862_v28 = vmul.f32 0.0625, %v1857_v27  ;;  %v2904_v35 = vsub.f32 %v1832_v17, %v1861_v30  ;;  %v1868_v37 = vmul.f32 %v2746_v11, %v2901_v29 }
 0x54f   : > { %v2503_v54 = vpop.permute.xlu1 %2502 }
 0x550   : > { %v1866_v31 = vsub.f32 %v2413_v13, %v1862_v28  ;;  %v1872_v40 = vmul.f32 %v1868_v37, %v1868_v37  ;;  %v1869_v41 = vmul.f32 %v2746_v11, %v2904_v35  ;;  %v2505_v21 = vunpack.i.h.bf16 %v2503_v54 }
 0x551   : > { %v1859_v32 = vpop.xlane.xlu0 %1858  ;;  %v2504_v22 = vunpack.i.l.bf16 %v2503_v54 }
 0x552   : > { %v1863_v33 = vmul.f32 0.0625, %v1859_v32  ;;  %v1870_v34 = vmul.f32 %v2746_v11, %v1866_v31  ;;  %v1873_v42 = vmul.f32 %v1869_v41, %v1869_v41 }
 0x554   : > { %v1867_v1 = vsub.f32 %v2414_v15, %v1863_v33  ;;  %v1874_v36 = vmul.f32 %v1870_v34, %v1870_v34 }
 0x556   : > { %1880 = vadd.xlane.f32.xlu1 %v1874_v36  ;;  %v1871_v38 = vmul.f32 %v2746_v11, %v1867_v1  ;;  %v2506_v11 = vpack.i.bf16 %v1907_v53, %v1906_v52 }
 0x558   : > { %v1875_v39 = vmul.f32 %v1871_v38, %v1871_v38 }
 0x55a   : > { %1882 = vadd.xlane.f32.xlu0 %v1875_v39  ;;  %1876 = vadd.xlane.f32.xlu1 %v1872_v40 }
 0x55e   : > { %1878 = vadd.xlane.f32.xlu0 %v1873_v42 }
 0x56b   : > { %2512 = vrot.lane.b32.xlu1 %v2511_v47, %s2591_s26 }
 0x56f   : > { %2517 = vrot.lane.b32.xlu1 %v2516_v51, %s2591_s26 }
 0x574   : > { %2507 = vrot.lane.b32.xlu0 %v2506_v11, %s2591_s26 }
 0x5e3   : > { %v1881_v55 = vpop.xlane.xlu1 %1880 }
 0x5e4   : > { %v1886_v56 = vmul.f32 0.0625, %v1881_v55 }
 0x5e6   : > { %v1890_v57 = vadd.f32 1e-05, %v1886_v56 }
 0x5e7   : > { %v1883_v58 = vpop.xlane.xlu0 %1882  ;;  %v1877_v59 = vpop.xlane.xlu1 %1876 }
 0x5e8   : > { %2572 = vrsqrt.f32 %v1890_v57  ;;  %v1887_v60 = vmul.f32 0.0625, %v1883_v58  ;;  %v1884_v61 = vmul.f32 0.0625, %v1877_v59 }
 0x5ea   : > { %v1891_v62 = vadd.f32 1e-05, %v1887_v60  ;;  %v1888_v63 = vadd.f32 1e-05, %v1884_v61 }
 0x5eb   : > { %v1879_v0 = vpop.xlane.xlu0 %1878  ;;  %v2513_v2 = vpop.permute.xlu1 %2512 }
 0x5ec   : > { %2574 = vrsqrt.f32 %v1891_v62  ;;  %v1885_v3 = vmul.f32 0.0625, %v1879_v0  ;;  %v2515_v7 = vunpack.i.h.bf16 %v2513_v2  ;;  %v2514_v8 = vunpack.i.l.bf16 %v2513_v2 }
 0x5ed   : > { %2576 = vrsqrt.f32 %v1888_v63 }
 0x5ee   : > { %v1889_v4 = vadd.f32 1e-05, %v1885_v3  ;;  %v1939_v15 = vsel %vm586_vm4, %v2514_v8, %v2515_v7 }
 0x5ef   : > { %v2518_v5 = vpop.permute.xlu1 %2517  ;;  %v2508_v12 = vpop.permute.xlu0 %2507 }
 0x5f0   : > { %2578 = vrsqrt.f32 %v1889_v4  ;;  %v2520_v9 = vunpack.i.h.bf16 %v2518_v5  ;;  %v2519_v10 = vunpack.i.l.bf16 %v2518_v5  ;;  %v2510_v17 = vunpack.i.h.bf16 %v2508_v12 }
 0x5f1   : > { %v2509_v18 = vunpack.i.l.bf16 %v2508_v12 }
 0x5f2   : > { %v2573_v6 = vpop.eup %2572  ;;  %v1940_v16 = vsel %vm586_vm4, %v2519_v10, %v2520_v9 }
 0x5f3   : > { %v1898_v13 = vmul.f32 %v2573_v6, %v1866_v31  ;;  %v1938_v27 = vsel %vm586_vm4, %v2509_v18, %v2510_v17  ;;  %v1937_v31 = vsel %vm586_vm4, %v2504_v22, %v2505_v21 }
 0x5f5   : > { %v1947_v23 = vadd.f32 %v1939_v15, %v1898_v13 }
 0x5f6   : > { %v2575_v14 = vpop.eup %2574 }
 0x5f7   : > { %v2577_v19 = vpop.eup %2576  ;;  %v1899_v20 = vmul.f32 %v2575_v14, %v1867_v1 }
 0x5f8   : > { %v1896_v25 = vmul.f32 %v2577_v19, %v2901_v29 }
 0x5f9   : > { %v1948_v24 = vadd.f32 %v1940_v16, %v1899_v20 }
 0x5fa   : > { %v2579_v26 = vpop.eup %2578  ;;  %v1945_v32 = vadd.f32 %v1937_v31, %v1896_v25 }
 0x5fb   : > { %v2196_v28 = vpack.c.bf16 %v1948_v24, %v1947_v23  ;;  %v1897_v30 = vmul.f32 %v2579_v26, %v2904_v35 }
 0x5fd   : > { %2198 = vst [vmem:[%s197_s23 + $0x8] sm:$0xff] %v2196_v28   ;;  %v1946_v33 = vadd.f32 %v1938_v27, %v1897_v30 }
 0x5ff   : > { %v2191_v34 = vpack.c.bf16 %v1946_v33, %v1945_v32 }
 0x601   : > { %2192 = vst [vmem:[%s197_s23] sm:$0xff] %v2191_v34  }
 0x602 PF: > { %s14_s15 = sadd.s32 1, %s2586_s15  }
 0x603   : > { %p11_p4 = scmp.ge.s32.totalorder %s14_s15, 4  }
 0x605   :  { %13 = sbr.rel (!%p11_p4) target bundleno = 1 (0x1), region = 82 }

// kernel: generator.14
= control target key start
LH: loop header
LB: loop body
LE: loop exit
PB: predicated region body
PF: predicated region fallthrough
CT: control target
= control target key end

     0   :  { %s781_s12 = smov 0   ;;  %s840_s0 = inlined_call_operand.vmem [shape: bf16[2,1,16,256], index: 0, kind: input, shape index: {}]   ;;  %s841_s1 = inlined_call_operand.vmem [shape: bf16[4,32,16], index: 1, kind: input, shape index: {}]   ;;  %s842_s2 = inlined_call_operand.vmem [shape: f32[1,128], index: 2, kind: input, shape index: {}]   ;;  %s843_s3 = inlined_call_operand.vmem [shape: bf16[2,32,128], index: 3, kind: output, shape index: {}]  }
   0x1 LB: > { %s621_s13 = sadd.s32 4294967295, %s756_s12   ;;  %p625_p0 = scmp.ge.s32.totalorder %s756_s12, 1  ;;  %s756_s12 = sphi %s781_s12, %s13_s12  }
   0x2   : > { %p137_p1 = scmp.lt.s32.totalorder %s756_s12, 3 }
   0x4   : > { %p138_p2 = pnand %p625_p0, %p137_p1 }
   0x5   : > { %p161_p3 = scmp.lt.s32.totalorder (!%p138_p2), %s621_s13, 1  ;;  %v739_v0 = vld [vmem:[%s841_s1 + $0x10] sm:$0xff] (!%p138_p2)   ;;  %v740_v1 = vld [vmem:[%s841_s1 + $0x20] sm:$0xff] (!%p138_p2)   ;;  %vm210_vm0 = vcmask (!%p138_p2), 130048   ;;  %s758_s22 = smov (!%p138_p2), 119   ;;  %vm207_vm1 = vcmask (!%p138_p2), 1039360  }
   0x6   : > { %141 = sbr.rel (%p138_p2) target bundleno = 702 (0x2be), region = 32  ;;  %691 = vmatprep.mubr.msk.bf16.mxu1 (!%p138_p2), %vm210_vm0, %v739_v0  ;;  %703 = vmatprep.mubr.msk.bf16.mxu0 (!%p138_p2), %vm210_vm0, %v740_v1  ;;  %s759_s23 = smov (!%p138_p2), 127   ;;  %vm356_vm2 = vcmask (!%p138_p2), 973824   ;;  %v741_v11 = vld [vmem:[%s841_s1 + $0x18] sm:$0xff] (!%p138_p2)   ;;  %v743_v12 = vld [vmem:[%s841_s1 + $0x28] sm:$0xff] (!%p138_p2)   ;;  %vm437_vm3 = vcmask (!%p138_p2), 965632  }
   0x7   : > { %s760_s24 = smov (!%p138_p2), 118   ;;  %v744_v15 = vld [vmem:[%s841_s1] sm:$0xff] (!%p138_p2)   ;;  %v745_v17 = vld [vmem:[%s841_s1 + $0x30] sm:$0xff] (!%p138_p2)   ;;  %v746_v18 = vld [vmem:[%s841_s1 + $0x8] sm:$0xff] (!%p138_p2)  }
   0x8   : > { %v747_v19 = vld [vmem:[%s841_s1 + $0x38] sm:$0xff] (!%p138_p2)   ;;  %v661_v25 = vld [vmem:[%s842_s2] ss:$0 sm:$0xff] (!%p138_p2) }
   0xd   : > { %s845_s13 = smov (!%p161_p3, %s621_s13), 1 }
   0xe   : > { %s664_s18 = sshll.u32 %s845_s13, 4 }
   0xf   : > { %s165_s21 = scalar_lea.vmem %s840_s0, %s664_s18  ;;  %s170_s16 = scalar_lea.vmem %s843_s3, %s664_s18 }
  0x10   : > { %v736_v2 = vld [vmem:[%s165_s21] ss:$8 sps:$4 sm:$0xff]   ;;  %v738_v3 = vld [vmem:[%s165_s21 + $0x4] ss:$8 sps:$4 sm:$0xff]  }
  0x11   : > { %352 = vrot.lane.b32.xlu1 %v736_v2, %s758_s22  ;;  %203 = vrot.lane.b32.xlu0 %v736_v2, %s759_s23  ;;  %v742_v8 = vld [vmem:[%s165_s21] ss:$8 sps:$4 sm:$0xff]  }
  0x15   : > { %354 = vrot.lane.b32.xlu1 %v738_v3, %s758_s22  ;;  %205 = vrot.lane.b32.xlu0 %v738_v3, %s759_s23 }
  0x19   : > { %435 = vrot.lane.b32.xlu1 %v738_v3, %s760_s24  ;;  %433 = vrot.lane.b32.xlu0 %v736_v2, %s760_s24 }
  0x83   : > { %v353_v4 = vpop.permute.xlu1 %352  ;;  %v204_v5 = vpop.permute.xlu0 %203 }
  0x87   : > { %v355_v6 = vpop.permute.xlu1 %354  ;;  %v206_v7 = vpop.permute.xlu0 %205 }
  0x88   : > { %v208_v9 = vsel %vm207_vm1, %v204_v5, %v206_v7  ;;  %v357_v10 = vsel %vm356_vm2, %v353_v4, %v355_v6 }
  0x89   : > { %689 = vmatprep.subr.bf16.mxu1 %v208_v9  ;;  %701 = vmatprep.subr.bf16.mxu0 %v357_v10 }
  0x8a   : > { %690 = vmatpush3.bf16.msra.mxu1 %v208_v9  ;;  %702 = vmatpush3.bf16.msra.mxu0 %v357_v10 }
  0x8b   : > { %v436_v13 = vpop.permute.xlu1 %435  ;;  %v434_v14 = vpop.permute.xlu0 %433  ;;  %695 = vmatprep.subr.bf16.mxu1 %v742_v8 }
  0x8c   : > { %v438_v16 = vsel %vm437_vm3, %v434_v14, %v436_v13 }
  0x8d   : > { %692 = vmatmul.mubr.msk.bf16.vlgmr.msra.gmra.mrb[0].mxu1 %vm210_vm0, %v741_v11  ;;  %704 = vmatmul.mubr.msk.bf16.vlgmr.msra.gmra.mrb[0].mxu0 %vm210_vm0, %v743_v12 }
  0x8e   : > { %707 = vmatprep.subr.bf16.mxu0 %v438_v16  ;;  %696 = vmatpush3.bf16.msra.mxu1 %v742_v8 }
  0x8f   : > { %708 = vmatpush3.bf16.msra.mxu0 %v438_v16  ;;  %697 = vmatprep.mubr.msk.bf16.mxu1 %vm210_vm0, %v744_v15 }
  0x90   : > { %709 = vmatprep.mubr.msk.bf16.mxu0 %vm210_vm0, %v745_v17 }
  0x99   : > { %698 = vmatmul.mubr.msk.bf16.vlgmr.msra.gmra.mrb[0].mxu1 %vm210_vm0, %v746_v18  ;;  %710 = vmatmul.mubr.msk.bf16.vlgmr.msra.gmra.mrb[0].mxu0 %vm210_vm0, %v747_v19 }
 0x16c   : > { %v699_v20 = vpop.f32.mrb[0].mxu1  ;;  %v711_v21 = vpop.f32.mrb[0].mxu0 }
 0x16d   : > { %v713_v22 = vadd.f32 %v711_v21, %v699_v20  ;;  %v322_v23 = vpop.f32.mrb[1].mxu1  ;;  %v480_v24 = vpop.f32.mrb[1].mxu0 }
 0x16e   : > { %v714_v26 = vadd.f32 %v480_v24, %v322_v23  ;;  %v700_v27 = vpop.f32.mrb[2].mxu1  ;;  %v712_v28 = vpop.f32.mrb[2].mxu0 }
 0x16f   : > { %v715_v29 = vadd.f32 %v712_v28, %v700_v27  ;;  %v325_v30 = vpop.f32.mrb[3].mxu1  ;;  %v483_v31 = vpop.f32.mrb[3].mxu0  ;;  %v514_v35 = vmul.f32 %v713_v22, %v661_v25 }
 0x170   : > { %v716_v32 = vadd.f32 %v483_v31, %v325_v30  ;;  %v506_v33 = vmul.f32 %v714_v26, %v661_v25 }
 0x171   : > { %v518_v36 = vmul.f32 %v715_v29, %v661_v25 }
 0x172   : > { %507 = vadd.xlane.f32.xlu0 %v506_v33  ;;  %v510_v34 = vmul.f32 %v716_v32, %v661_v25 }
 0x174   : > { %511 = vadd.xlane.f32.xlu1 %v510_v34 }
 0x176   : > { %515 = vadd.xlane.f32.xlu0 %v514_v35 }
 0x17a   : > { %519 = vadd.xlane.f32.xlu0 %v518_v36 }
 0x1ff   : > { %v508_v37 = vpop.xlane.xlu0 %507 }
 0x201   : > { %v512_v38 = vpop.xlane.xlu1 %511 }
 0x202   : > { %v513_v39 = vadd.f32 %v512_v38, %v508_v37 }
 0x203   : > { %v516_v40 = vpop.xlane.xlu0 %515 }
 0x204   : > { %v517_v41 = vadd.f32 %v516_v40, %v513_v39 }
 0x207   : > { %v520_v42 = vpop.xlane.xlu0 %519 }
 0x208   : > { %v521_v43 = vadd.f32 %v520_v42, %v517_v41 }
 0x20a   : > { %v522_v44 = vmul.f32 0.00390625, %v521_v43 }
 0x20c   : > { %v529_v45 = vsub.f32 %v716_v32, %v522_v44  ;;  %v523_v46 = vsub.f32 %v714_v26, %v522_v44  ;;  %v541_v47 = vsub.f32 %v715_v29, %v522_v44  ;;  %v535_v48 = vsub.f32 %v713_v22, %v522_v44 }
 0x20e   : > { %v530_v49 = vmul.f32 %v661_v25, %v529_v45  ;;  %v524_v50 = vmul.f32 %v661_v25, %v523_v46  ;;  %v542_v53 = vmul.f32 %v661_v25, %v541_v47  ;;  %v536_v54 = vmul.f32 %v661_v25, %v535_v48 }
 0x210   : > { %v531_v51 = vmul.f32 %v530_v49, %v530_v49  ;;  %v525_v52 = vmul.f32 %v524_v50, %v524_v50  ;;  %v543_v55 = vmul.f32 %v542_v53, %v542_v53  ;;  %v537_v56 = vmul.f32 %v536_v54, %v536_v54 }
 0x212   : > { %532 = vadd.xlane.f32.xlu0 %v531_v51  ;;  %526 = vadd.xlane.f32.xlu1 %v525_v52 }
 0x216   : > { %544 = vadd.xlane.f32.xlu0 %v543_v55  ;;  %538 = vadd.xlane.f32.xlu1 %v537_v56 }
 0x29f   : > { %v533_v57 = vpop.xlane.xlu0 %532  ;;  %v527_v58 = vpop.xlane.xlu1 %526 }
 0x2a0   : > { %v534_v59 = vadd.f32 %v533_v57, %v527_v58 }
 0x2a3   : > { %v539_v60 = vpop.xlane.xlu1 %538  ;;  %v545_v62 = vpop.xlane.xlu0 %544 }
 0x2a4   : > { %v540_v61 = vadd.f32 %v539_v60, %v534_v59 }
 0x2a6   : > { %v546_v63 = vadd.f32 %v545_v62, %v540_v61 }
 0x2a8   : > { %v547_v0 = vmul.f32 0.00390625, %v546_v63 }
 0x2aa   : > { %v548_v1 = vadd.f32 1e-05, %v547_v0 }
 0x2ac   : > { %748 = vrsqrt.f32 %v548_v1 }
 0x2b6   : > { %v749_v2 = vpop.eup %748 }
 0x2b7   : > { %v550_v3 = vmul.f32 %v749_v2, %v523_v46  ;;  %v554_v4 = vmul.f32 %v749_v2, %v529_v45  ;;  %v558_v5 = vmul.f32 %v749_v2, %v535_v48  ;;  %v562_v6 = vmul.f32 %v749_v2, %v541_v47 }
 0x2b9   : > { %v551_v7 = vmax.f32 %v550_v3, 0.0  ;;  %v555_v8 = vmax.f32 %v554_v4, 0.0  ;;  %v559_v9 = vmax.f32 %v558_v5, 0.0  ;;  %v563_v10 = vmax.f32 %v562_v6, 0.0 }
 0x2bb   : > { %v669_v11 = vpack.c.bf16 %v555_v8, %v551_v7  ;;  %v674_v12 = vpack.c.bf16 %v563_v10, %v559_v9 }
 0x2bd   : > { %670 = vst [vmem:[%s170_s16] sm:$0xff] %v669_v11   ;;  %676 = vst [vmem:[%s170_s16 + $0x8] sm:$0xff] %v674_v12  }
 0x2be PF: > { %s13_s12 = sadd.s32 1, %s756_s12  }
 0x2bf   : > { %p10_p4 = scmp.ge.s32.totalorder %s13_s12, 4  }
 0x2c1   :  { %12 = sbr.rel (!%p10_p4) target bundleno = 1 (0x1), region = 65 }

// kernel: generator.15
= control target key start
LH: loop header
LB: loop body
LE: loop exit
PB: predicated region body
PF: predicated region fallthrough
CT: control target
= control target key end

     0   :  { %s6772_s12 = smov 0   ;;  %s7760_s0 = inlined_call_operand.vmem [shape: bf16[2,1,8,640], index: 0, kind: input, shape index: {}]   ;;  %s7761_s1 = inlined_call_operand.vmem [shape: bf16[49,3,8], index: 1, kind: input, shape index: {}]   ;;  %s7762_s2 = inlined_call_operand.vmem [shape: f32[1,384], index: 2, kind: input, shape index: {}]   ;;  %s7763_s3 = inlined_call_operand.vmem [shape: f32[2,3,384], index: 3, kind: output, shape index: {}]  }
   0x1 LB: > { %s5634_s13 = sadd.s32 4294967295, %s6702_s12   ;;  %p5638_p0 = scmp.ge.s32.totalorder %s6702_s12, 1  ;;  %s6702_s12 = sphi %s6772_s12, %s13_s12  }
   0x2   : > { %p137_p1 = scmp.lt.s32.totalorder %s6702_s12, 3 }
   0x4   : > { %p138_p2 = pnand %p5638_p0, %p137_p1 }
   0x5   : > { %p161_p3 = scmp.lt.s32.totalorder (!%p138_p2), %s5634_s13, 1  ;;  %v6704_v0 = vmov (!%p138_p2), 0.0   ;;  %v6705_v1 = vmov (!%p138_p2), 0   ;;  %vm6706_vm0 = vmmov (!%p138_p2), 0   ;;  %s6707_s17 = smov (!%p138_p2), 127   ;;  %vm196_vm1 = vcmask (!%p138_p2), 1039360  }
   0x6   : > { %141 = sbr.rel (%p138_p2) target bundleno = 948 (0x3b4), region = 32  ;;  %5945 = vmatprep.subr.bf16.mxu1 (!%p138_p2), %v6704_v0  ;;  %246 = vmatprep.mubr.bf16.mxu0 (!%p138_p2), %v6705_v1  ;;  %s6708_s18 = smov (!%p138_p2), 126   ;;  %vm204_vm2 = vcmask (!%p138_p2), 1043456   ;;  %v5641_v18 = vld [vmem:[%s7761_s1 + $0x2] sm:$0x3] (!%p138_p2)  ;;  %vm200_vm3 = vcmask (!%p138_p2), 64512  }
   0x7   : > { %5947 = vmatprep.mubr.msk.bf16.mxu1 (!%p138_p2), %vm6706_vm0, %v6704_v0  ;;  %s6709_s19 = smov (!%p138_p2), 125   ;;  %s6710_s20 = smov (!%p138_p2), 124   ;;  %vm401_vm4 = vcmask (!%p138_p2), 1031168   ;;  %v174_v29 = vld [vmem:[%s7761_s1] sm:$0x3] (!%p138_p2)  ;;  %vm511_vm5 = vcmask (!%p138_p2), 1022976  }
   0x8   : > { %s6711_s21 = smov (!%p138_p2), 123   ;;  %s6712_s22 = smov (!%p138_p2), 122   ;;  %v5653_v39 = vld [vmem:[%s7761_s1 + $0x4] sm:$0x3] (!%p138_p2)  ;;  %vm621_vm6 = vcmask (!%p138_p2), 1014784   ;;  %vm731_vm7 = vcmask (!%p138_p2), 1006592  }
   0x9   : > { %s6713_s23 = smov (!%p138_p2), 106   ;;  %s6714_s24 = smov (!%p138_p2), 105   ;;  %v5657_v49 = vld [vmem:[%s7761_s1 + $0x6] sm:$0x3] (!%p138_p2)  ;;  %v5661_v59 = vld [vmem:[%s7761_s1 + $0x8] sm:$0x3] (!%p138_p2) }
   0xa   : > { %s6715_s25 = smov (!%p138_p2), 104   ;;  %s6716_s26 = smov (!%p138_p2), 103   ;;  %vm841_vm8 = vcmask (!%p138_p2), 998400   ;;  %vm951_vm9 = vcmask (!%p138_p2), 867328   ;;  %vm1061_vm10 = vcmask (!%p138_p2), 859136   ;;  %vm1171_vm11 = vcmask (!%p138_p2), 850944  }
   0xb   : > { %s6717_s27 = smov (!%p138_p2), 102   ;;  %s6718_s28 = smov (!%p138_p2), 101   ;;  %vm1281_vm12 = vcmask (!%p138_p2), 842752   ;;  %vm1391_vm13 = vcmask (!%p138_p2), 834560   ;;  %vm1501_vm14 = vcmask (!%p138_p2), 826368   ;;  %vm1611_vm15 = vcmask (!%p138_p2), 818176  }
   0xc   : > { %s6719_s29 = smov (!%p138_p2), 100   ;;  %s6720_s30 = smov (!%p138_p2), 84  }
   0xd   : > { %s7765_s13 = smov (!%p161_p3, %s5634_s13), 1  ;;  %s6721_s4 = smov 83  }
   0xe   : > { %s6623_s2 = smul.u32 20, %s7765_s13  ;;  %s6722_s5 = smov 82  }
   0xf   : > { %s6723_s8 = smov 81   ;;  %s6724_s11 = smov 80  }
  0x10   : > { %s6790_s16 = scalar_lea.vmem %s7760_s0, %s6623_s2  ;;  %s6725_s15 = smov 79  }
  0x11   : > { %v175_v2 = vld [vmem:[%s6790_s16 + $0x8] sm:$0xff]  ;;  %v172_v3 = vld [vmem:[%s6790_s16] sm:$0xff]  ;;  %s6730_s7 = smov 59   ;;  %s6731_s10 = smov 58  }
  0x12   : > { %v6794_v4 = vcombine.low %v175_v2, %v175_v2  ;;  %v6796_v5 = vcombine.low %v172_v3, %v172_v3  ;;  %v6799_v6 = vcombine.high %v172_v3, %v172_v3  ;;  %v6802_v7 = vcombine.high %v175_v2, %v175_v2  ;;  %v6685_v12 = vld [vmem:[%s6790_s16 + $0x8] ss:$0 sps:$4 sm:$0xff]   ;;  %s6732_s14 = smov 57   ;;  %s6737_s6 = smov 37  }
  0x13   : > { %v308_v20 = vsel %vm204_vm2, %v6685_v12, 0  ;;  %s6738_s9 = smov 36   ;;  %s6739_s2 = smov 35  }
  0x14   : > { %192 = vrot.lane.b32.xlu1 %v6794_v4, %s6707_s17  ;;  %188 = vrot.lane.b32.xlu0 %v6796_v5, %s6707_s17  ;;  %v302_v19 = vsel %vm204_vm2, %v6796_v5, 0 }
  0x18   : > { %194 = vrot.lane.b32.xlu1 %v6802_v7, %s6707_s17  ;;  %190 = vrot.lane.b32.xlu0 %v6799_v6, %s6707_s17  ;;  %s6740_s17 = smov 34  }
  0x1c   : > { %393 = vrot.lane.b32.xlu0 %v6796_v5, %s6708_s18  ;;  %395 = vrot.lane.b32.xlu1 %v6799_v6, %s6708_s18 }
  0x20   : > { %397 = vrot.lane.b32.xlu0 %v6794_v4, %s6708_s18  ;;  %399 = vrot.lane.b32.xlu1 %v6802_v7, %s6708_s18  ;;  %s6733_s18 = smov 56  }
  0x24   : > { %503 = vrot.lane.b32.xlu0 %v6796_v5, %s6709_s19  ;;  %505 = vrot.lane.b32.xlu1 %v6799_v6, %s6709_s19 }
  0x28   : > { %507 = vrot.lane.b32.xlu0 %v6794_v4, %s6709_s19  ;;  %509 = vrot.lane.b32.xlu1 %v6802_v7, %s6709_s19  ;;  %s6726_s19 = smov 78  }
  0x2c   : > { %613 = vrot.lane.b32.xlu0 %v6796_v5, %s6710_s20  ;;  %615 = vrot.lane.b32.xlu1 %v6799_v6, %s6710_s20 }
  0x30   : > { %617 = vrot.lane.b32.xlu0 %v6794_v4, %s6710_s20  ;;  %619 = vrot.lane.b32.xlu1 %v6802_v7, %s6710_s20 }
  0x34   : > { %723 = vrot.lane.b32.xlu0 %v6796_v5, %s6711_s21  ;;  %725 = vrot.lane.b32.xlu1 %v6799_v6, %s6711_s21 }
  0x38   : > { %727 = vrot.lane.b32.xlu0 %v6794_v4, %s6711_s21  ;;  %729 = vrot.lane.b32.xlu1 %v6802_v7, %s6711_s21 }
  0x3c   : > { %833 = vrot.lane.b32.xlu0 %v6796_v5, %s6712_s22  ;;  %835 = vrot.lane.b32.xlu1 %v6799_v6, %s6712_s22 }
  0x40   : > { %837 = vrot.lane.b32.xlu0 %v6794_v4, %s6712_s22  ;;  %839 = vrot.lane.b32.xlu1 %v6802_v7, %s6712_s22 }
  0x44   : > { %943 = vrot.lane.b32.xlu0 %v6796_v5, %s6713_s23  ;;  %945 = vrot.lane.b32.xlu1 %v6799_v6, %s6713_s23 }
  0x48   : > { %947 = vrot.lane.b32.xlu0 %v6794_v4, %s6713_s23  ;;  %949 = vrot.lane.b32.xlu1 %v6802_v7, %s6713_s23  ;;  %s6741_s23 = smov 18  }
  0x4c   : > { %1053 = vrot.lane.b32.xlu0 %v6796_v5, %s6714_s24  ;;  %1055 = vrot.lane.b32.xlu1 %v6799_v6, %s6714_s24 }
  0x50   : > { %1057 = vrot.lane.b32.xlu0 %v6794_v4, %s6714_s24  ;;  %1059 = vrot.lane.b32.xlu1 %v6802_v7, %s6714_s24  ;;  %s6734_s24 = smov 40  }
  0x54   : > { %1163 = vrot.lane.b32.xlu0 %v6796_v5, %s6715_s25  ;;  %1165 = vrot.lane.b32.xlu1 %v6799_v6, %s6715_s25 }
  0x58   : > { %1167 = vrot.lane.b32.xlu0 %v6794_v4, %s6715_s25  ;;  %1169 = vrot.lane.b32.xlu1 %v6802_v7, %s6715_s25  ;;  %s6727_s25 = smov 62  }
  0x5c   : > { %1273 = vrot.lane.b32.xlu0 %v6796_v5, %s6716_s26  ;;  %1275 = vrot.lane.b32.xlu1 %v6799_v6, %s6716_s26 }
  0x60   : > { %1277 = vrot.lane.b32.xlu0 %v6794_v4, %s6716_s26  ;;  %1279 = vrot.lane.b32.xlu1 %v6802_v7, %s6716_s26  ;;  %s6742_s26 = smov 17  }
  0x64   : > { %1383 = vrot.lane.b32.xlu0 %v6796_v5, %s6717_s27  ;;  %1385 = vrot.lane.b32.xlu1 %v6799_v6, %s6717_s27 }
  0x68   : > { %1387 = vrot.lane.b32.xlu0 %v6794_v4, %s6717_s27  ;;  %1389 = vrot.lane.b32.xlu1 %v6802_v7, %s6717_s27  ;;  %s6735_s27 = smov 39  }
  0x6c   : > { %1493 = vrot.lane.b32.xlu0 %v6796_v5, %s6718_s28  ;;  %1495 = vrot.lane.b32.xlu1 %v6799_v6, %s6718_s28 }
  0x70   : > { %1497 = vrot.lane.b32.xlu0 %v6794_v4, %s6718_s28  ;;  %1499 = vrot.lane.b32.xlu1 %v6802_v7, %s6718_s28  ;;  %s6728_s28 = smov 61  }
  0x74   : > { %1603 = vrot.lane.b32.xlu0 %v6796_v5, %s6719_s29  ;;  %1605 = vrot.lane.b32.xlu1 %v6799_v6, %s6719_s29 }
  0x78   : > { %1607 = vrot.lane.b32.xlu0 %v6794_v4, %s6719_s29  ;;  %1609 = vrot.lane.b32.xlu1 %v6802_v7, %s6719_s29  ;;  %s6743_s29 = smov 16  }
  0x7c   : > { %1713 = vrot.lane.b32.xlu0 %v6796_v5, %s6720_s30  ;;  %1715 = vrot.lane.b32.xlu1 %v6799_v6, %s6720_s30 }
  0x80   : > { %1717 = vrot.lane.b32.xlu0 %v6794_v4, %s6720_s30  ;;  %1719 = vrot.lane.b32.xlu1 %v6802_v7, %s6720_s30  ;;  %s6736_s30 = smov 38  }
  0x84   : > { %1823 = vrot.lane.b32.xlu0 %v6796_v5, %s6721_s4  ;;  %1825 = vrot.lane.b32.xlu1 %v6799_v6, %s6721_s4 }
  0x86   : > { %v193_v8 = vpop.permute.xlu1 %192  ;;  %v189_v9 = vpop.permute.xlu0 %188 }
  0x88   : > { %1827 = vrot.lane.b32.xlu0 %v6794_v4, %s6721_s4  ;;  %1829 = vrot.lane.b32.xlu1 %v6802_v7, %s6721_s4  ;;  %s6729_s4 = smov 60  }
  0x8a   : > { %v195_v10 = vpop.permute.xlu1 %194  ;;  %v191_v11 = vpop.permute.xlu0 %190 }
  0x8b   : > { %v198_v13 = vsel %vm196_vm1, %v191_v11, %v193_v8  ;;  %v197_v14 = vsel %vm196_vm1, %v189_v9, %v191_v11  ;;  %v199_v15 = vsel %vm196_vm1, %v193_v8, %v195_v10  ;;  %v5665_v11 = vld [vmem:[%s7761_s1 + $0xa] sm:$0x3]  ;;  %vm1721_vm1 = vcmask 687104  }
  0x8c   : > { %5646 = vmatprep.subr.msk.bf16.mxu0 %vm204_vm2, %v198_v13  ;;  %v206_v16 = vsel %vm204_vm2, %v197_v14, 0  ;;  %v212_v17 = vsel %vm204_vm2, %v199_v15, 0  ;;  %1933 = vrot.lane.b32.xlu0 %v6796_v5, %s6722_s5 }
  0x8d   : > { %215 = vmatpush1.bf16.msra.mxu0 %v206_v16  ;;  %5946 = vmatpush3.bf16.msra.mxu1 %v212_v17 }
  0x8e   : > { %5650 = vmatprep.subr.msk.bf16.mxu0 %vm204_vm2, %v6799_v6  ;;  %5951 = vmatprep.subr.bf16.mxu1 %v6704_v0  ;;  %v394_v21 = vpop.permute.xlu0 %393  ;;  %v396_v22 = vpop.permute.xlu1 %395 }
  0x8f   : > { %1935 = vrot.lane.b32.xlu1 %v6799_v6, %s6722_s5  ;;  %v402_v27 = vsel %vm401_vm4, %v394_v21, %v396_v22  ;;  %v5669_v21 = vld [vmem:[%s7761_s1 + $0xc] sm:$0x3] }
  0x90   : > { %5948 = vmatmul.mubr.msk.bf16.vlgmr.msra.gmra.mrb[0].mxu1 %vm200_vm3, %v5641_v18  ;;  %5647 = vmatmul.mubr.msk.bf16.vlgmr.msra.gmra.mrb[0].mxu0 %vm200_vm3, %v5641_v18  ;;  %v409_v32 = vsel %vm204_vm2, %v402_v27, 0 }
  0x91   : > { %311 = vmatpush1.bf16.msra.mxu0 %v302_v19  ;;  %5952 = vmatpush3.bf16.msra.mxu1 %v308_v20 }
  0x92   : > { %v398_v23 = vpop.permute.xlu0 %397  ;;  %5953 = vmatprep.mubr.msk.bf16.mxu1 %vm6706_vm0, %v6704_v0  ;;  %342 = vmatprep.mubr.bf16.mxu0 %v6705_v1  ;;  %v400_v25 = vpop.permute.xlu1 %399 }
  0x93   : > { %v403_v24 = vsel %vm401_vm4, %v396_v22, %v398_v23  ;;  %5957 = vmatprep.subr.bf16.mxu1 %v6704_v0  ;;  %1937 = vrot.lane.b32.xlu0 %v6794_v4, %s6722_s5  ;;  %v404_v28 = vsel %vm401_vm4, %v398_v23, %v400_v25  ;;  %vm1831_vm4 = vcmask 678912  }
  0x94   : > { %5654 = vmatprep.subr.msk.bf16.mxu0 %vm204_vm2, %v403_v24  ;;  %1939 = vrot.lane.b32.xlu1 %v6802_v7, %s6722_s5  ;;  %v415_v31 = vsel %vm204_vm2, %v404_v28, 0  ;;  %s6744_s5 = smov 15  }
  0x96   : > { %v504_v26 = vpop.permute.xlu0 %503  ;;  %v506_v30 = vpop.permute.xlu1 %505 }
  0x97   : > { %2043 = vrot.lane.b32.xlu0 %v6796_v5, %s6723_s8  ;;  %v512_v37 = vsel %vm511_vm5, %v504_v26, %v506_v30 }
  0x98   : > { %2045 = vrot.lane.b32.xlu1 %v6799_v6, %s6723_s8  ;;  %v519_v43 = vsel %vm204_vm2, %v512_v37, 0 }
  0x9a   : > { %v508_v33 = vpop.permute.xlu0 %507  ;;  %v510_v36 = vpop.permute.xlu1 %509 }
  0x9b   : > { %2047 = vrot.lane.b32.xlu0 %v6794_v4, %s6723_s8  ;;  %v513_v34 = vsel %vm511_vm5, %v506_v30, %v508_v33  ;;  %v514_v38 = vsel %vm511_vm5, %v508_v33, %v510_v36  ;;  %vm1941_vm5 = vcmask 670720  }
  0x9c   : > { %5954 = vmatmul.mubr.msk.bf16.vlgmr.msra.gmra.mrb[0].mxu1 %vm200_vm3, %v174_v29  ;;  %5651 = vmatmul.mubr.msk.bf16.vlgmr.msra.gmra.mrb[0].mxu0 %vm200_vm3, %v174_v29  ;;  %v525_v42 = vsel %vm204_vm2, %v514_v38, 0 }
  0x9d   : > { %418 = vmatpush1.bf16.msra.mxu0 %v409_v32  ;;  %5958 = vmatpush3.bf16.msra.mxu1 %v415_v31  ;;  %v5673_v31 = vld [vmem:[%s7761_s1 + $0xe] sm:$0x3] }
  0x9e   : > { %5959 = vmatprep.mubr.msk.bf16.mxu1 %vm6706_vm0, %v6704_v0  ;;  %449 = vmatprep.mubr.bf16.mxu0 %v6705_v1  ;;  %v614_v35 = vpop.permute.xlu0 %613  ;;  %v616_v40 = vpop.permute.xlu1 %615 }
  0x9f   : > { %5658 = vmatprep.subr.msk.bf16.mxu0 %vm204_vm2, %v513_v34  ;;  %5963 = vmatprep.subr.bf16.mxu1 %v6704_v0  ;;  %v622_v47 = vsel %vm621_vm6, %v614_v35, %v616_v40 }
  0xa0   : > { %2049 = vrot.lane.b32.xlu1 %v6802_v7, %s6723_s8  ;;  %2153 = vrot.lane.b32.xlu0 %v6796_v5, %s6724_s11  ;;  %v629_v53 = vsel %vm204_vm2, %v622_v47, 0  ;;  %s6745_s8 = smov 14  }
  0xa2   : > { %v618_v41 = vpop.permute.xlu0 %617  ;;  %v620_v46 = vpop.permute.xlu1 %619 }
  0xa3   : > { %v623_v44 = vsel %vm621_vm6, %v616_v40, %v618_v41  ;;  %v624_v48 = vsel %vm621_vm6, %v618_v41, %v620_v46  ;;  %v5677_v41 = vld [vmem:[%s7761_s1 + $0x10] sm:$0x3] }
  0xa4   : > { %2155 = vrot.lane.b32.xlu1 %v6799_v6, %s6724_s11  ;;  %2157 = vrot.lane.b32.xlu0 %v6794_v4, %s6724_s11  ;;  %v635_v52 = vsel %vm204_vm2, %v624_v48, 0 }
  0xa6   : > { %v724_v45 = vpop.permute.xlu0 %723  ;;  %v726_v50 = vpop.permute.xlu1 %725 }
  0xa7   : > { %v732_v57 = vsel %vm731_vm7, %v724_v45, %v726_v50 }
  0xa8   : > { %5655 = vmatmul.mubr.msk.bf16.vlgmr.msra.gmra.mrb[0].mxu0 %vm200_vm3, %v5653_v39  ;;  %5960 = vmatmul.mubr.msk.bf16.vlgmr.msra.gmra.mrb[0].mxu1 %vm200_vm3, %v5653_v39  ;;  %v739_v63 = vsel %vm204_vm2, %v732_v57, 0 }
  0xa9   : > { %528 = vmatpush1.bf16.msra.mxu0 %v519_v43  ;;  %5964 = vmatpush3.bf16.msra.mxu1 %v525_v42 }
  0xaa   : > { %559 = vmatprep.mubr.bf16.mxu0 %v6705_v1  ;;  %5965 = vmatprep.mubr.msk.bf16.mxu1 %vm6706_vm0, %v6704_v0  ;;  %v728_v51 = vpop.permute.xlu0 %727  ;;  %v730_v56 = vpop.permute.xlu1 %729 }
  0xab   : > { %5662 = vmatprep.subr.msk.bf16.mxu0 %vm204_vm2, %v623_v44  ;;  %5969 = vmatprep.subr.bf16.mxu1 %v6704_v0  ;;  %v733_v54 = vsel %vm731_vm7, %v726_v50, %v728_v51  ;;  %v734_v58 = vsel %vm731_vm7, %v728_v51, %v730_v56  ;;  %v5681_v51 = vld [vmem:[%s7761_s1 + $0x12] sm:$0x3] }
  0xac   : > { %2159 = vrot.lane.b32.xlu1 %v6802_v7, %s6724_s11  ;;  %2263 = vrot.lane.b32.xlu0 %v6796_v5, %s6725_s15  ;;  %v745_v62 = vsel %vm204_vm2, %v734_v58, 0  ;;  %s6746_s11 = smov 13  }
  0xae   : > { %v834_v55 = vpop.permute.xlu0 %833  ;;  %v836_v60 = vpop.permute.xlu1 %835 }
  0xaf   : > { %v842_v9 = vsel %vm841_vm8, %v834_v55, %v836_v60 }
  0xb0   : > { %2265 = vrot.lane.b32.xlu1 %v6799_v6, %s6725_s15  ;;  %2267 = vrot.lane.b32.xlu0 %v6794_v4, %s6725_s15  ;;  %v849_v15 = vsel %vm204_vm2, %v842_v9, 0 }
  0xb2   : > { %v838_v61 = vpop.permute.xlu0 %837  ;;  %v840_v8 = vpop.permute.xlu1 %839 }
  0xb3   : > { %v843_v2 = vsel %vm841_vm8, %v836_v60, %v838_v61  ;;  %v844_v10 = vsel %vm841_vm8, %v838_v61, %v840_v8  ;;  %v5685_v61 = vld [vmem:[%s7761_s1 + $0x14] sm:$0x3] }
  0xb4   : > { %5659 = vmatmul.mubr.msk.bf16.vlgmr.msra.gmra.mrb[0].mxu0 %vm200_vm3, %v5657_v49  ;;  %5966 = vmatmul.mubr.msk.bf16.vlgmr.msra.gmra.mrb[0].mxu1 %vm200_vm3, %v5657_v49  ;;  %v855_v14 = vsel %vm204_vm2, %v844_v10, 0 }
  0xb5   : > { %638 = vmatpush1.bf16.msra.mxu0 %v629_v53  ;;  %5970 = vmatpush3.bf16.msra.mxu1 %v635_v52 }
  0xb6   : > { %669 = vmatprep.mubr.bf16.mxu0 %v6705_v1  ;;  %5971 = vmatprep.mubr.msk.bf16.mxu1 %vm6706_vm0, %v6704_v0  ;;  %v944_v3 = vpop.permute.xlu0 %943  ;;  %v946_v12 = vpop.permute.xlu1 %945 }
  0xb7   : > { %5666 = vmatprep.subr.msk.bf16.mxu0 %vm204_vm2, %v733_v54  ;;  %5975 = vmatprep.subr.bf16.mxu1 %v6704_v0  ;;  %v952_v19 = vsel %vm951_vm9, %v944_v3, %v946_v12 }
  0xb8   : > { %2269 = vrot.lane.b32.xlu1 %v6802_v7, %s6725_s15  ;;  %2373 = vrot.lane.b32.xlu0 %v6796_v5, %s6726_s19  ;;  %v959_v25 = vsel %vm204_vm2, %v952_v19, 0  ;;  %s6747_s15 = smov 12  }
  0xba   : > { %v948_v13 = vpop.permute.xlu0 %947  ;;  %v950_v18 = vpop.permute.xlu1 %949 }
  0xbb   : > { %v953_v16 = vsel %vm951_vm9, %v946_v12, %v948_v13  ;;  %v954_v20 = vsel %vm951_vm9, %v948_v13, %v950_v18  ;;  %v5689_v13 = vld [vmem:[%s7761_s1 + $0x16] sm:$0x3]  ;;  %vm2051_vm9 = vcmask 662528  }
  0xbc   : > { %2375 = vrot.lane.b32.xlu1 %v6799_v6, %s6726_s19  ;;  %2377 = vrot.lane.b32.xlu0 %v6794_v4, %s6726_s19  ;;  %v965_v24 = vsel %vm204_vm2, %v954_v20, 0 }
  0xbe   : > { %v1054_v17 = vpop.permute.xlu0 %1053  ;;  %v1056_v22 = vpop.permute.xlu1 %1055 }
  0xbf   : > { %v1062_v29 = vsel %vm1061_vm10, %v1054_v17, %v1056_v22 }
  0xc0   : > { %5663 = vmatmul.mubr.msk.bf16.vlgmr.msra.gmra.mrb[0].mxu0 %vm200_vm3, %v5661_v59  ;;  %5972 = vmatmul.mubr.msk.bf16.vlgmr.msra.gmra.mrb[0].mxu1 %vm200_vm3, %v5661_v59  ;;  %v1069_v35 = vsel %vm204_vm2, %v1062_v29, 0 }
  0xc1   : > { %748 = vmatpush1.bf16.msra.mxu0 %v739_v63  ;;  %5976 = vmatpush3.bf16.msra.mxu1 %v745_v62 }
  0xc2   : > { %779 = vmatprep.mubr.bf16.mxu0 %v6705_v1  ;;  %5977 = vmatprep.mubr.msk.bf16.mxu1 %vm6706_vm0, %v6704_v0  ;;  %v1058_v23 = vpop.permute.xlu0 %1057  ;;  %v1060_v28 = vpop.permute.xlu1 %1059 }
  0xc3   : > { %5670 = vmatprep.subr.msk.bf16.mxu0 %vm204_vm2, %v843_v2  ;;  %5981 = vmatprep.subr.bf16.mxu1 %v6704_v0  ;;  %v1063_v26 = vsel %vm1061_vm10, %v1056_v22, %v1058_v23  ;;  %v1064_v30 = vsel %vm1061_vm10, %v1058_v23, %v1060_v28  ;;  %v5693_v23 = vld [vmem:[%s7761_s1 + $0x18] sm:$0x3]  ;;  %vm2161_vm10 = vcmask 654336  }
  0xc4   : > { %2379 = vrot.lane.b32.xlu1 %v6802_v7, %s6726_s19  ;;  %2483 = vrot.lane.b32.xlu0 %v6796_v5, %s6727_s25  ;;  %v1075_v34 = vsel %vm204_vm2, %v1064_v30, 0 }
  0xc6   : > { %v1164_v27 = vpop.permute.xlu0 %1163  ;;  %v1166_v32 = vpop.permute.xlu1 %1165 }
  0xc7   : > { %v1172_v39 = vsel %vm1171_vm11, %v1164_v27, %v1166_v32 }
  0xc8   : > { %2485 = vrot.lane.b32.xlu1 %v6799_v6, %s6727_s25  ;;  %2487 = vrot.lane.b32.xlu0 %v6794_v4, %s6727_s25  ;;  %v1179_v45 = vsel %vm204_vm2, %v1172_v39, 0 }
  0xca   : > { %v1168_v33 = vpop.permute.xlu0 %1167  ;;  %v1170_v38 = vpop.permute.xlu1 %1169 }
  0xcb   : > { %v1173_v36 = vsel %vm1171_vm11, %v1166_v32, %v1168_v33  ;;  %v1174_v40 = vsel %vm1171_vm11, %v1168_v33, %v1170_v38  ;;  %v5697_v33 = vld [vmem:[%s7761_s1 + $0x1a] sm:$0x3]  ;;  %vm2271_vm11 = vcmask 646144  }
  0xcc   : > { %5667 = vmatmul.mubr.msk.bf16.vlgmr.msra.gmra.mrb[0].mxu0 %vm200_vm3, %v5665_v11  ;;  %5978 = vmatmul.mubr.msk.bf16.vlgmr.msra.gmra.mrb[0].mxu1 %vm200_vm3, %v5665_v11  ;;  %v1185_v44 = vsel %vm204_vm2, %v1174_v40, 0 }
  0xcd   : > { %858 = vmatpush1.bf16.msra.mxu0 %v849_v15  ;;  %5982 = vmatpush3.bf16.msra.mxu1 %v855_v14 }
  0xce   : > { %889 = vmatprep.mubr.bf16.mxu0 %v6705_v1  ;;  %5983 = vmatprep.mubr.msk.bf16.mxu1 %vm6706_vm0, %v6704_v0  ;;  %v1274_v37 = vpop.permute.xlu0 %1273  ;;  %v1276_v42 = vpop.permute.xlu1 %1275 }
  0xcf   : > { %5674 = vmatprep.subr.msk.bf16.mxu0 %vm204_vm2, %v953_v16  ;;  %5987 = vmatprep.subr.bf16.mxu1 %v6704_v0  ;;  %v1282_v49 = vsel %vm1281_vm12, %v1274_v37, %v1276_v42 }
  0xd0   : > { %2489 = vrot.lane.b32.xlu1 %v6802_v7, %s6727_s25  ;;  %2593 = vrot.lane.b32.xlu0 %v6796_v5, %s6728_s28  ;;  %v1289_v55 = vsel %vm204_vm2, %v1282_v49, 0 }
  0xd2   : > { %v1278_v43 = vpop.permute.xlu0 %1277  ;;  %v1280_v48 = vpop.permute.xlu1 %1279 }
  0xd3   : > { %v1283_v46 = vsel %vm1281_vm12, %v1276_v42, %v1278_v43  ;;  %v1284_v50 = vsel %vm1281_vm12, %v1278_v43, %v1280_v48  ;;  %v5701_v43 = vld [vmem:[%s7761_s1 + $0x1c] sm:$0x3]  ;;  %vm2381_vm12 = vcmask 637952  }
  0xd4   : > { %2595 = vrot.lane.b32.xlu1 %v6799_v6, %s6728_s28  ;;  %2597 = vrot.lane.b32.xlu0 %v6794_v4, %s6728_s28  ;;  %v1295_v54 = vsel %vm204_vm2, %v1284_v50, 0 }
  0xd6   : > { %v1384_v47 = vpop.permute.xlu0 %1383  ;;  %v1386_v52 = vpop.permute.xlu1 %1385 }
  0xd7   : > { %v1392_v59 = vsel %vm1391_vm13, %v1384_v47, %v1386_v52 }
  0xd8   : > { %5671 = vmatmul.mubr.msk.bf16.vlgmr.msra.gmra.mrb[0].mxu0 %vm200_vm3, %v5669_v21  ;;  %5984 = vmatmul.mubr.msk.bf16.vlgmr.msra.gmra.mrb[0].mxu1 %vm200_vm3, %v5669_v21  ;;  %v1399_v3 = vsel %vm204_vm2, %v1392_v59, 0 }
  0xd9   : > { %968 = vmatpush1.bf16.msra.mxu0 %v959_v25  ;;  %5988 = vmatpush3.bf16.msra.mxu1 %v965_v24 }
  0xda   : > { %999 = vmatprep.mubr.bf16.mxu0 %v6705_v1  ;;  %5989 = vmatprep.mubr.msk.bf16.mxu1 %vm6706_vm0, %v6704_v0  ;;  %v1388_v53 = vpop.permute.xlu0 %1387  ;;  %v1390_v58 = vpop.permute.xlu1 %1389 }
  0xdb   : > { %5678 = vmatprep.subr.msk.bf16.mxu0 %vm204_vm2, %v1063_v26  ;;  %5993 = vmatprep.subr.bf16.mxu1 %v6704_v0  ;;  %v1393_v56 = vsel %vm1391_vm13, %v1386_v52, %v1388_v53  ;;  %v1394_v60 = vsel %vm1391_vm13, %v1388_v53, %v1390_v58  ;;  %v5705_v53 = vld [vmem:[%s7761_s1 + $0x1e] sm:$0x3]  ;;  %vm2491_vm13 = vcmask 506880  }
  0xdc   : > { %2599 = vrot.lane.b32.xlu1 %v6802_v7, %s6728_s28  ;;  %2703 = vrot.lane.b32.xlu0 %v6796_v5, %s6729_s4  ;;  %v1405_v2 = vsel %vm204_vm2, %v1394_v60, 0 }
  0xde   : > { %v1494_v57 = vpop.permute.xlu0 %1493  ;;  %v1496_v62 = vpop.permute.xlu1 %1495 }
  0xdf   : > { %v1502_v11 = vsel %vm1501_vm14, %v1494_v57, %v1496_v62 }
  0xe0   : > { %2705 = vrot.lane.b32.xlu1 %v6799_v6, %s6729_s4  ;;  %2707 = vrot.lane.b32.xlu0 %v6794_v4, %s6729_s4  ;;  %v1509_v17 = vsel %vm204_vm2, %v1502_v11, 0 }
  0xe2   : > { %v1498_v63 = vpop.permute.xlu0 %1497  ;;  %v1500_v10 = vpop.permute.xlu1 %1499 }
  0xe3   : > { %v1503_v8 = vsel %vm1501_vm14, %v1496_v62, %v1498_v63  ;;  %v1504_v12 = vsel %vm1501_vm14, %v1498_v63, %v1500_v10  ;;  %v5709_v63 = vld [vmem:[%s7761_s1 + $0x20] sm:$0x3]  ;;  %vm2601_vm14 = vcmask 498688  }
  0xe4   : > { %5675 = vmatmul.mubr.msk.bf16.vlgmr.msra.gmra.mrb[0].mxu0 %vm200_vm3, %v5673_v31  ;;  %5990 = vmatmul.mubr.msk.bf16.vlgmr.msra.gmra.mrb[0].mxu1 %vm200_vm3, %v5673_v31  ;;  %v1515_v16 = vsel %vm204_vm2, %v1504_v12, 0 }
  0xe5   : > { %1078 = vmatpush1.bf16.msra.mxu0 %v1069_v35  ;;  %5994 = vmatpush3.bf16.msra.mxu1 %v1075_v34 }
  0xe6   : > { %1109 = vmatprep.mubr.bf16.mxu0 %v6705_v1  ;;  %5995 = vmatprep.mubr.msk.bf16.mxu1 %vm6706_vm0, %v6704_v0  ;;  %v1604_v9 = vpop.permute.xlu0 %1603  ;;  %v1606_v14 = vpop.permute.xlu1 %1605 }
  0xe7   : > { %5682 = vmatprep.subr.msk.bf16.mxu0 %vm204_vm2, %v1173_v36  ;;  %5999 = vmatprep.subr.bf16.mxu1 %v6704_v0  ;;  %v1612_v21 = vsel %vm1611_vm15, %v1604_v9, %v1606_v14 }
  0xe8   : > { %2709 = vrot.lane.b32.xlu1 %v6802_v7, %s6729_s4  ;;  %2813 = vrot.lane.b32.xlu0 %v6796_v5, %s6730_s7  ;;  %v1619_v27 = vsel %vm204_vm2, %v1612_v21, 0 }
  0xea   : > { %v1608_v15 = vpop.permute.xlu0 %1607  ;;  %v1610_v20 = vpop.permute.xlu1 %1609 }
  0xeb   : > { %v1613_v18 = vsel %vm1611_vm15, %v1606_v14, %v1608_v15  ;;  %v1614_v22 = vsel %vm1611_vm15, %v1608_v15, %v1610_v20  ;;  %v5713_v15 = vld [vmem:[%s7761_s1 + $0x22] sm:$0x3]  ;;  %vm2711_vm15 = vcmask 490496  }
  0xec   : > { %2815 = vrot.lane.b32.xlu1 %v6799_v6, %s6730_s7  ;;  %2817 = vrot.lane.b32.xlu0 %v6794_v4, %s6730_s7  ;;  %v1625_v26 = vsel %vm204_vm2, %v1614_v22, 0 }
  0xee   : > { %v1714_v19 = vpop.permute.xlu0 %1713  ;;  %v1716_v24 = vpop.permute.xlu1 %1715 }
  0xef   : > { %v1722_v31 = vsel %vm1721_vm1, %v1714_v19, %v1716_v24 }
  0xf0   : > { %5679 = vmatmul.mubr.msk.bf16.vlgmr.msra.gmra.mrb[0].mxu0 %vm200_vm3, %v5677_v41  ;;  %5996 = vmatmul.mubr.msk.bf16.vlgmr.msra.gmra.mrb[0].mxu1 %vm200_vm3, %v5677_v41  ;;  %v1729_v37 = vsel %vm204_vm2, %v1722_v31, 0 }
  0xf1   : > { %1188 = vmatpush1.bf16.msra.mxu0 %v1179_v45  ;;  %6000 = vmatpush3.bf16.msra.mxu1 %v1185_v44 }
  0xf2   : > { %1219 = vmatprep.mubr.bf16.mxu0 %v6705_v1  ;;  %6001 = vmatprep.mubr.msk.bf16.mxu1 %vm6706_vm0, %v6704_v0  ;;  %v1718_v25 = vpop.permute.xlu0 %1717  ;;  %v1720_v30 = vpop.permute.xlu1 %1719 }
  0xf3   : > { %5686 = vmatprep.subr.msk.bf16.mxu0 %vm204_vm2, %v1283_v46  ;;  %6005 = vmatprep.subr.bf16.mxu1 %v6704_v0  ;;  %v1723_v28 = vsel %vm1721_vm1, %v1716_v24, %v1718_v25  ;;  %v1724_v32 = vsel %vm1721_vm1, %v1718_v25, %v1720_v30  ;;  %v5717_v25 = vld [vmem:[%s7761_s1 + $0x24] sm:$0x3]  ;;  %vm2821_vm1 = vcmask 482304  }
  0xf4   : > { %2819 = vrot.lane.b32.xlu1 %v6802_v7, %s6730_s7  ;;  %2923 = vrot.lane.b32.xlu0 %v6796_v5, %s6731_s10  ;;  %v1735_v36 = vsel %vm204_vm2, %v1724_v32, 0 }
  0xf6   : > { %v1824_v29 = vpop.permute.xlu0 %1823  ;;  %v1826_v34 = vpop.permute.xlu1 %1825 }
  0xf7   : > { %v1832_v41 = vsel %vm1831_vm4, %v1824_v29, %v1826_v34 }
  0xf8   : > { %2925 = vrot.lane.b32.xlu1 %v6799_v6, %s6731_s10  ;;  %2927 = vrot.lane.b32.xlu0 %v6794_v4, %s6731_s10  ;;  %v1839_v47 = vsel %vm204_vm2, %v1832_v41, 0 }
  0xfa   : > { %v1828_v35 = vpop.permute.xlu0 %1827  ;;  %v1830_v40 = vpop.permute.xlu1 %1829 }
  0xfb   : > { %v1833_v38 = vsel %vm1831_vm4, %v1826_v34, %v1828_v35  ;;  %v1834_v42 = vsel %vm1831_vm4, %v1828_v35, %v1830_v40  ;;  %v5721_v35 = vld [vmem:[%s7761_s1 + $0x26] sm:$0x3]  ;;  %vm2931_vm4 = vcmask 474112  }
  0xfc   : > { %5683 = vmatmul.mubr.msk.bf16.vlgmr.msra.gmra.mrb[0].mxu0 %vm200_vm3, %v5681_v51  ;;  %6002 = vmatmul.mubr.msk.bf16.vlgmr.msra.gmra.mrb[0].mxu1 %vm200_vm3, %v5681_v51  ;;  %v1845_v46 = vsel %vm204_vm2, %v1834_v42, 0 }
  0xfd   : > { %1298 = vmatpush1.bf16.msra.mxu0 %v1289_v55  ;;  %6006 = vmatpush3.bf16.msra.mxu1 %v1295_v54 }
  0xfe   : > { %1329 = vmatprep.mubr.bf16.mxu0 %v6705_v1  ;;  %6007 = vmatprep.mubr.msk.bf16.mxu1 %vm6706_vm0, %v6704_v0  ;;  %v1934_v39 = vpop.permute.xlu0 %1933 }
  0xff   : > { %5690 = vmatprep.subr.msk.bf16.mxu0 %vm204_vm2, %v1393_v56  ;;  %6011 = vmatprep.subr.bf16.mxu1 %v6704_v0 }
 0x100   : > { %2929 = vrot.lane.b32.xlu1 %v6802_v7, %s6731_s10  ;;  %3033 = vrot.lane.b32.xlu0 %v6796_v5, %s6732_s14 }
 0x101   : > { %v1936_v44 = vpop.permute.xlu1 %1935 }
 0x102   : > { %v1942_v51 = vsel %vm1941_vm5, %v1934_v39, %v1936_v44 }
 0x103   : > { %v1949_v57 = vsel %vm204_vm2, %v1942_v51, 0 }
 0x104   : > { %3035 = vrot.lane.b32.xlu1 %v6799_v6, %s6732_s14  ;;  %3037 = vrot.lane.b32.xlu0 %v6794_v4, %s6732_s14 }
 0x105   : > { %v1938_v45 = vpop.permute.xlu0 %1937 }
 0x106   : > { %v1943_v48 = vsel %vm1941_vm5, %v1936_v44, %v1938_v45  ;;  %v1940_v50 = vpop.permute.xlu1 %1939 }
 0x107   : > { %v1944_v52 = vsel %vm1941_vm5, %v1938_v45, %v1940_v50  ;;  %v5725_v45 = vld [vmem:[%s7761_s1 + $0x28] sm:$0x3]  ;;  %vm3041_vm5 = vcmask 465920  }
 0x108   : > { %5687 = vmatmul.mubr.msk.bf16.vlgmr.msra.gmra.mrb[0].mxu0 %vm200_vm3, %v5685_v61  ;;  %6008 = vmatmul.mubr.msk.bf16.vlgmr.msra.gmra.mrb[0].mxu1 %vm200_vm3, %v5685_v61  ;;  %v1955_v56 = vsel %vm204_vm2, %v1944_v52, 0 }
 0x109   : > { %1408 = vmatpush1.bf16.msra.mxu0 %v1399_v3  ;;  %6012 = vmatpush3.bf16.msra.mxu1 %v1405_v2  ;;  %v2044_v49 = vpop.permute.xlu0 %2043 }
 0x10a   : > { %1439 = vmatprep.mubr.bf16.mxu0 %v6705_v1  ;;  %6013 = vmatprep.mubr.msk.bf16.mxu1 %vm6706_vm0, %v6704_v0  ;;  %v2046_v54 = vpop.permute.xlu1 %2045 }
 0x10b   : > { %5694 = vmatprep.subr.msk.bf16.mxu0 %vm204_vm2, %v1503_v8  ;;  %6017 = vmatprep.subr.bf16.mxu1 %v6704_v0  ;;  %v2052_v61 = vsel %vm2051_vm9, %v2044_v49, %v2046_v54 }
 0x10c   : > { %3039 = vrot.lane.b32.xlu1 %v6802_v7, %s6732_s14  ;;  %3143 = vrot.lane.b32.xlu0 %v6796_v5, %s6733_s18  ;;  %v2059_v9 = vsel %vm204_vm2, %v2052_v61, 0 }
 0x10d   : > { %v2048_v55 = vpop.permute.xlu0 %2047 }
 0x10e   : > { %v2053_v58 = vsel %vm2051_vm9, %v2046_v54, %v2048_v55 }
 0x110   : > { %3145 = vrot.lane.b32.xlu1 %v6799_v6, %s6733_s18  ;;  %3147 = vrot.lane.b32.xlu0 %v6794_v4, %s6733_s18 }
 0x112   : > { %v2154_v59 = vpop.permute.xlu0 %2153  ;;  %v2050_v60 = vpop.permute.xlu1 %2049 }
 0x113   : > { %v2054_v62 = vsel %vm2051_vm9, %v2048_v55, %v2050_v60  ;;  %v5729_v55 = vld [vmem:[%s7761_s1 + $0x2a] sm:$0x3]  ;;  %vm3151_vm9 = vcmask 457728  }
 0x114   : > { %5691 = vmatmul.mubr.msk.bf16.vlgmr.msra.gmra.mrb[0].mxu0 %vm200_vm3, %v5689_v13  ;;  %6014 = vmatmul.mubr.msk.bf16.vlgmr.msra.gmra.mrb[0].mxu1 %vm200_vm3, %v5689_v13  ;;  %v2065_v8 = vsel %vm204_vm2, %v2054_v62, 0 }
 0x115   : > { %1518 = vmatpush1.bf16.msra.mxu0 %v1509_v17  ;;  %6018 = vmatpush3.bf16.msra.mxu1 %v1515_v16 }
 0x116   : > { %1549 = vmatprep.mubr.bf16.mxu0 %v6705_v1  ;;  %6019 = vmatprep.mubr.msk.bf16.mxu1 %vm6706_vm0, %v6704_v0  ;;  %v2156_v2 = vpop.permute.xlu1 %2155  ;;  %v2158_v3 = vpop.permute.xlu0 %2157 }
 0x117   : > { %5698 = vmatprep.subr.msk.bf16.mxu0 %vm204_vm2, %v1613_v18  ;;  %6023 = vmatprep.subr.bf16.mxu1 %v6704_v0  ;;  %v2163_v10 = vsel %vm2161_vm10, %v2156_v2, %v2158_v3  ;;  %v2162_v13 = vsel %vm2161_vm10, %v2154_v59, %v2156_v2 }
 0x118   : > { %3149 = vrot.lane.b32.xlu1 %v6802_v7, %s6733_s18  ;;  %3253 = vrot.lane.b32.xlu0 %v6796_v5, %s6734_s24  ;;  %v2169_v19 = vsel %vm204_vm2, %v2162_v13, 0 }
 0x11c   : > { %3255 = vrot.lane.b32.xlu1 %v6799_v6, %s6734_s24  ;;  %3257 = vrot.lane.b32.xlu0 %v6794_v4, %s6734_s24 }
 0x11e   : > { %v2264_v11 = vpop.permute.xlu0 %2263  ;;  %v2160_v12 = vpop.permute.xlu1 %2159 }
 0x11f   : > { %v2164_v14 = vsel %vm2161_vm10, %v2158_v3, %v2160_v12  ;;  %v5733_v3 = vld [vmem:[%s7761_s1 + $0x2c] sm:$0x3]  ;;  %vm3261_vm10 = vcmask 326656  }
 0x120   : > { %5695 = vmatmul.mubr.msk.bf16.vlgmr.msra.gmra.mrb[0].mxu0 %vm200_vm3, %v5693_v23  ;;  %6020 = vmatmul.mubr.msk.bf16.vlgmr.msra.gmra.mrb[0].mxu1 %vm200_vm3, %v5693_v23  ;;  %v2175_v18 = vsel %vm204_vm2, %v2164_v14, 0 }
 0x121   : > { %1628 = vmatpush1.bf16.msra.mxu0 %v1619_v27  ;;  %6024 = vmatpush3.bf16.msra.mxu1 %v1625_v26 }
 0x122   : > { %1659 = vmatprep.mubr.bf16.mxu0 %v6705_v1  ;;  %6025 = vmatprep.mubr.msk.bf16.mxu1 %vm6706_vm0, %v6704_v0  ;;  %v2266_v16 = vpop.permute.xlu1 %2265  ;;  %v2268_v17 = vpop.permute.xlu0 %2267 }
 0x123   : > { %5702 = vmatprep.subr.msk.bf16.mxu0 %vm204_vm2, %v1723_v28  ;;  %6029 = vmatprep.subr.bf16.mxu1 %v6704_v0  ;;  %v2273_v20 = vsel %vm2271_vm11, %v2266_v16, %v2268_v17  ;;  %v2272_v23 = vsel %vm2271_vm11, %v2264_v11, %v2266_v16 }
 0x124   : > { %3259 = vrot.lane.b32.xlu1 %v6802_v7, %s6734_s24  ;;  %3363 = vrot.lane.b32.xlu0 %v6796_v5, %s6735_s27  ;;  %v2279_v29 = vsel %vm204_vm2, %v2272_v23, 0 }
 0x128   : > { %3365 = vrot.lane.b32.xlu1 %v6799_v6, %s6735_s27  ;;  %3367 = vrot.lane.b32.xlu0 %v6794_v4, %s6735_s27 }
 0x12a   : > { %v2374_v21 = vpop.permute.xlu0 %2373  ;;  %v2270_v22 = vpop.permute.xlu1 %2269 }
 0x12b   : > { %v2274_v24 = vsel %vm2271_vm11, %v2268_v17, %v2270_v22  ;;  %v5737_v17 = vld [vmem:[%s7761_s1 + $0x2e] sm:$0x3]  ;;  %vm3371_vm11 = vcmask 318464  }
 0x12c   : > { %5699 = vmatmul.mubr.msk.bf16.vlgmr.msra.gmra.mrb[0].mxu0 %vm200_vm3, %v5697_v33  ;;  %6026 = vmatmul.mubr.msk.bf16.vlgmr.msra.gmra.mrb[0].mxu1 %vm200_vm3, %v5697_v33  ;;  %v2285_v28 = vsel %vm204_vm2, %v2274_v24, 0 }
 0x12d   : > { %1738 = vmatpush1.bf16.msra.mxu0 %v1729_v37  ;;  %6030 = vmatpush3.bf16.msra.mxu1 %v1735_v36 }
 0x12e   : > { %1769 = vmatprep.mubr.bf16.mxu0 %v6705_v1  ;;  %6031 = vmatprep.mubr.msk.bf16.mxu1 %vm6706_vm0, %v6704_v0  ;;  %v2376_v26 = vpop.permute.xlu1 %2375  ;;  %v2378_v27 = vpop.permute.xlu0 %2377 }
 0x12f   : > { %5706 = vmatprep.subr.msk.bf16.mxu0 %vm204_vm2, %v1833_v38  ;;  %6035 = vmatprep.subr.bf16.mxu1 %v6704_v0  ;;  %v2383_v30 = vsel %vm2381_vm12, %v2376_v26, %v2378_v27  ;;  %v2382_v33 = vsel %vm2381_vm12, %v2374_v21, %v2376_v26 }
 0x130   : > { %3369 = vrot.lane.b32.xlu1 %v6802_v7, %s6735_s27  ;;  %3473 = vrot.lane.b32.xlu0 %v6796_v5, %s6736_s30  ;;  %v2389_v39 = vsel %vm204_vm2, %v2382_v33, 0 }
 0x134   : > { %3475 = vrot.lane.b32.xlu1 %v6799_v6, %s6736_s30  ;;  %3477 = vrot.lane.b32.xlu0 %v6794_v4, %s6736_s30 }
 0x136   : > { %v2484_v31 = vpop.permute.xlu0 %2483  ;;  %v2380_v32 = vpop.permute.xlu1 %2379 }
 0x137   : > { %v2384_v34 = vsel %vm2381_vm12, %v2378_v27, %v2380_v32  ;;  %v5741_v27 = vld [vmem:[%s7761_s1 + $0x30] sm:$0x3]  ;;  %vm3481_vm12 = vcmask 310272  }
 0x138   : > { %5703 = vmatmul.mubr.msk.bf16.vlgmr.msra.gmra.mrb[0].mxu0 %vm200_vm3, %v5701_v43  ;;  %6032 = vmatmul.mubr.msk.bf16.vlgmr.msra.gmra.mrb[0].mxu1 %vm200_vm3, %v5701_v43  ;;  %v2395_v38 = vsel %vm204_vm2, %v2384_v34, 0 }
 0x139   : > { %1848 = vmatpush1.bf16.msra.mxu0 %v1839_v47  ;;  %6036 = vmatpush3.bf16.msra.mxu1 %v1845_v46 }
 0x13a   : > { %1879 = vmatprep.mubr.bf16.mxu0 %v6705_v1  ;;  %6037 = vmatprep.mubr.msk.bf16.mxu1 %vm6706_vm0, %v6704_v0  ;;  %v2486_v36 = vpop.permute.xlu1 %2485  ;;  %v2488_v37 = vpop.permute.xlu0 %2487 }
 0x13b   : > { %5710 = vmatprep.subr.msk.bf16.mxu0 %vm204_vm2, %v1943_v48  ;;  %6041 = vmatprep.subr.bf16.mxu1 %v6704_v0  ;;  %v2493_v40 = vsel %vm2491_vm13, %v2486_v36, %v2488_v37  ;;  %v2492_v43 = vsel %vm2491_vm13, %v2484_v31, %v2486_v36 }
 0x13c   : > { %3479 = vrot.lane.b32.xlu1 %v6802_v7, %s6736_s30  ;;  %3583 = vrot.lane.b32.xlu0 %v6796_v5, %s6737_s6  ;;  %v2499_v49 = vsel %vm204_vm2, %v2492_v43, 0  ;;  %s6750_s30 = smov 119  }
 0x140   : > { %3585 = vrot.lane.b32.xlu1 %v6799_v6, %s6737_s6  ;;  %3587 = vrot.lane.b32.xlu0 %v6794_v4, %s6737_s6 }
 0x142   : > { %v2594_v41 = vpop.permute.xlu0 %2593  ;;  %v2490_v42 = vpop.permute.xlu1 %2489 }
 0x143   : > { %v2494_v44 = vsel %vm2491_vm13, %v2488_v37, %v2490_v42  ;;  %v5745_v37 = vld [vmem:[%s7761_s1 + $0x32] sm:$0x3]  ;;  %vm3591_vm13 = vcmask 302080  }
 0x144   : > { %5707 = vmatmul.mubr.msk.bf16.vlgmr.msra.gmra.mrb[0].mxu0 %vm200_vm3, %v5705_v53  ;;  %6038 = vmatmul.mubr.msk.bf16.vlgmr.msra.gmra.mrb[0].mxu1 %vm200_vm3, %v5705_v53  ;;  %v2505_v48 = vsel %vm204_vm2, %v2494_v44, 0 }
 0x145   : > { %1958 = vmatpush1.bf16.msra.mxu0 %v1949_v57  ;;  %6042 = vmatpush3.bf16.msra.mxu1 %v1955_v56 }
 0x146   : > { %1989 = vmatprep.mubr.bf16.mxu0 %v6705_v1  ;;  %6043 = vmatprep.mubr.msk.bf16.mxu1 %vm6706_vm0, %v6704_v0  ;;  %v2596_v46 = vpop.permute.xlu1 %2595  ;;  %v2598_v47 = vpop.permute.xlu0 %2597 }
 0x147   : > { %5714 = vmatprep.subr.msk.bf16.mxu0 %vm204_vm2, %v2053_v58  ;;  %6047 = vmatprep.subr.bf16.mxu1 %v6704_v0  ;;  %v2603_v50 = vsel %vm2601_vm14, %v2596_v46, %v2598_v47  ;;  %v2602_v53 = vsel %vm2601_vm14, %v2594_v41, %v2596_v46 }
 0x148   : > { %3589 = vrot.lane.b32.xlu1 %v6802_v7, %s6737_s6  ;;  %3693 = vrot.lane.b32.xlu0 %v6796_v5, %s6738_s9  ;;  %v2609_v59 = vsel %vm204_vm2, %v2602_v53, 0  ;;  %s6751_s6 = smov 118  }
 0x14c   : > { %3695 = vrot.lane.b32.xlu1 %v6799_v6, %s6738_s9  ;;  %3697 = vrot.lane.b32.xlu0 %v6794_v4, %s6738_s9 }
 0x14e   : > { %v2704_v51 = vpop.permute.xlu0 %2703  ;;  %v2600_v52 = vpop.permute.xlu1 %2599 }
 0x14f   : > { %v2604_v54 = vsel %vm2601_vm14, %v2598_v47, %v2600_v52  ;;  %vm3701_vm14 = vcmask 293888  }
 0x150   : > { %5711 = vmatmul.mubr.msk.bf16.vlgmr.msra.gmra.mrb[0].mxu0 %vm200_vm3, %v5709_v63  ;;  %6044 = vmatmul.mubr.msk.bf16.vlgmr.msra.gmra.mrb[0].mxu1 %vm200_vm3, %v5709_v63  ;;  %v2615_v58 = vsel %vm204_vm2, %v2604_v54, 0 }
 0x151   : > { %2068 = vmatpush1.bf16.msra.mxu0 %v2059_v9  ;;  %6048 = vmatpush3.bf16.msra.mxu1 %v2065_v8 }
 0x152   : > { %2099 = vmatprep.mubr.bf16.mxu0 %v6705_v1  ;;  %6049 = vmatprep.mubr.msk.bf16.mxu1 %vm6706_vm0, %v6704_v0  ;;  %v2706_v56 = vpop.permute.xlu1 %2705  ;;  %v2708_v57 = vpop.permute.xlu0 %2707 }
 0x153   : > { %5718 = vmatprep.subr.msk.bf16.mxu0 %vm204_vm2, %v2163_v10  ;;  %6053 = vmatprep.subr.bf16.mxu1 %v6704_v0  ;;  %v2713_v60 = vsel %vm2711_vm15, %v2706_v56, %v2708_v57  ;;  %v2712_v63 = vsel %vm2711_vm15, %v2704_v51, %v2706_v56 }
 0x154   : > { %3699 = vrot.lane.b32.xlu1 %v6802_v7, %s6738_s9  ;;  %3803 = vrot.lane.b32.xlu0 %v6796_v5, %s6739_s2  ;;  %v2719_v11 = vsel %vm204_vm2, %v2712_v63, 0 }
 0x158   : > { %3805 = vrot.lane.b32.xlu1 %v6799_v6, %s6739_s2  ;;  %3807 = vrot.lane.b32.xlu0 %v6794_v4, %s6739_s2 }
 0x15a   : > { %v2814_v61 = vpop.permute.xlu0 %2813  ;;  %v2710_v62 = vpop.permute.xlu1 %2709 }
 0x15b   : > { %v2714_v2 = vsel %vm2711_vm15, %v2708_v57, %v2710_v62  ;;  %vm3811_vm15 = vcmask 285696  }
 0x15c   : > { %5715 = vmatmul.mubr.msk.bf16.vlgmr.msra.gmra.mrb[0].mxu0 %vm200_vm3, %v5713_v15  ;;  %6050 = vmatmul.mubr.msk.bf16.vlgmr.msra.gmra.mrb[0].mxu1 %vm200_vm3, %v5713_v15  ;;  %v2725_v10 = vsel %vm204_vm2, %v2714_v2, 0 }
 0x15d   : > { %2178 = vmatpush1.bf16.msra.mxu0 %v2169_v19  ;;  %6054 = vmatpush3.bf16.msra.mxu1 %v2175_v18 }
 0x15e   : > { %2209 = vmatprep.mubr.bf16.mxu0 %v6705_v1  ;;  %6055 = vmatprep.mubr.msk.bf16.mxu1 %vm6706_vm0, %v6704_v0  ;;  %v2816_v8 = vpop.permute.xlu1 %2815  ;;  %v2818_v9 = vpop.permute.xlu0 %2817 }
 0x15f   : > { %5722 = vmatprep.subr.msk.bf16.mxu0 %vm204_vm2, %v2273_v20  ;;  %6059 = vmatprep.subr.bf16.mxu1 %v6704_v0  ;;  %v2823_v12 = vsel %vm2821_vm1, %v2816_v8, %v2818_v9  ;;  %v2822_v15 = vsel %vm2821_vm1, %v2814_v61, %v2816_v8 }
 0x160   : > { %3809 = vrot.lane.b32.xlu1 %v6802_v7, %s6739_s2  ;;  %3913 = vrot.lane.b32.xlu0 %v6796_v5, %s6740_s17  ;;  %v2829_v21 = vsel %vm204_vm2, %v2822_v15, 0 }
 0x164   : > { %3915 = vrot.lane.b32.xlu1 %v6799_v6, %s6740_s17  ;;  %3917 = vrot.lane.b32.xlu0 %v6794_v4, %s6740_s17 }
 0x166   : > { %v2924_v13 = vpop.permute.xlu0 %2923  ;;  %v2820_v14 = vpop.permute.xlu1 %2819 }
 0x167   : > { %v2824_v16 = vsel %vm2821_vm1, %v2818_v9, %v2820_v14  ;;  %vm3921_vm1 = vcmask 277504  }
 0x168   : > { %5719 = vmatmul.mubr.msk.bf16.vlgmr.msra.gmra.mrb[0].mxu0 %vm200_vm3, %v5717_v25  ;;  %6056 = vmatmul.mubr.msk.bf16.vlgmr.msra.gmra.mrb[0].mxu1 %vm200_vm3, %v5717_v25  ;;  %v2835_v20 = vsel %vm204_vm2, %v2824_v16, 0 }
 0x169   : > { %2288 = vmatpush1.bf16.msra.mxu0 %v2279_v29  ;;  %6060 = vmatpush3.bf16.msra.mxu1 %v2285_v28 }
 0x16a   : > { %2319 = vmatprep.mubr.bf16.mxu0 %v6705_v1  ;;  %6061 = vmatprep.mubr.msk.bf16.mxu1 %vm6706_vm0, %v6704_v0  ;;  %v2926_v18 = vpop.permute.xlu1 %2925  ;;  %v2928_v19 = vpop.permute.xlu0 %2927 }
 0x16b   : > { %5726 = vmatprep.subr.msk.bf16.mxu0 %vm204_vm2, %v2383_v30  ;;  %6065 = vmatprep.subr.bf16.mxu1 %v6704_v0  ;;  %v2933_v22 = vsel %vm2931_vm4, %v2926_v18, %v2928_v19  ;;  %v2932_v25 = vsel %vm2931_vm4, %v2924_v13, %v2926_v18 }
 0x16c   : > { %3919 = vrot.lane.b32.xlu1 %v6802_v7, %s6740_s17  ;;  %4023 = vrot.lane.b32.xlu0 %v6796_v5, %s6741_s23  ;;  %v2939_v30 = vsel %vm204_vm2, %v2932_v25, 0  ;;  %s6624_s17 = smul.u32 12, %s7765_s13 }
 0x16e   : > { %s170_s19 = scalar_lea.vmem %s7763_s3, %s6624_s17 }
 0x170   : > { %4025 = vrot.lane.b32.xlu1 %v6799_v6, %s6741_s23  ;;  %4027 = vrot.lane.b32.xlu0 %v6794_v4, %s6741_s23 }
 0x172   : > { %v3034_v23 = vpop.permute.xlu0 %3033  ;;  %v2930_v24 = vpop.permute.xlu1 %2929 }
 0x173   : > { %v2934_v26 = vsel %vm2931_vm4, %v2928_v19, %v2930_v24  ;;  %vm4031_vm4 = vcmask 146432  }
 0x174   : > { %5723 = vmatmul.mubr.msk.bf16.vlgmr.msra.gmra.mrb[0].mxu0 %vm200_vm3, %v5721_v35  ;;  %6062 = vmatmul.mubr.msk.bf16.vlgmr.msra.gmra.mrb[0].mxu1 %vm200_vm3, %v5721_v35  ;;  %v2945_v31 = vsel %vm204_vm2, %v2934_v26, 0 }
 0x175   : > { %2398 = vmatpush1.bf16.msra.mxu0 %v2389_v39  ;;  %6066 = vmatpush3.bf16.msra.mxu1 %v2395_v38 }
 0x176   : > { %2429 = vmatprep.mubr.bf16.mxu0 %v6705_v1  ;;  %6067 = vmatprep.mubr.msk.bf16.mxu1 %vm6706_vm0, %v6704_v0  ;;  %v3036_v28 = vpop.permute.xlu1 %3035  ;;  %v3038_v29 = vpop.permute.xlu0 %3037 }
 0x177   : > { %5730 = vmatprep.subr.msk.bf16.mxu0 %vm204_vm2, %v2493_v40  ;;  %6071 = vmatprep.subr.bf16.mxu1 %v6704_v0  ;;  %v3043_v32 = vsel %vm3041_vm5, %v3036_v28, %v3038_v29  ;;  %v3042_v35 = vsel %vm3041_vm5, %v3034_v23, %v3036_v28  ;;  %v4791_v40 = vld [vmem:[%s6790_s16 + $0x4] sm:$0xff] }
 0x178   : > { %4029 = vrot.lane.b32.xlu1 %v6802_v7, %s6741_s23  ;;  %4133 = vrot.lane.b32.xlu0 %v6796_v5, %s6742_s26  ;;  %v3049_v41 = vsel %vm204_vm2, %v3042_v35, 0  ;;  %v7366_v42 = vcombine.low %v4791_v40, %v4791_v40 }
 0x17c   : > { %4135 = vrot.lane.b32.xlu1 %v6799_v6, %s6742_s26  ;;  %4137 = vrot.lane.b32.xlu0 %v6794_v4, %s6742_s26 }
 0x17e   : > { %v3144_v33 = vpop.permute.xlu0 %3143  ;;  %v3040_v34 = vpop.permute.xlu1 %3039 }
 0x17f   : > { %v3044_v36 = vsel %vm3041_vm5, %v3038_v29, %v3040_v34  ;;  %vm4141_vm5 = vcmask 138240  }
 0x180   : > { %5727 = vmatmul.mubr.msk.bf16.vlgmr.msra.gmra.mrb[0].mxu0 %vm200_vm3, %v5725_v45  ;;  %6068 = vmatmul.mubr.msk.bf16.vlgmr.msra.gmra.mrb[0].mxu1 %vm200_vm3, %v5725_v45  ;;  %v7377_v45 = vcombine.high %v4791_v40, %v4791_v40 }
 0x181   : > { %2508 = vmatpush1.bf16.msra.mxu0 %v2499_v49  ;;  %6072 = vmatpush3.bf16.msra.mxu1 %v2505_v48 }
 0x182   : > { %2539 = vmatprep.mubr.bf16.mxu0 %v6705_v1  ;;  %6073 = vmatprep.mubr.msk.bf16.mxu1 %vm6706_vm0, %v6704_v0  ;;  %v3146_v38 = vpop.permute.xlu1 %3145  ;;  %v3148_v39 = vpop.permute.xlu0 %3147 }
 0x183   : > { %5734 = vmatprep.subr.msk.bf16.mxu0 %vm204_vm2, %v2603_v50  ;;  %6077 = vmatprep.subr.bf16.mxu1 %v6704_v0  ;;  %v3152_v47 = vsel %vm3151_vm9, %v3144_v33, %v3146_v38 }
 0x184   : > { %4139 = vrot.lane.b32.xlu1 %v6802_v7, %s6742_s26  ;;  %4243 = vrot.lane.b32.xlu0 %v6796_v5, %s6743_s29  ;;  %v3159_v51 = vsel %vm204_vm2, %v3152_v47, 0 }
 0x188   : > { %4245 = vrot.lane.b32.xlu1 %v6799_v6, %s6743_s29  ;;  %4247 = vrot.lane.b32.xlu0 %v6794_v4, %s6743_s29 }
 0x18a   : > { %v3254_v43 = vpop.permute.xlu0 %3253  ;;  %v3150_v44 = vpop.permute.xlu1 %3149 }
 0x18b   : > { %v3154_v48 = vsel %vm3151_vm9, %v3148_v39, %v3150_v44 }
 0x18c   : > { %5731 = vmatmul.mubr.msk.bf16.vlgmr.msra.gmra.mrb[0].mxu0 %vm200_vm3, %v5729_v55  ;;  %6074 = vmatmul.mubr.msk.bf16.vlgmr.msra.gmra.mrb[0].mxu1 %vm200_vm3, %v5729_v55  ;;  %v3165_v52 = vsel %vm204_vm2, %v3154_v48, 0 }
 0x18d   : > { %2618 = vmatpush1.bf16.msra.mxu0 %v2609_v59  ;;  %6078 = vmatpush3.bf16.msra.mxu1 %v2615_v58  ;;  %v5753_v59 = vld [vmem:[%s7761_s1 + $0x36] sm:$0x3] }
 0x18e   : > { %2649 = vmatprep.mubr.bf16.mxu0 %v6705_v1  ;;  %6079 = vmatprep.mubr.msk.bf16.mxu1 %vm6706_vm0, %v6704_v0  ;;  %v3256_v49 = vpop.permute.xlu1 %3255  ;;  %v3258_v50 = vpop.permute.xlu0 %3257 }
 0x18f   : > { %5738 = vmatprep.subr.msk.bf16.mxu0 %vm204_vm2, %v2713_v60  ;;  %6083 = vmatprep.subr.bf16.mxu1 %v6704_v0  ;;  %v3263_v53 = vsel %vm3261_vm10, %v3256_v49, %v3258_v50  ;;  %v3262_v57 = vsel %vm3261_vm10, %v3254_v43, %v3256_v49 }
 0x190   : > { %4249 = vrot.lane.b32.xlu1 %v6802_v7, %s6743_s29  ;;  %4353 = vrot.lane.b32.xlu0 %v6796_v5, %s6744_s5  ;;  %v3269_v62 = vsel %vm204_vm2, %v3262_v57, 0 }
 0x194   : > { %4355 = vrot.lane.b32.xlu1 %v6799_v6, %s6744_s5  ;;  %4357 = vrot.lane.b32.xlu0 %v6794_v4, %s6744_s5 }
 0x196   : > { %v3364_v55 = vpop.permute.xlu0 %3363  ;;  %v3260_v56 = vpop.permute.xlu1 %3259 }
 0x197   : > { %v3264_v58 = vsel %vm3261_vm10, %v3258_v50, %v3260_v56  ;;  %v5773_v50 = vld [vmem:[%s7761_s1 + $0x40] sm:$0x3]  ;;  %vm4361_vm10 = vcmask 121856  }
 0x198   : > { %5735 = vmatmul.mubr.msk.bf16.vlgmr.msra.gmra.mrb[0].mxu0 %vm200_vm3, %v5733_v3  ;;  %6080 = vmatmul.mubr.msk.bf16.vlgmr.msra.gmra.mrb[0].mxu1 %vm200_vm3, %v5733_v3  ;;  %v3275_v63 = vsel %vm204_vm2, %v3264_v58, 0  ;;  %v5777_v58 = vld [vmem:[%s7761_s1 + $0x42] sm:$0x3] }
 0x199   : > { %2728 = vmatpush1.bf16.msra.mxu0 %v2719_v11  ;;  %6084 = vmatpush3.bf16.msra.mxu1 %v2725_v10  ;;  %v5757_v11 = vld [vmem:[%s7761_s1 + $0x38] sm:$0x3] }
 0x19a   : > { %2759 = vmatprep.mubr.bf16.mxu0 %v6705_v1  ;;  %6085 = vmatprep.mubr.msk.bf16.mxu1 %vm6706_vm0, %v6704_v0  ;;  %v3366_v60 = vpop.permute.xlu1 %3365  ;;  %v3368_v61 = vpop.permute.xlu0 %3367 }
 0x19b   : > { %5742 = vmatprep.subr.msk.bf16.mxu0 %vm204_vm2, %v2823_v12  ;;  %6089 = vmatprep.subr.bf16.mxu1 %v6704_v0  ;;  %v3373_v2 = vsel %vm3371_vm11, %v3366_v60, %v3368_v61  ;;  %v3372_v9 = vsel %vm3371_vm11, %v3364_v55, %v3366_v60 }
 0x19c   : > { %4359 = vrot.lane.b32.xlu1 %v6802_v7, %s6744_s5  ;;  %4463 = vrot.lane.b32.xlu0 %v6796_v5, %s6745_s8  ;;  %v3379_v14 = vsel %vm204_vm2, %v3372_v9, 0  ;;  %v5781_v9 = vld [vmem:[%s7761_s1 + $0x44] sm:$0x3] }
 0x1a0   : > { %4465 = vrot.lane.b32.xlu1 %v6799_v6, %s6745_s8  ;;  %4467 = vrot.lane.b32.xlu0 %v6794_v4, %s6745_s8 }
 0x1a2   : > { %v3474_v3 = vpop.permute.xlu0 %3473  ;;  %v3370_v8 = vpop.permute.xlu1 %3369 }
 0x1a3   : > { %v3374_v10 = vsel %vm3371_vm11, %v3368_v61, %v3370_v8  ;;  %vm4471_vm11 = vcmask 113664  }
 0x1a4   : > { %5739 = vmatmul.mubr.msk.bf16.vlgmr.msra.gmra.mrb[0].mxu0 %vm200_vm3, %v5737_v17  ;;  %6086 = vmatmul.mubr.msk.bf16.vlgmr.msra.gmra.mrb[0].mxu1 %vm200_vm3, %v5737_v17  ;;  %v3385_v15 = vsel %vm204_vm2, %v3374_v10, 0 }
 0x1a5   : > { %2838 = vmatpush1.bf16.msra.mxu0 %v2829_v21  ;;  %6090 = vmatpush3.bf16.msra.mxu1 %v2835_v20  ;;  %v5761_v21 = vld [vmem:[%s7761_s1 + $0x3a] sm:$0x3] }
 0x1a6   : > { %2869 = vmatprep.mubr.bf16.mxu0 %v6705_v1  ;;  %6091 = vmatprep.mubr.msk.bf16.mxu1 %vm6706_vm0, %v6704_v0  ;;  %v3476_v12 = vpop.permute.xlu1 %3475  ;;  %v3478_v13 = vpop.permute.xlu0 %3477 }
 0x1a7   : > { %5746 = vmatprep.subr.msk.bf16.mxu0 %vm204_vm2, %v2933_v22  ;;  %6095 = vmatprep.subr.bf16.mxu1 %v6704_v0  ;;  %v3483_v16 = vsel %vm3481_vm12, %v3476_v12, %v3478_v13  ;;  %v3482_v19 = vsel %vm3481_vm12, %v3474_v3, %v3476_v12 }
 0x1a8   : > { %4469 = vrot.lane.b32.xlu1 %v6802_v7, %s6745_s8  ;;  %4573 = vrot.lane.b32.xlu0 %v6796_v5, %s6746_s11  ;;  %v3489_v24 = vsel %vm204_vm2, %v3482_v19, 0  ;;  %v5785_v19 = vld [vmem:[%s7761_s1 + $0x46] sm:$0x3] }
 0x1ac   : > { %4575 = vrot.lane.b32.xlu1 %v6799_v6, %s6746_s11  ;;  %4577 = vrot.lane.b32.xlu0 %v6794_v4, %s6746_s11 }
 0x1ae   : > { %v3584_v17 = vpop.permute.xlu0 %3583  ;;  %v3480_v18 = vpop.permute.xlu1 %3479 }
 0x1af   : > { %v3484_v20 = vsel %vm3481_vm12, %v3478_v13, %v3480_v18  ;;  %vm4581_vm12 = vcmask 105472  }
 0x1b0   : > { %5743 = vmatmul.mubr.msk.bf16.vlgmr.msra.gmra.mrb[0].mxu0 %vm200_vm3, %v5741_v27  ;;  %6092 = vmatmul.mubr.msk.bf16.vlgmr.msra.gmra.mrb[0].mxu1 %vm200_vm3, %v5741_v27  ;;  %v3495_v25 = vsel %vm204_vm2, %v3484_v20, 0 }
 0x1b1   : > { %2948 = vmatpush1.bf16.msra.mxu0 %v2939_v30  ;;  %6096 = vmatpush3.bf16.msra.mxu1 %v2945_v31  ;;  %v5765_v31 = vld [vmem:[%s7761_s1 + $0x3c] sm:$0x3] }
 0x1b2   : > { %2979 = vmatprep.mubr.bf16.mxu0 %v6705_v1  ;;  %6097 = vmatprep.mubr.msk.bf16.mxu1 %vm6706_vm0, %v6704_v0  ;;  %v3586_v22 = vpop.permute.xlu1 %3585  ;;  %v3588_v23 = vpop.permute.xlu0 %3587 }
 0x1b3   : > { %5750 = vmatprep.subr.msk.bf16.mxu0 %vm204_vm2, %v3043_v32  ;;  %6101 = vmatprep.subr.bf16.mxu1 %v6704_v0  ;;  %v3593_v26 = vsel %vm3591_vm13, %v3586_v22, %v3588_v23  ;;  %v3592_v29 = vsel %vm3591_vm13, %v3584_v17, %v3586_v22 }
 0x1b4   : > { %4579 = vrot.lane.b32.xlu1 %v6802_v7, %s6746_s11  ;;  %4683 = vrot.lane.b32.xlu0 %v6796_v5, %s6747_s15  ;;  %v3055_v5 = vsel %vm204_vm2, %v3044_v36, 0  ;;  %v3599_v34 = vsel %vm204_vm2, %v3592_v29, 0  ;;  %v5789_v29 = vld [vmem:[%s7761_s1 + $0x48] sm:$0x3] }
 0x1b8   : > { %4685 = vrot.lane.b32.xlu1 %v6799_v6, %s6747_s15  ;;  %4687 = vrot.lane.b32.xlu0 %v6794_v4, %s6747_s15  ;;  %v3153_v6 = vsel %vm3151_vm9, %v3146_v38, %v3148_v39  ;;  %v4792_v4 = vld [vmem:[%s6790_s16 + $0xc] sm:$0xff]  ;;  %vm4251_vm9 = vcmask 130048  }
 0x1b9   : > { %v7379_v46 = vcombine.low %v4792_v4, %v4792_v4  ;;  %v7395_v54 = vcombine.high %v4792_v4, %v4792_v4 }
 0x1ba   : > { %v3694_v27 = vpop.permute.xlu0 %3693  ;;  %v3590_v28 = vpop.permute.xlu1 %3589 }
 0x1bb   : > { %v3594_v30 = vsel %vm3591_vm13, %v3588_v23, %v3590_v28  ;;  %vm4691_vm13 = vcmask 97280  }
 0x1bc   : > { %5747 = vmatmul.mubr.msk.bf16.vlgmr.msra.gmra.mrb[0].mxu0 %vm200_vm3, %v5745_v37  ;;  %6098 = vmatmul.mubr.msk.bf16.vlgmr.msra.gmra.mrb[0].mxu1 %vm200_vm3, %v5745_v37  ;;  %v3605_v35 = vsel %vm204_vm2, %v3594_v30, 0 }
 0x1bd   : > { %3058 = vmatpush1.bf16.msra.mxu0 %v3049_v41  ;;  %6102 = vmatpush3.bf16.msra.mxu1 %v3055_v5  ;;  %v5769_v41 = vld [vmem:[%s7761_s1 + $0x3e] sm:$0x3] }
 0x1be   : > { %3089 = vmatprep.mubr.bf16.mxu0 %v6705_v1  ;;  %6103 = vmatprep.mubr.msk.bf16.mxu1 %vm6706_vm0, %v6704_v0  ;;  %v3696_v32 = vpop.permute.xlu1 %3695  ;;  %v3698_v33 = vpop.permute.xlu0 %3697 }
 0x1bf   : > { %5754 = vmatprep.subr.msk.bf16.mxu0 %vm204_vm2, %v3153_v6  ;;  %6107 = vmatprep.subr.bf16.mxu1 %v6704_v0  ;;  %v3703_v36 = vsel %vm3701_vm14, %v3696_v32, %v3698_v33  ;;  %v3702_v39 = vsel %vm3701_vm14, %v3694_v27, %v3696_v32 }
 0x1c0   : > { %4689 = vrot.lane.b32.xlu1 %v6802_v7, %s6747_s15  ;;  %4805 = vrot.lane.b32.xlu0 %v7366_v42, %s6710_s20  ;;  %v5749_v7 = vld [vmem:[%s7761_s1 + $0x34] sm:$0x3]  ;;  %v3709_v4 = vsel %vm204_vm2, %v3702_v39, 0  ;;  %v5793_v39 = vld [vmem:[%s7761_s1 + $0x4a] sm:$0x3] }
 0x1c4   : > { %4807 = vrot.lane.b32.xlu1 %v7377_v45, %s6710_s20  ;;  %4809 = vrot.lane.b32.xlu0 %v7379_v46, %s6710_s20 }
 0x1c6   : > { %v3804_v37 = vpop.permute.xlu0 %3803  ;;  %v3700_v38 = vpop.permute.xlu1 %3699 }
 0x1c7   : > { %v3704_v40 = vsel %vm3701_vm14, %v3698_v33, %v3700_v38  ;;  %vm5470_vm14 = vcmask 965632  }
 0x1c8   : > { %5751 = vmatmul.mubr.msk.bf16.vlgmr.msra.gmra.mrb[0].mxu0 %vm200_vm3, %v5749_v7  ;;  %6104 = vmatmul.mubr.msk.bf16.vlgmr.msra.gmra.mrb[0].mxu1 %vm200_vm3, %v5749_v7  ;;  %v3715_v43 = vsel %vm204_vm2, %v3704_v40, 0 }
 0x1c9   : > { %3168 = vmatpush1.bf16.msra.mxu0 %v3159_v51  ;;  %6108 = vmatpush3.bf16.msra.mxu1 %v3165_v52 }
 0x1ca   : > { %3199 = vmatprep.mubr.bf16.mxu0 %v6705_v1  ;;  %6109 = vmatprep.mubr.msk.bf16.mxu1 %vm6706_vm0, %v6704_v0  ;;  %v3806_v5 = vpop.permute.xlu1 %3805  ;;  %v3808_v6 = vpop.permute.xlu0 %3807 }
 0x1cb   : > { %5758 = vmatprep.subr.msk.bf16.mxu0 %vm204_vm2, %v3263_v53  ;;  %6113 = vmatprep.subr.bf16.mxu1 %v6704_v0  ;;  %v3813_v44 = vsel %vm3811_vm15, %v3806_v5, %v3808_v6  ;;  %v3812_v7 = vsel %vm3811_vm15, %v3804_v37, %v3806_v5 }
 0x1cc   : > { %4811 = vrot.lane.b32.xlu1 %v7395_v54, %s6710_s20  ;;  %4914 = vrot.lane.b32.xlu0 %v7366_v42, %s6711_s21  ;;  %v3819_v53 = vsel %vm204_vm2, %v3812_v7, 0  ;;  %v5797_v7 = vld [vmem:[%s7761_s1 + $0x4c] sm:$0x3] }
 0x1d0   : > { %4916 = vrot.lane.b32.xlu1 %v7377_v45, %s6711_s21  ;;  %4918 = vrot.lane.b32.xlu0 %v7379_v46, %s6711_s21 }
 0x1d2   : > { %v3914_v47 = vpop.permute.xlu0 %3913  ;;  %v3810_v48 = vpop.permute.xlu1 %3809 }
 0x1d3   : > { %v3814_v49 = vsel %vm3811_vm15, %v3808_v6, %v3810_v48 }
 0x1d4   : > { %5755 = vmatmul.mubr.msk.bf16.vlgmr.msra.gmra.mrb[0].mxu0 %vm200_vm3, %v5753_v59  ;;  %6110 = vmatmul.mubr.msk.bf16.vlgmr.msra.gmra.mrb[0].mxu1 %vm200_vm3, %v5753_v59  ;;  %v3825_v55 = vsel %vm204_vm2, %v3814_v49, 0 }
 0x1d5   : > { %3278 = vmatpush1.bf16.msra.mxu0 %v3269_v62  ;;  %6114 = vmatpush3.bf16.msra.mxu1 %v3275_v63 }
 0x1d6   : > { %3309 = vmatprep.mubr.bf16.mxu0 %v6705_v1  ;;  %6115 = vmatprep.mubr.msk.bf16.mxu1 %vm6706_vm0, %v6704_v0  ;;  %v3916_v51 = vpop.permute.xlu1 %3915  ;;  %v3918_v52 = vpop.permute.xlu0 %3917 }
 0x1d7   : > { %5762 = vmatprep.subr.msk.bf16.mxu0 %vm204_vm2, %v3373_v2  ;;  %6119 = vmatprep.subr.bf16.mxu1 %v6704_v0  ;;  %v3922_v56 = vsel %vm3921_vm1, %v3914_v47, %v3916_v51 }
 0x1d8   : > { %4920 = vrot.lane.b32.xlu1 %v7395_v54, %s6711_s21  ;;  %5023 = vrot.lane.b32.xlu0 %v7366_v42, %s6712_s22  ;;  %s6748_s21 = smov 121   ;;  %v3929_v61 = vsel %vm204_vm2, %v3922_v56, 0  ;;  %v5801_v56 = vld [vmem:[%s7761_s1 + $0x4e] sm:$0x3] }
 0x1dc   : > { %5025 = vrot.lane.b32.xlu1 %v7377_v45, %s6712_s22  ;;  %5027 = vrot.lane.b32.xlu0 %v7379_v46, %s6712_s22 }
 0x1e0   : > { %5759 = vmatmul.mubr.msk.bf16.vlgmr.msra.gmra.mrb[0].mxu0 %vm200_vm3, %v5757_v11  ;;  %6116 = vmatmul.mubr.msk.bf16.vlgmr.msra.gmra.mrb[0].mxu1 %vm200_vm3, %v5757_v11 }
 0x1e1   : > { %3388 = vmatpush1.bf16.msra.mxu0 %v3379_v14  ;;  %6120 = vmatpush3.bf16.msra.mxu1 %v3385_v15 }
 0x1e2   : > { %3419 = vmatprep.mubr.bf16.mxu0 %v6705_v1  ;;  %6121 = vmatprep.mubr.msk.bf16.mxu1 %vm6706_vm0, %v6704_v0 }
 0x1e3   : > { %5766 = vmatprep.subr.msk.bf16.mxu0 %vm204_vm2, %v3483_v16  ;;  %6125 = vmatprep.subr.bf16.mxu1 %v6704_v0 }
 0x1e4   : > { %5029 = vrot.lane.b32.xlu1 %v7395_v54, %s6712_s22  ;;  %5132 = vrot.lane.b32.xlu0 %v7366_v42, %s6748_s21  ;;  %s6749_s22 = smov 120  }
 0x1e8   : > { %5134 = vrot.lane.b32.xlu1 %v7377_v45, %s6748_s21  ;;  %5136 = vrot.lane.b32.xlu0 %v7379_v46, %s6748_s21 }
 0x1ec   : > { %5763 = vmatmul.mubr.msk.bf16.vlgmr.msra.gmra.mrb[0].mxu0 %vm200_vm3, %v5761_v21  ;;  %6122 = vmatmul.mubr.msk.bf16.vlgmr.msra.gmra.mrb[0].mxu1 %vm200_vm3, %v5761_v21 }
 0x1ed   : > { %3498 = vmatpush1.bf16.msra.mxu0 %v3489_v24  ;;  %6126 = vmatpush3.bf16.msra.mxu1 %v3495_v25 }
 0x1ee   : > { %3529 = vmatprep.mubr.bf16.mxu0 %v6705_v1  ;;  %6127 = vmatprep.mubr.msk.bf16.mxu1 %vm6706_vm0, %v6704_v0 }
 0x1ef   : > { %5770 = vmatprep.subr.msk.bf16.mxu0 %vm204_vm2, %v3593_v26  ;;  %6131 = vmatprep.subr.bf16.mxu1 %v6704_v0 }
 0x1f0   : > { %5138 = vrot.lane.b32.xlu1 %v7395_v54, %s6748_s21  ;;  %5242 = vrot.lane.b32.xlu0 %v7366_v42, %s6749_s22 }
 0x1f4   : > { %5244 = vrot.lane.b32.xlu1 %v7377_v45, %s6749_s22  ;;  %5246 = vrot.lane.b32.xlu0 %v7379_v46, %s6749_s22 }
 0x1f8   : > { %5767 = vmatmul.mubr.msk.bf16.vlgmr.msra.gmra.mrb[0].mxu0 %vm200_vm3, %v5765_v31  ;;  %6128 = vmatmul.mubr.msk.bf16.vlgmr.msra.gmra.mrb[0].mxu1 %vm200_vm3, %v5765_v31 }
 0x1f9   : > { %3608 = vmatpush1.bf16.msra.mxu0 %v3599_v34  ;;  %6132 = vmatpush3.bf16.msra.mxu1 %v3605_v35 }
 0x1fa   : > { %3639 = vmatprep.mubr.bf16.mxu0 %v6705_v1  ;;  %6133 = vmatprep.mubr.msk.bf16.mxu1 %vm6706_vm0, %v6704_v0 }
 0x1fb   : > { %5774 = vmatprep.subr.msk.bf16.mxu0 %vm204_vm2, %v3703_v36  ;;  %6137 = vmatprep.subr.bf16.mxu1 %v6704_v0 }
 0x1fc   : > { %5248 = vrot.lane.b32.xlu1 %v7395_v54, %s6749_s22  ;;  %5352 = vrot.lane.b32.xlu0 %v7366_v42, %s6750_s30 }
 0x200   : > { %5354 = vrot.lane.b32.xlu1 %v7377_v45, %s6750_s30  ;;  %5356 = vrot.lane.b32.xlu0 %v7379_v46, %s6750_s30 }
 0x204   : > { %5771 = vmatmul.mubr.msk.bf16.vlgmr.msra.gmra.mrb[0].mxu0 %vm200_vm3, %v5769_v41  ;;  %6134 = vmatmul.mubr.msk.bf16.vlgmr.msra.gmra.mrb[0].mxu1 %vm200_vm3, %v5769_v41 }
 0x205   : > { %3718 = vmatpush1.bf16.msra.mxu0 %v3709_v4  ;;  %6138 = vmatpush3.bf16.msra.mxu1 %v3715_v43 }
 0x206   : > { %3749 = vmatprep.mubr.bf16.mxu0 %v6705_v1  ;;  %6139 = vmatprep.mubr.msk.bf16.mxu1 %vm6706_vm0, %v6704_v0 }
 0x207   : > { %5778 = vmatprep.subr.msk.bf16.mxu0 %vm204_vm2, %v3813_v44  ;;  %6143 = vmatprep.subr.bf16.mxu1 %v6704_v0 }
 0x208   : > { %5358 = vrot.lane.b32.xlu1 %v7395_v54, %s6750_s30  ;;  %5462 = vrot.lane.b32.xlu0 %v7366_v42, %s6751_s6  ;;  %v3923_v42 = vsel %vm3921_vm1, %v3916_v51, %v3918_v52 }
 0x20c   : > { %5464 = vrot.lane.b32.xlu1 %v7377_v45, %s6751_s6  ;;  %5466 = vrot.lane.b32.xlu0 %v7379_v46, %s6751_s6  ;;  %v4024_v45 = vpop.permute.xlu0 %4023  ;;  %v3920_v46 = vpop.permute.xlu1 %3919 }
 0x20d   : > { %v3924_v57 = vsel %vm3921_vm1, %v3918_v52, %v3920_v46 }
 0x20e   : > { %v3935_v62 = vsel %vm204_vm2, %v3924_v57, 0 }
 0x210   : > { %5775 = vmatmul.mubr.msk.bf16.vlgmr.msra.gmra.mrb[0].mxu0 %vm200_vm3, %v5773_v50  ;;  %6140 = vmatmul.mubr.msk.bf16.vlgmr.msra.gmra.mrb[0].mxu1 %vm200_vm3, %v5773_v50  ;;  %v4026_v59 = vpop.permute.xlu1 %4025  ;;  %v4028_v60 = vpop.permute.xlu0 %4027 }
 0x211   : > { %3828 = vmatpush1.bf16.msra.mxu0 %v3819_v53  ;;  %6144 = vmatpush3.bf16.msra.mxu1 %v3825_v55  ;;  %v4032_v3 = vsel %vm4031_vm4, %v4024_v45, %v4026_v59 }
 0x212   : > { %3859 = vmatprep.mubr.bf16.mxu0 %v6705_v1  ;;  %6145 = vmatprep.mubr.msk.bf16.mxu1 %vm6706_vm0, %v6704_v0  ;;  %v4039_v12 = vsel %vm204_vm2, %v4032_v3, 0  ;;  %v5805_v3 = vld [vmem:[%s7761_s1 + $0x50] sm:$0x3] }
 0x213   : > { %5782 = vmatprep.subr.msk.bf16.mxu0 %vm204_vm2, %v3923_v42  ;;  %6149 = vmatprep.subr.bf16.mxu1 %v6704_v0 }
 0x214   : > { %5468 = vrot.lane.b32.xlu1 %v7395_v54, %s6751_s6  ;;  %v4033_v54 = vsel %vm4031_vm4, %v4026_v59, %v4028_v60  ;;  %v4134_v63 = vpop.permute.xlu0 %4133  ;;  %v4030_v2 = vpop.permute.xlu1 %4029 }
 0x215   : > { %v4034_v8 = vsel %vm4031_vm4, %v4028_v60, %v4030_v2 }
 0x216   : > { %v4045_v13 = vsel %vm204_vm2, %v4034_v8, 0 }
 0x218   : > { %v4136_v10 = vpop.permute.xlu1 %4135  ;;  %v4138_v11 = vpop.permute.xlu0 %4137 }
 0x219   : > { %v4143_v14 = vsel %vm4141_vm5, %v4136_v10, %v4138_v11  ;;  %v4142_v17 = vsel %vm4141_vm5, %v4134_v63, %v4136_v10 }
 0x21a   : > { %v4149_v22 = vsel %vm204_vm2, %v4142_v17, 0  ;;  %v5809_v17 = vld [vmem:[%s7761_s1 + $0x52] sm:$0x3] }
 0x21c   : > { %5779 = vmatmul.mubr.msk.bf16.vlgmr.msra.gmra.mrb[0].mxu0 %vm200_vm3, %v5777_v58  ;;  %6146 = vmatmul.mubr.msk.bf16.vlgmr.msra.gmra.mrb[0].mxu1 %vm200_vm3, %v5777_v58  ;;  %v4244_v15 = vpop.permute.xlu0 %4243  ;;  %v4140_v16 = vpop.permute.xlu1 %4139 }
 0x21d   : > { %3938 = vmatpush1.bf16.msra.mxu0 %v3929_v61  ;;  %6150 = vmatpush3.bf16.msra.mxu1 %v3935_v62  ;;  %v4144_v18 = vsel %vm4141_vm5, %v4138_v11, %v4140_v16 }
 0x21e   : > { %3969 = vmatprep.mubr.bf16.mxu0 %v6705_v1  ;;  %6151 = vmatprep.mubr.msk.bf16.mxu1 %vm6706_vm0, %v6704_v0  ;;  %v4155_v23 = vsel %vm204_vm2, %v4144_v18, 0 }
 0x21f   : > { %5786 = vmatprep.subr.msk.bf16.mxu0 %vm204_vm2, %v4033_v54  ;;  %6155 = vmatprep.subr.bf16.mxu1 %v6704_v0 }
 0x220   : > { %v4246_v20 = vpop.permute.xlu1 %4245  ;;  %v4248_v21 = vpop.permute.xlu0 %4247 }
 0x221   : > { %v4253_v24 = vsel %vm4251_vm9, %v4246_v20, %v4248_v21  ;;  %v4252_v27 = vsel %vm4251_vm9, %v4244_v15, %v4246_v20 }
 0x222   : > { %v4259_v32 = vsel %vm204_vm2, %v4252_v27, 0  ;;  %v5813_v27 = vld [vmem:[%s7761_s1 + $0x54] sm:$0x3] }
 0x224   : > { %v4354_v25 = vpop.permute.xlu0 %4353  ;;  %v4250_v26 = vpop.permute.xlu1 %4249 }
 0x225   : > { %v4254_v28 = vsel %vm4251_vm9, %v4248_v21, %v4250_v26 }
 0x226   : > { %v4265_v33 = vsel %vm204_vm2, %v4254_v28, 0 }
 0x228   : > { %5783 = vmatmul.mubr.msk.bf16.vlgmr.msra.gmra.mrb[0].mxu0 %vm200_vm3, %v5781_v9  ;;  %6152 = vmatmul.mubr.msk.bf16.vlgmr.msra.gmra.mrb[0].mxu1 %vm200_vm3, %v5781_v9  ;;  %v4356_v30 = vpop.permute.xlu1 %4355  ;;  %v4358_v31 = vpop.permute.xlu0 %4357 }
 0x229   : > { %4048 = vmatpush1.bf16.msra.mxu0 %v4039_v12  ;;  %6156 = vmatpush3.bf16.msra.mxu1 %v4045_v13  ;;  %v4363_v34 = vsel %vm4361_vm10, %v4356_v30, %v4358_v31  ;;  %v4362_v37 = vsel %vm4361_vm10, %v4354_v25, %v4356_v30 }
 0x22a   : > { %4079 = vmatprep.mubr.bf16.mxu0 %v6705_v1  ;;  %6157 = vmatprep.mubr.msk.bf16.mxu1 %vm6706_vm0, %v6704_v0  ;;  %v4369_v5 = vsel %vm204_vm2, %v4362_v37, 0  ;;  %v5821_v37 = vld [vmem:[%s7761_s1 + $0x56] sm:$0x3] }
 0x22b   : > { %5790 = vmatprep.subr.msk.bf16.mxu0 %vm204_vm2, %v4143_v14  ;;  %6161 = vmatprep.subr.bf16.mxu1 %v6704_v0 }
 0x22c   : > { %v4464_v35 = vpop.permute.xlu0 %4463  ;;  %v4360_v36 = vpop.permute.xlu1 %4359 }
 0x22d   : > { %v4364_v38 = vsel %vm4361_vm10, %v4358_v31, %v4360_v36 }
 0x22e   : > { %v4375_v6 = vsel %vm204_vm2, %v4364_v38, 0 }
 0x230   : > { %v4466_v40 = vpop.permute.xlu1 %4465  ;;  %v4468_v41 = vpop.permute.xlu0 %4467 }
 0x231   : > { %v4473_v4 = vsel %vm4471_vm11, %v4466_v40, %v4468_v41  ;;  %v4472_v47 = vsel %vm4471_vm11, %v4464_v35, %v4466_v40 }
 0x232   : > { %v4479_v51 = vsel %vm204_vm2, %v4472_v47, 0  ;;  %v5825_v47 = vld [vmem:[%s7761_s1 + $0x58] sm:$0x3] }
 0x234   : > { %5787 = vmatmul.mubr.msk.bf16.vlgmr.msra.gmra.mrb[0].mxu0 %vm200_vm3, %v5785_v19  ;;  %6158 = vmatmul.mubr.msk.bf16.vlgmr.msra.gmra.mrb[0].mxu1 %vm200_vm3, %v5785_v19  ;;  %v4574_v43 = vpop.permute.xlu0 %4573  ;;  %v4470_v44 = vpop.permute.xlu1 %4469 }
 0x235   : > { %4158 = vmatpush1.bf16.msra.mxu0 %v4149_v22  ;;  %6162 = vmatpush3.bf16.msra.mxu1 %v4155_v23  ;;  %v4474_v48 = vsel %vm4471_vm11, %v4468_v41, %v4470_v44 }
 0x236   : > { %4189 = vmatprep.mubr.bf16.mxu0 %v6705_v1  ;;  %6163 = vmatprep.mubr.msk.bf16.mxu1 %vm6706_vm0, %v6704_v0  ;;  %v4485_v52 = vsel %vm204_vm2, %v4474_v48, 0 }
 0x237   : > { %5794 = vmatprep.subr.msk.bf16.mxu0 %vm204_vm2, %v4253_v24  ;;  %6167 = vmatprep.subr.bf16.mxu1 %v6704_v0 }
 0x238   : > { %v4576_v49 = vpop.permute.xlu1 %4575  ;;  %v4578_v50 = vpop.permute.xlu0 %4577 }
 0x239   : > { %v4583_v53 = vsel %vm4581_vm12, %v4576_v49, %v4578_v50  ;;  %v4582_v45 = vsel %vm4581_vm12, %v4574_v43, %v4576_v49 }
 0x23a   : > { %v4589_v59 = vsel %vm204_vm2, %v4582_v45, 0  ;;  %v5829_v45 = vld [vmem:[%s7761_s1 + $0x5a] sm:$0x3] }
 0x23c   : > { %v4684_v55 = vpop.permute.xlu0 %4683  ;;  %v4580_v42 = vpop.permute.xlu1 %4579 }
 0x23d   : > { %v4584_v46 = vsel %vm4581_vm12, %v4578_v50, %v4580_v42 }
 0x23e   : > { %v4595_v60 = vsel %vm204_vm2, %v4584_v46, 0 }
 0x240   : > { %5791 = vmatmul.mubr.msk.bf16.vlgmr.msra.gmra.mrb[0].mxu0 %vm200_vm3, %v5789_v29  ;;  %6164 = vmatmul.mubr.msk.bf16.vlgmr.msra.gmra.mrb[0].mxu1 %vm200_vm3, %v5789_v29  ;;  %v4686_v57 = vpop.permute.xlu1 %4685  ;;  %v4688_v58 = vpop.permute.xlu0 %4687 }
 0x241   : > { %4268 = vmatpush1.bf16.msra.mxu0 %v4259_v32  ;;  %6168 = vmatpush3.bf16.msra.mxu1 %v4265_v33  ;;  %v4693_v61 = vsel %vm4691_vm13, %v4686_v57, %v4688_v58  ;;  %v4692_v63 = vsel %vm4691_vm13, %v4684_v55, %v4686_v57 }
 0x242   : > { %4299 = vmatprep.mubr.bf16.mxu0 %v6705_v1  ;;  %6169 = vmatprep.mubr.msk.bf16.mxu1 %vm6706_vm0, %v6704_v0  ;;  %v4699_v10 = vsel %vm204_vm2, %v4692_v63, 0  ;;  %v5833_v63 = vld [vmem:[%s7761_s1 + $0x5c] sm:$0x3] }
 0x243   : > { %5798 = vmatprep.subr.msk.bf16.mxu0 %vm204_vm2, %v4363_v34  ;;  %6173 = vmatprep.subr.bf16.mxu1 %v6704_v0 }
 0x244   : > { %v4806_v62 = vpop.permute.xlu0 %4805  ;;  %v4690_v54 = vpop.permute.xlu1 %4689 }
 0x245   : > { %v4694_v2 = vsel %vm4691_vm13, %v4688_v58, %v4690_v54 }
 0x246   : > { %v4705_v11 = vsel %vm204_vm2, %v4694_v2, 0 }
 0x248   : > { %v4808_v8 = vpop.permute.xlu1 %4807  ;;  %v4810_v9 = vpop.permute.xlu0 %4809 }
 0x249   : > { %v4814_v12 = vsel %vm621_vm6, %v4808_v8, %v4810_v9  ;;  %v4813_v15 = vsel %vm621_vm6, %v4806_v62, %v4808_v8 }
 0x24a   : > { %v4820_v20 = vsel %vm204_vm2, %v4813_v15, 0 }
 0x24c   : > { %5795 = vmatmul.mubr.msk.bf16.vlgmr.msra.gmra.mrb[0].mxu0 %vm200_vm3, %v5793_v39  ;;  %6170 = vmatmul.mubr.msk.bf16.vlgmr.msra.gmra.mrb[0].mxu1 %vm200_vm3, %v5793_v39  ;;  %v4915_v13 = vpop.permute.xlu0 %4914  ;;  %v4812_v14 = vpop.permute.xlu1 %4811 }
 0x24d   : > { %4378 = vmatpush1.bf16.msra.mxu0 %v4369_v5  ;;  %6174 = vmatpush3.bf16.msra.mxu1 %v4375_v6  ;;  %v4815_v16 = vsel %vm621_vm6, %v4810_v9, %v4812_v14  ;;  %vm5140_vm6 = vcmask 990208   ;;  %v5837_v14 = vld [vmem:[%s7761_s1 + $0x5e] sm:$0x3] }
 0x24e   : > { %4409 = vmatprep.mubr.bf16.mxu0 %v6705_v1  ;;  %6175 = vmatprep.mubr.msk.bf16.mxu1 %vm6706_vm0, %v6704_v0  ;;  %v4826_v21 = vsel %vm204_vm2, %v4815_v16, 0 }
 0x24f   : > { %5802 = vmatprep.subr.msk.bf16.mxu0 %vm204_vm2, %v4473_v4  ;;  %6179 = vmatprep.subr.bf16.mxu1 %v6704_v0 }
 0x250   : > { %v4917_v18 = vpop.permute.xlu1 %4916  ;;  %v4919_v19 = vpop.permute.xlu0 %4918 }
 0x251   : > { %v4923_v22 = vsel %vm731_vm7, %v4917_v18, %v4919_v19  ;;  %v4922_v25 = vsel %vm731_vm7, %v4915_v13, %v4917_v18 }
 0x252   : > { %v4929_v30 = vsel %vm204_vm2, %v4922_v25, 0 }
 0x254   : > { %v5024_v23 = vpop.permute.xlu0 %5023  ;;  %v4921_v24 = vpop.permute.xlu1 %4920 }
 0x255   : > { %v4924_v26 = vsel %vm731_vm7, %v4919_v19, %v4921_v24  ;;  %vm5250_vm7 = vcmask 982016  }
 0x256   : > { %v4935_v31 = vsel %vm204_vm2, %v4924_v26, 0 }
 0x258   : > { %5799 = vmatmul.mubr.msk.bf16.vlgmr.msra.gmra.mrb[0].mxu0 %vm200_vm3, %v5797_v7  ;;  %6176 = vmatmul.mubr.msk.bf16.vlgmr.msra.gmra.mrb[0].mxu1 %vm200_vm3, %v5797_v7  ;;  %v5026_v28 = vpop.permute.xlu1 %5025  ;;  %v5028_v29 = vpop.permute.xlu0 %5027 }
 0x259   : > { %4488 = vmatpush1.bf16.msra.mxu0 %v4479_v51  ;;  %6180 = vmatpush3.bf16.msra.mxu1 %v4485_v52  ;;  %v5032_v32 = vsel %vm841_vm8, %v5026_v28, %v5028_v29  ;;  %v5031_v35 = vsel %vm841_vm8, %v5024_v23, %v5026_v28 }
 0x25a   : > { %4519 = vmatprep.mubr.bf16.mxu0 %v6705_v1  ;;  %6181 = vmatprep.mubr.msk.bf16.mxu1 %vm6706_vm0, %v6704_v0  ;;  %v5038_v40 = vsel %vm204_vm2, %v5031_v35, 0 }
 0x25b   : > { %5806 = vmatprep.subr.msk.bf16.mxu0 %vm204_vm2, %v4583_v53  ;;  %6185 = vmatprep.subr.bf16.mxu1 %v6704_v0 }
 0x25c   : > { %v5133_v33 = vpop.permute.xlu0 %5132  ;;  %v5030_v34 = vpop.permute.xlu1 %5029 }
 0x25d   : > { %v5033_v36 = vsel %vm841_vm8, %v5028_v29, %v5030_v34  ;;  %vm5360_vm8 = vcmask 973824  }
 0x25e   : > { %v5044_v41 = vsel %vm204_vm2, %v5033_v36, 0 }
 0x260   : > { %v5135_v38 = vpop.permute.xlu1 %5134  ;;  %v5137_v39 = vpop.permute.xlu0 %5136 }
 0x261   : > { %v5142_v5 = vsel %vm5140_vm6, %v5135_v38, %v5137_v39  ;;  %v5141_v43 = vsel %vm5140_vm6, %v5133_v33, %v5135_v38 }
 0x262   : > { %v5148_v49 = vsel %vm204_vm2, %v5141_v43, 0 }
 0x264   : > { %5803 = vmatmul.mubr.msk.bf16.vlgmr.msra.gmra.mrb[0].mxu0 %vm200_vm3, %v5801_v56  ;;  %6182 = vmatmul.mubr.msk.bf16.vlgmr.msra.gmra.mrb[0].mxu1 %vm200_vm3, %v5801_v56  ;;  %v5243_v6 = vpop.permute.xlu0 %5242  ;;  %v5139_v4 = vpop.permute.xlu1 %5138 }
 0x265   : > { %4598 = vmatpush1.bf16.msra.mxu0 %v4589_v59  ;;  %6186 = vmatpush3.bf16.msra.mxu1 %v4595_v60  ;;  %v5143_v44 = vsel %vm5140_vm6, %v5137_v39, %v5139_v4 }
 0x266   : > { %4629 = vmatprep.mubr.bf16.mxu0 %v6705_v1  ;;  %6187 = vmatprep.mubr.msk.bf16.mxu1 %vm6706_vm0, %v6704_v0  ;;  %v5154_v50 = vsel %vm204_vm2, %v5143_v44, 0 }
 0x267   : > { %5810 = vmatprep.subr.msk.bf16.mxu0 %vm204_vm2, %v4693_v61  ;;  %6191 = vmatprep.subr.bf16.mxu1 %v6704_v0 }
 0x268   : > { %v5245_v48 = vpop.permute.xlu1 %5244  ;;  %v5247_v7 = vpop.permute.xlu0 %5246 }
 0x269   : > { %v5252_v51 = vsel %vm5250_vm7, %v5245_v48, %v5247_v7  ;;  %v5251_v55 = vsel %vm5250_vm7, %v5243_v6, %v5245_v48 }
 0x26a   : > { %v5258_v57 = vsel %vm204_vm2, %v5251_v55, 0 }
 0x26e   : > { %v5353_v52 = vpop.permute.xlu0 %5352  ;;  %v5249_v53 = vpop.permute.xlu1 %5248 }
 0x26f   : > { %v5253_v42 = vsel %vm5250_vm7, %v5247_v7, %v5249_v53 }
 0x270   : > { %5807 = vmatmul.mubr.msk.bf16.vlgmr.msra.gmra.mrb[0].mxu0 %vm200_vm3, %v5805_v3  ;;  %6188 = vmatmul.mubr.msk.bf16.vlgmr.msra.gmra.mrb[0].mxu1 %vm200_vm3, %v5805_v3  ;;  %v5264_v58 = vsel %vm204_vm2, %v5253_v42, 0 }
 0x271   : > { %4708 = vmatpush1.bf16.msra.mxu0 %v4699_v10  ;;  %6192 = vmatpush3.bf16.msra.mxu1 %v4705_v11 }
 0x272   : > { %4739 = vmatprep.mubr.bf16.mxu0 %v6705_v1  ;;  %6193 = vmatprep.mubr.msk.bf16.mxu1 %vm6706_vm0, %v6704_v0  ;;  %v5355_v46 = vpop.permute.xlu1 %5354  ;;  %v5357_v56 = vpop.permute.xlu0 %5356 }
 0x273   : > { %5818 = vmatprep.subr.msk.bf16.mxu0 %vm204_vm2, %v4814_v12  ;;  %6197 = vmatprep.subr.bf16.mxu1 %v6704_v0  ;;  %v5362_v59 = vsel %vm5360_vm8, %v5355_v46, %v5357_v56  ;;  %v5361_v62 = vsel %vm5360_vm8, %v5353_v52, %v5355_v46 }
 0x274   : > { %v5368_v8 = vsel %vm204_vm2, %v5361_v62, 0 }
 0x27a   : > { %v5463_v60 = vpop.permute.xlu0 %5462  ;;  %v5359_v61 = vpop.permute.xlu1 %5358 }
 0x27b   : > { %v5363_v54 = vsel %vm5360_vm8, %v5357_v56, %v5359_v61 }
 0x27c   : > { %5811 = vmatmul.mubr.msk.bf16.vlgmr.msra.gmra.mrb[0].mxu0 %vm200_vm3, %v5809_v17  ;;  %6194 = vmatmul.mubr.msk.bf16.vlgmr.msra.gmra.mrb[0].mxu1 %vm200_vm3, %v5809_v17  ;;  %v5374_v9 = vsel %vm204_vm2, %v5363_v54, 0  ;;  %v5841_v17 = vld [vmem:[%s7761_s1 + $0x60] sm:$0x3] }
 0x27d   : > { %4829 = vmatpush1.bf16.msra.mxu0 %v4820_v20  ;;  %6198 = vmatpush3.bf16.msra.mxu1 %v4826_v21 }
 0x27e   : > { %4860 = vmatprep.mubr.bf16.mxu0 %v6705_v1  ;;  %6199 = vmatprep.mubr.msk.bf16.mxu1 %vm6706_vm0, %v6704_v0  ;;  %v5465_v2 = vpop.permute.xlu1 %5464  ;;  %v5467_v3 = vpop.permute.xlu0 %5466 }
 0x27f   : > { %5822 = vmatprep.subr.msk.bf16.mxu0 %vm204_vm2, %v4923_v22  ;;  %6203 = vmatprep.subr.bf16.mxu1 %v6704_v0  ;;  %v5472_v10 = vsel %vm5470_vm14, %v5465_v2, %v5467_v3  ;;  %v5471_v12 = vsel %vm5470_vm14, %v5463_v60, %v5465_v2 }
 0x280   : > { %v5478_v15 = vsel %vm204_vm2, %v5471_v12, 0 }
 0x286   : > { %v5469_v11 = vpop.permute.xlu1 %5468 }
 0x287   : > { %v5473_v13 = vsel %vm5470_vm14, %v5467_v3, %v5469_v11 }
 0x288   : > { %5819 = vmatmul.mubr.msk.bf16.vlgmr.msra.gmra.mrb[0].mxu0 %vm200_vm3, %v5813_v27  ;;  %6200 = vmatmul.mubr.msk.bf16.vlgmr.msra.gmra.mrb[0].mxu1 %vm200_vm3, %v5813_v27  ;;  %v5484_v16 = vsel %vm204_vm2, %v5473_v13, 0 }
 0x289   : > { %4938 = vmatpush1.bf16.msra.mxu0 %v4929_v30  ;;  %6204 = vmatpush3.bf16.msra.mxu1 %v4935_v31 }
 0x28a   : > { %4969 = vmatprep.mubr.bf16.mxu0 %v6705_v1  ;;  %6205 = vmatprep.mubr.msk.bf16.mxu1 %vm6706_vm0, %v6704_v0 }
 0x28b   : > { %5826 = vmatprep.subr.msk.bf16.mxu0 %vm204_vm2, %v5032_v32  ;;  %6209 = vmatprep.subr.bf16.mxu1 %v6704_v0 }
 0x294   : > { %5823 = vmatmul.mubr.msk.bf16.vlgmr.msra.gmra.mrb[0].mxu0 %vm200_vm3, %v5821_v37  ;;  %6206 = vmatmul.mubr.msk.bf16.vlgmr.msra.gmra.mrb[0].mxu1 %vm200_vm3, %v5821_v37 }
 0x295   : > { %5047 = vmatpush1.bf16.msra.mxu0 %v5038_v40  ;;  %6210 = vmatpush3.bf16.msra.mxu1 %v5044_v41 }
 0x296   : > { %5078 = vmatprep.mubr.bf16.mxu0 %v6705_v1  ;;  %6211 = vmatprep.mubr.msk.bf16.mxu1 %vm6706_vm0, %v6704_v0 }
 0x297   : > { %5830 = vmatprep.subr.msk.bf16.mxu0 %vm204_vm2, %v5142_v5  ;;  %6215 = vmatprep.subr.bf16.mxu1 %v6704_v0 }
 0x2a0   : > { %5827 = vmatmul.mubr.msk.bf16.vlgmr.msra.gmra.mrb[0].mxu0 %vm200_vm3, %v5825_v47  ;;  %6212 = vmatmul.mubr.msk.bf16.vlgmr.msra.gmra.mrb[0].mxu1 %vm200_vm3, %v5825_v47 }
 0x2a1   : > { %5157 = vmatpush1.bf16.msra.mxu0 %v5148_v49  ;;  %6216 = vmatpush3.bf16.msra.mxu1 %v5154_v50 }
 0x2a2   : > { %5188 = vmatprep.mubr.bf16.mxu0 %v6705_v1  ;;  %6217 = vmatprep.mubr.msk.bf16.mxu1 %vm6706_vm0, %v6704_v0 }
 0x2a3   : > { %5834 = vmatprep.subr.msk.bf16.mxu0 %vm204_vm2, %v5252_v51  ;;  %6221 = vmatprep.subr.bf16.mxu1 %v6704_v0 }
 0x2ac   : > { %5831 = vmatmul.mubr.msk.bf16.vlgmr.msra.gmra.mrb[0].mxu0 %vm200_vm3, %v5829_v45  ;;  %6218 = vmatmul.mubr.msk.bf16.vlgmr.msra.gmra.mrb[0].mxu1 %vm200_vm3, %v5829_v45 }
 0x2ad   : > { %5267 = vmatpush1.bf16.msra.mxu0 %v5258_v57  ;;  %6222 = vmatpush3.bf16.msra.mxu1 %v5264_v58 }
 0x2ae   : > { %5298 = vmatprep.mubr.bf16.mxu0 %v6705_v1  ;;  %6223 = vmatprep.mubr.msk.bf16.mxu1 %vm6706_vm0, %v6704_v0 }
 0x2af   : > { %5838 = vmatprep.subr.msk.bf16.mxu0 %vm204_vm2, %v5362_v59  ;;  %6227 = vmatprep.subr.bf16.mxu1 %v6704_v0 }
 0x2b8   : > { %5835 = vmatmul.mubr.msk.bf16.vlgmr.msra.gmra.mrb[0].mxu0 %vm200_vm3, %v5833_v63  ;;  %6224 = vmatmul.mubr.msk.bf16.vlgmr.msra.gmra.mrb[0].mxu1 %vm200_vm3, %v5833_v63 }
 0x2b9   : > { %5377 = vmatpush1.bf16.msra.mxu0 %v5368_v8  ;;  %6228 = vmatpush3.bf16.msra.mxu1 %v5374_v9 }
 0x2ba   : > { %5408 = vmatprep.mubr.bf16.mxu0 %v6705_v1  ;;  %6229 = vmatprep.mubr.msk.bf16.mxu1 %vm6706_vm0, %v6704_v0 }
 0x2bb   : > { %5842 = vmatprep.subr.msk.bf16.mxu0 %vm204_vm2, %v5472_v10  ;;  %6233 = vmatprep.subr.bf16.mxu1 %v6704_v0 }
 0x2c4   : > { %5839 = vmatmul.mubr.msk.bf16.vlgmr.msra.gmra.mrb[0].mxu0 %vm200_vm3, %v5837_v14  ;;  %6230 = vmatmul.mubr.msk.bf16.vlgmr.msra.gmra.mrb[0].mxu1 %vm200_vm3, %v5837_v14 }
 0x2c5   : > { %5487 = vmatpush1.bf16.msra.mxu0 %v5478_v15  ;;  %6234 = vmatpush3.bf16.msra.mxu1 %v5484_v16 }
 0x2c6   : > { %5518 = vmatprep.mubr.bf16.mxu0 %v6705_v1  ;;  %6235 = vmatprep.mubr.msk.bf16.mxu1 %vm6706_vm0, %v6704_v0 }
 0x2d0   : > { %5843 = vmatmul.mubr.msk.bf16.vlgmr.msra.gmra.mrb[0].mxu0 %vm200_vm3, %v5841_v17  ;;  %6236 = vmatmul.mubr.msk.bf16.vlgmr.msra.gmra.mrb[0].mxu1 %vm200_vm3, %v5841_v17 }
 0x3a3   : > { %v5520_v18 = vpop.f32.mrb[0].mxu0  ;;  %v5561_v19 = vpop.f32.mrb[0].mxu1 }
 0x3a4   : > { %6690 = vtanh.f32 %v5520_v18  ;;  %v5522_v20 = vpop.f32.mrb[1].mxu0  ;;  %v6237_v21 = vpop.f32.mrb[1].mxu1 }
 0x3a5   : > { %6692 = vtanh.f32 %v5561_v19  ;;  %v5524_v22 = vpop.f32.mrb[2].mxu0  ;;  %v5564_v1 = vpop.f32.mrb[2].mxu1 }
 0x3a6   : > { %6694 = vtanh.f32 %v5522_v20  ;;  %v5525_v23 = vpop.f32.mrb[3].mxu0  ;;  %v6238_v24 = vpop.f32.mrb[3].mxu1 }
 0x3ae   : > { %v6691_v0 = vpop.eup %6690 }
 0x3af   : > { %v6693_v25 = vpop.eup %6692 }
 0x3b0   : > { %v6695_v26 = vpop.eup %6694  ;;  %5578 = vst [vmem:[%s170_s19 + $0x8] sm:$0x7] %v6693_v25 }
 0x3b1   : > { %v5575_v27 = vcombine.low %v6691_v0, %v6695_v26 }
 0x3b3   : > { %5577 = vst [vmem:[%s170_s19] sm:$0x77] %v5575_v27 }
 0x3b4 PF: > { %s13_s12 = sadd.s32 1, %s6702_s12  }
 0x3b5   : > { %p10_p4 = scmp.ge.s32.totalorder %s13_s12, 4  }
 0x3b7   :  { %12 = sbr.rel (!%p10_p4) target bundleno = 1 (0x1), region = 110 }

</bundles_post_ra>
